<compile_context>
chip_gen: v7x
topology: tpu7x:2x2x1
jax: 0.10.0
libtpu: 0.0.40
codegen_flags: <defaults>
</compile_context>

<pallas_src>
import functools

import numpy as np
import jax
import jax.numpy as jnp
from jax.experimental import pallas as pl
from jax.experimental.pallas import tpu as pltpu

PAD = 128              # lane halo on each side of the shift scratch (keeps the main write lane-aligned)
MATMUL_IN_BF16 = False  # set True on v6e/v7x: bf16 MXU operands, f32 accumulation/elementwise


def _full_spec(shape):
    nd = len(shape)
    return pl.BlockSpec(shape, lambda i: (0,) * nd)


def _dot(a, b):
    if MATMUL_IN_BF16:
        a = a.astype(jnp.bfloat16)
        b = b.astype(jnp.bfloat16)
    return jnp.dot(a, b, preferred_element_type=jnp.float32)


# ---------------- host-precomputed constants (numpy, trace-time) ----------------

def _shift_masks_flat(n, h, w):
    """[9, n*h*w] f32; mask[k, p]=1 iff 3x3 tap k=(dy,dx) of flat position p stays inside the image."""
    hh, ww = np.meshgrid(np.arange(h), np.arange(w), indexing="ij")
    rows = []
    for dy in range(3):
        for dx in range(3):
            valid = ((hh + dy - 1 >= 0) & (hh + dy - 1 < h) &
                     (ww + dx - 1 >= 0) & (ww + dx - 1 < w))
            rows.append(np.tile(valid.reshape(h * w), n))
    return np.stack(rows, 0).astype(np.float32)


def _pool_subsample_T(n, h, w):
    """[n*h*w, n*ho*wo] 0/1 right-multiply operator selecting the stride-2 (pad=1, k=3) window centers."""
    ho, wo = (h - 1) // 2 + 1, (w - 1) // 2 + 1
    sel = np.zeros((n * h * w, n * ho * wo), np.float32)
    for b in range(n):
        for i in range(ho):
            for j in range(wo):
                sel[b * h * w + 2 * i * w + 2 * j, b * ho * wo + i * wo + j] = 1.0
    return sel


def _bilinear_matrix(in_size, out_size):
    # nn.UpsamplingBilinear2d => align_corners=True
    i = np.arange(out_size, dtype=np.float64)
    src = i * (in_size - 1) / max(out_size - 1, 1)
    lo = np.clip(np.floor(src).astype(np.int64), 0, max(in_size - 2, 0))
    frac = src - lo
    a = np.zeros((out_size, in_size), np.float64)
    a[np.arange(out_size), lo] += 1.0 - frac
    a[np.arange(out_size), np.minimum(lo + 1, in_size - 1)] += frac
    return a


def _upsample_T(n, hi, wi, ho, wo):
    """[n*hi*wi, n*ho*wo] bilinear (align_corners) upsample as a right-multiply operator."""
    u_hw = np.kron(_bilinear_matrix(hi, ho), _bilinear_matrix(wi, wo))   # [ho*wo, hi*wi]
    return np.kron(np.eye(n), u_hw).T.astype(np.float32)


# ----------------------------- fused Pallas kernel -----------------------------

def _fused_kernel(x_ref,
                  bn1s_ref, bn1b_ref, bn2s_ref, bn2b_ref, bn3s_ref, bn3b_ref,
                  w1_ref, w2_ref, w3_ref,
                  mh_bn_ref, mh_w_ref,
                  mcat_f_ref, mcat_h_ref, mcat_q_ref,
                  m9_f_ref, m9_h_ref,
                  pool1_ref, pool2_ref, up1_ref, up2_ref,
                  o_ref, sbuf, *, cfg):
    f32 = jnp.float32
    c, cm = cfg['c'], cfg['cm']
    m_f, m_h, m_q = cfg['m_full'], cfg['m_half'], cfg['m_quart']
    w_f, w_h, w_q = cfg['w_full'], cfg['w_half'], cfg['w_quart']

    # Zero only the two halo bands of the persistent shift scratch, once.
    sbuf[:, 0:PAD] = jnp.zeros((c, PAD), f32)
    sbuf[:, PAD + m_f:PAD + m_f + PAD] = jnp.zeros((c, PAD), f32)

    def shifted_taps(val, m, w, rows):
        """Write val [rows, m] at lane offset PAD; return the 9 (unmasked) 3x3-shifted windows."""
        sbuf[0:rows, PAD:PAD + m] = val
        taps = []
        for k in range(9):
            off = (k // 3 - 1) * w + (k % 3 - 1)
            taps.append(sbuf[0:rows, PAD + off:PAD + off + m])
        return taps

    def resblock(xv, b, mcat_ref, m, w):
        # Pre-activation bottleneck.  in_ch == out_ch, stride 1 => identity residual
        # (PyTorch's conv4 projection is never used in this configuration).
        out1 = jnp.maximum(xv * bn1s_ref[b] + bn1b_ref[b], 0.0)          # relu(bn1(x))
        y1 = _dot(w1_ref[b], out1)                                       # 1x1 conv
        h2 = jnp.maximum(y1 * bn2s_ref[b] + bn2b_ref[b], 0.0)            # relu(bn2)
        taps = shifted_taps(h2, m, w, cm)
        tapcat = jnp.concatenate(taps, axis=0) * mcat_ref[...]           # [9*cm, m], one mask mul
        y2 = _dot(w2_ref[b], tapcat)                                     # 3x3 conv as ONE K=9*cm matmul
        h3 = jnp.maximum(y2 * bn3s_ref[b] + bn3b_ref[b], 0.0)            # relu(bn3)
        y3 = _dot(w3_ref[b], h3)                                         # 1x1 conv
        return y3 + xv

    def maxpool(xv, m9_ref, sel_ref, m, w):
        # MaxPool 3x3 / stride 2 / pad 1: masked shift-max at full res, then center subsample.
        taps = shifted_taps(xv, m, w, c)
        best = None
        for k in range(9):
            t = jnp.where(m9_ref[k] != 0.0, taps[k], f32(-3.0e38))
            best = t if best is None else jnp.maximum(best, t)
        return _dot(best, sel_ref[...])

    x = x_ref[...]
    x1 = resblock(x, 0, mcat_f_ref, m_f, w_f)                  # first_residual_blocks
    t0 = resblock(x1, 1, mcat_f_ref, m_f, w_f)                 # trunk_branches[0]
    trunk = resblock(t0, 2, mcat_f_ref, m_f, w_f)              # trunk_branches[1]

    mp1 = maxpool(x1, m9_f_ref, pool1_ref, m_f, w_f)           # mpool1
    d1 = resblock(mp1, 3, mcat_h_ref, m_h, w_h)                # down_residual_blocks1
    skip1 = resblock(d1, 4, mcat_h_ref, m_h, w_h)              # skip1_connection_residual_block
    mp2 = maxpool(d1, m9_h_ref, pool2_ref, m_h, w_h)           # mpool2
    mid0 = resblock(mp2, 5, mcat_q_ref, m_q, w_q)              # middle_2r_blocks[0]
    mid1 = resblock(mid0, 6, mcat_q_ref, m_q, w_q)             # middle_2r_blocks[1]

    interp1 = _dot(mid1, up1_ref[...])                         # interpolation1
    out = interp1 + d1 + skip1
    u1 = resblock(out, 7, mcat_h_ref, m_h, w_h)                # up_residual_blocks1
    interp2 = _dot(u1, up2_ref[...])                           # interpolation2

    z0 = interp2 + trunk                                       # conv1_1_blocks (mask head)
    h1 = jnp.maximum(z0 * mh_bn_ref[0] + mh_bn_ref[1], 0.0)
    z1 = _dot(mh_w_ref[0], h1)
    h2 = jnp.maximum(z1 * mh_bn_ref[2] + mh_bn_ref[3], 0.0)
    z2 = _dot(mh_w_ref[1], h2)
    sig = 1.0 / (1.0 + jnp.exp(-z2))                           # exact sigmoid
    masked = (1.0 + sig) * trunk

    o_ref[...] = resblock(masked, 8, mcat_f_ref, m_f, w_f)     # last_blocks


# ----------------------------- module forward -----------------------------

def attention_module_stage1_forward(x, params):
    """x: [N, C, H, W] float32 (PyTorch NCHW layout)."""
    n, c, h, w = x.shape
    cm = c // 4
    h2p, w2p = (h - 1) // 2 + 1, (w - 1) // 2 + 1
    h4p, w4p = (h2p - 1) // 2 + 1, (w2p - 1) // 2 + 1
    m_full, m_half, m_quart = n * h * w, n * h2p * w2p, n * h4p * w4p

    cfg = dict(c=c, cm=cm, m_full=m_full, m_half=m_half, m_quart=m_quart,
               w_full=w, w_half=w2p, w_quart=w4p)

    mask_f = _shift_masks_flat(n, h, w)
    mask_h = _shift_masks_flat(n, h2p, w2p)
    mask_q = _shift_masks_flat(n, h4p, w4p)
    consts = [
        jnp.asarray(np.repeat(mask_f, cm, axis=0)),            # mcat_full  [9*cm, m_full]
        jnp.asarray(np.repeat(mask_h, cm, axis=0)),            # mcat_half
        jnp.asarray(np.repeat(mask_q, cm, axis=0)),            # mcat_quart
        jnp.asarray(mask_f[:, None, :]),                       # m9_full [9, 1, m_full]
        jnp.asarray(mask_h[:, None, :]),                       # m9_half
        jnp.asarray(_pool_subsample_T(n, h, w)),               # pool1 [m_full, m_half]
        jnp.asarray(_pool_subsample_T(n, h2p, w2p)),           # pool2 [m_half, m_quart]
        jnp.asarray(_upsample_T(n, h4p, w4p, h2p, w2p)),       # up1   [m_quart, m_half]
        jnp.asarray(_upsample_T(n, h2p, w2p, h, w)),           # up2   [m_half, m_full]
    ]

    x_cf = x.transpose(1, 0, 2, 3).reshape(c, m_full)          # channels-first, spatial on lanes
    args = [x_cf,
            params['bn1s'], params['bn1b'], params['bn2s'], params['bn2b'],
            params['bn3s'], params['bn3b'],
            params['w1'], params['w2'], params['w3'],
            params['mh_bn'], params['mh_w'],
            *consts]

    out_cf = pl.pallas_call(
        functools.partial(_fused_kernel, cfg=cfg),
        out_shape=jax.ShapeDtypeStruct((c, m_full), jnp.float32),
        grid=(1,),
        in_specs=[_full_spec(a.shape) for a in args],
        out_specs=_full_spec((c, m_full)),
        scratch_shapes=[pltpu.VMEM((c, m_full + 2 * PAD), jnp.float32)],
        compiler_params=pltpu.CompilerParams(dimension_semantics=("arbitrary",)),
    )(*args)
    return out_cf.reshape(c, n, h, w).transpose(1, 0, 2, 3)


# ----------------------------- parameter init -----------------------------

def _fold_bn(key, c):
    k1, k2, k3, k4 = jax.random.split(key, 4)
    gamma = 1.0 + 0.1 * jax.random.normal(k1, (c,), jnp.float32)
    beta = 0.1 * jax.random.normal(k2, (c,), jnp.float32)
    mean = 0.1 * jax.random.normal(k3, (c,), jnp.float32)
    var = 1.0 + 0.1 * jax.random.uniform(k4, (c,), jnp.float32)
    scale = gamma / jnp.sqrt(var + 1e-5)
    shift = beta - mean * scale
    return scale.reshape(c, 1), shift.reshape(c, 1)


def init_params(key, c, n_blocks=9):
    """Stacked channels-first parameters for the 9 ResidualBlocks + the mask head."""
    cm = c // 4
    bkeys = jax.random.split(key, n_blocks + 1)
    bn1s, bn1b, bn2s, bn2b, bn3s, bn3b, w1, w2, w3 = ([] for _ in range(9))
    for bk in bkeys[:-1]:
        ks = jax.random.split(bk, 6)
        s1, b1 = _fold_bn(ks[0], c)
        s2, b2 = _fold_bn(ks[1], cm)
        s3, b3 = _fold_bn(ks[2], cm)
        bn1s.append(s1); bn1b.append(b1)
        bn2s.append(s2); bn2b.append(b2)
        bn3s.append(s3); bn3b.append(b3)
        w1.append(0.1 * jax.random.normal(ks[3], (cm, c), jnp.float32))
        # 3x3 conv weight stored as [cm_out, 9*cm_in] matching the packed-tap operand rows (k*cm + ci)
        w9 = 0.1 * jax.random.normal(ks[4], (9, cm, cm), jnp.float32)     # [k, co, ci]
        w2.append(jnp.transpose(w9, (1, 0, 2)).reshape(cm, 9 * cm))
        w3.append(0.1 * jax.random.normal(ks[5], (c, cm), jnp.float32))
    mk = jax.random.split(bkeys[-1], 4)
    ms1, mb1 = _fold_bn(mk[0], c)
    ms2, mb2 = _fold_bn(mk[1], c)
    return dict(
        bn1s=jnp.stack(bn1s), bn1b=jnp.stack(bn1b),
        bn2s=jnp.stack(bn2s), bn2b=jnp.stack(bn2b),
        bn3s=jnp.stack(bn3s), bn3b=jnp.stack(bn3b),
        w1=jnp.stack(w1), w2=jnp.stack(w2), w3=jnp.stack(w3),
        mh_bn=jnp.stack([ms1, mb1, ms2, mb2]),
        mh_w=jnp.stack([0.1 * jax.random.normal(mk[2], (c, c), jnp.float32),
                        0.1 * jax.random.normal(mk[3], (c, c), jnp.float32)]),
    )


# ----------------------------- demo -----------------------------

if __name__ == "__main__":
    key = jax.random.PRNGKey(0)
    kx, kp = jax.random.split(key)
    N, C, H, W = 2, 16, 16, 16        # in_channels = out_channels = 16, size1=(16,16), size2=(8,8)
    x = jax.random.normal(kx, (N, C, H, W), jnp.float32)
    params = init_params(kp, C)

    fwd = jax.jit(attention_module_stage1_forward)
    out = fwd(x, params)
    jax.block_until_ready(out)
    assert out.shape == (N, C, H, W) and out.dtype == jnp.float32
    print("KERNEL_OK")
</pallas_src>

<mosaic_0001>
module attributes {stable_mosaic.version = 11 : i64} {
  func.func @_fused_kernel(%arg0: i32, %arg1: memref<16x512xf32, #tpu.memory_space<vmem>>, %arg2: memref<9x16x1xf32, #tpu.memory_space<vmem>>, %arg3: memref<9x16x1xf32, #tpu.memory_space<vmem>>, %arg4: memref<9x4x1xf32, #tpu.memory_space<vmem>>, %arg5: memref<9x4x1xf32, #tpu.memory_space<vmem>>, %arg6: memref<9x4x1xf32, #tpu.memory_space<vmem>>, %arg7: memref<9x4x1xf32, #tpu.memory_space<vmem>>, %arg8: memref<9x4x16xf32, #tpu.memory_space<vmem>>, %arg9: memref<9x4x36xf32, #tpu.memory_space<vmem>>, %arg10: memref<9x16x4xf32, #tpu.memory_space<vmem>>, %arg11: memref<4x16x1xf32, #tpu.memory_space<vmem>>, %arg12: memref<2x16x16xf32, #tpu.memory_space<vmem>>, %arg13: memref<36x512xf32, #tpu.memory_space<vmem>>, %arg14: memref<36x128xf32, #tpu.memory_space<vmem>>, %arg15: memref<36x32xf32, #tpu.memory_space<vmem>>, %arg16: memref<9x1x512xf32, #tpu.memory_space<vmem>>, %arg17: memref<9x1x128xf32, #tpu.memory_space<vmem>>, %arg18: memref<512x128xf32, #tpu.memory_space<vmem>>, %arg19: memref<128x32xf32, #tpu.memory_space<vmem>>, %arg20: memref<32x128xf32, #tpu.memory_space<vmem>>, %arg21: memref<128x512xf32, #tpu.memory_space<vmem>>, %arg22: memref<16x512xf32, #tpu.memory_space<vmem>>, %arg23: memref<16x768xf32, #tpu.memory_space<vmem>>) attributes {dimension_semantics = [#tpu.dimension_semantics<arbitrary>], iteration_bounds = array<i64: 1>, scalar_prefetch = 0 : i64, scratch_operands = 1 : i64, tpu.core_type = #tpu.core_type<tc>, window_params = [{pipeline_mode = #tpu.pipeline_mode<synchronous>, transform_indices = @transform_0, window_bounds = array<i64: 16, 512>}, {pipeline_mode = #tpu.pipeline_mode<synchronous>, transform_indices = @transform_1, window_bounds = array<i64: 9, 16, 1>}, {pipeline_mode = #tpu.pipeline_mode<synchronous>, transform_indices = @transform_2, window_bounds = array<i64: 9, 16, 1>}, {pipeline_mode = #tpu.pipeline_mode<synchronous>, transform_indices = @transform_3, window_bounds = array<i64: 9, 4, 1>}, {pipeline_mode = #tpu.pipeline_mode<synchronous>, transform_indices = @transform_4, window_bounds = array<i64: 9, 4, 1>}, {pipeline_mode = #tpu.pipeline_mode<synchronous>, transform_indices = @transform_5, window_bounds = array<i64: 9, 4, 1>}, {pipeline_mode = #tpu.pipeline_mode<synchronous>, transform_indices = @transform_6, window_bounds = array<i64: 9, 4, 1>}, {pipeline_mode = #tpu.pipeline_mode<synchronous>, transform_indices = @transform_7, window_bounds = array<i64: 9, 4, 16>}, {pipeline_mode = #tpu.pipeline_mode<synchronous>, transform_indices = @transform_8, window_bounds = array<i64: 9, 4, 36>}, {pipeline_mode = #tpu.pipeline_mode<synchronous>, transform_indices = @transform_9, window_bounds = array<i64: 9, 16, 4>}, {pipeline_mode = #tpu.pipeline_mode<synchronous>, transform_indices = @transform_10, window_bounds = array<i64: 4, 16, 1>}, {pipeline_mode = #tpu.pipeline_mode<synchronous>, transform_indices = @transform_11, window_bounds = array<i64: 2, 16, 16>}, {pipeline_mode = #tpu.pipeline_mode<synchronous>, transform_indices = @transform_12, window_bounds = array<i64: 36, 512>}, {pipeline_mode = #tpu.pipeline_mode<synchronous>, transform_indices = @transform_13, window_bounds = array<i64: 36, 128>}, {pipeline_mode = #tpu.pipeline_mode<synchronous>, transform_indices = @transform_14, window_bounds = array<i64: 36, 32>}, {pipeline_mode = #tpu.pipeline_mode<synchronous>, transform_indices = @transform_15, window_bounds = array<i64: 9, 1, 512>}, {pipeline_mode = #tpu.pipeline_mode<synchronous>, transform_indices = @transform_16, window_bounds = array<i64: 9, 1, 128>}, {pipeline_mode = #tpu.pipeline_mode<synchronous>, transform_indices = @transform_17, window_bounds = array<i64: 512, 128>}, {pipeline_mode = #tpu.pipeline_mode<synchronous>, transform_indices = @transform_18, window_bounds = array<i64: 128, 32>}, {pipeline_mode = #tpu.pipeline_mode<synchronous>, transform_indices = @transform_19, window_bounds = array<i64: 32, 128>}, {pipeline_mode = #tpu.pipeline_mode<synchronous>, transform_indices = @transform_20, window_bounds = array<i64: 128, 512>}, {pipeline_mode = #tpu.pipeline_mode<synchronous>, transform_indices = @transform_21, window_bounds = array<i64: 16, 512>}]} {
    %cst = arith.constant 0.000000e+00 : f32
    %0 = vector.broadcast %cst : f32 to vector<16x128xf32>
    %c0 = arith.constant 0 : index
    %c0_0 = arith.constant 0 : index
    %1 = vector.load %arg23[%c0, %c0_0] : memref<16x768xf32, #tpu.memory_space<vmem>>, vector<16x128xf32>
    tpu.vector_store %arg23[%c0, %c0_0], %0 {strides = array<i32>} : memref<16x768xf32, #tpu.memory_space<vmem>>, vector<16x128xf32>,
    %cst_1 = arith.constant 0.000000e+00 : f32
    %2 = vector.broadcast %cst_1 : f32 to vector<16x128xf32>
    %c0_2 = arith.constant 0 : index
    %c640 = arith.constant 640 : index
    %3 = vector.load %arg23[%c0_2, %c640] : memref<16x768xf32, #tpu.memory_space<vmem>>, vector<16x128xf32>
    tpu.vector_store %arg23[%c0_2, %c640], %2 {strides = array<i32>} : memref<16x768xf32, #tpu.memory_space<vmem>>, vector<16x128xf32>,
    %c0_3 = arith.constant 0 : index
    %c0_4 = arith.constant 0 : index
    %4 = vector.load %arg1[%c0_3, %c0_4] : memref<16x512xf32, #tpu.memory_space<vmem>>, vector<16x512xf32>
    %c0_5 = arith.constant 0 : index
    %c0_6 = arith.constant 0 : index
    %c0_7 = arith.constant 0 : index
    %5 = vector.load %arg2[%c0_5, %c0_6, %c0_7] : memref<9x16x1xf32, #tpu.memory_space<vmem>>, vector<1x16x1xf32>
    %6 = vector.shape_cast %5 : vector<1x16x1xf32> to vector<16x1xf32>
    %7 = vector.broadcast %6 : vector<16x1xf32> to vector<16x512xf32>
    %8 = arith.mulf %4, %7 : vector<16x512xf32>
    %c0_8 = arith.constant 0 : index
    %c0_9 = arith.constant 0 : index
    %c0_10 = arith.constant 0 : index
    %9 = vector.load %arg3[%c0_8, %c0_9, %c0_10] : memref<9x16x1xf32, #tpu.memory_space<vmem>>, vector<1x16x1xf32>
    %10 = vector.shape_cast %9 : vector<1x16x1xf32> to vector<16x1xf32>
    %11 = vector.broadcast %10 : vector<16x1xf32> to vector<16x512xf32>
    %12 = arith.addf %8, %11 : vector<16x512xf32>
    %cst_11 = arith.constant 0.000000e+00 : f32
    %13 = vector.broadcast %cst_11 : f32 to vector<16x512xf32>
    %14 = arith.maximumf %12, %13 : vector<16x512xf32>
    %c0_12 = arith.constant 0 : index
    %c0_13 = arith.constant 0 : index
    %c0_14 = arith.constant 0 : index
    %15 = vector.load %arg8[%c0_12, %c0_13, %c0_14] : memref<9x4x16xf32, #tpu.memory_space<vmem>>, vector<1x4x16xf32>
    %16 = vector.shape_cast %15 : vector<1x4x16xf32> to vector<4x16xf32>
    %cst_15 = arith.constant dense<0.000000e+00> : vector<4x512xf32>
    %17 = tpu.matmul %16, %14, %cst_15 {dimension_numbers = #tpu.dot_dimension_numbers<[1], [0], [0], [1], [0, 0, 1, 1], [], []>} : vector<4x16xf32>, vector<16x512xf32>, vector<4x512xf32> -> vector<4x512xf32>
    %c0_16 = arith.constant 0 : index
    %c0_17 = arith.constant 0 : index
    %c0_18 = arith.constant 0 : index
    %18 = vector.load %arg4[%c0_16, %c0_17, %c0_18] : memref<9x4x1xf32, #tpu.memory_space<vmem>>, vector<1x4x1xf32>
    %19 = vector.shape_cast %18 : vector<1x4x1xf32> to vector<4x1xf32>
    %20 = vector.broadcast %19 : vector<4x1xf32> to vector<4x512xf32>
    %21 = arith.mulf %17, %20 : vector<4x512xf32>
    %c0_19 = arith.constant 0 : index
    %c0_20 = arith.constant 0 : index
    %c0_21 = arith.constant 0 : index
    %22 = vector.load %arg5[%c0_19, %c0_20, %c0_21] : memref<9x4x1xf32, #tpu.memory_space<vmem>>, vector<1x4x1xf32>
    %23 = vector.shape_cast %22 : vector<1x4x1xf32> to vector<4x1xf32>
    %24 = vector.broadcast %23 : vector<4x1xf32> to vector<4x512xf32>
    %25 = arith.addf %21, %24 : vector<4x512xf32>
    %cst_22 = arith.constant 0.000000e+00 : f32
    %26 = vector.broadcast %cst_22 : f32 to vector<4x512xf32>
    %27 = arith.maximumf %25, %26 : vector<4x512xf32>
    %c0_23 = arith.constant 0 : index
    %c128 = arith.constant 128 : index
    %28 = vector.load %arg23[%c0_23, %c128] : memref<16x768xf32, #tpu.memory_space<vmem>>, vector<4x512xf32>
    tpu.vector_store %arg23[%c0_23, %c128], %27 {strides = array<i32>} : memref<16x768xf32, #tpu.memory_space<vmem>>, vector<4x512xf32>,
    %c0_24 = arith.constant 0 : index
    %c111 = arith.constant 111 : index
    %29 = vector.load %arg23[%c0_24, %c111] : memref<16x768xf32, #tpu.memory_space<vmem>>, vector<4x512xf32>
    %c0_25 = arith.constant 0 : index
    %c112 = arith.constant 112 : index
    %30 = vector.load %arg23[%c0_25, %c112] : memref<16x768xf32, #tpu.memory_space<vmem>>, vector<4x512xf32>
    %c0_26 = arith.constant 0 : index
    %c113 = arith.constant 113 : index
    %31 = vector.load %arg23[%c0_26, %c113] : memref<16x768xf32, #tpu.memory_space<vmem>>, vector<4x512xf32>
    %c0_27 = arith.constant 0 : index
    %c127 = arith.constant 127 : index
    %32 = vector.load %arg23[%c0_27, %c127] : memref<16x768xf32, #tpu.memory_space<vmem>>, vector<4x512xf32>
    %c0_28 = arith.constant 0 : index
    %c128_29 = arith.constant 128 : index
    %33 = vector.load %arg23[%c0_28, %c128_29] : memref<16x768xf32, #tpu.memory_space<vmem>>, vector<4x512xf32>
    %c0_30 = arith.constant 0 : index
    %c129 = arith.constant 129 : index
    %34 = vector.load %arg23[%c0_30, %c129] : memref<16x768xf32, #tpu.memory_space<vmem>>, vector<4x512xf32>
    %c0_31 = arith.constant 0 : index
    %c143 = arith.constant 143 : index
    %35 = vector.load %arg23[%c0_31, %c143] : memref<16x768xf32, #tpu.memory_space<vmem>>, vector<4x512xf32>
    %c0_32 = arith.constant 0 : index
    %c144 = arith.constant 144 : index
    %36 = vector.load %arg23[%c0_32, %c144] : memref<16x768xf32, #tpu.memory_space<vmem>>, vector<4x512xf32>
    %c0_33 = arith.constant 0 : index
    %c145 = arith.constant 145 : index
    %37 = vector.load %arg23[%c0_33, %c145] : memref<16x768xf32, #tpu.memory_space<vmem>>, vector<4x512xf32>
    %38 = tpu.concatenate %29, %30, %31, %32, %33, %34, %35, %36, %37 in 0 : vector<4x512xf32>, vector<4x512xf32>, vector<4x512xf32>, vector<4x512xf32>, vector<4x512xf32>, vector<4x512xf32>, vector<4x512xf32>, vector<4x512xf32>, vector<4x512xf32> -> vector<36x512xf32>
    %c0_34 = arith.constant 0 : index
    %c0_35 = arith.constant 0 : index
    %39 = vector.load %arg13[%c0_34, %c0_35] : memref<36x512xf32, #tpu.memory_space<vmem>>, vector<36x512xf32>
    %40 = arith.mulf %38, %39 : vector<36x512xf32>
    %c0_36 = arith.constant 0 : index
    %c0_37 = arith.constant 0 : index
    %c0_38 = arith.constant 0 : index
    %41 = vector.load %arg9[%c0_36, %c0_37, %c0_38] : memref<9x4x36xf32, #tpu.memory_space<vmem>>, vector<1x4x36xf32>
    %42 = vector.shape_cast %41 : vector<1x4x36xf32> to vector<4x36xf32>
    %cst_39 = arith.constant dense<0.000000e+00> : vector<4x512xf32>
    %43 = tpu.matmul %42, %40, %cst_39 {dimension_numbers = #tpu.dot_dimension_numbers<[1], [0], [0], [1], [0, 0, 1, 1], [], []>} : vector<4x36xf32>, vector<36x512xf32>, vector<4x512xf32> -> vector<4x512xf32>
    %c0_40 = arith.constant 0 : index
    %c0_41 = arith.constant 0 : index
    %c0_42 = arith.constant 0 : index
    %44 = vector.load %arg6[%c0_40, %c0_41, %c0_42] : memref<9x4x1xf32, #tpu.memory_space<vmem>>, vector<1x4x1xf32>
    %45 = vector.shape_cast %44 : vector<1x4x1xf32> to vector<4x1xf32>
    %46 = vector.broadcast %45 : vector<4x1xf32> to vector<4x512xf32>
    %47 = arith.mulf %43, %46 : vector<4x512xf32>
    %c0_43 = arith.constant 0 : index
    %c0_44 = arith.constant 0 : index
    %c0_45 = arith.constant 0 : index
    %48 = vector.load %arg7[%c0_43, %c0_44, %c0_45] : memref<9x4x1xf32, #tpu.memory_space<vmem>>, vector<1x4x1xf32>
    %49 = vector.shape_cast %48 : vector<1x4x1xf32> to vector<4x1xf32>
    %50 = vector.broadcast %49 : vector<4x1xf32> to vector<4x512xf32>
    %51 = arith.addf %47, %50 : vector<4x512xf32>
    %cst_46 = arith.constant 0.000000e+00 : f32
    %52 = vector.broadcast %cst_46 : f32 to vector<4x512xf32>
    %53 = arith.maximumf %51, %52 : vector<4x512xf32>
    %c0_47 = arith.constant 0 : index
    %c0_48 = arith.constant 0 : index
    %c0_49 = arith.constant 0 : index
    %54 = vector.load %arg10[%c0_47, %c0_48, %c0_49] : memref<9x16x4xf32, #tpu.memory_space<vmem>>, vector<1x16x4xf32>
    %55 = vector.shape_cast %54 : vector<1x16x4xf32> to vector<16x4xf32>
    %cst_50 = arith.constant dense<0.000000e+00> : vector<16x512xf32>
    %56 = tpu.matmul %55, %53, %cst_50 {dimension_numbers = #tpu.dot_dimension_numbers<[1], [0], [0], [1], [0, 0, 1, 1], [], []>} : vector<16x4xf32>, vector<4x512xf32>, vector<16x512xf32> -> vector<16x512xf32>
    %57 = arith.addf %56, %4 : vector<16x512xf32>
    %c1 = arith.constant 1 : index
    %c0_51 = arith.constant 0 : index
    %c0_52 = arith.constant 0 : index
    %58 = vector.load %arg2[%c1, %c0_51, %c0_52] : memref<9x16x1xf32, #tpu.memory_space<vmem>>, vector<1x16x1xf32>
    %59 = vector.shape_cast %58 : vector<1x16x1xf32> to vector<16x1xf32>
    %60 = vector.broadcast %59 : vector<16x1xf32> to vector<16x512xf32>
    %61 = arith.mulf %57, %60 : vector<16x512xf32>
    %c1_53 = arith.constant 1 : index
    %c0_54 = arith.constant 0 : index
    %c0_55 = arith.constant 0 : index
    %62 = vector.load %arg3[%c1_53, %c0_54, %c0_55] : memref<9x16x1xf32, #tpu.memory_space<vmem>>, vector<1x16x1xf32>
    %63 = vector.shape_cast %62 : vector<1x16x1xf32> to vector<16x1xf32>
    %64 = vector.broadcast %63 : vector<16x1xf32> to vector<16x512xf32>
    %65 = arith.addf %61, %64 : vector<16x512xf32>
    %cst_56 = arith.constant 0.000000e+00 : f32
    %66 = vector.broadcast %cst_56 : f32 to vector<16x512xf32>
    %67 = arith.maximumf %65, %66 : vector<16x512xf32>
    %c1_57 = arith.constant 1 : index
    %c0_58 = arith.constant 0 : index
    %c0_59 = arith.constant 0 : index
    %68 = vector.load %arg8[%c1_57, %c0_58, %c0_59] : memref<9x4x16xf32, #tpu.memory_space<vmem>>, vector<1x4x16xf32>
    %69 = vector.shape_cast %68 : vector<1x4x16xf32> to vector<4x16xf32>
    %cst_60 = arith.constant dense<0.000000e+00> : vector<4x512xf32>
    %70 = tpu.matmul %69, %67, %cst_60 {dimension_numbers = #tpu.dot_dimension_numbers<[1], [0], [0], [1], [0, 0, 1, 1], [], []>} : vector<4x16xf32>, vector<16x512xf32>, vector<4x512xf32> -> vector<4x512xf32>
    %c1_61 = arith.constant 1 : index
    %c0_62 = arith.constant 0 : index
    %c0_63 = arith.constant 0 : index
    %71 = vector.load %arg4[%c1_61, %c0_62, %c0_63] : memref<9x4x1xf32, #tpu.memory_space<vmem>>, vector<1x4x1xf32>
    %72 = vector.shape_cast %71 : vector<1x4x1xf32> to vector<4x1xf32>
    %73 = vector.broadcast %72 : vector<4x1xf32> to vector<4x512xf32>
    %74 = arith.mulf %70, %73 : vector<4x512xf32>
    %c1_64 = arith.constant 1 : index
    %c0_65 = arith.constant 0 : index
    %c0_66 = arith.constant 0 : index
    %75 = vector.load %arg5[%c1_64, %c0_65, %c0_66] : memref<9x4x1xf32, #tpu.memory_space<vmem>>, vector<1x4x1xf32>
    %76 = vector.shape_cast %75 : vector<1x4x1xf32> to vector<4x1xf32>
    %77 = vector.broadcast %76 : vector<4x1xf32> to vector<4x512xf32>
    %78 = arith.addf %74, %77 : vector<4x512xf32>
    %cst_67 = arith.constant 0.000000e+00 : f32
    %79 = vector.broadcast %cst_67 : f32 to vector<4x512xf32>
    %80 = arith.maximumf %78, %79 : vector<4x512xf32>
    %c0_68 = arith.constant 0 : index
    %c128_69 = arith.constant 128 : index
    %81 = vector.load %arg23[%c0_68, %c128_69] : memref<16x768xf32, #tpu.memory_space<vmem>>, vector<4x512xf32>
    tpu.vector_store %arg23[%c0_68, %c128_69], %80 {strides = array<i32>} : memref<16x768xf32, #tpu.memory_space<vmem>>, vector<4x512xf32>,
    %c0_70 = arith.constant 0 : index
    %c111_71 = arith.constant 111 : index
    %82 = vector.load %arg23[%c0_70, %c111_71] : memref<16x768xf32, #tpu.memory_space<vmem>>, vector<4x512xf32>
    %c0_72 = arith.constant 0 : index
    %c112_73 = arith.constant 112 : index
    %83 = vector.load %arg23[%c0_72, %c112_73] : memref<16x768xf32, #tpu.memory_space<vmem>>, vector<4x512xf32>
    %c0_74 = arith.constant 0 : index
    %c113_75 = arith.constant 113 : index
    %84 = vector.load %arg23[%c0_74, %c113_75] : memref<16x768xf32, #tpu.memory_space<vmem>>, vector<4x512xf32>
    %c0_76 = arith.constant 0 : index
    %c127_77 = arith.constant 127 : index
    %85 = vector.load %arg23[%c0_76, %c127_77] : memref<16x768xf32, #tpu.memory_space<vmem>>, vector<4x512xf32>
    %c0_78 = arith.constant 0 : index
    %c128_79 = arith.constant 128 : index
    %86 = vector.load %arg23[%c0_78, %c128_79] : memref<16x768xf32, #tpu.memory_space<vmem>>, vector<4x512xf32>
    %c0_80 = arith.constant 0 : index
    %c129_81 = arith.constant 129 : index
    %87 = vector.load %arg23[%c0_80, %c129_81] : memref<16x768xf32, #tpu.memory_space<vmem>>, vector<4x512xf32>
    %c0_82 = arith.constant 0 : index
    %c143_83 = arith.constant 143 : index
    %88 = vector.load %arg23[%c0_82, %c143_83] : memref<16x768xf32, #tpu.memory_space<vmem>>, vector<4x512xf32>
    %c0_84 = arith.constant 0 : index
    %c144_85 = arith.constant 144 : index
    %89 = vector.load %arg23[%c0_84, %c144_85] : memref<16x768xf32, #tpu.memory_space<vmem>>, vector<4x512xf32>
    %c0_86 = arith.constant 0 : index
    %c145_87 = arith.constant 145 : index
    %90 = vector.load %arg23[%c0_86, %c145_87] : memref<16x768xf32, #tpu.memory_space<vmem>>, vector<4x512xf32>
    %91 = tpu.concatenate %82, %83, %84, %85, %86, %87, %88, %89, %90 in 0 : vector<4x512xf32>, vector<4x512xf32>, vector<4x512xf32>, vector<4x512xf32>, vector<4x512xf32>, vector<4x512xf32>, vector<4x512xf32>, vector<4x512xf32>, vector<4x512xf32> -> vector<36x512xf32>
    %c0_88 = arith.constant 0 : index
    %c0_89 = arith.constant 0 : index
    %92 = vector.load %arg13[%c0_88, %c0_89] : memref<36x512xf32, #tpu.memory_space<vmem>>, vector<36x512xf32>
    %93 = arith.mulf %91, %92 : vector<36x512xf32>
    %c1_90 = arith.constant 1 : index
    %c0_91 = arith.constant 0 : index
    %c0_92 = arith.constant 0 : index
    %94 = vector.load %arg9[%c1_90, %c0_91, %c0_92] : memref<9x4x36xf32, #tpu.memory_space<vmem>>, vector<1x4x36xf32>
    %95 = vector.shape_cast %94 : vector<1x4x36xf32> to vector<4x36xf32>
    %cst_93 = arith.constant dense<0.000000e+00> : vector<4x512xf32>
    %96 = tpu.matmul %95, %93, %cst_93 {dimension_numbers = #tpu.dot_dimension_numbers<[1], [0], [0], [1], [0, 0, 1, 1], [], []>} : vector<4x36xf32>, vector<36x512xf32>, vector<4x512xf32> -> vector<4x512xf32>
    %c1_94 = arith.constant 1 : index
    %c0_95 = arith.constant 0 : index
    %c0_96 = arith.constant 0 : index
    %97 = vector.load %arg6[%c1_94, %c0_95, %c0_96] : memref<9x4x1xf32, #tpu.memory_space<vmem>>, vector<1x4x1xf32>
    %98 = vector.shape_cast %97 : vector<1x4x1xf32> to vector<4x1xf32>
    %99 = vector.broadcast %98 : vector<4x1xf32> to vector<4x512xf32>
    %100 = arith.mulf %96, %99 : vector<4x512xf32>
    %c1_97 = arith.constant 1 : index
    %c0_98 = arith.constant 0 : index
    %c0_99 = arith.constant 0 : index
    %101 = vector.load %arg7[%c1_97, %c0_98, %c0_99] : memref<9x4x1xf32, #tpu.memory_space<vmem>>, vector<1x4x1xf32>
    %102 = vector.shape_cast %101 : vector<1x4x1xf32> to vector<4x1xf32>
    %103 = vector.broadcast %102 : vector<4x1xf32> to vector<4x512xf32>
    %104 = arith.addf %100, %103 : vector<4x512xf32>
    %cst_100 = arith.constant 0.000000e+00 : f32
    %105 = vector.broadcast %cst_100 : f32 to vector<4x512xf32>
    %106 = arith.maximumf %104, %105 : vector<4x512xf32>
    %c1_101 = arith.constant 1 : index
    %c0_102 = arith.constant 0 : index
    %c0_103 = arith.constant 0 : index
    %107 = vector.load %arg10[%c1_101, %c0_102, %c0_103] : memref<9x16x4xf32, #tpu.memory_space<vmem>>, vector<1x16x4xf32>
    %108 = vector.shape_cast %107 : vector<1x16x4xf32> to vector<16x4xf32>
    %cst_104 = arith.constant dense<0.000000e+00> : vector<16x512xf32>
    %109 = tpu.matmul %108, %106, %cst_104 {dimension_numbers = #tpu.dot_dimension_numbers<[1], [0], [0], [1], [0, 0, 1, 1], [], []>} : vector<16x4xf32>, vector<4x512xf32>, vector<16x512xf32> -> vector<16x512xf32>
    %110 = arith.addf %109, %57 : vector<16x512xf32>
    %c2 = arith.constant 2 : index
    %c0_105 = arith.constant 0 : index
    %c0_106 = arith.constant 0 : index
    %111 = vector.load %arg2[%c2, %c0_105, %c0_106] : memref<9x16x1xf32, #tpu.memory_space<vmem>>, vector<1x16x1xf32>
    %112 = vector.shape_cast %111 : vector<1x16x1xf32> to vector<16x1xf32>
    %113 = vector.broadcast %112 : vector<16x1xf32> to vector<16x512xf32>
    %114 = arith.mulf %110, %113 : vector<16x512xf32>
    %c2_107 = arith.constant 2 : index
    %c0_108 = arith.constant 0 : index
    %c0_109 = arith.constant 0 : index
    %115 = vector.load %arg3[%c2_107, %c0_108, %c0_109] : memref<9x16x1xf32, #tpu.memory_space<vmem>>, vector<1x16x1xf32>
    %116 = vector.shape_cast %115 : vector<1x16x1xf32> to vector<16x1xf32>
    %117 = vector.broadcast %116 : vector<16x1xf32> to vector<16x512xf32>
    %118 = arith.addf %114, %117 : vector<16x512xf32>
    %cst_110 = arith.constant 0.000000e+00 : f32
    %119 = vector.broadcast %cst_110 : f32 to vector<16x512xf32>
    %120 = arith.maximumf %118, %119 : vector<16x512xf32>
    %c2_111 = arith.constant 2 : index
    %c0_112 = arith.constant 0 : index
    %c0_113 = arith.constant 0 : index
    %121 = vector.load %arg8[%c2_111, %c0_112, %c0_113] : memref<9x4x16xf32, #tpu.memory_space<vmem>>, vector<1x4x16xf32>
    %122 = vector.shape_cast %121 : vector<1x4x16xf32> to vector<4x16xf32>
    %cst_114 = arith.constant dense<0.000000e+00> : vector<4x512xf32>
    %123 = tpu.matmul %122, %120, %cst_114 {dimension_numbers = #tpu.dot_dimension_numbers<[1], [0], [0], [1], [0, 0, 1, 1], [], []>} : vector<4x16xf32>, vector<16x512xf32>, vector<4x512xf32> -> vector<4x512xf32>
    %c2_115 = arith.constant 2 : index
    %c0_116 = arith.constant 0 : index
    %c0_117 = arith.constant 0 : index
    %124 = vector.load %arg4[%c2_115, %c0_116, %c0_117] : memref<9x4x1xf32, #tpu.memory_space<vmem>>, vector<1x4x1xf32>
    %125 = vector.shape_cast %124 : vector<1x4x1xf32> to vector<4x1xf32>
    %126 = vector.broadcast %125 : vector<4x1xf32> to vector<4x512xf32>
    %127 = arith.mulf %123, %126 : vector<4x512xf32>
    %c2_118 = arith.constant 2 : index
    %c0_119 = arith.constant 0 : index
    %c0_120 = arith.constant 0 : index
    %128 = vector.load %arg5[%c2_118, %c0_119, %c0_120] : memref<9x4x1xf32, #tpu.memory_space<vmem>>, vector<1x4x1xf32>
    %129 = vector.shape_cast %128 : vector<1x4x1xf32> to vector<4x1xf32>
    %130 = vector.broadcast %129 : vector<4x1xf32> to vector<4x512xf32>
    %131 = arith.addf %127, %130 : vector<4x512xf32>
    %cst_121 = arith.constant 0.000000e+00 : f32
    %132 = vector.broadcast %cst_121 : f32 to vector<4x512xf32>
    %133 = arith.maximumf %131, %132 : vector<4x512xf32>
    %c0_122 = arith.constant 0 : index
    %c128_123 = arith.constant 128 : index
    %134 = vector.load %arg23[%c0_122, %c128_123] : memref<16x768xf32, #tpu.memory_space<vmem>>, vector<4x512xf32>
    tpu.vector_store %arg23[%c0_122, %c128_123], %133 {strides = array<i32>} : memref<16x768xf32, #tpu.memory_space<vmem>>, vector<4x512xf32>,
    %c0_124 = arith.constant 0 : index
    %c111_125 = arith.constant 111 : index
    %135 = vector.load %arg23[%c0_124, %c111_125] : memref<16x768xf32, #tpu.memory_space<vmem>>, vector<4x512xf32>
    %c0_126 = arith.constant 0 : index
    %c112_127 = arith.constant 112 : index
    %136 = vector.load %arg23[%c0_126, %c112_127] : memref<16x768xf32, #tpu.memory_space<vmem>>, vector<4x512xf32>
    %c0_128 = arith.constant 0 : index
    %c113_129 = arith.constant 113 : index
    %137 = vector.load %arg23[%c0_128, %c113_129] : memref<16x768xf32, #tpu.memory_space<vmem>>, vector<4x512xf32>
    %c0_130 = arith.constant 0 : index
    %c127_131 = arith.constant 127 : index
    %138 = vector.load %arg23[%c0_130, %c127_131] : memref<16x768xf32, #tpu.memory_space<vmem>>, vector<4x512xf32>
    %c0_132 = arith.constant 0 : index
    %c128_133 = arith.constant 128 : index
    %139 = vector.load %arg23[%c0_132, %c128_133] : memref<16x768xf32, #tpu.memory_space<vmem>>, vector<4x512xf32>
    %c0_134 = arith.constant 0 : index
    %c129_135 = arith.constant 129 : index
    %140 = vector.load %arg23[%c0_134, %c129_135] : memref<16x768xf32, #tpu.memory_space<vmem>>, vector<4x512xf32>
    %c0_136 = arith.constant 0 : index
    %c143_137 = arith.constant 143 : index
    %141 = vector.load %arg23[%c0_136, %c143_137] : memref<16x768xf32, #tpu.memory_space<vmem>>, vector<4x512xf32>
    %c0_138 = arith.constant 0 : index
    %c144_139 = arith.constant 144 : index
    %142 = vector.load %arg23[%c0_138, %c144_139] : memref<16x768xf32, #tpu.memory_space<vmem>>, vector<4x512xf32>
    %c0_140 = arith.constant 0 : index
    %c145_141 = arith.constant 145 : index
    %143 = vector.load %arg23[%c0_140, %c145_141] : memref<16x768xf32, #tpu.memory_space<vmem>>, vector<4x512xf32>
    %144 = tpu.concatenate %135, %136, %137, %138, %139, %140, %141, %142, %143 in 0 : vector<4x512xf32>, vector<4x512xf32>, vector<4x512xf32>, vector<4x512xf32>, vector<4x512xf32>, vector<4x512xf32>, vector<4x512xf32>, vector<4x512xf32>, vector<4x512xf32> -> vector<36x512xf32>
    %c0_142 = arith.constant 0 : index
    %c0_143 = arith.constant 0 : index
    %145 = vector.load %arg13[%c0_142, %c0_143] : memref<36x512xf32, #tpu.memory_space<vmem>>, vector<36x512xf32>
    %146 = arith.mulf %144, %145 : vector<36x512xf32>
    %c2_144 = arith.constant 2 : index
    %c0_145 = arith.constant 0 : index
    %c0_146 = arith.constant 0 : index
    %147 = vector.load %arg9[%c2_144, %c0_145, %c0_146] : memref<9x4x36xf32, #tpu.memory_space<vmem>>, vector<1x4x36xf32>
    %148 = vector.shape_cast %147 : vector<1x4x36xf32> to vector<4x36xf32>
    %cst_147 = arith.constant dense<0.000000e+00> : vector<4x512xf32>
    %149 = tpu.matmul %148, %146, %cst_147 {dimension_numbers = #tpu.dot_dimension_numbers<[1], [0], [0], [1], [0, 0, 1, 1], [], []>} : vector<4x36xf32>, vector<36x512xf32>, vector<4x512xf32> -> vector<4x512xf32>
    %c2_148 = arith.constant 2 : index
    %c0_149 = arith.constant 0 : index
    %c0_150 = arith.constant 0 : index
    %150 = vector.load %arg6[%c2_148, %c0_149, %c0_150] : memref<9x4x1xf32, #tpu.memory_space<vmem>>, vector<1x4x1xf32>
    %151 = vector.shape_cast %150 : vector<1x4x1xf32> to vector<4x1xf32>
    %152 = vector.broadcast %151 : vector<4x1xf32> to vector<4x512xf32>
    %153 = arith.mulf %149, %152 : vector<4x512xf32>
    %c2_151 = arith.constant 2 : index
    %c0_152 = arith.constant 0 : index
    %c0_153 = arith.constant 0 : index
    %154 = vector.load %arg7[%c2_151, %c0_152, %c0_153] : memref<9x4x1xf32, #tpu.memory_space<vmem>>, vector<1x4x1xf32>
    %155 = vector.shape_cast %154 : vector<1x4x1xf32> to vector<4x1xf32>
    %156 = vector.broadcast %155 : vector<4x1xf32> to vector<4x512xf32>
    %157 = arith.addf %153, %156 : vector<4x512xf32>
    %cst_154 = arith.constant 0.000000e+00 : f32
    %158 = vector.broadcast %cst_154 : f32 to vector<4x512xf32>
    %159 = arith.maximumf %157, %158 : vector<4x512xf32>
    %c2_155 = arith.constant 2 : index
    %c0_156 = arith.constant 0 : index
    %c0_157 = arith.constant 0 : index
    %160 = vector.load %arg10[%c2_155, %c0_156, %c0_157] : memref<9x16x4xf32, #tpu.memory_space<vmem>>, vector<1x16x4xf32>
    %161 = vector.shape_cast %160 : vector<1x16x4xf32> to vector<16x4xf32>
    %cst_158 = arith.constant dense<0.000000e+00> : vector<16x512xf32>
    %162 = tpu.matmul %161, %159, %cst_158 {dimension_numbers = #tpu.dot_dimension_numbers<[1], [0], [0], [1], [0, 0, 1, 1], [], []>} : vector<16x4xf32>, vector<4x512xf32>, vector<16x512xf32> -> vector<16x512xf32>
    %163 = arith.addf %162, %110 : vector<16x512xf32>
    %c0_159 = arith.constant 0 : index
    %c128_160 = arith.constant 128 : index
    %164 = vector.load %arg23[%c0_159, %c128_160] : memref<16x768xf32, #tpu.memory_space<vmem>>, vector<16x512xf32>
    tpu.vector_store %arg23[%c0_159, %c128_160], %57 {strides = array<i32>} : memref<16x768xf32, #tpu.memory_space<vmem>>, vector<16x512xf32>,
    %c0_161 = arith.constant 0 : index
    %c111_162 = arith.constant 111 : index
    %165 = vector.load %arg23[%c0_161, %c111_162] : memref<16x768xf32, #tpu.memory_space<vmem>>, vector<16x512xf32>
    %c0_163 = arith.constant 0 : index
    %c112_164 = arith.constant 112 : index
    %166 = vector.load %arg23[%c0_163, %c112_164] : memref<16x768xf32, #tpu.memory_space<vmem>>, vector<16x512xf32>
    %c0_165 = arith.constant 0 : index
    %c113_166 = arith.constant 113 : index
    %167 = vector.load %arg23[%c0_165, %c113_166] : memref<16x768xf32, #tpu.memory_space<vmem>>, vector<16x512xf32>
    %c0_167 = arith.constant 0 : index
    %c127_168 = arith.constant 127 : index
    %168 = vector.load %arg23[%c0_167, %c127_168] : memref<16x768xf32, #tpu.memory_space<vmem>>, vector<16x512xf32>
    %c0_169 = arith.constant 0 : index
    %c128_170 = arith.constant 128 : index
    %169 = vector.load %arg23[%c0_169, %c128_170] : memref<16x768xf32, #tpu.memory_space<vmem>>, vector<16x512xf32>
    %c0_171 = arith.constant 0 : index
    %c129_172 = arith.constant 129 : index
    %170 = vector.load %arg23[%c0_171, %c129_172] : memref<16x768xf32, #tpu.memory_space<vmem>>, vector<16x512xf32>
    %c0_173 = arith.constant 0 : index
    %c143_174 = arith.constant 143 : index
    %171 = vector.load %arg23[%c0_173, %c143_174] : memref<16x768xf32, #tpu.memory_space<vmem>>, vector<16x512xf32>
    %c0_175 = arith.constant 0 : index
    %c144_176 = arith.constant 144 : index
    %172 = vector.load %arg23[%c0_175, %c144_176] : memref<16x768xf32, #tpu.memory_space<vmem>>, vector<16x512xf32>
    %c0_177 = arith.constant 0 : index
    %c145_178 = arith.constant 145 : index
    %173 = vector.load %arg23[%c0_177, %c145_178] : memref<16x768xf32, #tpu.memory_space<vmem>>, vector<16x512xf32>
    %c0_179 = arith.constant 0 : index
    %c0_180 = arith.constant 0 : index
    %c0_181 = arith.constant 0 : index
    %174 = vector.load %arg16[%c0_179, %c0_180, %c0_181] : memref<9x1x512xf32, #tpu.memory_space<vmem>>, vector<1x1x512xf32>
    %175 = vector.shape_cast %174 : vector<1x1x512xf32> to vector<1x512xf32>
    %cst_182 = arith.constant 0.000000e+00 : f32
    %176 = vector.broadcast %cst_182 : f32 to vector<1x512xf32>
    %177 = arith.cmpf one, %175, %176 : vector<1x512xf32>
    %cst_183 = arith.constant -3.000000e+38 : f32
    %178 = vector.shape_cast %177 : vector<1x512xi1> to vector<1x512xi1>
    %179 = vector.broadcast %178 : vector<1x512xi1> to vector<16x512xi1>
    %180 = vector.broadcast %cst_183 : f32 to vector<16x512xf32>
    %181 = arith.select %179, %165, %180 : vector<16x512xi1>, vector<16x512xf32>
    %c1_184 = arith.constant 1 : index
    %c0_185 = arith.constant 0 : index
    %c0_186 = arith.constant 0 : index
    %182 = vector.load %arg16[%c1_184, %c0_185, %c0_186] : memref<9x1x512xf32, #tpu.memory_space<vmem>>, vector<1x1x512xf32>
    %183 = vector.shape_cast %182 : vector<1x1x512xf32> to vector<1x512xf32>
    %cst_187 = arith.constant 0.000000e+00 : f32
    %184 = vector.broadcast %cst_187 : f32 to vector<1x512xf32>
    %185 = arith.cmpf one, %183, %184 : vector<1x512xf32>
    %cst_188 = arith.constant -3.000000e+38 : f32
    %186 = vector.shape_cast %185 : vector<1x512xi1> to vector<1x512xi1>
    %187 = vector.broadcast %186 : vector<1x512xi1> to vector<16x512xi1>
    %188 = vector.broadcast %cst_188 : f32 to vector<16x512xf32>
    %189 = arith.select %187, %166, %188 : vector<16x512xi1>, vector<16x512xf32>
    %190 = arith.maximumf %181, %189 : vector<16x512xf32>
    %c2_189 = arith.constant 2 : index
    %c0_190 = arith.constant 0 : index
    %c0_191 = arith.constant 0 : index
    %191 = vector.load %arg16[%c2_189, %c0_190, %c0_191] : memref<9x1x512xf32, #tpu.memory_space<vmem>>, vector<1x1x512xf32>
    %192 = vector.shape_cast %191 : vector<1x1x512xf32> to vector<1x512xf32>
    %cst_192 = arith.constant 0.000000e+00 : f32
    %193 = vector.broadcast %cst_192 : f32 to vector<1x512xf32>
    %194 = arith.cmpf one, %192, %193 : vector<1x512xf32>
    %cst_193 = arith.constant -3.000000e+38 : f32
    %195 = vector.shape_cast %194 : vector<1x512xi1> to vector<1x512xi1>
    %196 = vector.broadcast %195 : vector<1x512xi1> to vector<16x512xi1>
    %197 = vector.broadcast %cst_193 : f32 to vector<16x512xf32>
    %198 = arith.select %196, %167, %197 : vector<16x512xi1>, vector<16x512xf32>
    %199 = arith.maximumf %190, %198 : vector<16x512xf32>
    %c3 = arith.constant 3 : index
    %c0_194 = arith.constant 0 : index
    %c0_195 = arith.constant 0 : index
    %200 = vector.load %arg16[%c3, %c0_194, %c0_195] : memref<9x1x512xf32, #tpu.memory_space<vmem>>, vector<1x1x512xf32>
    %201 = vector.shape_cast %200 : vector<1x1x512xf32> to vector<1x512xf32>
    %cst_196 = arith.constant 0.000000e+00 : f32
    %202 = vector.broadcast %cst_196 : f32 to vector<1x512xf32>
    %203 = arith.cmpf one, %201, %202 : vector<1x512xf32>
    %cst_197 = arith.constant -3.000000e+38 : f32
    %204 = vector.shape_cast %203 : vector<1x512xi1> to vector<1x512xi1>
    %205 = vector.broadcast %204 : vector<1x512xi1> to vector<16x512xi1>
    %206 = vector.broadcast %cst_197 : f32 to vector<16x512xf32>
    %207 = arith.select %205, %168, %206 : vector<16x512xi1>, vector<16x512xf32>
    %208 = arith.maximumf %199, %207 : vector<16x512xf32>
    %c4 = arith.constant 4 : index
    %c0_198 = arith.constant 0 : index
    %c0_199 = arith.constant 0 : index
    %209 = vector.load %arg16[%c4, %c0_198, %c0_199] : memref<9x1x512xf32, #tpu.memory_space<vmem>>, vector<1x1x512xf32>
    %210 = vector.shape_cast %209 : vector<1x1x512xf32> to vector<1x512xf32>
    %cst_200 = arith.constant 0.000000e+00 : f32
    %211 = vector.broadcast %cst_200 : f32 to vector<1x512xf32>
    %212 = arith.cmpf one, %210, %211 : vector<1x512xf32>
    %cst_201 = arith.constant -3.000000e+38 : f32
    %213 = vector.shape_cast %212 : vector<1x512xi1> to vector<1x512xi1>
    %214 = vector.broadcast %213 : vector<1x512xi1> to vector<16x512xi1>
    %215 = vector.broadcast %cst_201 : f32 to vector<16x512xf32>
    %216 = arith.select %214, %169, %215 : vector<16x512xi1>, vector<16x512xf32>
    %217 = arith.maximumf %208, %216 : vector<16x512xf32>
    %c5 = arith.constant 5 : index
    %c0_202 = arith.constant 0 : index
    %c0_203 = arith.constant 0 : index
    %218 = vector.load %arg16[%c5, %c0_202, %c0_203] : memref<9x1x512xf32, #tpu.memory_space<vmem>>, vector<1x1x512xf32>
    %219 = vector.shape_cast %218 : vector<1x1x512xf32> to vector<1x512xf32>
    %cst_204 = arith.constant 0.000000e+00 : f32
    %220 = vector.broadcast %cst_204 : f32 to vector<1x512xf32>
    %221 = arith.cmpf one, %219, %220 : vector<1x512xf32>
    %cst_205 = arith.constant -3.000000e+38 : f32
    %222 = vector.shape_cast %221 : vector<1x512xi1> to vector<1x512xi1>
    %223 = vector.broadcast %222 : vector<1x512xi1> to vector<16x512xi1>
    %224 = vector.broadcast %cst_205 : f32 to vector<16x512xf32>
    %225 = arith.select %223, %170, %224 : vector<16x512xi1>, vector<16x512xf32>
    %226 = arith.maximumf %217, %225 : vector<16x512xf32>
    %c6 = arith.constant 6 : index
    %c0_206 = arith.constant 0 : index
    %c0_207 = arith.constant 0 : index
    %227 = vector.load %arg16[%c6, %c0_206, %c0_207] : memref<9x1x512xf32, #tpu.memory_space<vmem>>, vector<1x1x512xf32>
    %228 = vector.shape_cast %227 : vector<1x1x512xf32> to vector<1x512xf32>
    %cst_208 = arith.constant 0.000000e+00 : f32
    %229 = vector.broadcast %cst_208 : f32 to vector<1x512xf32>
    %230 = arith.cmpf one, %228, %229 : vector<1x512xf32>
    %cst_209 = arith.constant -3.000000e+38 : f32
    %231 = vector.shape_cast %230 : vector<1x512xi1> to vector<1x512xi1>
    %232 = vector.broadcast %231 : vector<1x512xi1> to vector<16x512xi1>
    %233 = vector.broadcast %cst_209 : f32 to vector<16x512xf32>
    %234 = arith.select %232, %171, %233 : vector<16x512xi1>, vector<16x512xf32>
    %235 = arith.maximumf %226, %234 : vector<16x512xf32>
    %c7 = arith.constant 7 : index
    %c0_210 = arith.constant 0 : index
    %c0_211 = arith.constant 0 : index
    %236 = vector.load %arg16[%c7, %c0_210, %c0_211] : memref<9x1x512xf32, #tpu.memory_space<vmem>>, vector<1x1x512xf32>
    %237 = vector.shape_cast %236 : vector<1x1x512xf32> to vector<1x512xf32>
    %cst_212 = arith.constant 0.000000e+00 : f32
    %238 = vector.broadcast %cst_212 : f32 to vector<1x512xf32>
    %239 = arith.cmpf one, %237, %238 : vector<1x512xf32>
    %cst_213 = arith.constant -3.000000e+38 : f32
    %240 = vector.shape_cast %239 : vector<1x512xi1> to vector<1x512xi1>
    %241 = vector.broadcast %240 : vector<1x512xi1> to vector<16x512xi1>
    %242 = vector.broadcast %cst_213 : f32 to vector<16x512xf32>
    %243 = arith.select %241, %172, %242 : vector<16x512xi1>, vector<16x512xf32>
    %244 = arith.maximumf %235, %243 : vector<16x512xf32>
    %c8 = arith.constant 8 : index
    %c0_214 = arith.constant 0 : index
    %c0_215 = arith.constant 0 : index
    %245 = vector.load %arg16[%c8, %c0_214, %c0_215] : memref<9x1x512xf32, #tpu.memory_space<vmem>>, vector<1x1x512xf32>
    %246 = vector.shape_cast %245 : vector<1x1x512xf32> to vector<1x512xf32>
    %cst_216 = arith.constant 0.000000e+00 : f32
    %247 = vector.broadcast %cst_216 : f32 to vector<1x512xf32>
    %248 = arith.cmpf one, %246, %247 : vector<1x512xf32>
    %cst_217 = arith.constant -3.000000e+38 : f32
    %249 = vector.shape_cast %248 : vector<1x512xi1> to vector<1x512xi1>
    %250 = vector.broadcast %249 : vector<1x512xi1> to vector<16x512xi1>
    %251 = vector.broadcast %cst_217 : f32 to vector<16x512xf32>
    %252 = arith.select %250, %173, %251 : vector<16x512xi1>, vector<16x512xf32>
    %253 = arith.maximumf %244, %252 : vector<16x512xf32>
    %c0_218 = arith.constant 0 : index
    %c0_219 = arith.constant 0 : index
    %254 = vector.load %arg18[%c0_218, %c0_219] : memref<512x128xf32, #tpu.memory_space<vmem>>, vector<512x128xf32>
    %cst_220 = arith.constant dense<0.000000e+00> : vector<16x128xf32>
    %255 = tpu.matmul %253, %254, %cst_220 {dimension_numbers = #tpu.dot_dimension_numbers<[1], [0], [0], [1], [0, 0, 1, 1], [], []>} : vector<16x512xf32>, vector<512x128xf32>, vector<16x128xf32> -> vector<16x128xf32>
    %c3_221 = arith.constant 3 : index
    %c0_222 = arith.constant 0 : index
    %c0_223 = arith.constant 0 : index
    %256 = vector.load %arg2[%c3_221, %c0_222, %c0_223] : memref<9x16x1xf32, #tpu.memory_space<vmem>>, vector<1x16x1xf32>
    %257 = vector.shape_cast %256 : vector<1x16x1xf32> to vector<16x1xf32>
    %258 = vector.broadcast %257 : vector<16x1xf32> to vector<16x128xf32>
    %259 = arith.mulf %255, %258 : vector<16x128xf32>
    %c3_224 = arith.constant 3 : index
    %c0_225 = arith.constant 0 : index
    %c0_226 = arith.constant 0 : index
    %260 = vector.load %arg3[%c3_224, %c0_225, %c0_226] : memref<9x16x1xf32, #tpu.memory_space<vmem>>, vector<1x16x1xf32>
    %261 = vector.shape_cast %260 : vector<1x16x1xf32> to vector<16x1xf32>
    %262 = vector.broadcast %261 : vector<16x1xf32> to vector<16x128xf32>
    %263 = arith.addf %259, %262 : vector<16x128xf32>
    %cst_227 = arith.constant 0.000000e+00 : f32
    %264 = vector.broadcast %cst_227 : f32 to vector<16x128xf32>
    %265 = arith.maximumf %263, %264 : vector<16x128xf32>
    %c3_228 = arith.constant 3 : index
    %c0_229 = arith.constant 0 : index
    %c0_230 = arith.constant 0 : index
    %266 = vector.load %arg8[%c3_228, %c0_229, %c0_230] : memref<9x4x16xf32, #tpu.memory_space<vmem>>, vector<1x4x16xf32>
    %267 = vector.shape_cast %266 : vector<1x4x16xf32> to vector<4x16xf32>
    %cst_231 = arith.constant dense<0.000000e+00> : vector<4x128xf32>
    %268 = tpu.matmul %267, %265, %cst_231 {dimension_numbers = #tpu.dot_dimension_numbers<[1], [0], [0], [1], [0, 0, 1, 1], [], []>} : vector<4x16xf32>, vector<16x128xf32>, vector<4x128xf32> -> vector<4x128xf32>
    %c3_232 = arith.constant 3 : index
    %c0_233 = arith.constant 0 : index
    %c0_234 = arith.constant 0 : index
    %269 = vector.load %arg4[%c3_232, %c0_233, %c0_234] : memref<9x4x1xf32, #tpu.memory_space<vmem>>, vector<1x4x1xf32>
    %270 = vector.shape_cast %269 : vector<1x4x1xf32> to vector<4x1xf32>
    %271 = vector.broadcast %270 : vector<4x1xf32> to vector<4x128xf32>
    %272 = arith.mulf %268, %271 : vector<4x128xf32>
    %c3_235 = arith.constant 3 : index
    %c0_236 = arith.constant 0 : index
    %c0_237 = arith.constant 0 : index
    %273 = vector.load %arg5[%c3_235, %c0_236, %c0_237] : memref<9x4x1xf32, #tpu.memory_space<vmem>>, vector<1x4x1xf32>
    %274 = vector.shape_cast %273 : vector<1x4x1xf32> to vector<4x1xf32>
    %275 = vector.broadcast %274 : vector<4x1xf32> to vector<4x128xf32>
    %276 = arith.addf %272, %275 : vector<4x128xf32>
    %cst_238 = arith.constant 0.000000e+00 : f32
    %277 = vector.broadcast %cst_238 : f32 to vector<4x128xf32>
    %278 = arith.maximumf %276, %277 : vector<4x128xf32>
    %c0_239 = arith.constant 0 : index
    %c128_240 = arith.constant 128 : index
    %279 = vector.load %arg23[%c0_239, %c128_240] : memref<16x768xf32, #tpu.memory_space<vmem>>, vector<4x128xf32>
    tpu.vector_store %arg23[%c0_239, %c128_240], %278 {strides = array<i32>} : memref<16x768xf32, #tpu.memory_space<vmem>>, vector<4x128xf32>,
    %c0_241 = arith.constant 0 : index
    %c119 = arith.constant 119 : index
    %280 = vector.load %arg23[%c0_241, %c119] : memref<16x768xf32, #tpu.memory_space<vmem>>, vector<4x128xf32>
    %c0_242 = arith.constant 0 : index
    %c120 = arith.constant 120 : index
    %281 = vector.load %arg23[%c0_242, %c120] : memref<16x768xf32, #tpu.memory_space<vmem>>, vector<4x128xf32>
    %c0_243 = arith.constant 0 : index
    %c121 = arith.constant 121 : index
    %282 = vector.load %arg23[%c0_243, %c121] : memref<16x768xf32, #tpu.memory_space<vmem>>, vector<4x128xf32>
    %c0_244 = arith.constant 0 : index
    %c127_245 = arith.constant 127 : index
    %283 = vector.load %arg23[%c0_244, %c127_245] : memref<16x768xf32, #tpu.memory_space<vmem>>, vector<4x128xf32>
    %c0_246 = arith.constant 0 : index
    %c128_247 = arith.constant 128 : index
    %284 = vector.load %arg23[%c0_246, %c128_247] : memref<16x768xf32, #tpu.memory_space<vmem>>, vector<4x128xf32>
    %c0_248 = arith.constant 0 : index
    %c129_249 = arith.constant 129 : index
    %285 = vector.load %arg23[%c0_248, %c129_249] : memref<16x768xf32, #tpu.memory_space<vmem>>, vector<4x128xf32>
    %c0_250 = arith.constant 0 : index
    %c135 = arith.constant 135 : index
    %286 = vector.load %arg23[%c0_250, %c135] : memref<16x768xf32, #tpu.memory_space<vmem>>, vector<4x128xf32>
    %c0_251 = arith.constant 0 : index
    %c136 = arith.constant 136 : index
    %287 = vector.load %arg23[%c0_251, %c136] : memref<16x768xf32, #tpu.memory_space<vmem>>, vector<4x128xf32>
    %c0_252 = arith.constant 0 : index
    %c137 = arith.constant 137 : index
    %288 = vector.load %arg23[%c0_252, %c137] : memref<16x768xf32, #tpu.memory_space<vmem>>, vector<4x128xf32>
    %289 = tpu.concatenate %280, %281, %282, %283, %284, %285, %286, %287, %288 in 0 : vector<4x128xf32>, vector<4x128xf32>, vector<4x128xf32>, vector<4x128xf32>, vector<4x128xf32>, vector<4x128xf32>, vector<4x128xf32>, vector<4x128xf32>, vector<4x128xf32> -> vector<36x128xf32>
    %c0_253 = arith.constant 0 : index
    %c0_254 = arith.constant 0 : index
    %290 = vector.load %arg14[%c0_253, %c0_254] : memref<36x128xf32, #tpu.memory_space<vmem>>, vector<36x128xf32>
    %291 = arith.mulf %289, %290 : vector<36x128xf32>
    %c3_255 = arith.constant 3 : index
    %c0_256 = arith.constant 0 : index
    %c0_257 = arith.constant 0 : index
    %292 = vector.load %arg9[%c3_255, %c0_256, %c0_257] : memref<9x4x36xf32, #tpu.memory_space<vmem>>, vector<1x4x36xf32>
    %293 = vector.shape_cast %292 : vector<1x4x36xf32> to vector<4x36xf32>
    %cst_258 = arith.constant dense<0.000000e+00> : vector<4x128xf32>
    %294 = tpu.matmul %293, %291, %cst_258 {dimension_numbers = #tpu.dot_dimension_numbers<[1], [0], [0], [1], [0, 0, 1, 1], [], []>} : vector<4x36xf32>, vector<36x128xf32>, vector<4x128xf32> -> vector<4x128xf32>
    %c3_259 = arith.constant 3 : index
    %c0_260 = arith.constant 0 : index
    %c0_261 = arith.constant 0 : index
    %295 = vector.load %arg6[%c3_259, %c0_260, %c0_261] : memref<9x4x1xf32, #tpu.memory_space<vmem>>, vector<1x4x1xf32>
    %296 = vector.shape_cast %295 : vector<1x4x1xf32> to vector<4x1xf32>
    %297 = vector.broadcast %296 : vector<4x1xf32> to vector<4x128xf32>
    %298 = arith.mulf %294, %297 : vector<4x128xf32>
    %c3_262 = arith.constant 3 : index
    %c0_263 = arith.constant 0 : index
    %c0_264 = arith.constant 0 : index
    %299 = vector.load %arg7[%c3_262, %c0_263, %c0_264] : memref<9x4x1xf32, #tpu.memory_space<vmem>>, vector<1x4x1xf32>
    %300 = vector.shape_cast %299 : vector<1x4x1xf32> to vector<4x1xf32>
    %301 = vector.broadcast %300 : vector<4x1xf32> to vector<4x128xf32>
    %302 = arith.addf %298, %301 : vector<4x128xf32>
    %cst_265 = arith.constant 0.000000e+00 : f32
    %303 = vector.broadcast %cst_265 : f32 to vector<4x128xf32>
    %304 = arith.maximumf %302, %303 : vector<4x128xf32>
    %c3_266 = arith.constant 3 : index
    %c0_267 = arith.constant 0 : index
    %c0_268 = arith.constant 0 : index
    %305 = vector.load %arg10[%c3_266, %c0_267, %c0_268] : memref<9x16x4xf32, #tpu.memory_space<vmem>>, vector<1x16x4xf32>
    %306 = vector.shape_cast %305 : vector<1x16x4xf32> to vector<16x4xf32>
    %cst_269 = arith.constant dense<0.000000e+00> : vector<16x128xf32>
    %307 = tpu.matmul %306, %304, %cst_269 {dimension_numbers = #tpu.dot_dimension_numbers<[1], [0], [0], [1], [0, 0, 1, 1], [], []>} : vector<16x4xf32>, vector<4x128xf32>, vector<16x128xf32> -> vector<16x128xf32>
    %308 = arith.addf %307, %255 : vector<16x128xf32>
    %c4_270 = arith.constant 4 : index
    %c0_271 = arith.constant 0 : index
    %c0_272 = arith.constant 0 : index
    %309 = vector.load %arg2[%c4_270, %c0_271, %c0_272] : memref<9x16x1xf32, #tpu.memory_space<vmem>>, vector<1x16x1xf32>
    %310 = vector.shape_cast %309 : vector<1x16x1xf32> to vector<16x1xf32>
    %311 = vector.broadcast %310 : vector<16x1xf32> to vector<16x128xf32>
    %312 = arith.mulf %308, %311 : vector<16x128xf32>
    %c4_273 = arith.constant 4 : index
    %c0_274 = arith.constant 0 : index
    %c0_275 = arith.constant 0 : index
    %313 = vector.load %arg3[%c4_273, %c0_274, %c0_275] : memref<9x16x1xf32, #tpu.memory_space<vmem>>, vector<1x16x1xf32>
    %314 = vector.shape_cast %313 : vector<1x16x1xf32> to vector<16x1xf32>
    %315 = vector.broadcast %314 : vector<16x1xf32> to vector<16x128xf32>
    %316 = arith.addf %312, %315 : vector<16x128xf32>
    %cst_276 = arith.constant 0.000000e+00 : f32
    %317 = vector.broadcast %cst_276 : f32 to vector<16x128xf32>
    %318 = arith.maximumf %316, %317 : vector<16x128xf32>
    %c4_277 = arith.constant 4 : index
    %c0_278 = arith.constant 0 : index
    %c0_279 = arith.constant 0 : index
    %319 = vector.load %arg8[%c4_277, %c0_278, %c0_279] : memref<9x4x16xf32, #tpu.memory_space<vmem>>, vector<1x4x16xf32>
    %320 = vector.shape_cast %319 : vector<1x4x16xf32> to vector<4x16xf32>
    %cst_280 = arith.constant dense<0.000000e+00> : vector<4x128xf32>
    %321 = tpu.matmul %320, %318, %cst_280 {dimension_numbers = #tpu.dot_dimension_numbers<[1], [0], [0], [1], [0, 0, 1, 1], [], []>} : vector<4x16xf32>, vector<16x128xf32>, vector<4x128xf32> -> vector<4x128xf32>
    %c4_281 = arith.constant 4 : index
    %c0_282 = arith.constant 0 : index
    %c0_283 = arith.constant 0 : index
    %322 = vector.load %arg4[%c4_281, %c0_282, %c0_283] : memref<9x4x1xf32, #tpu.memory_space<vmem>>, vector<1x4x1xf32>
    %323 = vector.shape_cast %322 : vector<1x4x1xf32> to vector<4x1xf32>
    %324 = vector.broadcast %323 : vector<4x1xf32> to vector<4x128xf32>
    %325 = arith.mulf %321, %324 : vector<4x128xf32>
    %c4_284 = arith.constant 4 : index
    %c0_285 = arith.constant 0 : index
    %c0_286 = arith.constant 0 : index
    %326 = vector.load %arg5[%c4_284, %c0_285, %c0_286] : memref<9x4x1xf32, #tpu.memory_space<vmem>>, vector<1x4x1xf32>
    %327 = vector.shape_cast %326 : vector<1x4x1xf32> to vector<4x1xf32>
    %328 = vector.broadcast %327 : vector<4x1xf32> to vector<4x128xf32>
    %329 = arith.addf %325, %328 : vector<4x128xf32>
    %cst_287 = arith.constant 0.000000e+00 : f32
    %330 = vector.broadcast %cst_287 : f32 to vector<4x128xf32>
    %331 = arith.maximumf %329, %330 : vector<4x128xf32>
    %c0_288 = arith.constant 0 : index
    %c128_289 = arith.constant 128 : index
    %332 = vector.load %arg23[%c0_288, %c128_289] : memref<16x768xf32, #tpu.memory_space<vmem>>, vector<4x128xf32>
    tpu.vector_store %arg23[%c0_288, %c128_289], %331 {strides = array<i32>} : memref<16x768xf32, #tpu.memory_space<vmem>>, vector<4x128xf32>,
    %c0_290 = arith.constant 0 : index
    %c119_291 = arith.constant 119 : index
    %333 = vector.load %arg23[%c0_290, %c119_291] : memref<16x768xf32, #tpu.memory_space<vmem>>, vector<4x128xf32>
    %c0_292 = arith.constant 0 : index
    %c120_293 = arith.constant 120 : index
    %334 = vector.load %arg23[%c0_292, %c120_293] : memref<16x768xf32, #tpu.memory_space<vmem>>, vector<4x128xf32>
    %c0_294 = arith.constant 0 : index
    %c121_295 = arith.constant 121 : index
    %335 = vector.load %arg23[%c0_294, %c121_295] : memref<16x768xf32, #tpu.memory_space<vmem>>, vector<4x128xf32>
    %c0_296 = arith.constant 0 : index
    %c127_297 = arith.constant 127 : index
    %336 = vector.load %arg23[%c0_296, %c127_297] : memref<16x768xf32, #tpu.memory_space<vmem>>, vector<4x128xf32>
    %c0_298 = arith.constant 0 : index
    %c128_299 = arith.constant 128 : index
    %337 = vector.load %arg23[%c0_298, %c128_299] : memref<16x768xf32, #tpu.memory_space<vmem>>, vector<4x128xf32>
    %c0_300 = arith.constant 0 : index
    %c129_301 = arith.constant 129 : index
    %338 = vector.load %arg23[%c0_300, %c129_301] : memref<16x768xf32, #tpu.memory_space<vmem>>, vector<4x128xf32>
    %c0_302 = arith.constant 0 : index
    %c135_303 = arith.constant 135 : index
    %339 = vector.load %arg23[%c0_302, %c135_303] : memref<16x768xf32, #tpu.memory_space<vmem>>, vector<4x128xf32>
    %c0_304 = arith.constant 0 : index
    %c136_305 = arith.constant 136 : index
    %340 = vector.load %arg23[%c0_304, %c136_305] : memref<16x768xf32, #tpu.memory_space<vmem>>, vector<4x128xf32>
    %c0_306 = arith.constant 0 : index
    %c137_307 = arith.constant 137 : index
    %341 = vector.load %arg23[%c0_306, %c137_307] : memref<16x768xf32, #tpu.memory_space<vmem>>, vector<4x128xf32>
    %342 = tpu.concatenate %333, %334, %335, %336, %337, %338, %339, %340, %341 in 0 : vector<4x128xf32>, vector<4x128xf32>, vector<4x128xf32>, vector<4x128xf32>, vector<4x128xf32>, vector<4x128xf32>, vector<4x128xf32>, vector<4x128xf32>, vector<4x128xf32> -> vector<36x128xf32>
    %c0_308 = arith.constant 0 : index
    %c0_309 = arith.constant 0 : index
    %343 = vector.load %arg14[%c0_308, %c0_309] : memref<36x128xf32, #tpu.memory_space<vmem>>, vector<36x128xf32>
    %344 = arith.mulf %342, %343 : vector<36x128xf32>
    %c4_310 = arith.constant 4 : index
    %c0_311 = arith.constant 0 : index
    %c0_312 = arith.constant 0 : index
    %345 = vector.load %arg9[%c4_310, %c0_311, %c0_312] : memref<9x4x36xf32, #tpu.memory_space<vmem>>, vector<1x4x36xf32>
    %346 = vector.shape_cast %345 : vector<1x4x36xf32> to vector<4x36xf32>
    %cst_313 = arith.constant dense<0.000000e+00> : vector<4x128xf32>
    %347 = tpu.matmul %346, %344, %cst_313 {dimension_numbers = #tpu.dot_dimension_numbers<[1], [0], [0], [1], [0, 0, 1, 1], [], []>} : vector<4x36xf32>, vector<36x128xf32>, vector<4x128xf32> -> vector<4x128xf32>
    %c4_314 = arith.constant 4 : index
    %c0_315 = arith.constant 0 : index
    %c0_316 = arith.constant 0 : index
    %348 = vector.load %arg6[%c4_314, %c0_315, %c0_316] : memref<9x4x1xf32, #tpu.memory_space<vmem>>, vector<1x4x1xf32>
    %349 = vector.shape_cast %348 : vector<1x4x1xf32> to vector<4x1xf32>
    %350 = vector.broadcast %349 : vector<4x1xf32> to vector<4x128xf32>
    %351 = arith.mulf %347, %350 : vector<4x128xf32>
    %c4_317 = arith.constant 4 : index
    %c0_318 = arith.constant 0 : index
    %c0_319 = arith.constant 0 : index
    %352 = vector.load %arg7[%c4_317, %c0_318, %c0_319] : memref<9x4x1xf32, #tpu.memory_space<vmem>>, vector<1x4x1xf32>
    %353 = vector.shape_cast %352 : vector<1x4x1xf32> to vector<4x1xf32>
    %354 = vector.broadcast %353 : vector<4x1xf32> to vector<4x128xf32>
    %355 = arith.addf %351, %354 : vector<4x128xf32>
    %cst_320 = arith.constant 0.000000e+00 : f32
    %356 = vector.broadcast %cst_320 : f32 to vector<4x128xf32>
    %357 = arith.maximumf %355, %356 : vector<4x128xf32>
    %c4_321 = arith.constant 4 : index
    %c0_322 = arith.constant 0 : index
    %c0_323 = arith.constant 0 : index
    %358 = vector.load %arg10[%c4_321, %c0_322, %c0_323] : memref<9x16x4xf32, #tpu.memory_space<vmem>>, vector<1x16x4xf32>
    %359 = vector.shape_cast %358 : vector<1x16x4xf32> to vector<16x4xf32>
    %cst_324 = arith.constant dense<0.000000e+00> : vector<16x128xf32>
    %360 = tpu.matmul %359, %357, %cst_324 {dimension_numbers = #tpu.dot_dimension_numbers<[1], [0], [0], [1], [0, 0, 1, 1], [], []>} : vector<16x4xf32>, vector<4x128xf32>, vector<16x128xf32> -> vector<16x128xf32>
    %361 = arith.addf %360, %308 : vector<16x128xf32>
    %c0_325 = arith.constant 0 : index
    %c128_326 = arith.constant 128 : index
    %362 = vector.load %arg23[%c0_325, %c128_326] : memref<16x768xf32, #tpu.memory_space<vmem>>, vector<16x128xf32>
    tpu.vector_store %arg23[%c0_325, %c128_326], %308 {strides = array<i32>} : memref<16x768xf32, #tpu.memory_space<vmem>>, vector<16x128xf32>,
    %c0_327 = arith.constant 0 : index
    %c119_328 = arith.constant 119 : index
    %363 = vector.load %arg23[%c0_327, %c119_328] : memref<16x768xf32, #tpu.memory_space<vmem>>, vector<16x128xf32>
    %c0_329 = arith.constant 0 : index
    %c120_330 = arith.constant 120 : index
    %364 = vector.load %arg23[%c0_329, %c120_330] : memref<16x768xf32, #tpu.memory_space<vmem>>, vector<16x128xf32>
    %c0_331 = arith.constant 0 : index
    %c121_332 = arith.constant 121 : index
    %365 = vector.load %arg23[%c0_331, %c121_332] : memref<16x768xf32, #tpu.memory_space<vmem>>, vector<16x128xf32>
    %c0_333 = arith.constant 0 : index
    %c127_334 = arith.constant 127 : index
    %366 = vector.load %arg23[%c0_333, %c127_334] : memref<16x768xf32, #tpu.memory_space<vmem>>, vector<16x128xf32>
    %c0_335 = arith.constant 0 : index
    %c128_336 = arith.constant 128 : index
    %367 = vector.load %arg23[%c0_335, %c128_336] : memref<16x768xf32, #tpu.memory_space<vmem>>, vector<16x128xf32>
    %c0_337 = arith.constant 0 : index
    %c129_338 = arith.constant 129 : index
    %368 = vector.load %arg23[%c0_337, %c129_338] : memref<16x768xf32, #tpu.memory_space<vmem>>, vector<16x128xf32>
    %c0_339 = arith.constant 0 : index
    %c135_340 = arith.constant 135 : index
    %369 = vector.load %arg23[%c0_339, %c135_340] : memref<16x768xf32, #tpu.memory_space<vmem>>, vector<16x128xf32>
    %c0_341 = arith.constant 0 : index
    %c136_342 = arith.constant 136 : index
    %370 = vector.load %arg23[%c0_341, %c136_342] : memref<16x768xf32, #tpu.memory_space<vmem>>, vector<16x128xf32>
    %c0_343 = arith.constant 0 : index
    %c137_344 = arith.constant 137 : index
    %371 = vector.load %arg23[%c0_343, %c137_344] : memref<16x768xf32, #tpu.memory_space<vmem>>, vector<16x128xf32>
    %c0_345 = arith.constant 0 : index
    %c0_346 = arith.constant 0 : index
    %c0_347 = arith.constant 0 : index
    %372 = vector.load %arg17[%c0_345, %c0_346, %c0_347] : memref<9x1x128xf32, #tpu.memory_space<vmem>>, vector<1x1x128xf32>
    %373 = vector.shape_cast %372 : vector<1x1x128xf32> to vector<1x128xf32>
    %cst_348 = arith.constant 0.000000e+00 : f32
    %374 = vector.broadcast %cst_348 : f32 to vector<1x128xf32>
    %375 = arith.cmpf one, %373, %374 : vector<1x128xf32>
    %cst_349 = arith.constant -3.000000e+38 : f32
    %376 = vector.shape_cast %375 : vector<1x128xi1> to vector<1x128xi1>
    %377 = vector.broadcast %376 : vector<1x128xi1> to vector<16x128xi1>
    %378 = vector.broadcast %cst_349 : f32 to vector<16x128xf32>
    %379 = arith.select %377, %363, %378 : vector<16x128xi1>, vector<16x128xf32>
    %c1_350 = arith.constant 1 : index
    %c0_351 = arith.constant 0 : index
    %c0_352 = arith.constant 0 : index
    %380 = vector.load %arg17[%c1_350, %c0_351, %c0_352] : memref<9x1x128xf32, #tpu.memory_space<vmem>>, vector<1x1x128xf32>
    %381 = vector.shape_cast %380 : vector<1x1x128xf32> to vector<1x128xf32>
    %cst_353 = arith.constant 0.000000e+00 : f32
    %382 = vector.broadcast %cst_353 : f32 to vector<1x128xf32>
    %383 = arith.cmpf one, %381, %382 : vector<1x128xf32>
    %cst_354 = arith.constant -3.000000e+38 : f32
    %384 = vector.shape_cast %383 : vector<1x128xi1> to vector<1x128xi1>
    %385 = vector.broadcast %384 : vector<1x128xi1> to vector<16x128xi1>
    %386 = vector.broadcast %cst_354 : f32 to vector<16x128xf32>
    %387 = arith.select %385, %364, %386 : vector<16x128xi1>, vector<16x128xf32>
    %388 = arith.maximumf %379, %387 : vector<16x128xf32>
    %c2_355 = arith.constant 2 : index
    %c0_356 = arith.constant 0 : index
    %c0_357 = arith.constant 0 : index
    %389 = vector.load %arg17[%c2_355, %c0_356, %c0_357] : memref<9x1x128xf32, #tpu.memory_space<vmem>>, vector<1x1x128xf32>
    %390 = vector.shape_cast %389 : vector<1x1x128xf32> to vector<1x128xf32>
    %cst_358 = arith.constant 0.000000e+00 : f32
    %391 = vector.broadcast %cst_358 : f32 to vector<1x128xf32>
    %392 = arith.cmpf one, %390, %391 : vector<1x128xf32>
    %cst_359 = arith.constant -3.000000e+38 : f32
    %393 = vector.shape_cast %392 : vector<1x128xi1> to vector<1x128xi1>
    %394 = vector.broadcast %393 : vector<1x128xi1> to vector<16x128xi1>
    %395 = vector.broadcast %cst_359 : f32 to vector<16x128xf32>
    %396 = arith.select %394, %365, %395 : vector<16x128xi1>, vector<16x128xf32>
    %397 = arith.maximumf %388, %396 : vector<16x128xf32>
    %c3_360 = arith.constant 3 : index
    %c0_361 = arith.constant 0 : index
    %c0_362 = arith.constant 0 : index
    %398 = vector.load %arg17[%c3_360, %c0_361, %c0_362] : memref<9x1x128xf32, #tpu.memory_space<vmem>>, vector<1x1x128xf32>
    %399 = vector.shape_cast %398 : vector<1x1x128xf32> to vector<1x128xf32>
    %cst_363 = arith.constant 0.000000e+00 : f32
    %400 = vector.broadcast %cst_363 : f32 to vector<1x128xf32>
    %401 = arith.cmpf one, %399, %400 : vector<1x128xf32>
    %cst_364 = arith.constant -3.000000e+38 : f32
    %402 = vector.shape_cast %401 : vector<1x128xi1> to vector<1x128xi1>
    %403 = vector.broadcast %402 : vector<1x128xi1> to vector<16x128xi1>
    %404 = vector.broadcast %cst_364 : f32 to vector<16x128xf32>
    %405 = arith.select %403, %366, %404 : vector<16x128xi1>, vector<16x128xf32>
    %406 = arith.maximumf %397, %405 : vector<16x128xf32>
    %c4_365 = arith.constant 4 : index
    %c0_366 = arith.constant 0 : index
    %c0_367 = arith.constant 0 : index
    %407 = vector.load %arg17[%c4_365, %c0_366, %c0_367] : memref<9x1x128xf32, #tpu.memory_space<vmem>>, vector<1x1x128xf32>
    %408 = vector.shape_cast %407 : vector<1x1x128xf32> to vector<1x128xf32>
    %cst_368 = arith.constant 0.000000e+00 : f32
    %409 = vector.broadcast %cst_368 : f32 to vector<1x128xf32>
    %410 = arith.cmpf one, %408, %409 : vector<1x128xf32>
    %cst_369 = arith.constant -3.000000e+38 : f32
    %411 = vector.shape_cast %410 : vector<1x128xi1> to vector<1x128xi1>
    %412 = vector.broadcast %411 : vector<1x128xi1> to vector<16x128xi1>
    %413 = vector.broadcast %cst_369 : f32 to vector<16x128xf32>
    %414 = arith.select %412, %367, %413 : vector<16x128xi1>, vector<16x128xf32>
    %415 = arith.maximumf %406, %414 : vector<16x128xf32>
    %c5_370 = arith.constant 5 : index
    %c0_371 = arith.constant 0 : index
    %c0_372 = arith.constant 0 : index
    %416 = vector.load %arg17[%c5_370, %c0_371, %c0_372] : memref<9x1x128xf32, #tpu.memory_space<vmem>>, vector<1x1x128xf32>
    %417 = vector.shape_cast %416 : vector<1x1x128xf32> to vector<1x128xf32>
    %cst_373 = arith.constant 0.000000e+00 : f32
    %418 = vector.broadcast %cst_373 : f32 to vector<1x128xf32>
    %419 = arith.cmpf one, %417, %418 : vector<1x128xf32>
    %cst_374 = arith.constant -3.000000e+38 : f32
    %420 = vector.shape_cast %419 : vector<1x128xi1> to vector<1x128xi1>
    %421 = vector.broadcast %420 : vector<1x128xi1> to vector<16x128xi1>
    %422 = vector.broadcast %cst_374 : f32 to vector<16x128xf32>
    %423 = arith.select %421, %368, %422 : vector<16x128xi1>, vector<16x128xf32>
    %424 = arith.maximumf %415, %423 : vector<16x128xf32>
    %c6_375 = arith.constant 6 : index
    %c0_376 = arith.constant 0 : index
    %c0_377 = arith.constant 0 : index
    %425 = vector.load %arg17[%c6_375, %c0_376, %c0_377] : memref<9x1x128xf32, #tpu.memory_space<vmem>>, vector<1x1x128xf32>
    %426 = vector.shape_cast %425 : vector<1x1x128xf32> to vector<1x128xf32>
    %cst_378 = arith.constant 0.000000e+00 : f32
    %427 = vector.broadcast %cst_378 : f32 to vector<1x128xf32>
    %428 = arith.cmpf one, %426, %427 : vector<1x128xf32>
    %cst_379 = arith.constant -3.000000e+38 : f32
    %429 = vector.shape_cast %428 : vector<1x128xi1> to vector<1x128xi1>
    %430 = vector.broadcast %429 : vector<1x128xi1> to vector<16x128xi1>
    %431 = vector.broadcast %cst_379 : f32 to vector<16x128xf32>
    %432 = arith.select %430, %369, %431 : vector<16x128xi1>, vector<16x128xf32>
    %433 = arith.maximumf %424, %432 : vector<16x128xf32>
    %c7_380 = arith.constant 7 : index
    %c0_381 = arith.constant 0 : index
    %c0_382 = arith.constant 0 : index
    %434 = vector.load %arg17[%c7_380, %c0_381, %c0_382] : memref<9x1x128xf32, #tpu.memory_space<vmem>>, vector<1x1x128xf32>
    %435 = vector.shape_cast %434 : vector<1x1x128xf32> to vector<1x128xf32>
    %cst_383 = arith.constant 0.000000e+00 : f32
    %436 = vector.broadcast %cst_383 : f32 to vector<1x128xf32>
    %437 = arith.cmpf one, %435, %436 : vector<1x128xf32>
    %cst_384 = arith.constant -3.000000e+38 : f32
    %438 = vector.shape_cast %437 : vector<1x128xi1> to vector<1x128xi1>
    %439 = vector.broadcast %438 : vector<1x128xi1> to vector<16x128xi1>
    %440 = vector.broadcast %cst_384 : f32 to vector<16x128xf32>
    %441 = arith.select %439, %370, %440 : vector<16x128xi1>, vector<16x128xf32>
    %442 = arith.maximumf %433, %441 : vector<16x128xf32>
    %c8_385 = arith.constant 8 : index
    %c0_386 = arith.constant 0 : index
    %c0_387 = arith.constant 0 : index
    %443 = vector.load %arg17[%c8_385, %c0_386, %c0_387] : memref<9x1x128xf32, #tpu.memory_space<vmem>>, vector<1x1x128xf32>
    %444 = vector.shape_cast %443 : vector<1x1x128xf32> to vector<1x128xf32>
    %cst_388 = arith.constant 0.000000e+00 : f32
    %445 = vector.broadcast %cst_388 : f32 to vector<1x128xf32>
    %446 = arith.cmpf one, %444, %445 : vector<1x128xf32>
    %cst_389 = arith.constant -3.000000e+38 : f32
    %447 = vector.shape_cast %446 : vector<1x128xi1> to vector<1x128xi1>
    %448 = vector.broadcast %447 : vector<1x128xi1> to vector<16x128xi1>
    %449 = vector.broadcast %cst_389 : f32 to vector<16x128xf32>
    %450 = arith.select %448, %371, %449 : vector<16x128xi1>, vector<16x128xf32>
    %451 = arith.maximumf %442, %450 : vector<16x128xf32>
    %c0_390 = arith.constant 0 : index
    %c0_391 = arith.constant 0 : index
    %452 = vector.load %arg19[%c0_390, %c0_391] : memref<128x32xf32, #tpu.memory_space<vmem>>, vector<128x32xf32>
    %cst_392 = arith.constant dense<0.000000e+00> : vector<16x32xf32>
    %453 = tpu.matmul %451, %452, %cst_392 {dimension_numbers = #tpu.dot_dimension_numbers<[1], [0], [0], [1], [0, 0, 1, 1], [], []>} : vector<16x128xf32>, vector<128x32xf32>, vector<16x32xf32> -> vector<16x32xf32>
    %c5_393 = arith.constant 5 : index
    %c0_394 = arith.constant 0 : index
    %c0_395 = arith.constant 0 : index
    %454 = vector.load %arg2[%c5_393, %c0_394, %c0_395] : memref<9x16x1xf32, #tpu.memory_space<vmem>>, vector<1x16x1xf32>
    %455 = vector.shape_cast %454 : vector<1x16x1xf32> to vector<16x1xf32>
    %456 = vector.broadcast %455 : vector<16x1xf32> to vector<16x32xf32>
    %457 = arith.mulf %453, %456 : vector<16x32xf32>
    %c5_396 = arith.constant 5 : index
    %c0_397 = arith.constant 0 : index
    %c0_398 = arith.constant 0 : index
    %458 = vector.load %arg3[%c5_396, %c0_397, %c0_398] : memref<9x16x1xf32, #tpu.memory_space<vmem>>, vector<1x16x1xf32>
    %459 = vector.shape_cast %458 : vector<1x16x1xf32> to vector<16x1xf32>
    %460 = vector.broadcast %459 : vector<16x1xf32> to vector<16x32xf32>
    %461 = arith.addf %457, %460 : vector<16x32xf32>
    %cst_399 = arith.constant 0.000000e+00 : f32
    %462 = vector.broadcast %cst_399 : f32 to vector<16x32xf32>
    %463 = arith.maximumf %461, %462 : vector<16x32xf32>
    %c5_400 = arith.constant 5 : index
    %c0_401 = arith.constant 0 : index
    %c0_402 = arith.constant 0 : index
    %464 = vector.load %arg8[%c5_400, %c0_401, %c0_402] : memref<9x4x16xf32, #tpu.memory_space<vmem>>, vector<1x4x16xf32>
    %465 = vector.shape_cast %464 : vector<1x4x16xf32> to vector<4x16xf32>
    %cst_403 = arith.constant dense<0.000000e+00> : vector<4x32xf32>
    %466 = tpu.matmul %465, %463, %cst_403 {dimension_numbers = #tpu.dot_dimension_numbers<[1], [0], [0], [1], [0, 0, 1, 1], [], []>} : vector<4x16xf32>, vector<16x32xf32>, vector<4x32xf32> -> vector<4x32xf32>
    %c5_404 = arith.constant 5 : index
    %c0_405 = arith.constant 0 : index
    %c0_406 = arith.constant 0 : index
    %467 = vector.load %arg4[%c5_404, %c0_405, %c0_406] : memref<9x4x1xf32, #tpu.memory_space<vmem>>, vector<1x4x1xf32>
    %468 = vector.shape_cast %467 : vector<1x4x1xf32> to vector<4x1xf32>
    %469 = vector.broadcast %468 : vector<4x1xf32> to vector<4x32xf32>
    %470 = arith.mulf %466, %469 : vector<4x32xf32>
    %c5_407 = arith.constant 5 : index
    %c0_408 = arith.constant 0 : index
    %c0_409 = arith.constant 0 : index
    %471 = vector.load %arg5[%c5_407, %c0_408, %c0_409] : memref<9x4x1xf32, #tpu.memory_space<vmem>>, vector<1x4x1xf32>
    %472 = vector.shape_cast %471 : vector<1x4x1xf32> to vector<4x1xf32>
    %473 = vector.broadcast %472 : vector<4x1xf32> to vector<4x32xf32>
    %474 = arith.addf %470, %473 : vector<4x32xf32>
    %cst_410 = arith.constant 0.000000e+00 : f32
    %475 = vector.broadcast %cst_410 : f32 to vector<4x32xf32>
    %476 = arith.maximumf %474, %475 : vector<4x32xf32>
    %c0_411 = arith.constant 0 : index
    %c128_412 = arith.constant 128 : index
    %477 = vector.load %arg23[%c0_411, %c128_412] : memref<16x768xf32, #tpu.memory_space<vmem>>, vector<4x32xf32>
    tpu.vector_store %arg23[%c0_411, %c128_412], %476 {strides = array<i32>} : memref<16x768xf32, #tpu.memory_space<vmem>>, vector<4x32xf32>,
    %c0_413 = arith.constant 0 : index
    %c123 = arith.constant 123 : index
    %478 = vector.load %arg23[%c0_413, %c123] : memref<16x768xf32, #tpu.memory_space<vmem>>, vector<4x32xf32>
    %c0_414 = arith.constant 0 : index
    %c124 = arith.constant 124 : index
    %479 = vector.load %arg23[%c0_414, %c124] : memref<16x768xf32, #tpu.memory_space<vmem>>, vector<4x32xf32>
    %c0_415 = arith.constant 0 : index
    %c125 = arith.constant 125 : index
    %480 = vector.load %arg23[%c0_415, %c125] : memref<16x768xf32, #tpu.memory_space<vmem>>, vector<4x32xf32>
    %c0_416 = arith.constant 0 : index
    %c127_417 = arith.constant 127 : index
    %481 = vector.load %arg23[%c0_416, %c127_417] : memref<16x768xf32, #tpu.memory_space<vmem>>, vector<4x32xf32>
    %c0_418 = arith.constant 0 : index
    %c128_419 = arith.constant 128 : index
    %482 = vector.load %arg23[%c0_418, %c128_419] : memref<16x768xf32, #tpu.memory_space<vmem>>, vector<4x32xf32>
    %c0_420 = arith.constant 0 : index
    %c129_421 = arith.constant 129 : index
    %483 = vector.load %arg23[%c0_420, %c129_421] : memref<16x768xf32, #tpu.memory_space<vmem>>, vector<4x32xf32>
    %c0_422 = arith.constant 0 : index
    %c131 = arith.constant 131 : index
    %484 = vector.load %arg23[%c0_422, %c131] : memref<16x768xf32, #tpu.memory_space<vmem>>, vector<4x32xf32>
    %c0_423 = arith.constant 0 : index
    %c132 = arith.constant 132 : index
    %485 = vector.load %arg23[%c0_423, %c132] : memref<16x768xf32, #tpu.memory_space<vmem>>, vector<4x32xf32>
    %c0_424 = arith.constant 0 : index
    %c133 = arith.constant 133 : index
    %486 = vector.load %arg23[%c0_424, %c133] : memref<16x768xf32, #tpu.memory_space<vmem>>, vector<4x32xf32>
    %487 = tpu.concatenate %478, %479, %480, %481, %482, %483, %484, %485, %486 in 0 : vector<4x32xf32>, vector<4x32xf32>, vector<4x32xf32>, vector<4x32xf32>, vector<4x32xf32>, vector<4x32xf32>, vector<4x32xf32>, vector<4x32xf32>, vector<4x32xf32> -> vector<36x32xf32>
    %c0_425 = arith.constant 0 : index
    %c0_426 = arith.constant 0 : index
    %488 = vector.load %arg15[%c0_425, %c0_426] : memref<36x32xf32, #tpu.memory_space<vmem>>, vector<36x32xf32>
    %489 = arith.mulf %487, %488 : vector<36x32xf32>
    %c5_427 = arith.constant 5 : index
    %c0_428 = arith.constant 0 : index
    %c0_429 = arith.constant 0 : index
    %490 = vector.load %arg9[%c5_427, %c0_428, %c0_429] : memref<9x4x36xf32, #tpu.memory_space<vmem>>, vector<1x4x36xf32>
    %491 = vector.shape_cast %490 : vector<1x4x36xf32> to vector<4x36xf32>
    %cst_430 = arith.constant dense<0.000000e+00> : vector<4x32xf32>
    %492 = tpu.matmul %491, %489, %cst_430 {dimension_numbers = #tpu.dot_dimension_numbers<[1], [0], [0], [1], [0, 0, 1, 1], [], []>} : vector<4x36xf32>, vector<36x32xf32>, vector<4x32xf32> -> vector<4x32xf32>
    %c5_431 = arith.constant 5 : index
    %c0_432 = arith.constant 0 : index
    %c0_433 = arith.constant 0 : index
    %493 = vector.load %arg6[%c5_431, %c0_432, %c0_433] : memref<9x4x1xf32, #tpu.memory_space<vmem>>, vector<1x4x1xf32>
    %494 = vector.shape_cast %493 : vector<1x4x1xf32> to vector<4x1xf32>
    %495 = vector.broadcast %494 : vector<4x1xf32> to vector<4x32xf32>
    %496 = arith.mulf %492, %495 : vector<4x32xf32>
    %c5_434 = arith.constant 5 : index
    %c0_435 = arith.constant 0 : index
    %c0_436 = arith.constant 0 : index
    %497 = vector.load %arg7[%c5_434, %c0_435, %c0_436] : memref<9x4x1xf32, #tpu.memory_space<vmem>>, vector<1x4x1xf32>
    %498 = vector.shape_cast %497 : vector<1x4x1xf32> to vector<4x1xf32>
    %499 = vector.broadcast %498 : vector<4x1xf32> to vector<4x32xf32>
    %500 = arith.addf %496, %499 : vector<4x32xf32>
    %cst_437 = arith.constant 0.000000e+00 : f32
    %501 = vector.broadcast %cst_437 : f32 to vector<4x32xf32>
    %502 = arith.maximumf %500, %501 : vector<4x32xf32>
    %c5_438 = arith.constant 5 : index
    %c0_439 = arith.constant 0 : index
    %c0_440 = arith.constant 0 : index
    %503 = vector.load %arg10[%c5_438, %c0_439, %c0_440] : memref<9x16x4xf32, #tpu.memory_space<vmem>>, vector<1x16x4xf32>
    %504 = vector.shape_cast %503 : vector<1x16x4xf32> to vector<16x4xf32>
    %cst_441 = arith.constant dense<0.000000e+00> : vector<16x32xf32>
    %505 = tpu.matmul %504, %502, %cst_441 {dimension_numbers = #tpu.dot_dimension_numbers<[1], [0], [0], [1], [0, 0, 1, 1], [], []>} : vector<16x4xf32>, vector<4x32xf32>, vector<16x32xf32> -> vector<16x32xf32>
    %506 = arith.addf %505, %453 : vector<16x32xf32>
    %c6_442 = arith.constant 6 : index
    %c0_443 = arith.constant 0 : index
    %c0_444 = arith.constant 0 : index
    %507 = vector.load %arg2[%c6_442, %c0_443, %c0_444] : memref<9x16x1xf32, #tpu.memory_space<vmem>>, vector<1x16x1xf32>
    %508 = vector.shape_cast %507 : vector<1x16x1xf32> to vector<16x1xf32>
    %509 = vector.broadcast %508 : vector<16x1xf32> to vector<16x32xf32>
    %510 = arith.mulf %506, %509 : vector<16x32xf32>
    %c6_445 = arith.constant 6 : index
    %c0_446 = arith.constant 0 : index
    %c0_447 = arith.constant 0 : index
    %511 = vector.load %arg3[%c6_445, %c0_446, %c0_447] : memref<9x16x1xf32, #tpu.memory_space<vmem>>, vector<1x16x1xf32>
    %512 = vector.shape_cast %511 : vector<1x16x1xf32> to vector<16x1xf32>
    %513 = vector.broadcast %512 : vector<16x1xf32> to vector<16x32xf32>
    %514 = arith.addf %510, %513 : vector<16x32xf32>
    %cst_448 = arith.constant 0.000000e+00 : f32
    %515 = vector.broadcast %cst_448 : f32 to vector<16x32xf32>
    %516 = arith.maximumf %514, %515 : vector<16x32xf32>
    %c6_449 = arith.constant 6 : index
    %c0_450 = arith.constant 0 : index
    %c0_451 = arith.constant 0 : index
    %517 = vector.load %arg8[%c6_449, %c0_450, %c0_451] : memref<9x4x16xf32, #tpu.memory_space<vmem>>, vector<1x4x16xf32>
    %518 = vector.shape_cast %517 : vector<1x4x16xf32> to vector<4x16xf32>
    %cst_452 = arith.constant dense<0.000000e+00> : vector<4x32xf32>
    %519 = tpu.matmul %518, %516, %cst_452 {dimension_numbers = #tpu.dot_dimension_numbers<[1], [0], [0], [1], [0, 0, 1, 1], [], []>} : vector<4x16xf32>, vector<16x32xf32>, vector<4x32xf32> -> vector<4x32xf32>
    %c6_453 = arith.constant 6 : index
    %c0_454 = arith.constant 0 : index
    %c0_455 = arith.constant 0 : index
    %520 = vector.load %arg4[%c6_453, %c0_454, %c0_455] : memref<9x4x1xf32, #tpu.memory_space<vmem>>, vector<1x4x1xf32>
    %521 = vector.shape_cast %520 : vector<1x4x1xf32> to vector<4x1xf32>
    %522 = vector.broadcast %521 : vector<4x1xf32> to vector<4x32xf32>
    %523 = arith.mulf %519, %522 : vector<4x32xf32>
    %c6_456 = arith.constant 6 : index
    %c0_457 = arith.constant 0 : index
    %c0_458 = arith.constant 0 : index
    %524 = vector.load %arg5[%c6_456, %c0_457, %c0_458] : memref<9x4x1xf32, #tpu.memory_space<vmem>>, vector<1x4x1xf32>
    %525 = vector.shape_cast %524 : vector<1x4x1xf32> to vector<4x1xf32>
    %526 = vector.broadcast %525 : vector<4x1xf32> to vector<4x32xf32>
    %527 = arith.addf %523, %526 : vector<4x32xf32>
    %cst_459 = arith.constant 0.000000e+00 : f32
    %528 = vector.broadcast %cst_459 : f32 to vector<4x32xf32>
    %529 = arith.maximumf %527, %528 : vector<4x32xf32>
    %c0_460 = arith.constant 0 : index
    %c128_461 = arith.constant 128 : index
    %530 = vector.load %arg23[%c0_460, %c128_461] : memref<16x768xf32, #tpu.memory_space<vmem>>, vector<4x32xf32>
    tpu.vector_store %arg23[%c0_460, %c128_461], %529 {strides = array<i32>} : memref<16x768xf32, #tpu.memory_space<vmem>>, vector<4x32xf32>,
    %c0_462 = arith.constant 0 : index
    %c123_463 = arith.constant 123 : index
    %531 = vector.load %arg23[%c0_462, %c123_463] : memref<16x768xf32, #tpu.memory_space<vmem>>, vector<4x32xf32>
    %c0_464 = arith.constant 0 : index
    %c124_465 = arith.constant 124 : index
    %532 = vector.load %arg23[%c0_464, %c124_465] : memref<16x768xf32, #tpu.memory_space<vmem>>, vector<4x32xf32>
    %c0_466 = arith.constant 0 : index
    %c125_467 = arith.constant 125 : index
    %533 = vector.load %arg23[%c0_466, %c125_467] : memref<16x768xf32, #tpu.memory_space<vmem>>, vector<4x32xf32>
    %c0_468 = arith.constant 0 : index
    %c127_469 = arith.constant 127 : index
    %534 = vector.load %arg23[%c0_468, %c127_469] : memref<16x768xf32, #tpu.memory_space<vmem>>, vector<4x32xf32>
    %c0_470 = arith.constant 0 : index
    %c128_471 = arith.constant 128 : index
    %535 = vector.load %arg23[%c0_470, %c128_471] : memref<16x768xf32, #tpu.memory_space<vmem>>, vector<4x32xf32>
    %c0_472 = arith.constant 0 : index
    %c129_473 = arith.constant 129 : index
    %536 = vector.load %arg23[%c0_472, %c129_473] : memref<16x768xf32, #tpu.memory_space<vmem>>, vector<4x32xf32>
    %c0_474 = arith.constant 0 : index
    %c131_475 = arith.constant 131 : index
    %537 = vector.load %arg23[%c0_474, %c131_475] : memref<16x768xf32, #tpu.memory_space<vmem>>, vector<4x32xf32>
    %c0_476 = arith.constant 0 : index
    %c132_477 = arith.constant 132 : index
    %538 = vector.load %arg23[%c0_476, %c132_477] : memref<16x768xf32, #tpu.memory_space<vmem>>, vector<4x32xf32>
    %c0_478 = arith.constant 0 : index
    %c133_479 = arith.constant 133 : index
    %539 = vector.load %arg23[%c0_478, %c133_479] : memref<16x768xf32, #tpu.memory_space<vmem>>, vector<4x32xf32>
    %540 = tpu.concatenate %531, %532, %533, %534, %535, %536, %537, %538, %539 in 0 : vector<4x32xf32>, vector<4x32xf32>, vector<4x32xf32>, vector<4x32xf32>, vector<4x32xf32>, vector<4x32xf32>, vector<4x32xf32>, vector<4x32xf32>, vector<4x32xf32> -> vector<36x32xf32>
    %c0_480 = arith.constant 0 : index
    %c0_481 = arith.constant 0 : index
    %541 = vector.load %arg15[%c0_480, %c0_481] : memref<36x32xf32, #tpu.memory_space<vmem>>, vector<36x32xf32>
    %542 = arith.mulf %540, %541 : vector<36x32xf32>
    %c6_482 = arith.constant 6 : index
    %c0_483 = arith.constant 0 : index
    %c0_484 = arith.constant 0 : index
    %543 = vector.load %arg9[%c6_482, %c0_483, %c0_484] : memref<9x4x36xf32, #tpu.memory_space<vmem>>, vector<1x4x36xf32>
    %544 = vector.shape_cast %543 : vector<1x4x36xf32> to vector<4x36xf32>
    %cst_485 = arith.constant dense<0.000000e+00> : vector<4x32xf32>
    %545 = tpu.matmul %544, %542, %cst_485 {dimension_numbers = #tpu.dot_dimension_numbers<[1], [0], [0], [1], [0, 0, 1, 1], [], []>} : vector<4x36xf32>, vector<36x32xf32>, vector<4x32xf32> -> vector<4x32xf32>
    %c6_486 = arith.constant 6 : index
    %c0_487 = arith.constant 0 : index
    %c0_488 = arith.constant 0 : index
    %546 = vector.load %arg6[%c6_486, %c0_487, %c0_488] : memref<9x4x1xf32, #tpu.memory_space<vmem>>, vector<1x4x1xf32>
    %547 = vector.shape_cast %546 : vector<1x4x1xf32> to vector<4x1xf32>
    %548 = vector.broadcast %547 : vector<4x1xf32> to vector<4x32xf32>
    %549 = arith.mulf %545, %548 : vector<4x32xf32>
    %c6_489 = arith.constant 6 : index
    %c0_490 = arith.constant 0 : index
    %c0_491 = arith.constant 0 : index
    %550 = vector.load %arg7[%c6_489, %c0_490, %c0_491] : memref<9x4x1xf32, #tpu.memory_space<vmem>>, vector<1x4x1xf32>
    %551 = vector.shape_cast %550 : vector<1x4x1xf32> to vector<4x1xf32>
    %552 = vector.broadcast %551 : vector<4x1xf32> to vector<4x32xf32>
    %553 = arith.addf %549, %552 : vector<4x32xf32>
    %cst_492 = arith.constant 0.000000e+00 : f32
    %554 = vector.broadcast %cst_492 : f32 to vector<4x32xf32>
    %555 = arith.maximumf %553, %554 : vector<4x32xf32>
    %c6_493 = arith.constant 6 : index
    %c0_494 = arith.constant 0 : index
    %c0_495 = arith.constant 0 : index
    %556 = vector.load %arg10[%c6_493, %c0_494, %c0_495] : memref<9x16x4xf32, #tpu.memory_space<vmem>>, vector<1x16x4xf32>
    %557 = vector.shape_cast %556 : vector<1x16x4xf32> to vector<16x4xf32>
    %cst_496 = arith.constant dense<0.000000e+00> : vector<16x32xf32>
    %558 = tpu.matmul %557, %555, %cst_496 {dimension_numbers = #tpu.dot_dimension_numbers<[1], [0], [0], [1], [0, 0, 1, 1], [], []>} : vector<16x4xf32>, vector<4x32xf32>, vector<16x32xf32> -> vector<16x32xf32>
    %559 = arith.addf %558, %506 : vector<16x32xf32>
    %c0_497 = arith.constant 0 : index
    %c0_498 = arith.constant 0 : index
    %560 = vector.load %arg20[%c0_497, %c0_498] : memref<32x128xf32, #tpu.memory_space<vmem>>, vector<32x128xf32>
    %cst_499 = arith.constant dense<0.000000e+00> : vector<16x128xf32>
    %561 = tpu.matmul %559, %560, %cst_499 {dimension_numbers = #tpu.dot_dimension_numbers<[1], [0], [0], [1], [0, 0, 1, 1], [], []>} : vector<16x32xf32>, vector<32x128xf32>, vector<16x128xf32> -> vector<16x128xf32>
    %562 = arith.addf %561, %308 : vector<16x128xf32>
    %563 = arith.addf %562, %361 : vector<16x128xf32>
    %c7_500 = arith.constant 7 : index
    %c0_501 = arith.constant 0 : index
    %c0_502 = arith.constant 0 : index
    %564 = vector.load %arg2[%c7_500, %c0_501, %c0_502] : memref<9x16x1xf32, #tpu.memory_space<vmem>>, vector<1x16x1xf32>
    %565 = vector.shape_cast %564 : vector<1x16x1xf32> to vector<16x1xf32>
    %566 = vector.broadcast %565 : vector<16x1xf32> to vector<16x128xf32>
    %567 = arith.mulf %563, %566 : vector<16x128xf32>
    %c7_503 = arith.constant 7 : index
    %c0_504 = arith.constant 0 : index
    %c0_505 = arith.constant 0 : index
    %568 = vector.load %arg3[%c7_503, %c0_504, %c0_505] : memref<9x16x1xf32, #tpu.memory_space<vmem>>, vector<1x16x1xf32>
    %569 = vector.shape_cast %568 : vector<1x16x1xf32> to vector<16x1xf32>
    %570 = vector.broadcast %569 : vector<16x1xf32> to vector<16x128xf32>
    %571 = arith.addf %567, %570 : vector<16x128xf32>
    %cst_506 = arith.constant 0.000000e+00 : f32
    %572 = vector.broadcast %cst_506 : f32 to vector<16x128xf32>
    %573 = arith.maximumf %571, %572 : vector<16x128xf32>
    %c7_507 = arith.constant 7 : index
    %c0_508 = arith.constant 0 : index
    %c0_509 = arith.constant 0 : index
    %574 = vector.load %arg8[%c7_507, %c0_508, %c0_509] : memref<9x4x16xf32, #tpu.memory_space<vmem>>, vector<1x4x16xf32>
    %575 = vector.shape_cast %574 : vector<1x4x16xf32> to vector<4x16xf32>
    %cst_510 = arith.constant dense<0.000000e+00> : vector<4x128xf32>
    %576 = tpu.matmul %575, %573, %cst_510 {dimension_numbers = #tpu.dot_dimension_numbers<[1], [0], [0], [1], [0, 0, 1, 1], [], []>} : vector<4x16xf32>, vector<16x128xf32>, vector<4x128xf32> -> vector<4x128xf32>
    %c7_511 = arith.constant 7 : index
    %c0_512 = arith.constant 0 : index
    %c0_513 = arith.constant 0 : index
    %577 = vector.load %arg4[%c7_511, %c0_512, %c0_513] : memref<9x4x1xf32, #tpu.memory_space<vmem>>, vector<1x4x1xf32>
    %578 = vector.shape_cast %577 : vector<1x4x1xf32> to vector<4x1xf32>
    %579 = vector.broadcast %578 : vector<4x1xf32> to vector<4x128xf32>
    %580 = arith.mulf %576, %579 : vector<4x128xf32>
    %c7_514 = arith.constant 7 : index
    %c0_515 = arith.constant 0 : index
    %c0_516 = arith.constant 0 : index
    %581 = vector.load %arg5[%c7_514, %c0_515, %c0_516] : memref<9x4x1xf32, #tpu.memory_space<vmem>>, vector<1x4x1xf32>
    %582 = vector.shape_cast %581 : vector<1x4x1xf32> to vector<4x1xf32>
    %583 = vector.broadcast %582 : vector<4x1xf32> to vector<4x128xf32>
    %584 = arith.addf %580, %583 : vector<4x128xf32>
    %cst_517 = arith.constant 0.000000e+00 : f32
    %585 = vector.broadcast %cst_517 : f32 to vector<4x128xf32>
    %586 = arith.maximumf %584, %585 : vector<4x128xf32>
    %c0_518 = arith.constant 0 : index
    %c128_519 = arith.constant 128 : index
    %587 = vector.load %arg23[%c0_518, %c128_519] : memref<16x768xf32, #tpu.memory_space<vmem>>, vector<4x128xf32>
    tpu.vector_store %arg23[%c0_518, %c128_519], %586 {strides = array<i32>} : memref<16x768xf32, #tpu.memory_space<vmem>>, vector<4x128xf32>,
    %c0_520 = arith.constant 0 : index
    %c119_521 = arith.constant 119 : index
    %588 = vector.load %arg23[%c0_520, %c119_521] : memref<16x768xf32, #tpu.memory_space<vmem>>, vector<4x128xf32>
    %c0_522 = arith.constant 0 : index
    %c120_523 = arith.constant 120 : index
    %589 = vector.load %arg23[%c0_522, %c120_523] : memref<16x768xf32, #tpu.memory_space<vmem>>, vector<4x128xf32>
    %c0_524 = arith.constant 0 : index
    %c121_525 = arith.constant 121 : index
    %590 = vector.load %arg23[%c0_524, %c121_525] : memref<16x768xf32, #tpu.memory_space<vmem>>, vector<4x128xf32>
    %c0_526 = arith.constant 0 : index
    %c127_527 = arith.constant 127 : index
    %591 = vector.load %arg23[%c0_526, %c127_527] : memref<16x768xf32, #tpu.memory_space<vmem>>, vector<4x128xf32>
    %c0_528 = arith.constant 0 : index
    %c128_529 = arith.constant 128 : index
    %592 = vector.load %arg23[%c0_528, %c128_529] : memref<16x768xf32, #tpu.memory_space<vmem>>, vector<4x128xf32>
    %c0_530 = arith.constant 0 : index
    %c129_531 = arith.constant 129 : index
    %593 = vector.load %arg23[%c0_530, %c129_531] : memref<16x768xf32, #tpu.memory_space<vmem>>, vector<4x128xf32>
    %c0_532 = arith.constant 0 : index
    %c135_533 = arith.constant 135 : index
    %594 = vector.load %arg23[%c0_532, %c135_533] : memref<16x768xf32, #tpu.memory_space<vmem>>, vector<4x128xf32>
    %c0_534 = arith.constant 0 : index
    %c136_535 = arith.constant 136 : index
    %595 = vector.load %arg23[%c0_534, %c136_535] : memref<16x768xf32, #tpu.memory_space<vmem>>, vector<4x128xf32>
    %c0_536 = arith.constant 0 : index
    %c137_537 = arith.constant 137 : index
    %596 = vector.load %arg23[%c0_536, %c137_537] : memref<16x768xf32, #tpu.memory_space<vmem>>, vector<4x128xf32>
    %597 = tpu.concatenate %588, %589, %590, %591, %592, %593, %594, %595, %596 in 0 : vector<4x128xf32>, vector<4x128xf32>, vector<4x128xf32>, vector<4x128xf32>, vector<4x128xf32>, vector<4x128xf32>, vector<4x128xf32>, vector<4x128xf32>, vector<4x128xf32> -> vector<36x128xf32>
    %c0_538 = arith.constant 0 : index
    %c0_539 = arith.constant 0 : index
    %598 = vector.load %arg14[%c0_538, %c0_539] : memref<36x128xf32, #tpu.memory_space<vmem>>, vector<36x128xf32>
    %599 = arith.mulf %597, %598 : vector<36x128xf32>
    %c7_540 = arith.constant 7 : index
    %c0_541 = arith.constant 0 : index
    %c0_542 = arith.constant 0 : index
    %600 = vector.load %arg9[%c7_540, %c0_541, %c0_542] : memref<9x4x36xf32, #tpu.memory_space<vmem>>, vector<1x4x36xf32>
    %601 = vector.shape_cast %600 : vector<1x4x36xf32> to vector<4x36xf32>
    %cst_543 = arith.constant dense<0.000000e+00> : vector<4x128xf32>
    %602 = tpu.matmul %601, %599, %cst_543 {dimension_numbers = #tpu.dot_dimension_numbers<[1], [0], [0], [1], [0, 0, 1, 1], [], []>} : vector<4x36xf32>, vector<36x128xf32>, vector<4x128xf32> -> vector<4x128xf32>
    %c7_544 = arith.constant 7 : index
    %c0_545 = arith.constant 0 : index
    %c0_546 = arith.constant 0 : index
    %603 = vector.load %arg6[%c7_544, %c0_545, %c0_546] : memref<9x4x1xf32, #tpu.memory_space<vmem>>, vector<1x4x1xf32>
    %604 = vector.shape_cast %603 : vector<1x4x1xf32> to vector<4x1xf32>
    %605 = vector.broadcast %604 : vector<4x1xf32> to vector<4x128xf32>
    %606 = arith.mulf %602, %605 : vector<4x128xf32>
    %c7_547 = arith.constant 7 : index
    %c0_548 = arith.constant 0 : index
    %c0_549 = arith.constant 0 : index
    %607 = vector.load %arg7[%c7_547, %c0_548, %c0_549] : memref<9x4x1xf32, #tpu.memory_space<vmem>>, vector<1x4x1xf32>
    %608 = vector.shape_cast %607 : vector<1x4x1xf32> to vector<4x1xf32>
    %609 = vector.broadcast %608 : vector<4x1xf32> to vector<4x128xf32>
    %610 = arith.addf %606, %609 : vector<4x128xf32>
    %cst_550 = arith.constant 0.000000e+00 : f32
    %611 = vector.broadcast %cst_550 : f32 to vector<4x128xf32>
    %612 = arith.maximumf %610, %611 : vector<4x128xf32>
    %c7_551 = arith.constant 7 : index
    %c0_552 = arith.constant 0 : index
    %c0_553 = arith.constant 0 : index
    %613 = vector.load %arg10[%c7_551, %c0_552, %c0_553] : memref<9x16x4xf32, #tpu.memory_space<vmem>>, vector<1x16x4xf32>
    %614 = vector.shape_cast %613 : vector<1x16x4xf32> to vector<16x4xf32>
    %cst_554 = arith.constant dense<0.000000e+00> : vector<16x128xf32>
    %615 = tpu.matmul %614, %612, %cst_554 {dimension_numbers = #tpu.dot_dimension_numbers<[1], [0], [0], [1], [0, 0, 1, 1], [], []>} : vector<16x4xf32>, vector<4x128xf32>, vector<16x128xf32> -> vector<16x128xf32>
    %616 = arith.addf %615, %563 : vector<16x128xf32>
    %c0_555 = arith.constant 0 : index
    %c0_556 = arith.constant 0 : index
    %617 = vector.load %arg21[%c0_555, %c0_556] : memref<128x512xf32, #tpu.memory_space<vmem>>, vector<128x512xf32>
    %cst_557 = arith.constant dense<0.000000e+00> : vector<16x512xf32>
    %618 = tpu.matmul %616, %617, %cst_557 {dimension_numbers = #tpu.dot_dimension_numbers<[1], [0], [0], [1], [0, 0, 1, 1], [], []>} : vector<16x128xf32>, vector<128x512xf32>, vector<16x512xf32> -> vector<16x512xf32>
    %619 = arith.addf %618, %163 : vector<16x512xf32>
    %c0_558 = arith.constant 0 : index
    %c0_559 = arith.constant 0 : index
    %c0_560 = arith.constant 0 : index
    %620 = vector.load %arg11[%c0_558, %c0_559, %c0_560] : memref<4x16x1xf32, #tpu.memory_space<vmem>>, vector<1x16x1xf32>
    %621 = vector.shape_cast %620 : vector<1x16x1xf32> to vector<16x1xf32>
    %622 = vector.broadcast %621 : vector<16x1xf32> to vector<16x512xf32>
    %623 = arith.mulf %619, %622 : vector<16x512xf32>
    %c1_561 = arith.constant 1 : index
    %c0_562 = arith.constant 0 : index
    %c0_563 = arith.constant 0 : index
    %624 = vector.load %arg11[%c1_561, %c0_562, %c0_563] : memref<4x16x1xf32, #tpu.memory_space<vmem>>, vector<1x16x1xf32>
    %625 = vector.shape_cast %624 : vector<1x16x1xf32> to vector<16x1xf32>
    %626 = vector.broadcast %625 : vector<16x1xf32> to vector<16x512xf32>
    %627 = arith.addf %623, %626 : vector<16x512xf32>
    %cst_564 = arith.constant 0.000000e+00 : f32
    %628 = vector.broadcast %cst_564 : f32 to vector<16x512xf32>
    %629 = arith.maximumf %627, %628 : vector<16x512xf32>
    %c0_565 = arith.constant 0 : index
    %c0_566 = arith.constant 0 : index
    %c0_567 = arith.constant 0 : index
    %630 = vector.load %arg12[%c0_565, %c0_566, %c0_567] : memref<2x16x16xf32, #tpu.memory_space<vmem>>, vector<1x16x16xf32>
    %631 = vector.shape_cast %630 : vector<1x16x16xf32> to vector<16x16xf32>
    %cst_568 = arith.constant dense<0.000000e+00> : vector<16x512xf32>
    %632 = tpu.matmul %631, %629, %cst_568 {dimension_numbers = #tpu.dot_dimension_numbers<[1], [0], [0], [1], [0, 0, 1, 1], [], []>} : vector<16x16xf32>, vector<16x512xf32>, vector<16x512xf32> -> vector<16x512xf32>
    %c2_569 = arith.constant 2 : index
    %c0_570 = arith.constant 0 : index
    %c0_571 = arith.constant 0 : index
    %633 = vector.load %arg11[%c2_569, %c0_570, %c0_571] : memref<4x16x1xf32, #tpu.memory_space<vmem>>, vector<1x16x1xf32>
    %634 = vector.shape_cast %633 : vector<1x16x1xf32> to vector<16x1xf32>
    %635 = vector.broadcast %634 : vector<16x1xf32> to vector<16x512xf32>
    %636 = arith.mulf %632, %635 : vector<16x512xf32>
    %c3_572 = arith.constant 3 : index
    %c0_573 = arith.constant 0 : index
    %c0_574 = arith.constant 0 : index
    %637 = vector.load %arg11[%c3_572, %c0_573, %c0_574] : memref<4x16x1xf32, #tpu.memory_space<vmem>>, vector<1x16x1xf32>
    %638 = vector.shape_cast %637 : vector<1x16x1xf32> to vector<16x1xf32>
    %639 = vector.broadcast %638 : vector<16x1xf32> to vector<16x512xf32>
    %640 = arith.addf %636, %639 : vector<16x512xf32>
    %cst_575 = arith.constant 0.000000e+00 : f32
    %641 = vector.broadcast %cst_575 : f32 to vector<16x512xf32>
    %642 = arith.maximumf %640, %641 : vector<16x512xf32>
    %c1_576 = arith.constant 1 : index
    %c0_577 = arith.constant 0 : index
    %c0_578 = arith.constant 0 : index
    %643 = vector.load %arg12[%c1_576, %c0_577, %c0_578] : memref<2x16x16xf32, #tpu.memory_space<vmem>>, vector<1x16x16xf32>
    %644 = vector.shape_cast %643 : vector<1x16x16xf32> to vector<16x16xf32>
    %cst_579 = arith.constant dense<0.000000e+00> : vector<16x512xf32>
    %645 = tpu.matmul %644, %642, %cst_579 {dimension_numbers = #tpu.dot_dimension_numbers<[1], [0], [0], [1], [0, 0, 1, 1], [], []>} : vector<16x16xf32>, vector<16x512xf32>, vector<16x512xf32> -> vector<16x512xf32>
    %cst_580 = arith.constant 0.000000e+00 : f32
    %646 = vector.broadcast %cst_580 : f32 to vector<16x512xf32>
    %647 = arith.subf %646, %645 : vector<16x512xf32>
    %648 = math.exp %647 : vector<16x512xf32>
    %cst_581 = arith.constant 1.000000e+00 : f32
    %649 = vector.broadcast %cst_581 : f32 to vector<16x512xf32>
    %650 = arith.addf %649, %648 : vector<16x512xf32>
    %cst_582 = arith.constant 1.000000e+00 : f32
    %651 = vector.broadcast %cst_582 : f32 to vector<16x512xf32>
    %652 = arith.divf %651, %650 : vector<16x512xf32>
    %cst_583 = arith.constant 1.000000e+00 : f32
    %653 = vector.broadcast %cst_583 : f32 to vector<16x512xf32>
    %654 = arith.addf %653, %652 : vector<16x512xf32>
    %655 = arith.mulf %654, %163 : vector<16x512xf32>
    %c8_584 = arith.constant 8 : index
    %c0_585 = arith.constant 0 : index
    %c0_586 = arith.constant 0 : index
    %656 = vector.load %arg2[%c8_584, %c0_585, %c0_586] : memref<9x16x1xf32, #tpu.memory_space<vmem>>, vector<1x16x1xf32>
    %657 = vector.shape_cast %656 : vector<1x16x1xf32> to vector<16x1xf32>
    %658 = vector.broadcast %657 : vector<16x1xf32> to vector<16x512xf32>
    %659 = arith.mulf %655, %658 : vector<16x512xf32>
    %c8_587 = arith.constant 8 : index
    %c0_588 = arith.constant 0 : index
    %c0_589 = arith.constant 0 : index
    %660 = vector.load %arg3[%c8_587, %c0_588, %c0_589] : memref<9x16x1xf32, #tpu.memory_space<vmem>>, vector<1x16x1xf32>
    %661 = vector.shape_cast %660 : vector<1x16x1xf32> to vector<16x1xf32>
    %662 = vector.broadcast %661 : vector<16x1xf32> to vector<16x512xf32>
    %663 = arith.addf %659, %662 : vector<16x512xf32>
    %cst_590 = arith.constant 0.000000e+00 : f32
    %664 = vector.broadcast %cst_590 : f32 to vector<16x512xf32>
    %665 = arith.maximumf %663, %664 : vector<16x512xf32>
    %c8_591 = arith.constant 8 : index
    %c0_592 = arith.constant 0 : index
    %c0_593 = arith.constant 0 : index
    %666 = vector.load %arg8[%c8_591, %c0_592, %c0_593] : memref<9x4x16xf32, #tpu.memory_space<vmem>>, vector<1x4x16xf32>
    %667 = vector.shape_cast %666 : vector<1x4x16xf32> to vector<4x16xf32>
    %cst_594 = arith.constant dense<0.000000e+00> : vector<4x512xf32>
    %668 = tpu.matmul %667, %665, %cst_594 {dimension_numbers = #tpu.dot_dimension_numbers<[1], [0], [0], [1], [0, 0, 1, 1], [], []>} : vector<4x16xf32>, vector<16x512xf32>, vector<4x512xf32> -> vector<4x512xf32>
    %c8_595 = arith.constant 8 : index
    %c0_596 = arith.constant 0 : index
    %c0_597 = arith.constant 0 : index
    %669 = vector.load %arg4[%c8_595, %c0_596, %c0_597] : memref<9x4x1xf32, #tpu.memory_space<vmem>>, vector<1x4x1xf32>
    %670 = vector.shape_cast %669 : vector<1x4x1xf32> to vector<4x1xf32>
    %671 = vector.broadcast %670 : vector<4x1xf32> to vector<4x512xf32>
    %672 = arith.mulf %668, %671 : vector<4x512xf32>
    %c8_598 = arith.constant 8 : index
    %c0_599 = arith.constant 0 : index
    %c0_600 = arith.constant 0 : index
    %673 = vector.load %arg5[%c8_598, %c0_599, %c0_600] : memref<9x4x1xf32, #tpu.memory_space<vmem>>, vector<1x4x1xf32>
    %674 = vector.shape_cast %673 : vector<1x4x1xf32> to vector<4x1xf32>
    %675 = vector.broadcast %674 : vector<4x1xf32> to vector<4x512xf32>
    %676 = arith.addf %672, %675 : vector<4x512xf32>
    %cst_601 = arith.constant 0.000000e+00 : f32
    %677 = vector.broadcast %cst_601 : f32 to vector<4x512xf32>
    %678 = arith.maximumf %676, %677 : vector<4x512xf32>
    %c0_602 = arith.constant 0 : index
    %c128_603 = arith.constant 128 : index
    %679 = vector.load %arg23[%c0_602, %c128_603] : memref<16x768xf32, #tpu.memory_space<vmem>>, vector<4x512xf32>
    tpu.vector_store %arg23[%c0_602, %c128_603], %678 {strides = array<i32>} : memref<16x768xf32, #tpu.memory_space<vmem>>, vector<4x512xf32>,
    %c0_604 = arith.constant 0 : index
    %c111_605 = arith.constant 111 : index
    %680 = vector.load %arg23[%c0_604, %c111_605] : memref<16x768xf32, #tpu.memory_space<vmem>>, vector<4x512xf32>
    %c0_606 = arith.constant 0 : index
    %c112_607 = arith.constant 112 : index
    %681 = vector.load %arg23[%c0_606, %c112_607] : memref<16x768xf32, #tpu.memory_space<vmem>>, vector<4x512xf32>
    %c0_608 = arith.constant 0 : index
    %c113_609 = arith.constant 113 : index
    %682 = vector.load %arg23[%c0_608, %c113_609] : memref<16x768xf32, #tpu.memory_space<vmem>>, vector<4x512xf32>
    %c0_610 = arith.constant 0 : index
    %c127_611 = arith.constant 127 : index
    %683 = vector.load %arg23[%c0_610, %c127_611] : memref<16x768xf32, #tpu.memory_space<vmem>>, vector<4x512xf32>
    %c0_612 = arith.constant 0 : index
    %c128_613 = arith.constant 128 : index
    %684 = vector.load %arg23[%c0_612, %c128_613] : memref<16x768xf32, #tpu.memory_space<vmem>>, vector<4x512xf32>
    %c0_614 = arith.constant 0 : index
    %c129_615 = arith.constant 129 : index
    %685 = vector.load %arg23[%c0_614, %c129_615] : memref<16x768xf32, #tpu.memory_space<vmem>>, vector<4x512xf32>
    %c0_616 = arith.constant 0 : index
    %c143_617 = arith.constant 143 : index
    %686 = vector.load %arg23[%c0_616, %c143_617] : memref<16x768xf32, #tpu.memory_space<vmem>>, vector<4x512xf32>
    %c0_618 = arith.constant 0 : index
    %c144_619 = arith.constant 144 : index
    %687 = vector.load %arg23[%c0_618, %c144_619] : memref<16x768xf32, #tpu.memory_space<vmem>>, vector<4x512xf32>
    %c0_620 = arith.constant 0 : index
    %c145_621 = arith.constant 145 : index
    %688 = vector.load %arg23[%c0_620, %c145_621] : memref<16x768xf32, #tpu.memory_space<vmem>>, vector<4x512xf32>
    %689 = tpu.concatenate %680, %681, %682, %683, %684, %685, %686, %687, %688 in 0 : vector<4x512xf32>, vector<4x512xf32>, vector<4x512xf32>, vector<4x512xf32>, vector<4x512xf32>, vector<4x512xf32>, vector<4x512xf32>, vector<4x512xf32>, vector<4x512xf32> -> vector<36x512xf32>
    %c0_622 = arith.constant 0 : index
    %c0_623 = arith.constant 0 : index
    %690 = vector.load %arg13[%c0_622, %c0_623] : memref<36x512xf32, #tpu.memory_space<vmem>>, vector<36x512xf32>
    %691 = arith.mulf %689, %690 : vector<36x512xf32>
    %c8_624 = arith.constant 8 : index
    %c0_625 = arith.constant 0 : index
    %c0_626 = arith.constant 0 : index
    %692 = vector.load %arg9[%c8_624, %c0_625, %c0_626] : memref<9x4x36xf32, #tpu.memory_space<vmem>>, vector<1x4x36xf32>
    %693 = vector.shape_cast %692 : vector<1x4x36xf32> to vector<4x36xf32>
    %cst_627 = arith.constant dense<0.000000e+00> : vector<4x512xf32>
    %694 = tpu.matmul %693, %691, %cst_627 {dimension_numbers = #tpu.dot_dimension_numbers<[1], [0], [0], [1], [0, 0, 1, 1], [], []>} : vector<4x36xf32>, vector<36x512xf32>, vector<4x512xf32> -> vector<4x512xf32>
    %c8_628 = arith.constant 8 : index
    %c0_629 = arith.constant 0 : index
    %c0_630 = arith.constant 0 : index
    %695 = vector.load %arg6[%c8_628, %c0_629, %c0_630] : memref<9x4x1xf32, #tpu.memory_space<vmem>>, vector<1x4x1xf32>
    %696 = vector.shape_cast %695 : vector<1x4x1xf32> to vector<4x1xf32>
    %697 = vector.broadcast %696 : vector<4x1xf32> to vector<4x512xf32>
    %698 = arith.mulf %694, %697 : vector<4x512xf32>
    %c8_631 = arith.constant 8 : index
    %c0_632 = arith.constant 0 : index
    %c0_633 = arith.constant 0 : index
    %699 = vector.load %arg7[%c8_631, %c0_632, %c0_633] : memref<9x4x1xf32, #tpu.memory_space<vmem>>, vector<1x4x1xf32>
    %700 = vector.shape_cast %699 : vector<1x4x1xf32> to vector<4x1xf32>
    %701 = vector.broadcast %700 : vector<4x1xf32> to vector<4x512xf32>
    %702 = arith.addf %698, %701 : vector<4x512xf32>
    %cst_634 = arith.constant 0.000000e+00 : f32
    %703 = vector.broadcast %cst_634 : f32 to vector<4x512xf32>
    %704 = arith.maximumf %702, %703 : vector<4x512xf32>
    %c8_635 = arith.constant 8 : index
    %c0_636 = arith.constant 0 : index
    %c0_637 = arith.constant 0 : index
    %705 = vector.load %arg10[%c8_635, %c0_636, %c0_637] : memref<9x16x4xf32, #tpu.memory_space<vmem>>, vector<1x16x4xf32>
    %706 = vector.shape_cast %705 : vector<1x16x4xf32> to vector<16x4xf32>
    %cst_638 = arith.constant dense<0.000000e+00> : vector<16x512xf32>
    %707 = tpu.matmul %706, %704, %cst_638 {dimension_numbers = #tpu.dot_dimension_numbers<[1], [0], [0], [1], [0, 0, 1, 1], [], []>} : vector<16x4xf32>, vector<4x512xf32>, vector<16x512xf32> -> vector<16x512xf32>
    %708 = arith.addf %707, %655 : vector<16x512xf32>
    %c0_639 = arith.constant 0 : index
    %c0_640 = arith.constant 0 : index
    %709 = vector.load %arg22[%c0_639, %c0_640] : memref<16x512xf32, #tpu.memory_space<vmem>>, vector<16x512xf32>
    tpu.vector_store %arg22[%c0_639, %c0_640], %708 {strides = array<i32>} : memref<16x512xf32, #tpu.memory_space<vmem>>, vector<16x512xf32>,
    return
  }
  func.func @transform_0(%arg0: i32) -> (i32, i32) {
    %c0_i32 = arith.constant 0 : i32
    %c0_i32_0 = arith.constant 0 : i32
    %c0_i32_1 = arith.constant 0 : i32
    return %c0_i32, %c0_i32_0 : i32, i32
  }
  func.func @transform_1(%arg0: i32) -> (i32, i32, i32) {
    %c0_i32 = arith.constant 0 : i32
    %c0_i32_0 = arith.constant 0 : i32
    %c0_i32_1 = arith.constant 0 : i32
    %c0_i32_2 = arith.constant 0 : i32
    return %c0_i32, %c0_i32_0, %c0_i32_1 : i32, i32, i32
  }
  func.func @transform_2(%arg0: i32) -> (i32, i32, i32) {
    %c0_i32 = arith.constant 0 : i32
    %c0_i32_0 = arith.constant 0 : i32
    %c0_i32_1 = arith.constant 0 : i32
    %c0_i32_2 = arith.constant 0 : i32
    return %c0_i32, %c0_i32_0, %c0_i32_1 : i32, i32, i32
  }
  func.func @transform_3(%arg0: i32) -> (i32, i32, i32) {
    %c0_i32 = arith.constant 0 : i32
    %c0_i32_0 = arith.constant 0 : i32
    %c0_i32_1 = arith.constant 0 : i32
    %c0_i32_2 = arith.constant 0 : i32
    return %c0_i32, %c0_i32_0, %c0_i32_1 : i32, i32, i32
  }
  func.func @transform_4(%arg0: i32) -> (i32, i32, i32) {
    %c0_i32 = arith.constant 0 : i32
    %c0_i32_0 = arith.constant 0 : i32
    %c0_i32_1 = arith.constant 0 : i32
    %c0_i32_2 = arith.constant 0 : i32
    return %c0_i32, %c0_i32_0, %c0_i32_1 : i32, i32, i32
  }
  func.func @transform_5(%arg0: i32) -> (i32, i32, i32) {
    %c0_i32 = arith.constant 0 : i32
    %c0_i32_0 = arith.constant 0 : i32
    %c0_i32_1 = arith.constant 0 : i32
    %c0_i32_2 = arith.constant 0 : i32
    return %c0_i32, %c0_i32_0, %c0_i32_1 : i32, i32, i32
  }
  func.func @transform_6(%arg0: i32) -> (i32, i32, i32) {
    %c0_i32 = arith.constant 0 : i32
    %c0_i32_0 = arith.constant 0 : i32
    %c0_i32_1 = arith.constant 0 : i32
    %c0_i32_2 = arith.constant 0 : i32
    return %c0_i32, %c0_i32_0, %c0_i32_1 : i32, i32, i32
  }
  func.func @transform_7(%arg0: i32) -> (i32, i32, i32) {
    %c0_i32 = arith.constant 0 : i32
    %c0_i32_0 = arith.constant 0 : i32
    %c0_i32_1 = arith.constant 0 : i32
    %c0_i32_2 = arith.constant 0 : i32
    return %c0_i32, %c0_i32_0, %c0_i32_1 : i32, i32, i32
  }
  func.func @transform_8(%arg0: i32) -> (i32, i32, i32) {
    %c0_i32 = arith.constant 0 : i32
    %c0_i32_0 = arith.constant 0 : i32
    %c0_i32_1 = arith.constant 0 : i32
    %c0_i32_2 = arith.constant 0 : i32
    return %c0_i32, %c0_i32_0, %c0_i32_1 : i32, i32, i32
  }
  func.func @transform_9(%arg0: i32) -> (i32, i32, i32) {
    %c0_i32 = arith.constant 0 : i32
    %c0_i32_0 = arith.constant 0 : i32
    %c0_i32_1 = arith.constant 0 : i32
    %c0_i32_2 = arith.constant 0 : i32
    return %c0_i32, %c0_i32_0, %c0_i32_1 : i32, i32, i32
  }
  func.func @transform_10(%arg0: i32) -> (i32, i32, i32) {
    %c0_i32 = arith.constant 0 : i32
    %c0_i32_0 = arith.constant 0 : i32
    %c0_i32_1 = arith.constant 0 : i32
    %c0_i32_2 = arith.constant 0 : i32
    return %c0_i32, %c0_i32_0, %c0_i32_1 : i32, i32, i32
  }
  func.func @transform_11(%arg0: i32) -> (i32, i32, i32) {
    %c0_i32 = arith.constant 0 : i32
    %c0_i32_0 = arith.constant 0 : i32
    %c0_i32_1 = arith.constant 0 : i32
    %c0_i32_2 = arith.constant 0 : i32
    return %c0_i32, %c0_i32_0, %c0_i32_1 : i32, i32, i32
  }
  func.func @transform_12(%arg0: i32) -> (i32, i32) {
    %c0_i32 = arith.constant 0 : i32
    %c0_i32_0 = arith.constant 0 : i32
    %c0_i32_1 = arith.constant 0 : i32
    return %c0_i32, %c0_i32_0 : i32, i32
  }
  func.func @transform_13(%arg0: i32) -> (i32, i32) {
    %c0_i32 = arith.constant 0 : i32
    %c0_i32_0 = arith.constant 0 : i32
    %c0_i32_1 = arith.constant 0 : i32
    return %c0_i32, %c0_i32_0 : i32, i32
  }
  func.func @transform_14(%arg0: i32) -> (i32, i32) {
    %c0_i32 = arith.constant 0 : i32
    %c0_i32_0 = arith.constant 0 : i32
    %c0_i32_1 = arith.constant 0 : i32
    return %c0_i32, %c0_i32_0 : i32, i32
  }
  func.func @transform_15(%arg0: i32) -> (i32, i32, i32) {
    %c0_i32 = arith.constant 0 : i32
    %c0_i32_0 = arith.constant 0 : i32
    %c0_i32_1 = arith.constant 0 : i32
    %c0_i32_2 = arith.constant 0 : i32
    return %c0_i32, %c0_i32_0, %c0_i32_1 : i32, i32, i32
  }
  func.func @transform_16(%arg0: i32) -> (i32, i32, i32) {
    %c0_i32 = arith.constant 0 : i32
    %c0_i32_0 = arith.constant 0 : i32
    %c0_i32_1 = arith.constant 0 : i32
    %c0_i32_2 = arith.constant 0 : i32
    return %c0_i32, %c0_i32_0, %c0_i32_1 : i32, i32, i32
  }
  func.func @transform_17(%arg0: i32) -> (i32, i32) {
    %c0_i32 = arith.constant 0 : i32
    %c0_i32_0 = arith.constant 0 : i32
    %c0_i32_1 = arith.constant 0 : i32
    return %c0_i32, %c0_i32_0 : i32, i32
  }
  func.func @transform_18(%arg0: i32) -> (i32, i32) {
    %c0_i32 = arith.constant 0 : i32
    %c0_i32_0 = arith.constant 0 : i32
    %c0_i32_1 = arith.constant 0 : i32
    return %c0_i32, %c0_i32_0 : i32, i32
  }
  func.func @transform_19(%arg0: i32) -> (i32, i32) {
    %c0_i32 = arith.constant 0 : i32
    %c0_i32_0 = arith.constant 0 : i32
    %c0_i32_1 = arith.constant 0 : i32
    return %c0_i32, %c0_i32_0 : i32, i32
  }
  func.func @transform_20(%arg0: i32) -> (i32, i32) {
    %c0_i32 = arith.constant 0 : i32
    %c0_i32_0 = arith.constant 0 : i32
    %c0_i32_1 = arith.constant 0 : i32
    return %c0_i32, %c0_i32_0 : i32, i32
  }
  func.func @transform_21(%arg0: i32) -> (i32, i32) {
    %c0_i32 = arith.constant 0 : i32
    %c0_i32_0 = arith.constant 0 : i32
    %c0_i32_1 = arith.constant 0 : i32
    return %c0_i32, %c0_i32_0 : i32, i32
  }
}

</mosaic_0001>

<bundles_post_ra>
// kernel: attention_module_stage1_forward.1
= control target key start
LH: loop header
LB: loop body
LE: loop exit
PB: predicated region body
PF: predicated region fallthrough
CT: control target
= control target key end

     0   :  { %v14716_v0 = vmov 0   ;;  %v14718_v7 = vmov 0.0   ;;  %s14710_s25 = smov 126   ;;  %s14700_s22 = smov 112   ;;  %vm14801_vm0 = vcmask 130048   ;;  %vm14790_vm1 = vcmask 1043456   ;;  %s14672_s2 = inlined_call_operand.vmem [shape: f32[9,16,1], index: 2, kind: input, shape index: {}]   ;;  %s14673_s1 = inlined_call_operand.vmem [shape: f32[9,16,1], index: 1, kind: input, shape index: {}]   ;;  %s14674_s4 = inlined_call_operand.vmem [shape: f32[9,4,1], index: 4, kind: input, shape index: {}]   ;;  %s14675_s3 = inlined_call_operand.vmem [shape: f32[9,4,1], index: 3, kind: input, shape index: {}]   ;;  %s14676_s12 = inlined_call_operand.vmem [shape: f32[36,512], index: 12, kind: input, shape index: {}]   ;;  %s14677_s0 = inlined_call_operand.vmem [shape: f32[16,512], index: 0, kind: input, shape index: {}]   ;;  %s14678_s7 = inlined_call_operand.vmem [shape: f32[9,4,16], index: 7, kind: input, shape index: {}]   ;;  %s14679_s5 = inlined_call_operand.vmem [shape: f32[9,4,1], index: 5, kind: input, shape index: {}]   ;;  %s14680_s6 = inlined_call_operand.vmem [shape: f32[9,4,1], index: 6, kind: input, shape index: {}]   ;;  %s14681_s8 = inlined_call_operand.vmem [shape: f32[9,4,36], index: 8, kind: input, shape index: {}]   ;;  %s14682_s9 = inlined_call_operand.vmem [shape: f32[9,16,4], index: 9, kind: input, shape index: {}]   ;;  %s14683_s13 = inlined_call_operand.vmem [shape: f32[36,128], index: 13, kind: input, shape index: {}]   ;;  %s14684_s15 = inlined_call_operand.vmem [shape: f32[9,1,512], index: 15, kind: input, shape index: {}]   ;;  %s14685_s17 = inlined_call_operand.vmem [shape: f32[512,128], index: 17, kind: input, shape index: {}]   ;;  %s14686_s16 = inlined_call_operand.vmem [shape: f32[9,1,128], index: 16, kind: input, shape index: {}]   ;;  %s14687_s18 = inlined_call_operand.vmem [shape: f32[128,32], index: 18, kind: input, shape index: {}]   ;;  %s14688_s14 = inlined_call_operand.vmem [shape: f32[36,32], index: 14, kind: input, shape index: {}]   ;;  %s14689_s19 = inlined_call_operand.vmem [shape: f32[32,128], index: 19, kind: input, shape index: {}]   ;;  %s14690_s10 = inlined_call_operand.vmem [shape: f32[4,16,1], index: 10, kind: input, shape index: {}]   ;;  %s14691_s20 = inlined_call_operand.vmem [shape: f32[128,512], index: 20, kind: input, shape index: {}]   ;;  %s14692_s11 = inlined_call_operand.vmem [shape: f32[2,16,16], index: 11, kind: input, shape index: {}]   ;;  %s14693_s21 = inlined_call_operand.vmem [shape: f32[16,512], index: 21, kind: output, shape index: {}]  }
   0x1   :  { %14897 = sst [smem:[#allocation42_spill]] %s14672_s2  ;;  %9311 = vset.pattern.permute.xlu1 %v14716_v0  ;;  %9310 = vset.pattern.permute.xlu0 %v14716_v0  ;;  %68 = vst [vmem:[#allocation2] sm:$0xff] %v14718_v7  ;;  %70 = vst [vmem:[#allocation2 + $0x28] sm:$0xff] %v14718_v7  ;;  %s14704_s2 = smov 127   ;;  %v128_v62 = vld [vmem:[%s14678_s7] sm:$0xf] }
   0x2   :  { %14898 = sst [smem:[#allocation43_spill]] %s14673_s1  ;;  %s14910_s26 = sld [smem:[#allocation42_spill]]  ;;  %197 = vmatprep.mubr.f32.mxu0 %v14718_v7  ;;  %268 = vmatprep.mubr.f32.mxu1 %v14718_v7  ;;  %vm14800_vm2 = vcmask 1039360   ;;  %vm14789_vm3 = vcmask 908288   ;;  %vm14786_vm4 = vcmask 900096   ;;  %vm14787_vm5 = vcmask 1031168  }
   0x3   :  { %14899 = sst [smem:[#allocation44_spill]] %s14674_s4  ;;  %s14911_s28 = sld [smem:[#allocation43_spill]]  ;;  %vm14784_vm6 = vcmask 785408   ;;  %vm14797_vm7 = vcmask 916480   ;;  %vm14783_vm8 = vcmask 777216   ;;  %vm14782_vm9 = vcmask 769024  }
   0x4   :  { %14900 = sst [smem:[#allocation45_spill]] %s14675_s3  ;;  %s14912_s23 = sld [smem:[#allocation44_spill]]  ;;  %vm14808_vm10 = vcmask 138240   ;;  %vm14785_vm11 = vcmask 293888   ;;  %vm14788_vm12 = vcmask 31744  }
   0x5   :  { %14901 = sst [smem:[#allocation46_spill]] %s14676_s12  ;;  %s14913_s4 = sld [smem:[#allocation45_spill]] }
   0x6   :  { %14902 = sst [smem:[#allocation47_spill]] %s14677_s0  ;;  %s14914_s29 = sld [smem:[#allocation46_spill]] }
   0x7   :  { %14903 = sst [smem:[#allocation48_spill]] %s14687_s18  ;;  %s14747_s12 = smov 111  }
   0x8   :  { %14904 = sst [smem:[#allocation49_spill]] %s14688_s14  ;;  %v100_v1 = vld [vmem:[%s14910_s26] sm:$0xff]  ;;  %v101_v3 = vld [vmem:[%s14910_s26 + $0x8] sm:$0xff]  ;;  %s14706_s1 = smov 110  }
   0x9   :  { %14905 = sst [smem:[#allocation50_spill]] %s14689_s19  ;;  %v80_v2 = vld [vmem:[%s14911_s28] sm:$0xff]  ;;  %104 = vperm.xlu1 %9311, %v100_v1   ;;  %v81_v4 = vld [vmem:[%s14911_s28 + $0x8] sm:$0xff]  ;;  %s14702_s24 = smov 95  }
   0xa   :  { %14906 = sst [smem:[#allocation51_spill]] %s14690_s10  ;;  %84 = vperm.xlu0 %9310, %v80_v2   ;;  %v285_v5 = vld [vmem:[%s14912_s23] sm:$0xf]  ;;  %v10129_v16 = vld [vmem:[#allocation2 + $0x28] sm:$0xf]  ;;  %s14925_s27 = sld [smem:[#allocation47_spill]] }
   0xb   :  { %14907 = sst [smem:[#allocation52_spill]] %s14691_s20  ;;  %v275_v6 = vld [vmem:[%s14913_s4] sm:$0xf]  ;;  %v397_v18 = vrot.slane %v10129_v16, 4  ;;  %s14941_s3 = smov 96  }
   0xc   :  { %14908 = sst [smem:[#allocation53_spill]] %s14692_s11  ;;  %v10084_v8 = vld [vmem:[#allocation2] sm:$0xf]  ;;  %v10100_v11 = vld [vmem:[%s14914_s29 + $0x10] sm:$0xff]  ;;  %v10106_v12 = vld [vmem:[%s14914_s29 + $0x8] sm:$0xff]  ;;  %s14745_s30 = smov 94  }
   0xd   :  { %14909 = sst [smem:[#allocation54_spill]] %s14693_s21  ;;  %109 = vperm.xlu1 %9311, %v101_v3   ;;  %v314_v9 = vrot.slane %v10084_v8, 4  ;;  %v10092_v10 = vld [vmem:[%s14914_s29] sm:$0xff]  ;;  %14916 = vst [vmem:[#allocation4_spill] sm:$0xff] %v10100_v11  ;;  %14917 = vst [vmem:[#allocation5_spill] sm:$0xff] %v10106_v12  ;;  %v10120_v14 = vld [vmem:[%s14914_s29 + $0x18] sm:$0xff] }
   0xe   :  { %89 = vperm.xlu0 %9310, %v81_v4   ;;  %14915 = vst [vmem:[#allocation3_spill] sm:$0xff] %v10092_v10  ;;  %v10113_v13 = vld [vmem:[%s14914_s29 + $0x20] sm:$0xff]  ;;  %14919 = vst [vmem:[#allocation7_spill] sm:$0xff] %v10120_v14  ;;  %v10127_v15 = vld [vmem:[%s14914_s29 + $0x30] sm:$0xff]  ;;  %s14942_s0 = smov 110   ;;  %s14780_s10 = smov 17  }
   0xf   :  { %14918 = vst [vmem:[#allocation6_spill] sm:$0xff] %v10113_v13  ;;  %14920 = vst [vmem:[#allocation8_spill] sm:$0xff] %v10127_v15  ;;  %v10136_v17 = vld [vmem:[%s14914_s29 + $0x28] sm:$0xff]  ;;  %v10146_v19 = vld [vmem:[%s14914_s29 + $0x38] sm:$0xff]  ;;  %s14949_s20 = smov 111   ;;  %s9933_s21 = smov 16  }
  0x10   :  { %14921 = vst [vmem:[#allocation9_spill] sm:$0xff] %v10136_v17  ;;  %14922 = vst [vmem:[#allocation10_spill] sm:$0xff] %v10146_v19  ;;  %v10155_v20 = vld [vmem:[%s14914_s29 + $0x48] sm:$0xff]  ;;  %v10162_v21 = vld [vmem:[%s14914_s29 + $0x40] sm:$0xff]  ;;  %s9934_s19 = smov 15   ;;  %s9936_s11 = smov 113  }
  0x11   :  { %288 = vperm.xlu1 %9311, %v285_v5   ;;  %14923 = vst [vmem:[#allocation11_spill] sm:$0xff] %v10155_v20  ;;  %14924 = vst [vmem:[#allocation12_spill] sm:$0xff] %v10162_v21  ;;  %v10171_v22 = vld [vmem:[%s14925_s27 + $0x8] sm:$0xff]  ;;  %v10176_v23 = vld [vmem:[%s14925_s27 + $0x18] sm:$0xff]  ;;  %s14849_s14 = smov 119   ;;  %s14847_s18 = smov 118  }
  0x12   :  { %278 = vperm.xlu0 %9310, %v275_v6   ;;  %14926 = vst [vmem:[#allocation13_spill] sm:$0xff] %v10171_v22  ;;  %14927 = vst [vmem:[#allocation14_spill] sm:$0xff] %v10176_v23  ;;  %v10181_v24 = vld [vmem:[%s14925_s27] sm:$0xff]  ;;  %v10186_v25 = vld [vmem:[%s14925_s27 + $0x10] sm:$0xff] }
  0x13   :  { %14928 = vst [vmem:[#allocation15_spill] sm:$0xff] %v10181_v24  ;;  %14929 = vst [vmem:[#allocation16_spill] sm:$0xff] %v10186_v25  ;;  %v10193_v30 = vld [vmem:[%s14925_s27 + $0x28] sm:$0xff]  ;;  %v10198_v31 = vld [vmem:[%s14925_s27 + $0x38] sm:$0xff] }
  0x14   :  { %14930 = vst [vmem:[#allocation17_spill] sm:$0xff] %v10193_v30  ;;  %14931 = vst [vmem:[#allocation18_spill] sm:$0xff] %v10198_v31  ;;  %v10205_v34 = vld [vmem:[%s14925_s27 + $0x20] sm:$0xff]  ;;  %v10210_v35 = vld [vmem:[%s14925_s27 + $0x30] sm:$0xff]  ;;  %s14943_s27 = smov 127  }
  0x15   :  { %339 = vrot.lane.b32.xlu1 %v10084_v8, %s14710_s25  ;;  %14932 = vst [vmem:[#allocation19_spill] sm:$0xff] %v10205_v34  ;;  %14933 = vst [vmem:[#allocation20_spill] sm:$0xff] %v10210_v35  ;;  %v10226_v63 = vld [vmem:[%s14914_s29 + $0x58] sm:$0xff]  ;;  %v10231_v1 = vld [vmem:[%s14914_s29 + $0x50] sm:$0xff]  ;;  %s14940_s25 = smov 126  }
  0x16   :  { %319 = vrot.lane.b32.xlu0 %v314_v9, %s14704_s2  ;;  %14934 = vst [vmem:[#allocation21_spill] sm:$0xff] %v10226_v63  ;;  %14935 = vst [vmem:[#allocation22_spill] sm:$0xff] %v10231_v1  ;;  %v10240_v2 = vld [vmem:[%s14914_s29 + $0x68] sm:$0xff]  ;;  %v10245_v3 = vld [vmem:[%s14914_s29 + $0x60] sm:$0xff]  ;;  %s14944_s2 = smov 95  }
  0x17   :  { %14936 = vst [vmem:[#allocation23_spill] sm:$0xff] %v10240_v2  ;;  %14937 = vst [vmem:[#allocation24_spill] sm:$0xff] %v10245_v3  ;;  %v10254_v4 = vld [vmem:[%s14914_s29 + $0x78] sm:$0xff]  ;;  %v10259_v5 = vld [vmem:[%s14914_s29 + $0x70] sm:$0xff] }
  0x18   :  { %14938 = vst [vmem:[#allocation25_spill] sm:$0xff] %v10254_v4  ;;  %14939 = vst [vmem:[#allocation26_spill] sm:$0xff] %v10259_v5 }
  0x19   :  { %539 = vrot.lane.b32.xlu1 %v10092_v10, %s14747_s12 }
  0x1a   :  { %359 = vrot.lane.b32.xlu0 %v314_v9, %s14700_s22  ;;  %s14708_s22 = smov 96  }
  0x1d   :  { %543 = vrot.lane.b32.xlu1 %v10100_v11, %s14747_s12 }
  0x1e   :  { %541 = vrot.lane.b32.xlu0 %v10106_v12, %s14747_s12 }
  0x21   :  { %547 = vrot.lane.b32.xlu1 %v10113_v13, %s14747_s12 }
  0x22   :  { %545 = vrot.lane.b32.xlu0 %v10120_v14, %s14747_s12 }
  0x25   :  { %551 = vrot.lane.b32.xlu1 %v10127_v15, %s14747_s12 }
  0x26   :  { %549 = vrot.lane.b32.xlu0 %v10136_v17, %s14747_s12 }
  0x29   :  { %406 = vrot.lane.b32.xlu1 %v397_v18, %s14706_s1  ;;  %s14945_s1 = smov 112  }
  0x2a   :  { %553 = vrot.lane.b32.xlu0 %v10146_v19, %s14747_s12 }
  0x2d   :  { %446 = vrot.lane.b32.xlu1 %v397_v18, %s14702_s24  ;;  %s15384_s24 = smov 124  }
  0x2e   :  { %426 = vrot.lane.b32.xlu0 %v10129_v16, %s14708_s22  ;;  %s14845_s22 = smov 1  }
  0x31   :  { %557 = vrot.lane.b32.xlu1 %v10155_v20, %s14747_s12 }
  0x32   :  { %555 = vrot.lane.b32.xlu0 %v10162_v21, %s14747_s12 }
  0x35   :  { %561 = vrot.lane.b32.xlu1 %v10226_v63, %s14747_s12 }
  0x36   :  { %559 = vrot.lane.b32.xlu0 %v10231_v1, %s14747_s12 }
  0x39   :  { %565 = vrot.lane.b32.xlu1 %v10240_v2, %s14747_s12 }
  0x3a   :  { %563 = vrot.lane.b32.xlu0 %v10245_v3, %s14747_s12 }
  0x3d   :  { %569 = vrot.lane.b32.xlu1 %v10254_v4, %s14747_s12 }
  0x3e   :  { %567 = vrot.lane.b32.xlu0 %v10259_v5, %s14747_s12 }
  0x88   :  { %v105_v26 = vpop.permute.xlu1 %104 }
  0x89   :  { %v85_v27 = vpop.permute.xlu0 %84 }
  0x8a   :  { %v93_v28 = vmul.f32 %v85_v27, %v10171_v22  ;;  %v95_v29 = vmul.f32 %v85_v27, %v10176_v23  ;;  %v92_v32 = vmul.f32 %v85_v27, %v10181_v24  ;;  %v94_v33 = vmul.f32 %v85_v27, %v10186_v25 }
  0x8c   :  { %v113_v38 = vadd.f32 %v105_v26, %v93_v28  ;;  %v115_v40 = vadd.f32 %v105_v26, %v95_v29  ;;  %v110_v41 = vpop.permute.xlu1 %109  ;;  %v112_v43 = vadd.f32 %v105_v26, %v92_v32  ;;  %v114_v45 = vadd.f32 %v105_v26, %v94_v33 }
  0x8d   :  { %v90_v36 = vpop.permute.xlu0 %89 }
  0x8e   :  { %v97_v37 = vmul.f32 %v90_v36, %v10193_v30  ;;  %v99_v39 = vmul.f32 %v90_v36, %v10198_v31  ;;  %v96_v42 = vmul.f32 %v90_v36, %v10205_v34  ;;  %v98_v44 = vmul.f32 %v90_v36, %v10210_v35 }
  0x8f   :  { %v121_v50 = vmax.f32 %v113_v38, 0.0  ;;  %v123_v52 = vmax.f32 %v115_v40, 0.0  ;;  %v120_v54 = vmax.f32 %v112_v43, 0.0  ;;  %v122_v56 = vmax.f32 %v114_v45, 0.0 }
  0x90   :  { %v117_v46 = vadd.f32 %v110_v41, %v97_v37  ;;  %v119_v47 = vadd.f32 %v110_v41, %v99_v39  ;;  %v116_v48 = vadd.f32 %v110_v41, %v96_v42  ;;  %v118_v49 = vadd.f32 %v110_v41, %v98_v44  ;;  %v289_v32 = vpop.permute.xlu1 %288 }
  0x91   :  { %v279_v6 = vpop.permute.xlu0 %278 }
  0x92   :  { %v125_v51 = vmax.f32 %v117_v46, 0.0  ;;  %v127_v53 = vmax.f32 %v119_v47, 0.0  ;;  %v124_v55 = vmax.f32 %v116_v48, 0.0  ;;  %v126_v57 = vmax.f32 %v118_v49, 0.0 }
  0x94   :  { %v8951_v58 = vpack.c.bf16 %v125_v51, %v121_v50  ;;  %v8955_v59 = vpack.c.bf16 %v127_v53, %v123_v52  ;;  %v8953_v60 = vpack.c.bf16 %v124_v55, %v120_v54  ;;  %v8957_v61 = vpack.c.bf16 %v126_v57, %v122_v56  ;;  %v10319_v53 = vpop.permute.xlu1 %339 }
  0x95   :  { %v10321_v54 = vpop.permute.xlu0 %319 }
  0x96   :  { %8952 = vmatprep.subr.bf16.mxu0 %v8951_v58  ;;  %8956 = vmatprep.subr.bf16.mxu1 %v8955_v59  ;;  %v515_v58 = vld [vmem:[%s14914_s29 + $0x80] sm:$0xf]  ;;  %v516_v59 = vld [vmem:[%s14914_s29 + $0x88] sm:$0xf] }
  0x97   :  { %8954 = vmatpush1.bf16.msra.mxu0 %v8953_v60  ;;  %8958 = vmatpush1.bf16.msra.mxu1 %v8957_v61  ;;  %v517_v60 = vld [vmem:[%s14914_s29 + $0x90] sm:$0xf] }
  0x98   :  { %v10325_v55 = vpop.permute.xlu1 %539 }
  0x99   :  { %v10327_v56 = vpop.permute.xlu0 %359 }
  0x9a   :  { %8396 = vmatmul.mubr.msk.f32.vlgmr.msra.gmra.mrb[0].mxu0 %vm14801_vm0, %v128_v62  ;;  %8397 = vmatmul.mubr.msk.f32.vlgmr.msra.gmra.mrb[0].mxu1 %vm14801_vm0, %v128_v62 }
  0x9b   :  { %833 = vmatprep.mubr.f32.mxu0 %v14718_v7  ;;  %904 = vmatprep.mubr.f32.mxu1 %v14718_v7 }
  0x9d   :  { %v10336_v57 = vpop.permute.xlu0 %541 }
  0xa1   :  { %v546_v62 = vpop.permute.xlu0 %545 }
 0x16d   :  { %v199_v9 = vpop.f32.mrb[0].mxu0  ;;  %v270_v18 = vpop.f32.mrb[0].mxu1 }
 0x16e   :  { %v281_v26 = vmul.f32 %v279_v6, %v199_v9  ;;  %v283_v27 = vmul.f32 %v279_v6, %v270_v18  ;;  %v201_v28 = vpop.f32.mrb[1].mxu0  ;;  %v272_v29 = vpop.f32.mrb[1].mxu1 }
 0x16f   :  { %v282_v33 = vmul.f32 %v279_v6, %v201_v28  ;;  %v284_v36 = vmul.f32 %v279_v6, %v272_v29  ;;  %v518_v6 = vld [vmem:[%s14914_s29 + $0x98] sm:$0xf]  ;;  %v10359_v18 = vpop.permute.xlu0 %549 }
 0x170   :  { %v291_v37 = vadd.f32 %v289_v32, %v281_v26  ;;  %v293_v38 = vadd.f32 %v289_v32, %v283_v27 }
 0x171   :  { %v292_v39 = vadd.f32 %v289_v32, %v282_v33  ;;  %v294_v40 = vadd.f32 %v289_v32, %v284_v36 }
 0x172   :  { %v295_v41 = vmax.f32 %v291_v37, 0.0  ;;  %v297_v42 = vmax.f32 %v293_v38, 0.0 }
 0x173   :  { %v296_v43 = vmax.f32 %v292_v39, 0.0  ;;  %v298_v44 = vmax.f32 %v294_v40, 0.0  ;;  %v10363_v27 = vpop.permute.xlu0 %553 }
 0x174   :  { %299 = vst [vmem:[#allocation2 + $0x8] sm:$0xf] %v295_v41  ;;  %301 = vst [vmem:[#allocation2 + $0x18] sm:$0xf] %v297_v42 }
 0x175   :  { %300 = vst [vmem:[#allocation2 + $0x10] sm:$0xf] %v296_v43  ;;  %302 = vst [vmem:[#allocation2 + $0x20] sm:$0xf] %v298_v44 }
 0x177   :  { %v10367_v29 = vpop.permute.xlu0 %426 }
 0x17b   :  { %v10265_v45 = vld [vmem:[#allocation2 + $0x8] sm:$0xf]  ;;  %v10271_v46 = vld [vmem:[#allocation2 + $0x18] sm:$0xf]  ;;  %v10371_v33 = vpop.permute.xlu0 %555 }
 0x17c   :  { %379 = vrot.lane.b32.xlu1 %v10265_v45, %s14747_s12  ;;  %341 = vrot.lane.b32.xlu0 %v10265_v45, %s14940_s25  ;;  %v10277_v47 = vld [vmem:[#allocation2 + $0x10] sm:$0xf]  ;;  %v10283_v48 = vld [vmem:[#allocation2 + $0x20] sm:$0xf]  ;;  %v315_v49 = vrot.slane %v10265_v45, 4  ;;  %v317_v50 = vrot.slane %v10271_v46, 4 }
 0x17d   :  { %v316_v51 = vrot.slane %v10277_v47, 4  ;;  %v318_v52 = vrot.slane %v10283_v48, 4 }
 0x17f   :  { %v10375_v37 = vpop.permute.xlu0 %559 }
 0x180   :  { %383 = vrot.lane.b32.xlu1 %v10271_v46, %s14747_s12  ;;  %345 = vrot.lane.b32.xlu0 %v10271_v46, %s14940_s25 }
 0x183   :  { %v10379_v39 = vpop.permute.xlu0 %563 }
 0x184   :  { %418 = vrot.lane.b32.xlu0 %v10265_v45, %s14941_s3  ;;  %343 = vrot.lane.b32.xlu1 %v10277_v47, %s14940_s25 }
 0x187   :  { %v10383_v41 = vpop.permute.xlu0 %567 }
 0x188   :  { %422 = vrot.lane.b32.xlu0 %v10271_v46, %s14941_s3  ;;  %347 = vrot.lane.b32.xlu1 %v10283_v48, %s14940_s25 }
 0x18c   :  { %458 = vrot.lane.b32.xlu0 %v10265_v45, %s14745_s30  ;;  %420 = vrot.lane.b32.xlu1 %v10277_v47, %s14941_s3 }
 0x190   :  { %462 = vrot.lane.b32.xlu0 %v10271_v46, %s14745_s30  ;;  %424 = vrot.lane.b32.xlu1 %v10283_v48, %s14941_s3 }
 0x194   :  { %381 = vrot.lane.b32.xlu0 %v10277_v47, %s14747_s12  ;;  %460 = vrot.lane.b32.xlu1 %v10277_v47, %s14745_s30 }
 0x198   :  { %385 = vrot.lane.b32.xlu0 %v10283_v48, %s14747_s12  ;;  %398 = vrot.lane.b32.xlu1 %v315_v49, %s14942_s0 }
 0x19c   :  { %321 = vrot.lane.b32.xlu0 %v315_v49, %s14943_s27  ;;  %402 = vrot.lane.b32.xlu1 %v317_v50, %s14942_s0 }
 0x1a0   :  { %325 = vrot.lane.b32.xlu0 %v317_v50, %s14943_s27  ;;  %438 = vrot.lane.b32.xlu1 %v315_v49, %s14944_s2 }
 0x1a4   :  { %361 = vrot.lane.b32.xlu0 %v315_v49, %s14945_s1  ;;  %442 = vrot.lane.b32.xlu1 %v317_v50, %s14944_s2 }
 0x1a8   :  { %365 = vrot.lane.b32.xlu0 %v317_v50, %s14945_s1  ;;  %323 = vrot.lane.b32.xlu1 %v316_v51, %s14943_s27 }
 0x1ac   :  { %466 = vrot.lane.b32.xlu0 %v10129_v16, %s14745_s30  ;;  %327 = vrot.lane.b32.xlu1 %v318_v52, %s14943_s27  ;;  %v10334_v16 = vpop.permute.xlu1 %543 }
 0x1b0   :  { %400 = vrot.lane.b32.xlu0 %v316_v51, %s14942_s0  ;;  %363 = vrot.lane.b32.xlu1 %v316_v51, %s14945_s1  ;;  %v10349_v61 = vpop.permute.xlu1 %547 }
 0x1b4   :  { %404 = vrot.lane.b32.xlu0 %v318_v52, %s14942_s0  ;;  %367 = vrot.lane.b32.xlu1 %v318_v52, %s14945_s1  ;;  %v10357_v9 = vpop.permute.xlu1 %551 }
 0x1b5   :  { %v584_v12 = vsel %vm14789_vm3, %v10357_v9, %v10363_v27 }
 0x1b8   :  { %440 = vrot.lane.b32.xlu0 %v316_v51, %s14944_s2  ;;  %464 = vrot.lane.b32.xlu1 %v10283_v48, %s14745_s30  ;;  %v10361_v26 = vpop.permute.xlu1 %406  ;;  %s15318_s30 = smov 120  }
 0x1bc   :  { %444 = vrot.lane.b32.xlu0 %v318_v52, %s14944_s2  ;;  %571 = vrot.lane.b32.xlu1 %v515_v58, %s14747_s12  ;;  %v10365_v28 = vpop.permute.xlu1 %446 }
 0x1c0   :  { %573 = vrot.lane.b32.xlu0 %v516_v59, %s14747_s12  ;;  %575 = vrot.lane.b32.xlu1 %v517_v60, %s14747_s12  ;;  %v10369_v32 = vpop.permute.xlu1 %557 }
 0x1c4   :  { %577 = vrot.lane.b32.xlu0 %v518_v6, %s14747_s12  ;;  %v10373_v36 = vpop.permute.xlu1 %561  ;;  %s14983_s12 = smov 94  }
 0x1c8   :  { %v10377_v38 = vpop.permute.xlu1 %565 }
 0x1cc   :  { %v10381_v40 = vpop.permute.xlu1 %569 }
 0x1cd   :  { %14946 = vst [vmem:[#allocation27_spill] sm:$0xff] %v10381_v40  ;;  %v585_v40 = vsel %vm14789_vm3, %v10371_v33, %v10369_v32 }
 0x1ee   :  { %v380_v42 = vpop.permute.xlu1 %379  ;;  %v10385_v43 = vpop.permute.xlu0 %341 }
 0x1f2   :  { %v10387_v44 = vpop.permute.xlu1 %383  ;;  %v10389_v49 = vpop.permute.xlu0 %345 }
 0x1f6   :  { %v10391_v50 = vpop.permute.xlu0 %418  ;;  %v10393_v51 = vpop.permute.xlu1 %343 }
 0x1fa   :  { %v10395_v52 = vpop.permute.xlu0 %422  ;;  %v348_v58 = vpop.permute.xlu1 %347 }
 0x1fe   :  { %v10397_v59 = vpop.permute.xlu0 %458  ;;  %v10399_v60 = vpop.permute.xlu1 %420 }
 0x202   :  { %v10401_v6 = vpop.permute.xlu0 %462  ;;  %v10403_v0 = vpop.permute.xlu1 %424 }
 0x206   :  { %v382_v7 = vpop.permute.xlu0 %381  ;;  %v10405_v31 = vpop.permute.xlu1 %460 }
 0x20a   :  { %v10407_v35 = vpop.permute.xlu0 %385  ;;  %v399_v30 = vpop.permute.xlu1 %398 }
 0x20b   :  { %v489_v25 = vsel %vm14790_vm1, %v380_v42, %v399_v30 }
 0x20c   :  { %v629_v4 = vmul.f32 %v10371_v33, %v489_v25  ;;  %v430_v33 = vsel %vm14784_vm6, %v10399_v60, %v10395_v52 }
 0x20e   :  { %v10409_v34 = vpop.permute.xlu0 %321  ;;  %v10411_v23 = vpop.permute.xlu1 %402 }
 0x212   :  { %v10414_v22 = vpop.permute.xlu0 %325  ;;  %v439_v24 = vpop.permute.xlu1 %438 }
 0x213   :  { %v494_v5 = vsel %vm14790_vm1, %v10391_v50, %v439_v24 }
 0x214   :  { %v634_v3 = vmul.f32 %v10379_v39, %v494_v5 }
 0x216   :  { %v10420_v2 = vpop.permute.xlu0 %361  ;;  %v10422_v1 = vpop.permute.xlu1 %442  ;;  %v9312_v63 = vpack.i.bf16 %v634_v3, %v629_v4  ;;  %v581_v3 = vsel %vm14789_vm3, %v10334_v16, %v546_v62 }
 0x218   :  { %9313 = vrot.lane.b32.xlu0 %v9312_v63, %s14780_s10 }
 0x21a   :  { %v10425_v21 = vpop.permute.xlu0 %365  ;;  %v10427_v20 = vpop.permute.xlu1 %323 }
 0x21e   :  { %v10429_v19 = vpop.permute.xlu0 %466  ;;  %v328_v17 = vpop.permute.xlu1 %327 }
 0x21f   :  { %v333_v25 = vsel %vm14800_vm2, %v10414_v22, %v328_v17  ;;  %v483_v5 = vsel %vm14790_vm1, %v10283_v48, %v328_v17 }
 0x220   :  { %v482_v63 = vsel %vm14790_vm1, %v10271_v46, %v333_v25  ;;  %v623_v4 = vmul.f32 %v546_v62, %v483_v5  ;;  %v353_v25 = vsel %vm14787_vm5, %v10389_v49, %v348_v58 }
 0x221   :  { %v622_v15 = vmul.f32 %v581_v3, %v482_v63  ;;  %v388_v3 = vsel %vm14789_vm3, %v380_v42, %v382_v7 }
 0x222   :  { %v401_v14 = vpop.permute.xlu0 %400  ;;  %v10439_v13 = vpop.permute.xlu1 %363 }
 0x223   :  { %v9327_v11 = vpack.i.bf16 %v623_v4, %v622_v15  ;;  %v409_v17 = vsel %vm14786_vm4, %v399_v30, %v401_v14  ;;  %v410_v48 = vsel %vm14786_vm4, %v401_v14, %v10411_v23  ;;  %v389_v30 = vsel %vm14789_vm3, %v382_v7, %v10387_v44 }
 0x224   :  { %v490_v4 = vsel %vm14790_vm1, %v388_v3, %v409_v17  ;;  %v491_v10 = vsel %vm14790_vm1, %v389_v30, %v410_v48  ;;  %v586_v7 = vsel %vm14789_vm3, %v10369_v32, %v10375_v37 }
 0x225   :  { %9328 = vrot.lane.b32.xlu0 %v9327_v11, %s14780_s10  ;;  %v630_v48 = vmul.f32 %v585_v40, %v490_v4  ;;  %v350_v40 = vsel %vm14787_vm5, %v10319_v53, %v10385_v43 }
 0x226   :  { %v10447_v46 = vpop.permute.xlu0 %404  ;;  %v368_v62 = vpop.permute.xlu1 %367 }
 0x227   :  { %v373_v5 = vsel %vm14797_vm7, %v10425_v21, %v368_v62  ;;  %v488_v15 = vsel %vm14790_vm1, %v348_v58, %v368_v62 }
 0x228   :  { %v487_v14 = vsel %vm14790_vm1, %v353_v25, %v373_v5  ;;  %v628_v63 = vmul.f32 %v10363_v27, %v488_v15  ;;  %v429_v27 = vsel %vm14784_vm6, %v10391_v50, %v10399_v60  ;;  %v631_v25 = vmul.f32 %v586_v7, %v491_v10 }
 0x229   :  { %v627_v11 = vmul.f32 %v584_v12, %v487_v14  ;;  %v370_v50 = vsel %vm14797_vm7, %v10327_v56, %v10420_v2  ;;  %v588_v60 = vsel %vm14789_vm3, %v10379_v39, %v10377_v38  ;;  %v589_v10 = vsel %vm14789_vm3, %v10377_v38, %v10383_v41 }
 0x22a   :  { %v441_v58 = vpop.permute.xlu0 %440  ;;  %v10465_v62 = vpop.permute.xlu1 %464  ;;  %v330_v56 = vsel %vm14800_vm2, %v10321_v54, %v10409_v34  ;;  %v9342_v3 = vpack.i.bf16 %v631_v25, %v630_v48  ;;  %v331_v39 = vsel %vm14800_vm2, %v10409_v34, %v10427_v20  ;;  %v332_v38 = vsel %vm14800_vm2, %v10427_v20, %v10414_v22 }
 0x22b   :  { %v449_v42 = vsel %vm14783_vm8, %v439_v24, %v441_v58  ;;  %v450_v12 = vsel %vm14783_vm8, %v441_v58, %v10422_v1  ;;  %v9337_v17 = vpack.i.bf16 %v628_v63, %v627_v11  ;;  %v484_v63 = vsel %vm14790_vm1, %v350_v40, %v370_v50 }
 0x22c   :  { %v495_v5 = vsel %vm14790_vm1, %v429_v27, %v449_v42  ;;  %v496_v32 = vsel %vm14790_vm1, %v430_v33, %v450_v12  ;;  %v469_v54 = vsel %vm14782_vm9, %v10397_v59, %v10405_v31  ;;  %v479_v11 = vsel %vm14790_vm1, %v10084_v8, %v330_v56 }
 0x22d   :  { %9338 = vrot.lane.b32.xlu0 %v9337_v17, %s14780_s10  ;;  %v635_v30 = vmul.f32 %v588_v60, %v495_v5  ;;  %v636_v14 = vmul.f32 %v589_v10, %v496_v32  ;;  %v624_v27 = vmul.f32 %v10349_v61, %v484_v63  ;;  %v579_v20 = vsel %vm14789_vm3, %v10325_v55, %v10336_v57 }
 0x22e   :  { %v445_v24 = vpop.permute.xlu0 %444  ;;  %v10485_v15 = vpop.permute.xlu1 %571  ;;  %v480_v22 = vsel %vm14790_vm1, %v10265_v45, %v331_v39  ;;  %v481_v42 = vsel %vm14790_vm1, %v10277_v47, %v332_v38  ;;  %v371_v12 = vsel %vm14797_vm7, %v10420_v2, %v10439_v13  ;;  %v372_v33 = vsel %vm14797_vm7, %v10439_v13, %v10425_v21  ;;  %v8419_v38 = vld [vmem:[%s14913_s4 + $0x4] sm:$0xf] }
 0x22f   :  { %v9352_v34 = vpack.i.bf16 %v636_v14, %v635_v30  ;;  %v619_v45 = vmul.f32 %v10325_v55, %v479_v11  ;;  %v580_v47 = vsel %vm14789_vm3, %v10336_v57, %v10334_v16  ;;  %v351_v17 = vsel %vm14787_vm5, %v10385_v43, %v10393_v51  ;;  %v8412_v30 = vld [vmem:[%s14911_s28 + $0x10] sm:$0xff] }
 0x230   :  { %v352_v2 = vsel %vm14787_vm5, %v10393_v51, %v10389_v49  ;;  %v470_v13 = vsel %vm14782_vm9, %v10405_v31, %v10401_v6  ;;  %v620_v25 = vmul.f32 %v579_v20, %v480_v22  ;;  %v621_v55 = vmul.f32 %v580_v47, %v481_v42 }
 0x231   :  { %9343 = vrot.lane.b32.xlu0 %v9342_v3, %s14780_s10  ;;  %v9317_v48 = vpack.i.bf16 %v624_v27, %v619_v45  ;;  %v485_v5 = vsel %vm14790_vm1, %v351_v17, %v371_v12  ;;  %v486_v16 = vsel %vm14790_vm1, %v352_v2, %v372_v33  ;;  %v411_v43 = vsel %vm14786_vm4, %v10411_v23, %v10447_v46 }
 0x232   :  { %v574_v53 = vpop.permute.xlu0 %573  ;;  %v10507_v4 = vpop.permute.xlu1 %575  ;;  %v412_v49 = vsel %vm14786_vm4, %v10447_v46, %v10361_v26  ;;  %v582_v31 = vsel %vm14789_vm3, %v10349_v61, %v10359_v18  ;;  %v583_v51 = vsel %vm14789_vm3, %v10359_v18, %v10357_v9  ;;  %v390_v23 = vsel %vm14789_vm3, %v10387_v44, %v10407_v35 }
 0x233   :  { %v591_v58 = vsel %vm14789_vm3, %v10485_v15, %v574_v53  ;;  %v592_v8 = vsel %vm14789_vm3, %v574_v53, %v10507_v4  ;;  %v472_v26 = vsel %vm14782_vm9, %v10465_v62, %v10429_v19  ;;  %v9322_v32 = vpack.i.bf16 %v621_v55, %v620_v25 }
 0x234   :  { %v640_v7 = vmul.f32 %v591_v58, %v469_v54  ;;  %v641_v21 = vmul.f32 %v592_v8, %v470_v13  ;;  %v625_v50 = vmul.f32 %v582_v31, %v485_v5  ;;  %v626_v60 = vmul.f32 %v583_v51, %v486_v16 }
 0x235   :  { %9353 = vrot.lane.b32.xlu0 %v9352_v34, %s14780_s10  ;;  %v492_v10 = vsel %vm14790_vm1, %v390_v23, %v411_v43  ;;  %v493_v61 = vsel %vm14790_vm1, %v10407_v35, %v412_v49  ;;  %v451_v9 = vsel %vm14783_vm8, %v10422_v1, %v445_v24  ;;  %v452_v18 = vsel %vm14783_vm8, %v445_v24, %v10365_v28  ;;  %v911_v35 = vld [vmem:[%s14679_s5] sm:$0xf] }
 0x236   :  { %712 = vrot.lane.b32.xlu1 %v640_v7, %s14780_s10  ;;  %v578_v57 = vpop.permute.xlu0 %577  ;;  %v587_v19 = vsel %vm14789_vm3, %v10375_v37, %v10373_v36  ;;  %v431_v44 = vsel %vm14784_vm6, %v10395_v52, %v10403_v0  ;;  %v432_v1 = vsel %vm14784_vm6, %v10403_v0, %v10367_v29  ;;  %v9332_v28 = vpack.i.bf16 %v626_v60, %v625_v50  ;;  %v14947_v52 = vld [vmem:[#allocation27_spill] sm:$0xff] }
 0x237   :  { %v643_v46 = vmul.f32 %v578_v57, %v472_v26  ;;  %v632_v24 = vmul.f32 %v587_v19, %v492_v10  ;;  %v633_v40 = vmul.f32 %v10373_v36, %v493_v61  ;;  %v497_v56 = vsel %vm14790_vm1, %v431_v44, %v451_v9  ;;  %v8414_v36 = vld [vmem:[%s14910_s26 + $0x10] sm:$0xff] }
 0x238   :  { %v498_v37 = vsel %vm14790_vm1, %v432_v1, %v452_v18  ;;  %v590_v3 = vsel %vm14789_vm3, %v10383_v41, %v14947_v52  ;;  %v593_v39 = vsel %vm14789_vm3, %v10507_v4, %v578_v57  ;;  %v471_v41 = vsel %vm14782_vm9, %v10401_v6, %v10465_v62  ;;  %v921_v4 = vld [vmem:[%s14680_s6] sm:$0xf]  ;;  %v8413_v6 = vld [vmem:[%s14911_s28 + $0x18] sm:$0xff] }
 0x239   :  { %714 = vrot.lane.b32.xlu0 %v641_v21, %s14780_s10  ;;  %v9347_v0 = vpack.i.bf16 %v633_v40, %v632_v24  ;;  %v637_v29 = vmul.f32 %v590_v3, %v497_v56  ;;  %v638_v14 = vmul.f32 %v14947_v52, %v498_v37  ;;  %v642_v53 = vmul.f32 %v593_v39, %v471_v41  ;;  %v8415_v62 = vld [vmem:[%s14910_s26 + $0x18] sm:$0xff] }
 0x23a   :  { %9318 = vrot.lane.b32.xlu1 %v9317_v48, %s14780_s10  ;;  %v639_v54 = vmul.f32 %v10485_v15, %v10397_v59  ;;  %v8420_v59 = vld [vmem:[%s14912_s23 + $0x4] sm:$0xf] }
 0x23b   :  { %v9357_v63 = vpack.i.bf16 %v638_v14, %v637_v29 }
 0x23d   :  { %718 = vrot.lane.b32.xlu0 %v643_v46, %s14780_s10 }
 0x23e   :  { %9323 = vrot.lane.b32.xlu1 %v9322_v32, %s14780_s10 }
 0x241   :  { %914 = vperm.xlu0 %9310, %v911_v35  }
 0x242   :  { %9333 = vrot.lane.b32.xlu1 %v9332_v28, %s14780_s10 }
 0x245   :  { %1115 = vperm.xlu0 %9310, %v8412_v30  }
 0x246   :  { %9348 = vrot.lane.b32.xlu1 %v9347_v0, %s14780_s10 }
 0x249   :  { %1136 = vperm.xlu0 %9310, %v8414_v36  }
 0x24a   :  { %9358 = vrot.lane.b32.xlu1 %v9357_v63, %s14780_s10 }
 0x24d   :  { %1311 = vperm.xlu0 %9310, %v8419_v38  }
 0x24e   :  { %716 = vrot.lane.b32.xlu1 %v642_v53, %s14780_s10 }
 0x252   :  { %710 = vrot.lane.b32.xlu1 %v639_v54, %s14780_s10 }
 0x256   :  { %924 = vperm.xlu1 %9311, %v921_v4  }
 0x25a   :  { %1120 = vperm.xlu1 %9311, %v8413_v6   ;;  %v644_v6 = vld [vmem:[%s14681_s8] sm:$0xf] }
 0x25e   :  { %1141 = vperm.xlu1 %9311, %v8415_v62  }
 0x262   :  { %1322 = vperm.xlu1 %9311, %v8420_v59  }
 0x28a   :  { %v9314_v15 = vpop.permute.xlu0 %9313 }
 0x28b   :  { %v9316_v60 = vunpack.i.h.bf16 %v9314_v15  ;;  %v9315_v44 = vunpack.i.l.bf16 %v9314_v15  ;;  %v14948_v15 = vmov 0.0  }
 0x297   :  { %v9329_v11 = vpop.permute.xlu0 %9328 }
 0x298   :  { %v9331_v58 = vunpack.i.h.bf16 %v9329_v11  ;;  %v9330_v34 = vunpack.i.l.bf16 %v9329_v11 }
 0x29a   :  { %v724_v22 = vsel %vm14808_vm10, %v9330_v34, %v9331_v58 }
 0x29f   :  { %v9339_v7 = vpop.permute.xlu0 %9338 }
 0x2a0   :  { %v9341_v27 = vunpack.i.h.bf16 %v9339_v7  ;;  %v9340_v20 = vunpack.i.l.bf16 %v9339_v7 }
 0x2a2   :  { %v728_v42 = vsel %vm14808_vm10, %v9340_v20, %v9341_v27 }
 0x2a3   :  { %v8967_v8 = vpack.c.bf16 %v728_v42, %v724_v22  ;;  %v9344_v33 = vpop.permute.xlu0 %9343 }
 0x2a4   :  { %v9346_v25 = vunpack.i.h.bf16 %v9344_v33  ;;  %v9345_v16 = vunpack.i.l.bf16 %v9344_v33 }
 0x2a5   :  { %8968 = vmatprep.subr.bf16.mxu1 %v8967_v8 }
 0x2a6   :  { %v730_v19 = vsel %vm14808_vm10, %v9345_v16, %v9346_v25  ;;  %v729_v56 = vsel %vm14808_vm10, %v9315_v44, %v9345_v16  ;;  %v14964_v44 = vld [vmem:[#allocation25_spill] sm:$0xff] }
 0x2a7   :  { %v9354_v47 = vpop.permute.xlu0 %9353 }
 0x2a8   :  { %v10632_v12 = vpop.permute.xlu1 %712  ;;  %v9356_v2 = vunpack.i.h.bf16 %v9354_v47  ;;  %v9355_v13 = vunpack.i.l.bf16 %v9354_v47 }
 0x2aa   :  { %v734_v23 = vsel %vm14808_vm10, %v9355_v13, %v9356_v2  ;;  %v733_v35 = vsel %vm14808_vm10, %v9316_v60, %v9355_v13  ;;  %v14958_v60 = vld [vmem:[#allocation11_spill] sm:$0xff] }
 0x2ab   :  { %v8963_v1 = vpack.c.bf16 %v734_v23, %v730_v19  ;;  %v715_v28 = vpop.permute.xlu0 %714  ;;  %v8965_v30 = vpack.c.bf16 %v733_v35, %v729_v56  ;;  %v14954_v23 = vld [vmem:[#allocation7_spill] sm:$0xff]  ;;  %v14963_v19 = vld [vmem:[#allocation24_spill] sm:$0xff]  ;;  %v14965_v35 = vld [vmem:[#allocation26_spill] sm:$0xff] }
 0x2ac   :  { %v9319_v45 = vpop.permute.xlu1 %9318  ;;  %v738_v0 = vsel %vm14808_vm10, %v10632_v12, %v715_v28 }
 0x2ad   :  { %v9320_v55 = vunpack.i.l.bf16 %v9319_v45  ;;  %v9321_v57 = vunpack.i.h.bf16 %v9319_v45 }
 0x2af   :  { %v719_v53 = vpop.permute.xlu0 %718 }
 0x2b0   :  { %v9324_v17 = vpop.permute.xlu1 %9323 }
 0x2b1   :  { %v9326_v21 = vunpack.i.h.bf16 %v9324_v17  ;;  %v9325_v48 = vunpack.i.l.bf16 %v9324_v17 }
 0x2b3   :  { %v723_v31 = vsel %vm14808_vm10, %v9326_v21, %v9330_v34  ;;  %v721_v51 = vsel %vm14808_vm10, %v9320_v55, %v9325_v48  ;;  %v722_v32 = vsel %vm14808_vm10, %v9325_v48, %v9326_v21  ;;  %v935_v48 = vld [vmem:[%s14682_s9] sm:$0xff]  ;;  %v936_v55 = vld [vmem:[%s14682_s9 + $0x8] sm:$0xff] }
 0x2b4   :  { %v9334_v5 = vpop.permute.xlu1 %9333 }
 0x2b5   :  { %v9336_v43 = vunpack.i.h.bf16 %v9334_v5  ;;  %v9335_v49 = vunpack.i.l.bf16 %v9334_v5  ;;  %v10683_v5 = vld [vmem:[#allocation2] sm:$0xf] }
 0x2b6   :  { %1372 = vrot.lane.b32.xlu1 %v10683_v5, %s14940_s25  ;;  %v1348_v16 = vrot.slane %v10683_v5, 4 }
 0x2b7   :  { %v727_v26 = vsel %vm14808_vm10, %v9336_v43, %v9340_v20  ;;  %v725_v46 = vsel %vm14808_vm10, %v9321_v57, %v9335_v49  ;;  %v726_v50 = vsel %vm14808_vm10, %v9335_v49, %v9336_v43  ;;  %v14950_v57 = vld [vmem:[#allocation3_spill] sm:$0xff]  ;;  %v14951_v43 = vld [vmem:[#allocation4_spill] sm:$0xff]  ;;  %v14952_v49 = vld [vmem:[#allocation5_spill] sm:$0xff] }
 0x2b8   :  { %v9349_v10 = vpop.permute.xlu1 %9348  ;;  %v8959_v61 = vpack.c.bf16 %v726_v50, %v722_v32  ;;  %v8969_v9 = vpack.c.bf16 %v727_v26, %v723_v31  ;;  %v8961_v18 = vpack.c.bf16 %v725_v46, %v721_v51  ;;  %1353 = vrot.lane.b32.xlu0 %v1348_v16, %s14943_s27  ;;  %v14953_v31 = vld [vmem:[#allocation6_spill] sm:$0xff]  ;;  %v10698_v51 = vld [vmem:[#allocation2 + $0x28] sm:$0xf]  ;;  %v14956_v32 = vld [vmem:[#allocation9_spill] sm:$0xff] }
 0x2b9   :  { %v9351_v24 = vunpack.i.h.bf16 %v9349_v10  ;;  %v9350_v40 = vunpack.i.l.bf16 %v9349_v10  ;;  %v14955_v26 = vld [vmem:[#allocation8_spill] sm:$0xff]  ;;  %v1427_v46 = vrot.slane %v10698_v51, 4  ;;  %v14957_v50 = vld [vmem:[#allocation10_spill] sm:$0xff] }
 0x2ba   :  { %8960 = vmatprep.subr.bf16.mxu0 %v8959_v61  ;;  %8970 = vmatpush1.bf16.msra.mxu1 %v8969_v9  ;;  %v14959_v10 = vld [vmem:[#allocation12_spill] sm:$0xff]  ;;  %v14960_v61 = vld [vmem:[#allocation21_spill] sm:$0xff]  ;;  %v14961_v9 = vld [vmem:[#allocation22_spill] sm:$0xff] }
 0x2bb   :  { %8962 = vmatpush1.bf16.msra.mxu0 %v8961_v18  ;;  %v731_v29 = vsel %vm14808_vm10, %v9346_v25, %v9350_v40  ;;  %v732_v36 = vsel %vm14808_vm10, %v9350_v40, %v9351_v24  ;;  %1564 = vrot.lane.b32.xlu1 %v14950_v57, %s14949_s20  ;;  %v14962_v18 = vld [vmem:[#allocation23_spill] sm:$0xff] }
 0x2bc   :  { %v9359_v37 = vpop.permute.xlu1 %9358  ;;  %8964 = vmatprep.subr.bf16.mxu0 %v8963_v1  ;;  %1391 = vrot.lane.b32.xlu0 %v1348_v16, %s14945_s1  ;;  %v14966_v24 = vld [vmem:[#allocation15_spill] sm:$0xff] }
 0x2bd   :  { %v9361_v52 = vunpack.i.h.bf16 %v9359_v37  ;;  %v9360_v3 = vunpack.i.l.bf16 %v9359_v37 }
 0x2bf   :  { %v735_v14 = vsel %vm14808_vm10, %v9356_v2, %v9360_v3  ;;  %8966 = vmatpush1.bf16.msra.mxu0 %v8965_v30  ;;  %v736_v63 = vsel %vm14808_vm10, %v9360_v3, %v9361_v52  ;;  %1568 = vrot.lane.b32.xlu1 %v14951_v43, %s14949_s20  ;;  %v14968_v3 = vld [vmem:[#allocation13_spill] sm:$0xff] }
 0x2c0   :  { %v717_v39 = vpop.permute.xlu1 %716  ;;  %8398 = vmatprep.subr.msk.mxu0 %vm14790_vm1, %v738_v0  ;;  %v8971_v41 = vpack.c.bf16 %v736_v63, %v732_v36  ;;  %v8973_v38 = vpack.c.bf16 %v735_v14, %v731_v29  ;;  %v915_v11 = vpop.permute.xlu0 %914  ;;  %1566 = vrot.lane.b32.xlu0 %v14952_v49, %s14949_s20  ;;  %v14970_v0 = vld [vmem:[#allocation16_spill] sm:$0xff]  ;;  %v14972_v36 = vld [vmem:[#allocation14_spill] sm:$0xff] }
 0x2c1   :  { %v740_v54 = vsel %vm14808_vm10, %v717_v39, %v719_v53  ;;  %v739_v59 = vsel %vm14808_vm10, %v715_v28, %v717_v39 }
 0x2c2   :  { %8972 = vmatprep.subr.bf16.mxu1 %v8971_v41 }
 0x2c3   :  { %8974 = vmatpush1.bf16.msra.mxu1 %v8973_v38  ;;  %1572 = vrot.lane.b32.xlu1 %v14953_v31, %s14949_s20 }
 0x2c4   :  { %v711_v4 = vpop.permute.xlu1 %710  ;;  %8401 = vmatprep.subr.msk.mxu1 %vm14790_vm1, %v740_v54  ;;  %1570 = vrot.lane.b32.xlu0 %v14954_v23, %s14949_s20  ;;  %v1116_v1 = vpop.permute.xlu0 %1115  ;;  %v14974_v54 = vld [vmem:[#allocation19_spill] sm:$0xff] }
 0x2c5   :  { %v737_v62 = vsel %vm14808_vm10, %v711_v4, %v10632_v12 }
 0x2c6   :  { %8399 = vmatpush1.msk.msra.mxu0 %vm14790_vm1, %v737_v62 }
 0x2c7   :  { %8400 = vmatmul.mubr.msk.f32.vlgmr.msra.gmra.mrb[2].mxu0 %vm14785_vm11, %v644_v6  ;;  %8402 = vmatpush1.msk.msra.mxu1 %vm14790_vm1, %v739_v59 }
 0x2c8   :  { %8403 = vmatmul.mubr.msk.f32.vlgmr.msra.gmra.mrb[2].mxu1 %vm14785_vm11, %v644_v6  ;;  %1020 = vmatprep.mubr.f32.mxu0 %v14948_v15 }
 0x2c9   :  { %1097 = vmatprep.mubr.f32.mxu1 %v14948_v15  ;;  %1576 = vrot.lane.b32.xlu1 %v14955_v26, %s14949_s20 }
 0x2ca   :  { %1574 = vrot.lane.b32.xlu0 %v14956_v32, %s14949_s20 }
 0x2cd   :  { %1436 = vrot.lane.b32.xlu1 %v1427_v46, %s14942_s0 }
 0x2ce   :  { %1578 = vrot.lane.b32.xlu0 %v14957_v50, %s14949_s20 }
 0x2d1   :  { %1474 = vrot.lane.b32.xlu1 %v1427_v46, %s14944_s2 }
 0x2d2   :  { %1455 = vrot.lane.b32.xlu0 %v10698_v51, %s14941_s3 }
 0x2d5   :  { %v925_v20 = vpop.permute.xlu1 %924  ;;  %1582 = vrot.lane.b32.xlu1 %v14958_v60, %s14949_s20 }
 0x2d6   :  { %1580 = vrot.lane.b32.xlu0 %v14959_v10, %s14949_s20 }
 0x2d9   :  { %1586 = vrot.lane.b32.xlu1 %v14960_v61, %s14949_s20  ;;  %v1121_v52 = vpop.permute.xlu1 %1120  ;;  %v8416_v61 = vld [vmem:[%s14678_s7 + $0x4] sm:$0xf] }
 0x2da   :  { %1584 = vrot.lane.b32.xlu0 %v14961_v9, %s14949_s20  ;;  %v10770_v9 = vld [vmem:[#allocation2] sm:$0xff] }
 0x2db   :  { %14982 = vst [vmem:[#allocation10_spill] sm:$0xff] %v10770_v9 }
 0x2dd   :  { %1590 = vrot.lane.b32.xlu1 %v14962_v18, %s14949_s20 }
 0x2de   :  { %1588 = vrot.lane.b32.xlu0 %v14963_v19, %s14949_s20 }
 0x2e1   :  { %1594 = vrot.lane.b32.xlu1 %v14964_v44, %s14949_s20 }
 0x2e2   :  { %1592 = vrot.lane.b32.xlu0 %v14965_v35, %s14949_s20 }
 0x39a   :  { %v835_v58 = vpop.f32.mrb[2].mxu0 }
 0x39b   :  { %v917_v34 = vmul.f32 %v915_v11, %v835_v58  ;;  %v837_v7 = vpop.f32.mrb[3].mxu0  ;;  %v906_v27 = vpop.f32.mrb[2].mxu1  ;;  %v14978_v58 = vld [vmem:[#allocation20_spill] sm:$0xff] }
 0x39c   :  { %v918_v22 = vmul.f32 %v915_v11, %v837_v7  ;;  %v919_v42 = vmul.f32 %v915_v11, %v906_v27  ;;  %v908_v8 = vpop.f32.mrb[3].mxu1  ;;  %v1137_v27 = vpop.permute.xlu0 %1136 }
 0x39d   :  { %v927_v12 = vadd.f32 %v925_v20, %v917_v34  ;;  %v920_v33 = vmul.f32 %v915_v11, %v908_v8  ;;  %v1142_v8 = vpop.permute.xlu1 %1141 }
 0x39e   :  { %v928_v45 = vadd.f32 %v925_v20, %v918_v22  ;;  %v929_v47 = vadd.f32 %v925_v20, %v919_v42  ;;  %v14980_v22 = vld [vmem:[#allocation18_spill] sm:$0xff] }
 0x39f   :  { %v930_v17 = vadd.f32 %v925_v20, %v920_v33  ;;  %v931_v13 = vmax.f32 %v927_v12, 0.0 }
 0x3a0   :  { %v932_v2 = vmax.f32 %v928_v45, 0.0  ;;  %v933_v25 = vmax.f32 %v929_v47, 0.0  ;;  %v1312_v18 = vpop.permute.xlu0 %1311 }
 0x3a1   :  { %v934_v21 = vmax.f32 %v930_v17, 0.0 }
 0x3a2   :  { %8404 = vmatprep.subr.msk.mxu0 %vm14790_vm1, %v932_v2 }
 0x3a3   :  { %8405 = vmatpush1.msk.msra.mxu0 %vm14790_vm1, %v931_v13  ;;  %8408 = vmatprep.subr.msk.mxu1 %vm14790_vm1, %v934_v21 }
 0x3a4   :  { %8406 = vmatmul.mubr.msk.f32.vlgmr.msra.gmra.mrb[4].mxu0 %vm14788_vm12, %v935_v48  ;;  %8409 = vmatpush1.msk.msra.mxu1 %vm14790_vm1, %v933_v25 }
 0x3a5   :  { %8410 = vmatmul.mubr.msk.f32.vlgmr.msra.gmra.mrb[4].mxu1 %vm14788_vm12, %v935_v48  ;;  %1026 = vmatprep.mubr.f32.mxu0 %v14948_v15 }
 0x3a6   :  { %1103 = vmatprep.mubr.f32.mxu1 %v14948_v15 }
 0x3a8   :  { %8407 = vmatmul.mubr.msk.f32.gmra.mrb[6].mxu0 %vm14788_vm12, %v936_v55 }
 0x3a9   :  { %8411 = vmatmul.mubr.msk.f32.gmra.mrb[6].mxu1 %vm14788_vm12, %v936_v55  ;;  %1229 = vmatprep.mubr.f32.mxu0 %v14948_v15 }
 0x3aa   :  { %1300 = vmatprep.mubr.f32.mxu1 %v14948_v15  ;;  %v14976_v15 = vld [vmem:[#allocation17_spill] sm:$0xff] }
 0x477   :  { %v1022_v28 = vpop.f32.mrb[4].mxu0 }
 0x478   :  { %v10730_v40 = vadd.f32 %v1022_v28, %v14966_v24  ;;  %v1024_v56 = vpop.f32.mrb[5].mxu0  ;;  %v1099_v37 = vpop.f32.mrb[4].mxu1 }
 0x479   :  { %v10733_v30 = vadd.f32 %v1024_v56, %v14968_v3  ;;  %v10736_v29 = vadd.f32 %v1099_v37, %v14970_v0  ;;  %v1101_v14 = vpop.f32.mrb[5].mxu1  ;;  %v1323_v28 = vpop.permute.xlu1 %1322 }
 0x47a   :  { %14967 = vst [vmem:[#allocation27_spill] sm:$0xff] %v10730_v40  ;;  %v10739_v63 = vadd.f32 %v1101_v14, %v14972_v36  ;;  %v1123_v38 = vmul.f32 %v1116_v1, %v10730_v40 }
 0x47b   :  { %14969 = vst [vmem:[#allocation3_spill] sm:$0xff] %v10733_v30  ;;  %14971 = vst [vmem:[#allocation4_spill] sm:$0xff] %v10736_v29  ;;  %v1124_v39 = vmul.f32 %v1116_v1, %v10733_v30  ;;  %v1028_v41 = vpop.f32.mrb[6].mxu0  ;;  %v1125_v59 = vmul.f32 %v1116_v1, %v10736_v29 }
 0x47c   :  { %14973 = vst [vmem:[#allocation5_spill] sm:$0xff] %v10739_v63  ;;  %v1126_v53 = vmul.f32 %v1116_v1, %v10739_v63  ;;  %v10745_v4 = vadd.f32 %v1028_v41, %v14974_v54  ;;  %v1030_v6 = vpop.f32.mrb[7].mxu0  ;;  %v1105_v62 = vpop.f32.mrb[6].mxu1  ;;  %v1144_v47 = vadd.f32 %v1137_v27, %v1123_v38 }
 0x47d   :  { %v10749_v11 = vadd.f32 %v1030_v6, %v14976_v15  ;;  %v10752_v34 = vadd.f32 %v1105_v62, %v14978_v58  ;;  %v1107_v7 = vpop.f32.mrb[7].mxu1  ;;  %v1145_v45 = vadd.f32 %v1137_v27, %v1124_v39  ;;  %v1146_v21 = vadd.f32 %v1137_v27, %v1125_v59 }
 0x47e   :  { %14975 = vst [vmem:[#allocation6_spill] sm:$0xff] %v10745_v4  ;;  %v1127_v20 = vmul.f32 %v1121_v52, %v10745_v4  ;;  %3166 = vst [vmem:[#allocation2 + $0x38] sm:$0xff] %v10745_v4  ;;  %v10757_v42 = vadd.f32 %v1107_v7, %v14980_v22  ;;  %v1147_v13 = vadd.f32 %v1137_v27, %v1126_v53  ;;  %v1152_v31 = vmax.f32 %v1144_v47, 0.0  ;;  %v10830_v22 = vpop.permute.xlu1 %1372  ;;  %v1541_v47 = vld [vmem:[%s14914_s29 + $0x88] sm:$0xf] }
 0x47f   :  { %14977 = vst [vmem:[#allocation7_spill] sm:$0xff] %v10749_v11  ;;  %14979 = vst [vmem:[#allocation8_spill] sm:$0xff] %v10752_v34  ;;  %v1128_v12 = vmul.f32 %v1121_v52, %v10749_v11  ;;  %v1129_v33 = vmul.f32 %v1121_v52, %v10752_v34  ;;  %v1153_v43 = vmax.f32 %v1145_v45, 0.0  ;;  %v1154_v46 = vmax.f32 %v1146_v21, 0.0  ;;  %v1540_v45 = vld [vmem:[%s14914_s29 + $0x80] sm:$0xf] }
 0x480   :  { %14981 = vst [vmem:[#allocation9_spill] sm:$0xff] %v10757_v42  ;;  %3167 = vst [vmem:[#allocation2 + $0x40] sm:$0xff] %v10749_v11  ;;  %v1148_v17 = vadd.f32 %v1142_v8, %v1127_v20  ;;  %v1130_v2 = vmul.f32 %v1121_v52, %v10757_v42  ;;  %v1155_v23 = vmax.f32 %v1147_v13, 0.0  ;;  %v10828_v20 = vpop.permute.xlu0 %1353  ;;  %v1543_v21 = vld [vmem:[%s14914_s29 + $0x98] sm:$0xf] }
 0x481   :  { %3168 = vst [vmem:[#allocation2 + $0x48] sm:$0xff] %v10752_v34  ;;  %3169 = vst [vmem:[#allocation2 + $0x50] sm:$0xff] %v10757_v42  ;;  %v1150_v48 = vadd.f32 %v1142_v8, %v1129_v33  ;;  %v1149_v25 = vadd.f32 %v1142_v8, %v1128_v12 }
 0x482   :  { %v1156_v55 = vmax.f32 %v1148_v17, 0.0  ;;  %v1151_v16 = vadd.f32 %v1142_v8, %v1130_v2  ;;  %v10836_v12 = vpop.permute.xlu1 %1564  ;;  %v1542_v17 = vld [vmem:[%s14914_s29 + $0x90] sm:$0xf] }
 0x483   :  { %v1158_v57 = vmax.f32 %v1150_v48, 0.0  ;;  %v1157_v49 = vmax.f32 %v1149_v25, 0.0 }
 0x484   :  { %v1159_v26 = vmax.f32 %v1151_v16, 0.0  ;;  %v8977_v50 = vpack.c.bf16 %v1156_v55, %v1152_v31  ;;  %v10834_v8 = vpop.permute.xlu0 %1391 }
 0x485   :  { %v8975_v32 = vpack.c.bf16 %v1157_v49, %v1153_v43  ;;  %v8981_v10 = vpack.c.bf16 %v1158_v57, %v1154_v46 }
 0x486   :  { %v8979_v60 = vpack.c.bf16 %v1159_v26, %v1155_v23  ;;  %v10845_v33 = vpop.permute.xlu1 %1568 }
 0x487   :  { %8976 = vmatprep.subr.bf16.mxu0 %v8975_v32 }
 0x488   :  { %8978 = vmatpush1.bf16.msra.mxu0 %v8977_v50  ;;  %8980 = vmatprep.subr.bf16.mxu1 %v8979_v60 }
 0x489   :  { %8982 = vmatpush1.bf16.msra.mxu1 %v8981_v10 }
 0x48a   :  { %v10858_v13 = vpop.permute.xlu1 %1572 }
 0x48b   :  { %8417 = vmatmul.mubr.msk.f32.vlgmr.msra.gmra.mrb[8].mxu0 %vm14801_vm0, %v8416_v61 }
 0x48c   :  { %8418 = vmatmul.mubr.msk.f32.vlgmr.msra.gmra.mrb[8].mxu1 %vm14801_vm0, %v8416_v61  ;;  %1857 = vmatprep.mubr.f32.mxu0 %v10770_v9 }
 0x48d   :  { %1928 = vmatprep.mubr.f32.mxu1 %v10770_v9 }
 0x48e   :  { %v10868_v25 = vpop.permute.xlu1 %1576 }
 0x492   :  { %v10872_v16 = vpop.permute.xlu1 %1436 }
 0x496   :  { %v10876_v43 = vpop.permute.xlu1 %1474 }
 0x49a   :  { %v10880_v31 = vpop.permute.xlu1 %1582 }
 0x49e   :  { %v10884_v26 = vpop.permute.xlu1 %1586 }
 0x4a2   :  { %v10888_v32 = vpop.permute.xlu1 %1590 }
 0x4a6   :  { %v10892_v60 = vpop.permute.xlu1 %1594 }
 0x4a7   :  { %14984 = vst [vmem:[#allocation11_spill] sm:$0xff] %v10892_v60 }
 0x55e   :  { %v1231_v19 = vpop.f32.mrb[8].mxu0 }
 0x55f   :  { %v1314_v44 = vmul.f32 %v1312_v18, %v1231_v19  ;;  %v1233_v35 = vpop.f32.mrb[9].mxu0  ;;  %v1302_v1 = vpop.f32.mrb[8].mxu1 }
 0x560   :  { %v1315_v24 = vmul.f32 %v1312_v18, %v1233_v35  ;;  %v1316_v56 = vmul.f32 %v1312_v18, %v1302_v1  ;;  %v1304_v37 = vpop.f32.mrb[9].mxu1 }
 0x561   :  { %v1325_v52 = vadd.f32 %v1323_v28, %v1314_v44  ;;  %v1317_v3 = vmul.f32 %v1312_v18, %v1304_v37 }
 0x562   :  { %v1326_v0 = vadd.f32 %v1323_v28, %v1315_v24  ;;  %v1327_v14 = vadd.f32 %v1323_v28, %v1316_v56 }
 0x563   :  { %v1329_v36 = vmax.f32 %v1325_v52, 0.0  ;;  %v1328_v39 = vadd.f32 %v1323_v28, %v1317_v3 }
 0x564   :  { %v1330_v41 = vmax.f32 %v1326_v0, 0.0  ;;  %v1331_v38 = vmax.f32 %v1327_v14, 0.0 }
 0x565   :  { %1333 = vst [vmem:[#allocation2 + $0x8] sm:$0xf] %v1329_v36  ;;  %v1332_v53 = vmax.f32 %v1328_v39, 0.0 }
 0x566   :  { %1334 = vst [vmem:[#allocation2 + $0x10] sm:$0xf] %v1330_v41  ;;  %1335 = vst [vmem:[#allocation2 + $0x18] sm:$0xf] %v1331_v38 }
 0x567   :  { %1336 = vst [vmem:[#allocation2 + $0x20] sm:$0xf] %v1332_v53 }
 0x56c   :  { %v10774_v54 = vld [vmem:[#allocation2 + $0x8] sm:$0xf] }
 0x56d   :  { %1410 = vrot.lane.b32.xlu1 %v10774_v54, %s14949_s20  ;;  %1374 = vrot.lane.b32.xlu0 %v10774_v54, %s14940_s25  ;;  %v10780_v6 = vld [vmem:[#allocation2 + $0x18] sm:$0xf]  ;;  %v10786_v62 = vld [vmem:[#allocation2 + $0x10] sm:$0xf]  ;;  %v1349_v15 = vrot.slane %v10774_v54, 4 }
 0x56e   :  { %v10792_v59 = vld [vmem:[#allocation2 + $0x20] sm:$0xf]  ;;  %v1351_v58 = vrot.slane %v10780_v6, 4  ;;  %v1350_v7 = vrot.slane %v10786_v62, 4 }
 0x56f   :  { %v1352_v27 = vrot.slane %v10792_v59, 4 }
 0x571   :  { %1414 = vrot.lane.b32.xlu1 %v10780_v6, %s14949_s20  ;;  %1378 = vrot.lane.b32.xlu0 %v10780_v6, %s14940_s25 }
 0x575   :  { %1447 = vrot.lane.b32.xlu0 %v10774_v54, %s14941_s3  ;;  %1376 = vrot.lane.b32.xlu1 %v10786_v62, %s14940_s25 }
 0x579   :  { %1451 = vrot.lane.b32.xlu0 %v10780_v6, %s14941_s3  ;;  %1380 = vrot.lane.b32.xlu1 %v10792_v59, %s14940_s25 }
 0x57d   :  { %1485 = vrot.lane.b32.xlu0 %v10774_v54, %s14983_s12  ;;  %1449 = vrot.lane.b32.xlu1 %v10786_v62, %s14941_s3 }
 0x581   :  { %1489 = vrot.lane.b32.xlu0 %v10780_v6, %s14983_s12  ;;  %1453 = vrot.lane.b32.xlu1 %v10792_v59, %s14941_s3 }
 0x585   :  { %1412 = vrot.lane.b32.xlu0 %v10786_v62, %s14949_s20  ;;  %1487 = vrot.lane.b32.xlu1 %v10786_v62, %s14983_s12 }
 0x589   :  { %1416 = vrot.lane.b32.xlu0 %v10792_v59, %s14949_s20  ;;  %1428 = vrot.lane.b32.xlu1 %v1349_v15, %s14942_s0 }
 0x58d   :  { %1355 = vrot.lane.b32.xlu0 %v1349_v15, %s14943_s27  ;;  %1432 = vrot.lane.b32.xlu1 %v1351_v58, %s14942_s0 }
 0x591   :  { %1359 = vrot.lane.b32.xlu0 %v1351_v58, %s14943_s27  ;;  %1466 = vrot.lane.b32.xlu1 %v1349_v15, %s14944_s2 }
 0x595   :  { %1393 = vrot.lane.b32.xlu0 %v1349_v15, %s14945_s1  ;;  %1470 = vrot.lane.b32.xlu1 %v1351_v58, %s14944_s2 }
 0x599   :  { %1397 = vrot.lane.b32.xlu0 %v1351_v58, %s14945_s1  ;;  %1357 = vrot.lane.b32.xlu1 %v1350_v7, %s14943_s27 }
 0x59d   :  { %1493 = vrot.lane.b32.xlu0 %v10698_v51, %s14983_s12  ;;  %1361 = vrot.lane.b32.xlu1 %v1352_v27, %s14943_s27  ;;  %v10843_v51 = vpop.permute.xlu0 %1566 }
 0x5a1   :  { %1430 = vrot.lane.b32.xlu0 %v1350_v7, %s14942_s0  ;;  %1395 = vrot.lane.b32.xlu1 %v1350_v7, %s14945_s1  ;;  %v1571_v2 = vpop.permute.xlu0 %1570 }
 0x5a5   :  { %1434 = vrot.lane.b32.xlu0 %v1352_v27, %s14942_s0  ;;  %1399 = vrot.lane.b32.xlu1 %v1352_v27, %s14945_s1  ;;  %v10866_v48 = vpop.permute.xlu0 %1574 }
 0x5a9   :  { %1468 = vrot.lane.b32.xlu0 %v1350_v7, %s14944_s2  ;;  %1491 = vrot.lane.b32.xlu1 %v10792_v59, %s14983_s12  ;;  %v10870_v55 = vpop.permute.xlu0 %1578 }
 0x5ad   :  { %1472 = vrot.lane.b32.xlu0 %v1352_v27, %s14944_s2  ;;  %1596 = vrot.lane.b32.xlu1 %v1540_v45, %s14949_s20  ;;  %v10874_v57 = vpop.permute.xlu0 %1455 }
 0x5b1   :  { %1598 = vrot.lane.b32.xlu0 %v1541_v47, %s14949_s20  ;;  %1600 = vrot.lane.b32.xlu1 %v1542_v17, %s14949_s20  ;;  %v10878_v49 = vpop.permute.xlu0 %1580 }
 0x5b5   :  { %1602 = vrot.lane.b32.xlu0 %v1543_v21, %s14949_s20  ;;  %v10882_v23 = vpop.permute.xlu0 %1584 }
 0x5b9   :  { %v10886_v46 = vpop.permute.xlu0 %1588 }
 0x5bd   :  { %v10890_v50 = vpop.permute.xlu0 %1592 }
 0x5df   :  { %v1411_v10 = vpop.permute.xlu1 %1410  ;;  %v10894_v61 = vpop.permute.xlu0 %1374 }
 0x5e3   :  { %v10896_v18 = vpop.permute.xlu1 %1414  ;;  %v10898_v19 = vpop.permute.xlu0 %1378 }
 0x5e7   :  { %v1448_v44 = vpop.permute.xlu0 %1447  ;;  %v10900_v35 = vpop.permute.xlu1 %1376 }
 0x5eb   :  { %v10902_v1 = vpop.permute.xlu0 %1451  ;;  %v1381_v28 = vpop.permute.xlu1 %1380 }
 0x5ef   :  { %v10904_v24 = vpop.permute.xlu0 %1485  ;;  %v1450_v56 = vpop.permute.xlu1 %1449 }
 0x5f3   :  { %v10906_v37 = vpop.permute.xlu0 %1489  ;;  %v10908_v52 = vpop.permute.xlu1 %1453 }
 0x5f7   :  { %v1413_v3 = vpop.permute.xlu0 %1412  ;;  %v10910_v0 = vpop.permute.xlu1 %1487 }
 0x5fb   :  { %v10912_v14 = vpop.permute.xlu0 %1416  ;;  %v1429_v36 = vpop.permute.xlu1 %1428 }
 0x5fc   :  { %v1514_v38 = vsel %vm14790_vm1, %v1411_v10, %v1429_v36 }
 0x5fd   :  { %v1654_v7 = vmul.f32 %v10878_v49, %v1514_v38 }
 0x5ff   :  { %v10914_v39 = vpop.permute.xlu0 %1355  ;;  %v10916_v41 = vpop.permute.xlu1 %1432 }
 0x603   :  { %v10919_v53 = vpop.permute.xlu0 %1359  ;;  %v1467_v15 = vpop.permute.xlu1 %1466 }
 0x604   :  { %v1519_v58 = vsel %vm14790_vm1, %v1448_v44, %v1467_v15 }
 0x605   :  { %v1659_v27 = vmul.f32 %v10886_v46, %v1519_v58  ;;  %v1606_v58 = vsel %vm14789_vm3, %v10845_v33, %v1571_v2 }
 0x607   :  { %v9362_v45 = vpack.i.bf16 %v1659_v27, %v1654_v7  ;;  %v10924_v47 = vpop.permute.xlu0 %1393  ;;  %v10926_v17 = vpop.permute.xlu1 %1470 }
 0x609   :  { %9363 = vrot.lane.b32.xlu0 %v9362_v45, %s14780_s10 }
 0x60b   :  { %v10929_v21 = vpop.permute.xlu0 %1397  ;;  %v1358_v42 = vpop.permute.xlu1 %1357 }
 0x60f   :  { %v10931_v34 = vpop.permute.xlu0 %1493  ;;  %v1362_v11 = vpop.permute.xlu1 %1361 }
 0x610   :  { %v1366_v4 = vsel %vm14800_vm2, %v10919_v53, %v1362_v11  ;;  %v1508_v38 = vsel %vm14790_vm1, %v10792_v59, %v1362_v11  ;;  %v1385_v11 = vsel %vm14787_vm5, %v10898_v19, %v1381_v28  ;;  %v1418_v59 = vsel %vm14789_vm3, %v1411_v10, %v1413_v3 }
 0x611   :  { %v1507_v7 = vsel %vm14790_vm1, %v10780_v6, %v1366_v4  ;;  %v1648_v27 = vmul.f32 %v1571_v2, %v1508_v38  ;;  %v1419_v6 = vsel %vm14789_vm3, %v1413_v3, %v10896_v18  ;;  %v1610_v3 = vsel %vm14789_vm3, %v10878_v49, %v10880_v31 }
 0x612   :  { %v1647_v45 = vmul.f32 %v1606_v58, %v1507_v7  ;;  %v1611_v7 = vsel %vm14789_vm3, %v10880_v31, %v10882_v23 }
 0x613   :  { %v1431_v63 = vpop.permute.xlu0 %1430  ;;  %v1396_v29 = vpop.permute.xlu1 %1395 }
 0x614   :  { %v9377_v30 = vpack.i.bf16 %v1648_v27, %v1647_v45  ;;  %v1438_v40 = vsel %vm14786_vm4, %v1429_v36, %v1431_v63  ;;  %v1439_v9 = vsel %vm14786_vm4, %v1431_v63, %v10916_v41  ;;  %v1458_v27 = vsel %vm14784_vm6, %v1450_v56, %v10902_v1 }
 0x615   :  { %v1515_v2 = vsel %vm14790_vm1, %v1418_v59, %v1438_v40  ;;  %v1516_v38 = vsel %vm14790_vm1, %v1419_v6, %v1439_v9 }
 0x616   :  { %9378 = vrot.lane.b32.xlu0 %v9377_v30, %s14780_s10  ;;  %v1609_v30 = vsel %vm14789_vm3, %v10868_v25, %v10870_v55  ;;  %v1655_v45 = vmul.f32 %v1610_v3, %v1515_v2 }
 0x617   :  { %v10948_v60 = vpop.permute.xlu0 %1434  ;;  %v1400_v4 = vpop.permute.xlu1 %1399 }
 0x618   :  { %v1404_v36 = vsel %vm14797_vm7, %v10929_v21, %v1400_v4  ;;  %v1513_v63 = vsel %vm14790_vm1, %v1381_v28, %v1400_v4  ;;  %v1457_v28 = vsel %vm14784_vm6, %v1448_v44, %v1450_v56  ;;  %v1613_v44 = vsel %vm14789_vm3, %v10886_v46, %v10888_v32 }
 0x619   :  { %v1512_v10 = vsel %vm14790_vm1, %v1385_v11, %v1404_v36  ;;  %v1653_v58 = vmul.f32 %v10870_v55, %v1513_v63  ;;  %v1656_v11 = vmul.f32 %v1611_v7, %v1516_v38  ;;  %v1614_v56 = vsel %vm14789_vm3, %v10888_v32, %v10890_v50 }
 0x61a   :  { %v1652_v40 = vmul.f32 %v1609_v30, %v1512_v10  ;;  %v1382_v10 = vsel %vm14787_vm5, %v10830_v22, %v10894_v61  ;;  %v1363_v46 = vsel %vm14800_vm2, %v10828_v20, %v10914_v39  ;;  %v1495_v22 = vsel %vm14782_vm9, %v10904_v24, %v10910_v0 }
 0x61b   :  { %v1469_v9 = vpop.permute.xlu0 %1468  ;;  %v10971_v59 = vpop.permute.xlu1 %1491  ;;  %v9392_v38 = vpack.i.bf16 %v1656_v11, %v1655_v45  ;;  %v1504_v20 = vsel %vm14790_vm1, %v10683_v5, %v1363_v46  ;;  %v1496_v5 = vsel %vm14782_vm9, %v10910_v0, %v10906_v37  ;;  %v1402_v11 = vsel %vm14797_vm7, %v10924_v47, %v1396_v29  ;;  %v8442_v46 = vld [vmem:[%s14910_s26 + $0x20] sm:$0xff] }
 0x61c   :  { %v9387_v55 = vpack.i.bf16 %v1653_v58, %v1652_v40  ;;  %v1476_v4 = vsel %vm14783_vm8, %v1467_v15, %v1469_v9  ;;  %v1477_v49 = vsel %vm14783_vm8, %v1469_v9, %v10926_v17  ;;  %v1401_v15 = vsel %vm14797_vm7, %v10834_v8, %v10924_v47 }
 0x61d   :  { %v1520_v6 = vsel %vm14790_vm1, %v1457_v28, %v1476_v4  ;;  %v1521_v31 = vsel %vm14790_vm1, %v1458_v27, %v1477_v49  ;;  %v1509_v32 = vsel %vm14790_vm1, %v1382_v10, %v1401_v15  ;;  %v1364_v8 = vsel %vm14800_vm2, %v10914_v39, %v1358_v42 }
 0x61e   :  { %9388 = vrot.lane.b32.xlu0 %v9387_v55, %s14780_s10  ;;  %v1660_v63 = vmul.f32 %v1613_v44, %v1520_v6  ;;  %v1661_v30 = vmul.f32 %v1614_v56, %v1521_v31  ;;  %v1365_v58 = vsel %vm14800_vm2, %v1358_v42, %v10919_v53  ;;  %v1649_v27 = vmul.f32 %v10858_v13, %v1509_v32 }
 0x61f   :  { %v1473_v2 = vpop.permute.xlu0 %1472  ;;  %v10988_v36 = vpop.permute.xlu1 %1596  ;;  %v1505_v53 = vsel %vm14790_vm1, %v10774_v54, %v1364_v8  ;;  %v1506_v45 = vsel %vm14790_vm1, %v10786_v62, %v1365_v58  ;;  %v1644_v9 = vmul.f32 %v10836_v12, %v1504_v20  ;;  %v1403_v55 = vsel %vm14797_vm7, %v1396_v29, %v10929_v21  ;;  %v8441_v20 = vld [vmem:[%s14911_s28 + $0x28] sm:$0xff] }
 0x620   :  { %v9402_v28 = vpack.i.bf16 %v1661_v30, %v1660_v63  ;;  %v1604_v54 = vsel %vm14789_vm3, %v10836_v12, %v10843_v51  ;;  %v1605_v62 = vsel %vm14789_vm3, %v10843_v51, %v10845_v33  ;;  %v1383_v0 = vsel %vm14787_vm5, %v10894_v61, %v10900_v35 }
 0x621   :  { %v1384_v47 = vsel %vm14787_vm5, %v10900_v35, %v10898_v19  ;;  %v1645_v29 = vmul.f32 %v1604_v54, %v1505_v53  ;;  %v1646_v21 = vmul.f32 %v1605_v62, %v1506_v45  ;;  %v9367_v6 = vpack.i.bf16 %v1649_v27, %v1644_v9 }
 0x622   :  { %9393 = vrot.lane.b32.xlu0 %v9392_v38, %s14780_s10  ;;  %v1510_v31 = vsel %vm14790_vm1, %v1383_v0, %v1402_v11  ;;  %v1511_v12 = vsel %vm14790_vm1, %v1384_v47, %v1403_v55  ;;  %v1440_v51 = vsel %vm14786_vm4, %v10916_v41, %v10948_v60  ;;  %v1441_v33 = vsel %vm14786_vm4, %v10948_v60, %v10872_v16 }
 0x623   :  { %v1599_v3 = vpop.permute.xlu0 %1598  ;;  %v11002_v40 = vpop.permute.xlu1 %1600  ;;  %v1498_v61 = vsel %vm14782_vm9, %v10971_v59, %v10931_v34  ;;  %v1607_v19 = vsel %vm14789_vm3, %v10858_v13, %v10866_v48  ;;  %v1608_v35 = vsel %vm14789_vm3, %v10866_v48, %v10868_v25  ;;  %v1420_v41 = vsel %vm14789_vm3, %v10896_v18, %v10912_v14  ;;  %v8428_v25 = vld [vmem:[%s14679_s5 + $0x4] sm:$0xf] }
 0x624   :  { %v1616_v7 = vsel %vm14789_vm3, %v10988_v36, %v1599_v3  ;;  %v1617_v42 = vsel %vm14789_vm3, %v1599_v3, %v11002_v40  ;;  %v1650_v16 = vmul.f32 %v1607_v19, %v1510_v31  ;;  %v1651_v60 = vmul.f32 %v1608_v35, %v1511_v12 }
 0x625   :  { %v1665_v39 = vmul.f32 %v1616_v7, %v1495_v22  ;;  %v1666_v4 = vmul.f32 %v1617_v42, %v1496_v5  ;;  %v9372_v56 = vpack.i.bf16 %v1646_v21, %v1645_v29  ;;  %v1517_v34 = vsel %vm14790_vm1, %v1420_v41, %v1440_v51 }
 0x626   :  { %9403 = vrot.lane.b32.xlu0 %v9402_v28, %s14780_s10  ;;  %v1518_v15 = vsel %vm14790_vm1, %v10912_v14, %v1441_v33  ;;  %v1478_v13 = vsel %vm14783_vm8, %v10926_v17, %v1473_v2  ;;  %v1479_v48 = vsel %vm14783_vm8, %v1473_v2, %v10876_v43  ;;  %v1612_v18 = vsel %vm14789_vm3, %v10882_v23, %v10884_v26  ;;  %v8440_v23 = vld [vmem:[%s14911_s28 + $0x20] sm:$0xff] }
 0x627   :  { %1738 = vrot.lane.b32.xlu1 %v1665_v39, %s14780_s10  ;;  %v1603_v49 = vpop.permute.xlu0 %1602  ;;  %v1459_v14 = vsel %vm14784_vm6, %v10902_v1, %v10908_v52  ;;  %v1460_v17 = vsel %vm14784_vm6, %v10908_v52, %v10874_v57  ;;  %v1657_v63 = vmul.f32 %v1612_v18, %v1517_v34  ;;  %v1658_v43 = vmul.f32 %v10884_v26, %v1518_v15  ;;  %v14985_v1 = vld [vmem:[#allocation11_spill] sm:$0xff] }
 0x628   :  { %v1668_v44 = vmul.f32 %v1603_v49, %v1498_v61  ;;  %v9382_v2 = vpack.i.bf16 %v1651_v60, %v1650_v16  ;;  %v1522_v30 = vsel %vm14790_vm1, %v1459_v14, %v1478_v13  ;;  %v1523_v38 = vsel %vm14790_vm1, %v1460_v17, %v1479_v48 }
 0x629   :  { %v1615_v10 = vsel %vm14789_vm3, %v10890_v50, %v14985_v1  ;;  %v1663_v52 = vmul.f32 %v14985_v1, %v1523_v38  ;;  %v9397_v26 = vpack.i.bf16 %v1658_v43, %v1657_v63  ;;  %v1618_v8 = vsel %vm14789_vm3, %v11002_v40, %v1603_v49  ;;  %v8447_v50 = vld [vmem:[%s14913_s4 + $0x8] sm:$0xf]  ;;  %v8429_v40 = vld [vmem:[%s14680_s6 + $0x4] sm:$0xf] }
 0x62a   :  { %1740 = vrot.lane.b32.xlu0 %v1666_v4, %s14780_s10  ;;  %v1662_v57 = vmul.f32 %v1615_v10, %v1522_v30  ;;  %v1497_v58 = vsel %vm14782_vm9, %v10906_v37, %v10971_v59  ;;  %v1664_v22 = vmul.f32 %v10988_v36, %v10904_v24  ;;  %v8443_v37 = vld [vmem:[%s14910_s26 + $0x28] sm:$0xff] }
 0x62b   :  { %9368 = vrot.lane.b32.xlu1 %v9367_v6, %s14780_s10  ;;  %v1667_v3 = vmul.f32 %v1618_v8, %v1497_v58  ;;  %v8448_v24 = vld [vmem:[%s14912_s23 + $0x8] sm:$0xf] }
 0x62c   :  { %v9407_v32 = vpack.i.bf16 %v1663_v52, %v1662_v57 }
 0x62e   :  { %1744 = vrot.lane.b32.xlu0 %v1668_v44, %s14780_s10 }
 0x62f   :  { %9373 = vrot.lane.b32.xlu1 %v9372_v56, %s14780_s10 }
 0x632   :  { %1939 = vperm.xlu0 %9310, %v8428_v25  }
 0x633   :  { %9383 = vrot.lane.b32.xlu1 %v9382_v2, %s14780_s10 }
 0x636   :  { %2141 = vperm.xlu0 %9310, %v8440_v23  }
 0x637   :  { %9398 = vrot.lane.b32.xlu1 %v9397_v26, %s14780_s10 }
 0x63a   :  { %2162 = vperm.xlu0 %9310, %v8442_v46  }
 0x63b   :  { %9408 = vrot.lane.b32.xlu1 %v9407_v32, %s14780_s10 }
 0x63e   :  { %2337 = vperm.xlu0 %9310, %v8447_v50  }
 0x63f   :  { %1742 = vrot.lane.b32.xlu1 %v1667_v3, %s14780_s10 }
 0x643   :  { %1736 = vrot.lane.b32.xlu1 %v1664_v22, %s14780_s10 }
 0x647   :  { %1950 = vperm.xlu1 %9311, %v8429_v40  }
 0x64b   :  { %2146 = vperm.xlu1 %9311, %v8441_v20   ;;  %v8421_v20 = vld [vmem:[%s14681_s8 + $0x4] sm:$0xf] }
 0x64f   :  { %2167 = vperm.xlu1 %9311, %v8443_v37  }
 0x653   :  { %2348 = vperm.xlu1 %9311, %v8448_v24  }
 0x67b   :  { %v9364_v59 = vpop.permute.xlu0 %9363 }
 0x67c   :  { %v9366_v56 = vunpack.i.h.bf16 %v9364_v59  ;;  %v9365_v18 = vunpack.i.l.bf16 %v9364_v59  ;;  %v14986_v59 = vld [vmem:[#allocation10_spill] sm:$0xff] }
 0x688   :  { %v9379_v36 = vpop.permute.xlu0 %9378 }
 0x689   :  { %v9381_v7 = vunpack.i.h.bf16 %v9379_v36  ;;  %v9380_v28 = vunpack.i.l.bf16 %v9379_v36 }
 0x68b   :  { %v1749_v53 = vsel %vm14808_vm10, %v9380_v28, %v9381_v7 }
 0x690   :  { %v9389_v27 = vpop.permute.xlu0 %9388 }
 0x691   :  { %v9391_v39 = vunpack.i.h.bf16 %v9389_v27  ;;  %v9390_v42 = vunpack.i.l.bf16 %v9389_v27 }
 0x693   :  { %v1753_v45 = vsel %vm14808_vm10, %v9390_v42, %v9391_v39 }
 0x694   :  { %v8991_v5 = vpack.c.bf16 %v1753_v45, %v1749_v53  ;;  %v9394_v11 = vpop.permute.xlu0 %9393 }
 0x695   :  { %v9396_v21 = vunpack.i.h.bf16 %v9394_v11  ;;  %v9395_v31 = vunpack.i.l.bf16 %v9394_v11 }
 0x696   :  { %8992 = vmatprep.subr.bf16.mxu1 %v8991_v5 }
 0x697   :  { %v1755_v25 = vsel %vm14808_vm10, %v9395_v31, %v9396_v21  ;;  %v1754_v30 = vsel %vm14808_vm10, %v9365_v18, %v9395_v31 }
 0x698   :  { %v9404_v54 = vpop.permute.xlu0 %9403 }
 0x699   :  { %v1739_v9 = vpop.permute.xlu1 %1738  ;;  %v9406_v0 = vunpack.i.h.bf16 %v9404_v54  ;;  %v9405_v4 = vunpack.i.l.bf16 %v9404_v54 }
 0x69b   :  { %v1759_v35 = vsel %vm14808_vm10, %v9405_v4, %v9406_v0  ;;  %v1758_v14 = vsel %vm14808_vm10, %v9366_v56, %v9405_v4  ;;  %v2559_v56 = vld [vmem:[%s14914_s29 + $0x48] sm:$0xff] }
 0x69c   :  { %v8987_v17 = vpack.c.bf16 %v1759_v35, %v1755_v25  ;;  %v1741_v63 = vpop.permute.xlu0 %1740  ;;  %v8989_v10 = vpack.c.bf16 %v1758_v14, %v1754_v30  ;;  %v2556_v35 = vld [vmem:[%s14914_s29 + $0x30] sm:$0xff] }
 0x69d   :  { %v9369_v55 = vpop.permute.xlu1 %9368  ;;  %v1763_v57 = vsel %vm14808_vm10, %v1739_v9, %v1741_v63 }
 0x69e   :  { %v9370_v49 = vunpack.i.l.bf16 %v9369_v55  ;;  %v9371_v12 = vunpack.i.h.bf16 %v9369_v55 }
 0x6a0   :  { %v1745_v3 = vpop.permute.xlu0 %1744 }
 0x6a1   :  { %v9374_v62 = vpop.permute.xlu1 %9373 }
 0x6a2   :  { %v9376_v47 = vunpack.i.h.bf16 %v9374_v62  ;;  %v9375_v29 = vunpack.i.l.bf16 %v9374_v62 }
 0x6a4   :  { %v1748_v61 = vsel %vm14808_vm10, %v9376_v47, %v9380_v28  ;;  %v1746_v19 = vsel %vm14808_vm10, %v9370_v49, %v9375_v29  ;;  %v1747_v16 = vsel %vm14808_vm10, %v9375_v29, %v9376_v47  ;;  %v8430_v29 = vld [vmem:[%s14682_s9 + $0x10] sm:$0xff]  ;;  %v8431_v49 = vld [vmem:[%s14682_s9 + $0x18] sm:$0xff] }
 0x6a5   :  { %v9384_v6 = vpop.permute.xlu1 %9383 }
 0x6a6   :  { %v9386_v51 = vunpack.i.h.bf16 %v9384_v6  ;;  %v9385_v33 = vunpack.i.l.bf16 %v9384_v6  ;;  %v11172_v6 = vld [vmem:[#allocation2] sm:$0xf] }
 0x6a7   :  { %v2374_v31 = vrot.slane %v11172_v6, 4  ;;  %2398 = vrot.lane.b32.xlu1 %v11172_v6, %s14940_s25 }
 0x6a8   :  { %v1752_v44 = vsel %vm14808_vm10, %v9386_v51, %v9390_v42  ;;  %v1750_v41 = vsel %vm14808_vm10, %v9371_v12, %v9385_v33  ;;  %v1751_v60 = vsel %vm14808_vm10, %v9385_v33, %v9386_v51  ;;  %v2550_v12 = vld [vmem:[%s14914_s29] sm:$0xff]  ;;  %v2552_v51 = vld [vmem:[%s14914_s29 + $0x10] sm:$0xff]  ;;  %v2551_v33 = vld [vmem:[%s14914_s29 + $0x8] sm:$0xff] }
 0x6a9   :  { %v9399_v34 = vpop.permute.xlu1 %9398  ;;  %v8983_v15 = vpack.c.bf16 %v1751_v60, %v1747_v16  ;;  %v8993_v13 = vpack.c.bf16 %v1752_v44, %v1748_v61  ;;  %v8985_v48 = vpack.c.bf16 %v1750_v41, %v1746_v19  ;;  %2379 = vrot.lane.b32.xlu0 %v2374_v31, %s14943_s27  ;;  %v2554_v61 = vld [vmem:[%s14914_s29 + $0x20] sm:$0xff]  ;;  %v2553_v19 = vld [vmem:[%s14914_s29 + $0x18] sm:$0xff]  ;;  %v11201_v44 = vld [vmem:[#allocation2 + $0x28] sm:$0xf] }
 0x6aa   :  { %v9401_v43 = vunpack.i.h.bf16 %v9399_v34  ;;  %v9400_v2 = vunpack.i.l.bf16 %v9399_v34  ;;  %v2555_v41 = vld [vmem:[%s14914_s29 + $0x28] sm:$0xff]  ;;  %v2453_v16 = vrot.slane %v11201_v44, 4  ;;  %v2557_v60 = vld [vmem:[%s14914_s29 + $0x38] sm:$0xff]  ;;  %v2558_v34 = vld [vmem:[%s14914_s29 + $0x40] sm:$0xff] }
 0x6ab   :  { %8984 = vmatprep.subr.bf16.mxu0 %v8983_v15  ;;  %8994 = vmatpush1.bf16.msra.mxu1 %v8993_v13 }
 0x6ac   :  { %8986 = vmatpush1.bf16.msra.mxu0 %v8985_v48  ;;  %v1756_v52 = vsel %vm14808_vm10, %v9396_v21, %v9400_v2  ;;  %v1757_v46 = vsel %vm14808_vm10, %v9400_v2, %v9401_v43  ;;  %2590 = vrot.lane.b32.xlu1 %v2550_v12, %s14949_s20  ;;  %v14987_v48 = vld [vmem:[#allocation27_spill] sm:$0xff]  ;;  %v14991_v2 = vld [vmem:[#allocation4_spill] sm:$0xff] }
 0x6ad   :  { %v9409_v38 = vpop.permute.xlu1 %9408  ;;  %8988 = vmatprep.subr.bf16.mxu0 %v8987_v17  ;;  %2417 = vrot.lane.b32.xlu0 %v2374_v31, %s14945_s1 }
 0x6ae   :  { %v9411_v23 = vunpack.i.h.bf16 %v9409_v38  ;;  %v9410_v1 = vunpack.i.l.bf16 %v9409_v38 }
 0x6b0   :  { %v1760_v26 = vsel %vm14808_vm10, %v9406_v0, %v9410_v1  ;;  %8990 = vmatpush1.bf16.msra.mxu0 %v8989_v10  ;;  %v1761_v32 = vsel %vm14808_vm10, %v9410_v1, %v9411_v23  ;;  %2594 = vrot.lane.b32.xlu1 %v2552_v51, %s14949_s20  ;;  %v14993_v23 = vld [vmem:[#allocation5_spill] sm:$0xff] }
 0x6b1   :  { %v1743_v8 = vpop.permute.xlu1 %1742  ;;  %8422 = vmatprep.subr.msk.mxu0 %vm14790_vm1, %v1763_v57  ;;  %v8995_v50 = vpack.c.bf16 %v1761_v32, %v1757_v46  ;;  %v8997_v58 = vpack.c.bf16 %v1760_v26, %v1756_v52  ;;  %v1940_v36 = vpop.permute.xlu0 %1939  ;;  %2592 = vrot.lane.b32.xlu0 %v2551_v33, %s14949_s20  ;;  %v14995_v46 = vld [vmem:[#allocation6_spill] sm:$0xff] }
 0x6b2   :  { %v1765_v22 = vsel %vm14808_vm10, %v1743_v8, %v1745_v3  ;;  %v1764_v24 = vsel %vm14808_vm10, %v1741_v63, %v1743_v8  ;;  %v14989_v63 = vld [vmem:[#allocation3_spill] sm:$0xff] }
 0x6b3   :  { %8996 = vmatprep.subr.bf16.mxu1 %v8995_v50  ;;  %v14997_v3 = vld [vmem:[#allocation7_spill] sm:$0xff] }
 0x6b4   :  { %8998 = vmatpush1.bf16.msra.mxu1 %v8997_v58  ;;  %2598 = vrot.lane.b32.xlu1 %v2554_v61, %s14949_s20 }
 0x6b5   :  { %v1737_v40 = vpop.permute.xlu1 %1736  ;;  %8425 = vmatprep.subr.msk.mxu1 %vm14790_vm1, %v1765_v22  ;;  %2596 = vrot.lane.b32.xlu0 %v2553_v19, %s14949_s20  ;;  %v2142_v15 = vpop.permute.xlu0 %2141 }
 0x6b6   :  { %v1762_v37 = vsel %vm14808_vm10, %v1737_v40, %v1739_v9  ;;  %v14999_v40 = vld [vmem:[#allocation8_spill] sm:$0xff] }
 0x6b7   :  { %8423 = vmatpush1.msk.msra.mxu0 %vm14790_vm1, %v1762_v37 }
 0x6b8   :  { %8424 = vmatmul.mubr.msk.f32.vlgmr.msra.gmra.mrb[10].mxu0 %vm14785_vm11, %v8421_v20  ;;  %8426 = vmatpush1.msk.msra.mxu1 %vm14790_vm1, %v1764_v24 }
 0x6b9   :  { %8427 = vmatmul.mubr.msk.f32.vlgmr.msra.gmra.mrb[10].mxu1 %vm14785_vm11, %v8421_v20  ;;  %2046 = vmatprep.mubr.f32.mxu0 %v14986_v59  ;;  %v2163_v24 = vpop.permute.xlu0 %2162 }
 0x6ba   :  { %2123 = vmatprep.mubr.f32.mxu1 %v14986_v59  ;;  %2602 = vrot.lane.b32.xlu1 %v2556_v35, %s14949_s20 }
 0x6bb   :  { %2600 = vrot.lane.b32.xlu0 %v2555_v41, %s14949_s20  ;;  %v8444_v41 = vld [vmem:[%s14678_s7 + $0x8] sm:$0xf] }
 0x6be   :  { %2462 = vrot.lane.b32.xlu1 %v2453_v16, %s14942_s0 }
 0x6bf   :  { %2604 = vrot.lane.b32.xlu0 %v2557_v60, %s14949_s20  ;;  %v2560_v60 = vld [vmem:[%s14914_s29 + $0x50] sm:$0xff] }
 0x6c2   :  { %2500 = vrot.lane.b32.xlu1 %v2453_v16, %s14944_s2  ;;  %v2561_v16 = vld [vmem:[%s14914_s29 + $0x58] sm:$0xff] }
 0x6c3   :  { %2481 = vrot.lane.b32.xlu0 %v11201_v44, %s14941_s3 }
 0x6c6   :  { %v1951_v42 = vpop.permute.xlu1 %1950  ;;  %2608 = vrot.lane.b32.xlu1 %v2559_v56, %s14949_s20  ;;  %v2563_v56 = vld [vmem:[%s14914_s29 + $0x68] sm:$0xff] }
 0x6c7   :  { %2606 = vrot.lane.b32.xlu0 %v2558_v34, %s14949_s20  ;;  %v2565_v34 = vld [vmem:[%s14914_s29 + $0x78] sm:$0xff] }
 0x6ca   :  { %v2147_v17 = vpop.permute.xlu1 %2146  ;;  %2612 = vrot.lane.b32.xlu1 %v2561_v16, %s14949_s20 }
 0x6cb   :  { %2610 = vrot.lane.b32.xlu0 %v2560_v60, %s14949_s20 }
 0x6ce   :  { %2616 = vrot.lane.b32.xlu1 %v2563_v56, %s14949_s20 }
 0x6d2   :  { %2620 = vrot.lane.b32.xlu1 %v2565_v34, %s14949_s20 }
 0x78b   :  { %v1859_v7 = vpop.f32.mrb[10].mxu0 }
 0x78c   :  { %v1942_v28 = vmul.f32 %v1940_v36, %v1859_v7  ;;  %v1861_v27 = vpop.f32.mrb[11].mxu0  ;;  %v1930_v39 = vpop.f32.mrb[10].mxu1  ;;  %v15001_v7 = vld [vmem:[#allocation9_spill] sm:$0xff] }
 0x78d   :  { %v1943_v53 = vmul.f32 %v1940_v36, %v1861_v27  ;;  %v1944_v45 = vmul.f32 %v1940_v36, %v1930_v39  ;;  %v1932_v5 = vpop.f32.mrb[11].mxu1  ;;  %v2168_v27 = vpop.permute.xlu1 %2167 }
 0x78e   :  { %v1953_v9 = vadd.f32 %v1951_v42, %v1942_v28  ;;  %v1945_v11 = vmul.f32 %v1940_v36, %v1932_v5 }
 0x78f   :  { %v1954_v55 = vadd.f32 %v1951_v42, %v1943_v53  ;;  %v1955_v54 = vadd.f32 %v1951_v42, %v1944_v45 }
 0x790   :  { %v1956_v62 = vadd.f32 %v1951_v42, %v1945_v11  ;;  %v1957_v4 = vmax.f32 %v1953_v9, 0.0 }
 0x791   :  { %v1958_v0 = vmax.f32 %v1954_v55, 0.0  ;;  %v1959_v21 = vmax.f32 %v1955_v54, 0.0 }
 0x792   :  { %v1960_v47 = vmax.f32 %v1956_v62, 0.0 }
 0x793   :  { %8432 = vmatprep.subr.msk.mxu0 %vm14790_vm1, %v1958_v0 }
 0x794   :  { %8433 = vmatpush1.msk.msra.mxu0 %vm14790_vm1, %v1957_v4  ;;  %8436 = vmatprep.subr.msk.mxu1 %vm14790_vm1, %v1960_v47 }
 0x795   :  { %8434 = vmatmul.mubr.msk.f32.vlgmr.msra.gmra.mrb[12].mxu0 %vm14788_vm12, %v8430_v29  ;;  %8437 = vmatpush1.msk.msra.mxu1 %vm14790_vm1, %v1959_v21 }
 0x796   :  { %8438 = vmatmul.mubr.msk.f32.vlgmr.msra.gmra.mrb[12].mxu1 %vm14788_vm12, %v8430_v29  ;;  %2052 = vmatprep.mubr.f32.mxu0 %v14986_v59 }
 0x797   :  { %2129 = vmatprep.mubr.f32.mxu1 %v14986_v59 }
 0x799   :  { %8435 = vmatmul.mubr.msk.f32.gmra.mrb[14].mxu0 %vm14788_vm12, %v8431_v49 }
 0x79a   :  { %8439 = vmatmul.mubr.msk.f32.gmra.mrb[14].mxu1 %vm14788_vm12, %v8431_v49  ;;  %2255 = vmatprep.mubr.f32.mxu0 %v14986_v59 }
 0x79b   :  { %2326 = vmatprep.mubr.f32.mxu1 %v14986_v59 }
 0x868   :  { %v2048_v13 = vpop.f32.mrb[12].mxu0 }
 0x869   :  { %v11227_v25 = vadd.f32 %v2048_v13, %v14987_v48  ;;  %v2050_v18 = vpop.f32.mrb[13].mxu0  ;;  %v2125_v14 = vpop.f32.mrb[12].mxu1 }
 0x86a   :  { %v11230_v43 = vadd.f32 %v2050_v18, %v14989_v63  ;;  %v11233_v30 = vadd.f32 %v2125_v14, %v14991_v2  ;;  %v2127_v38 = vpop.f32.mrb[13].mxu1  ;;  %v2338_v13 = vpop.permute.xlu0 %2337 }
 0x86b   :  { %14988 = vst [vmem:[#allocation12_spill] sm:$0xff] %v11227_v25  ;;  %v11236_v1 = vadd.f32 %v2127_v38, %v14993_v23  ;;  %v2149_v52 = vmul.f32 %v2142_v15, %v11227_v25 }
 0x86c   :  { %14990 = vst [vmem:[#allocation21_spill] sm:$0xff] %v11230_v43  ;;  %14992 = vst [vmem:[#allocation22_spill] sm:$0xff] %v11233_v30  ;;  %v2150_v10 = vmul.f32 %v2142_v15, %v11230_v43  ;;  %v2054_v57 = vpop.f32.mrb[14].mxu0  ;;  %v2151_v58 = vmul.f32 %v2142_v15, %v11233_v30 }
 0x86d   :  { %14994 = vst [vmem:[#allocation23_spill] sm:$0xff] %v11236_v1  ;;  %v2152_v26 = vmul.f32 %v2142_v15, %v11236_v1  ;;  %v11242_v32 = vadd.f32 %v2054_v57, %v14995_v46  ;;  %v2056_v8 = vpop.f32.mrb[15].mxu0  ;;  %v2131_v50 = vpop.f32.mrb[14].mxu1  ;;  %v2170_v45 = vadd.f32 %v2163_v24, %v2149_v52  ;;  %v2564_v15 = vld [vmem:[%s14914_s29 + $0x70] sm:$0xff] }
 0x86e   :  { %v11246_v22 = vadd.f32 %v2056_v8, %v14997_v3  ;;  %v11249_v20 = vadd.f32 %v2131_v50, %v14999_v40  ;;  %v2133_v37 = vpop.f32.mrb[15].mxu1  ;;  %v2171_v39 = vadd.f32 %v2163_v24, %v2150_v10  ;;  %v2172_v55 = vadd.f32 %v2163_v24, %v2151_v58  ;;  %v2349_v10 = vpop.permute.xlu1 %2348 }
 0x86f   :  { %14996 = vst [vmem:[#allocation24_spill] sm:$0xff] %v11242_v32  ;;  %v2153_v36 = vmul.f32 %v2147_v17, %v11242_v32  ;;  %v11253_v28 = vadd.f32 %v2133_v37, %v15001_v7  ;;  %v2173_v5 = vadd.f32 %v2163_v24, %v2152_v26  ;;  %v2178_v49 = vmax.f32 %v2170_v45, 0.0 }
 0x870   :  { %14998 = vst [vmem:[#allocation25_spill] sm:$0xff] %v11246_v22  ;;  %15000 = vst [vmem:[#allocation26_spill] sm:$0xff] %v11249_v20  ;;  %v2154_v42 = vmul.f32 %v2147_v17, %v11246_v22  ;;  %v2155_v53 = vmul.f32 %v2147_v17, %v11249_v20  ;;  %v2179_v47 = vmax.f32 %v2171_v39, 0.0  ;;  %v2180_v51 = vmax.f32 %v2172_v55, 0.0 }
 0x871   :  { %15002 = vst [vmem:[#allocation15_spill] sm:$0xff] %v11253_v28  ;;  %v2174_v9 = vadd.f32 %v2168_v27, %v2153_v36  ;;  %v2156_v11 = vmul.f32 %v2147_v17, %v11253_v28  ;;  %v2181_v31 = vmax.f32 %v2173_v5, 0.0 }
 0x872   :  { %v2175_v54 = vadd.f32 %v2168_v27, %v2154_v42  ;;  %v2176_v62 = vadd.f32 %v2168_v27, %v2155_v53  ;;  %v11349_v55 = vpop.permute.xlu1 %2398 }
 0x873   :  { %v2182_v0 = vmax.f32 %v2174_v9, 0.0  ;;  %v2177_v4 = vadd.f32 %v2168_v27, %v2156_v11  ;;  %v11347_v11 = vpop.permute.xlu0 %2379 }
 0x874   :  { %v2183_v29 = vmax.f32 %v2175_v54, 0.0  ;;  %v2184_v21 = vmax.f32 %v2176_v62, 0.0 }
 0x875   :  { %v2185_v12 = vmax.f32 %v2177_v4, 0.0  ;;  %v9001_v61 = vpack.c.bf16 %v2182_v0, %v2178_v49  ;;  %v2566_v4 = vld [vmem:[%s14914_s29 + $0x80] sm:$0xf] }
 0x876   :  { %v8999_v33 = vpack.c.bf16 %v2183_v29, %v2179_v47  ;;  %v9005_v35 = vpack.c.bf16 %v2184_v21, %v2180_v51  ;;  %v11355_v62 = vpop.permute.xlu1 %2590  ;;  %v2567_v47 = vld [vmem:[%s14914_s29 + $0x88] sm:$0xf]  ;;  %v2568_v29 = vld [vmem:[%s14914_s29 + $0x90] sm:$0xf] }
 0x877   :  { %v9003_v19 = vpack.c.bf16 %v2185_v12, %v2181_v31  ;;  %v11353_v54 = vpop.permute.xlu0 %2417  ;;  %v2569_v31 = vld [vmem:[%s14914_s29 + $0x98] sm:$0xf] }
 0x878   :  { %9000 = vmatprep.subr.bf16.mxu0 %v8999_v33 }
 0x879   :  { %9002 = vmatpush1.bf16.msra.mxu0 %v9001_v61  ;;  %9004 = vmatprep.subr.bf16.mxu1 %v9003_v19 }
 0x87a   :  { %9006 = vmatpush1.bf16.msra.mxu1 %v9005_v35  ;;  %v11364_v0 = vpop.permute.xlu1 %2594 }
 0x87c   :  { %8445 = vmatmul.mubr.msk.f32.vlgmr.msra.gmra.mrb[16].mxu0 %vm14801_vm0, %v8444_v41 }
 0x87d   :  { %8446 = vmatmul.mubr.msk.f32.vlgmr.msra.gmra.mrb[16].mxu1 %vm14801_vm0, %v8444_v41  ;;  %2883 = vmatprep.mubr.f32.mxu0 %v14986_v59 }
 0x87e   :  { %2954 = vmatprep.mubr.f32.mxu1 %v14986_v59  ;;  %v2562_v59 = vld [vmem:[%s14914_s29 + $0x60] sm:$0xff]  ;;  %v11377_v49 = vpop.permute.xlu1 %2598 }
 0x87f   :  { %2614 = vrot.lane.b32.xlu0 %v2562_v59, %s14949_s20 }
 0x882   :  { %v11387_v51 = vpop.permute.xlu1 %2602 }
 0x883   :  { %2618 = vrot.lane.b32.xlu0 %v2564_v15, %s14949_s20 }
 0x886   :  { %v11391_v61 = vpop.permute.xlu1 %2462 }
 0x88a   :  { %v11395_v35 = vpop.permute.xlu1 %2500 }
 0x88e   :  { %v11399_v16 = vpop.permute.xlu1 %2608 }
 0x892   :  { %v11403_v56 = vpop.permute.xlu1 %2612 }
 0x896   :  { %v11407_v34 = vpop.permute.xlu1 %2616 }
 0x94f   :  { %v2257_v18 = vpop.f32.mrb[16].mxu0 }
 0x950   :  { %v2340_v14 = vmul.f32 %v2338_v13, %v2257_v18  ;;  %v2259_v17 = vpop.f32.mrb[17].mxu0  ;;  %v2328_v38 = vpop.f32.mrb[16].mxu1 }
 0x951   :  { %v2341_v57 = vmul.f32 %v2338_v13, %v2259_v17  ;;  %v2342_v52 = vmul.f32 %v2338_v13, %v2328_v38  ;;  %v2330_v26 = vpop.f32.mrb[17].mxu1 }
 0x952   :  { %v2351_v46 = vadd.f32 %v2349_v10, %v2340_v14  ;;  %v2343_v8 = vmul.f32 %v2338_v13, %v2330_v26  ;;  %v11411_v13 = vpop.permute.xlu1 %2620 }
 0x953   :  { %v2352_v50 = vadd.f32 %v2349_v10, %v2341_v57  ;;  %v2353_v58 = vadd.f32 %v2349_v10, %v2342_v52  ;;  %15003 = vst [vmem:[#allocation13_spill] sm:$0xff] %v11411_v13 }
 0x954   :  { %v2355_v3 = vmax.f32 %v2351_v46, 0.0  ;;  %v2354_v40 = vadd.f32 %v2349_v10, %v2343_v8 }
 0x955   :  { %v2356_v37 = vmax.f32 %v2352_v50, 0.0  ;;  %v2357_v24 = vmax.f32 %v2353_v58, 0.0 }
 0x956   :  { %2359 = vst [vmem:[#allocation2 + $0x8] sm:$0xf] %v2355_v3  ;;  %v2358_v36 = vmax.f32 %v2354_v40, 0.0 }
 0x957   :  { %2360 = vst [vmem:[#allocation2 + $0x10] sm:$0xf] %v2356_v37  ;;  %2361 = vst [vmem:[#allocation2 + $0x18] sm:$0xf] %v2357_v24 }
 0x958   :  { %2362 = vst [vmem:[#allocation2 + $0x20] sm:$0xf] %v2358_v36 }
 0x95d   :  { %v11289_v7 = vld [vmem:[#allocation2 + $0x8] sm:$0xf] }
 0x95e   :  { %2436 = vrot.lane.b32.xlu1 %v11289_v7, %s14949_s20  ;;  %3162 = vst [vmem:[#allocation2 + $0x8] sm:$0xff] %v14987_v48  ;;  %2400 = vrot.lane.b32.xlu0 %v11289_v7, %s14940_s25  ;;  %v11296_v27 = vld [vmem:[#allocation2 + $0x18] sm:$0xf]  ;;  %v11298_v39 = vld [vmem:[#allocation2 + $0x10] sm:$0xf]  ;;  %v2375_v53 = vrot.slane %v11289_v7, 4 }
 0x95f   :  { %3164 = vst [vmem:[#allocation2 + $0x18] sm:$0xff] %v14991_v2  ;;  %3163 = vst [vmem:[#allocation2 + $0x10] sm:$0xff] %v14989_v63  ;;  %v11302_v42 = vld [vmem:[#allocation2 + $0x20] sm:$0xf]  ;;  %v2377_v45 = vrot.slane %v11296_v27, 4  ;;  %v2376_v5 = vrot.slane %v11298_v39, 4 }
 0x960   :  { %3165 = vst [vmem:[#allocation2 + $0x20] sm:$0xff] %v14993_v23  ;;  %v2378_v9 = vrot.slane %v11302_v42, 4 }
 0x962   :  { %2440 = vrot.lane.b32.xlu1 %v11296_v27, %s14949_s20  ;;  %2404 = vrot.lane.b32.xlu0 %v11296_v27, %s14940_s25 }
 0x966   :  { %2473 = vrot.lane.b32.xlu0 %v11289_v7, %s14941_s3  ;;  %2402 = vrot.lane.b32.xlu1 %v11298_v39, %s14940_s25 }
 0x96a   :  { %2477 = vrot.lane.b32.xlu0 %v11296_v27, %s14941_s3  ;;  %2406 = vrot.lane.b32.xlu1 %v11302_v42, %s14940_s25 }
 0x96e   :  { %2511 = vrot.lane.b32.xlu0 %v11289_v7, %s14983_s12  ;;  %2475 = vrot.lane.b32.xlu1 %v11298_v39, %s14941_s3 }
 0x972   :  { %2515 = vrot.lane.b32.xlu0 %v11296_v27, %s14983_s12  ;;  %2479 = vrot.lane.b32.xlu1 %v11302_v42, %s14941_s3  ;;  %s15368_s3 = sld [smem:[#allocation49_spill]] }
 0x976   :  { %2438 = vrot.lane.b32.xlu0 %v11298_v39, %s14949_s20  ;;  %2513 = vrot.lane.b32.xlu1 %v11298_v39, %s14983_s12 }
 0x97a   :  { %2442 = vrot.lane.b32.xlu0 %v11302_v42, %s14949_s20  ;;  %2454 = vrot.lane.b32.xlu1 %v2375_v53, %s14942_s0 }
 0x97e   :  { %2381 = vrot.lane.b32.xlu0 %v2375_v53, %s14943_s27  ;;  %2458 = vrot.lane.b32.xlu1 %v2377_v45, %s14942_s0 }
 0x982   :  { %2385 = vrot.lane.b32.xlu0 %v2377_v45, %s14943_s27  ;;  %2492 = vrot.lane.b32.xlu1 %v2375_v53, %s14944_s2 }
 0x986   :  { %2419 = vrot.lane.b32.xlu0 %v2375_v53, %s14945_s1  ;;  %2496 = vrot.lane.b32.xlu1 %v2377_v45, %s14944_s2 }
 0x98a   :  { %2423 = vrot.lane.b32.xlu0 %v2377_v45, %s14945_s1  ;;  %2383 = vrot.lane.b32.xlu1 %v2376_v5, %s14943_s27 }
 0x98e   :  { %2519 = vrot.lane.b32.xlu0 %v11201_v44, %s14983_s12  ;;  %2387 = vrot.lane.b32.xlu1 %v2378_v9, %s14943_s27  ;;  %v11362_v44 = vpop.permute.xlu0 %2592 }
 0x992   :  { %2456 = vrot.lane.b32.xlu0 %v2376_v5, %s14942_s0  ;;  %2421 = vrot.lane.b32.xlu1 %v2376_v5, %s14945_s1  ;;  %v2597_v21 = vpop.permute.xlu0 %2596 }
 0x996   :  { %2460 = vrot.lane.b32.xlu0 %v2378_v9, %s14942_s0  ;;  %2425 = vrot.lane.b32.xlu1 %v2378_v9, %s14945_s1  ;;  %v11385_v12 = vpop.permute.xlu0 %2600 }
 0x99a   :  { %2494 = vrot.lane.b32.xlu0 %v2376_v5, %s14944_s2  ;;  %2517 = vrot.lane.b32.xlu1 %v11302_v42, %s14983_s12  ;;  %v11389_v33 = vpop.permute.xlu0 %2604  ;;  %s15333_s12 = smov 1  }
 0x99e   :  { %2498 = vrot.lane.b32.xlu0 %v2378_v9, %s14944_s2  ;;  %2622 = vrot.lane.b32.xlu1 %v2566_v4, %s14949_s20  ;;  %v11393_v19 = vpop.permute.xlu0 %2481  ;;  %s14882_s2 = smov 123  }
 0x9a2   :  { %2624 = vrot.lane.b32.xlu0 %v2567_v47, %s14949_s20  ;;  %2626 = vrot.lane.b32.xlu1 %v2568_v29, %s14949_s20  ;;  %v11397_v41 = vpop.permute.xlu0 %2606 }
 0x9a6   :  { %2628 = vrot.lane.b32.xlu0 %v2569_v31, %s14949_s20  ;;  %v11401_v60 = vpop.permute.xlu0 %2610 }
 0x9aa   :  { %v11405_v59 = vpop.permute.xlu0 %2614 }
 0x9ae   :  { %v11409_v15 = vpop.permute.xlu0 %2618 }
 0x9d0   :  { %v2437_v18 = vpop.permute.xlu1 %2436  ;;  %v11413_v14 = vpop.permute.xlu0 %2400 }
 0x9d4   :  { %v11415_v17 = vpop.permute.xlu1 %2440  ;;  %v11417_v38 = vpop.permute.xlu0 %2404 }
 0x9d8   :  { %v2474_v10 = vpop.permute.xlu0 %2473  ;;  %v11419_v57 = vpop.permute.xlu1 %2402 }
 0x9dc   :  { %v11421_v52 = vpop.permute.xlu0 %2477  ;;  %v2407_v26 = vpop.permute.xlu1 %2406 }
 0x9e0   :  { %v11423_v46 = vpop.permute.xlu0 %2511  ;;  %v2476_v8 = vpop.permute.xlu1 %2475 }
 0x9e4   :  { %v11425_v50 = vpop.permute.xlu0 %2515  ;;  %v11427_v58 = vpop.permute.xlu1 %2479 }
 0x9e8   :  { %v2439_v3 = vpop.permute.xlu0 %2438  ;;  %v11429_v40 = vpop.permute.xlu1 %2513 }
 0x9ec   :  { %v11431_v37 = vpop.permute.xlu0 %2442  ;;  %v2455_v24 = vpop.permute.xlu1 %2454 }
 0x9ed   :  { %v2540_v45 = vsel %vm14790_vm1, %v2437_v18, %v2455_v24 }
 0x9ee   :  { %v2680_v47 = vmul.f32 %v11397_v41, %v2540_v45 }
 0x9f0   :  { %v11433_v36 = vpop.permute.xlu0 %2381  ;;  %v11435_v53 = vpop.permute.xlu1 %2458 }
 0x9f4   :  { %v11438_v5 = vpop.permute.xlu0 %2385  ;;  %v2493_v9 = vpop.permute.xlu1 %2492 }
 0x9f5   :  { %v2545_v4 = vsel %vm14790_vm1, %v2474_v10, %v2493_v9 }
 0x9f6   :  { %v2685_v29 = vmul.f32 %v11405_v59, %v2545_v4  ;;  %v2632_v4 = vsel %vm14789_vm3, %v11364_v0, %v2597_v21 }
 0x9f8   :  { %v9412_v31 = vpack.i.bf16 %v2685_v29, %v2680_v47  ;;  %v11443_v28 = vpop.permute.xlu0 %2419  ;;  %v11445_v22 = vpop.permute.xlu1 %2496 }
 0x9fa   :  { %9413 = vrot.lane.b32.xlu0 %v9412_v31, %s14780_s10 }
 0x9fc   :  { %v11448_v20 = vpop.permute.xlu0 %2423  ;;  %v2384_v32 = vpop.permute.xlu1 %2383 }
 0xa00   :  { %v11450_v1 = vpop.permute.xlu0 %2519  ;;  %v2388_v43 = vpop.permute.xlu1 %2387 }
 0xa01   :  { %v2392_v30 = vsel %vm14800_vm2, %v11438_v5, %v2388_v43  ;;  %v2534_v45 = vsel %vm14790_vm1, %v11302_v42, %v2388_v43  ;;  %v2411_v43 = vsel %vm14787_vm5, %v11417_v38, %v2407_v26  ;;  %v2444_v42 = vsel %vm14789_vm3, %v2437_v18, %v2439_v3 }
 0xa02   :  { %v2533_v47 = vsel %vm14790_vm1, %v11296_v27, %v2392_v30  ;;  %v2674_v29 = vmul.f32 %v2597_v21, %v2534_v45  ;;  %v2445_v27 = vsel %vm14789_vm3, %v2439_v3, %v11415_v17  ;;  %v2636_v3 = vsel %vm14789_vm3, %v11397_v41, %v11399_v16 }
 0xa03   :  { %v2673_v31 = vmul.f32 %v2632_v4, %v2533_v47  ;;  %v2637_v47 = vsel %vm14789_vm3, %v11399_v16, %v11401_v60 }
 0xa04   :  { %v2457_v25 = vpop.permute.xlu0 %2456  ;;  %v2422_v23 = vpop.permute.xlu1 %2421 }
 0xa05   :  { %v9427_v2 = vpack.i.bf16 %v2674_v29, %v2673_v31  ;;  %v2464_v63 = vsel %vm14786_vm4, %v2455_v24, %v2457_v25  ;;  %v2465_v48 = vsel %vm14786_vm4, %v2457_v25, %v11435_v53  ;;  %v2484_v29 = vsel %vm14784_vm6, %v2476_v8, %v11421_v52 }
 0xa06   :  { %v2541_v21 = vsel %vm14790_vm1, %v2444_v42, %v2464_v63  ;;  %v2542_v45 = vsel %vm14790_vm1, %v2445_v27, %v2465_v48 }
 0xa07   :  { %9428 = vrot.lane.b32.xlu0 %v9427_v2, %s14780_s10  ;;  %v2635_v2 = vsel %vm14789_vm3, %v11387_v51, %v11389_v33  ;;  %v2681_v31 = vmul.f32 %v2636_v3, %v2541_v21 }
 0xa08   :  { %v11467_v13 = vpop.permute.xlu0 %2460  ;;  %v2426_v30 = vpop.permute.xlu1 %2425 }
 0xa09   :  { %v2430_v24 = vsel %vm14797_vm7, %v11448_v20, %v2426_v30  ;;  %v2539_v25 = vsel %vm14790_vm1, %v2407_v26, %v2426_v30  ;;  %v2483_v26 = vsel %vm14784_vm6, %v2474_v10, %v2476_v8  ;;  %v2639_v10 = vsel %vm14789_vm3, %v11405_v59, %v11407_v34 }
 0xa0a   :  { %v2538_v18 = vsel %vm14790_vm1, %v2411_v43, %v2430_v24  ;;  %v2679_v4 = vmul.f32 %v11389_v33, %v2539_v25  ;;  %v2682_v43 = vmul.f32 %v2637_v47, %v2542_v45  ;;  %v2640_v8 = vsel %vm14789_vm3, %v11407_v34, %v11409_v15 }
 0xa0b   :  { %v2678_v63 = vmul.f32 %v2635_v2, %v2538_v18  ;;  %v2408_v18 = vsel %vm14787_vm5, %v11349_v55, %v11413_v14  ;;  %v2389_v59 = vsel %vm14800_vm2, %v11347_v11, %v11433_v36  ;;  %v2521_v55 = vsel %vm14782_vm9, %v11423_v46, %v11429_v40 }
 0xa0c   :  { %v2495_v48 = vpop.permute.xlu0 %2494  ;;  %v11490_v42 = vpop.permute.xlu1 %2517  ;;  %v9442_v45 = vpack.i.bf16 %v2682_v43, %v2681_v31  ;;  %v2530_v11 = vsel %vm14790_vm1, %v11172_v6, %v2389_v59  ;;  %v2522_v6 = vsel %vm14782_vm9, %v11429_v40, %v11425_v50  ;;  %v2428_v43 = vsel %vm14797_vm7, %v11443_v28, %v2422_v23  ;;  %v15006_v59 = vld [vmem:[#allocation3_spill] sm:$0xff] }
 0xa0d   :  { %v9437_v33 = vpack.i.bf16 %v2679_v4, %v2678_v63  ;;  %v2502_v30 = vsel %vm14783_vm8, %v2493_v9, %v2495_v48  ;;  %v2503_v41 = vsel %vm14783_vm8, %v2495_v48, %v11445_v22  ;;  %v2427_v9 = vsel %vm14797_vm7, %v11353_v54, %v11443_v28 }
 0xa0e   :  { %v2546_v27 = vsel %vm14790_vm1, %v2483_v26, %v2502_v30  ;;  %v2547_v16 = vsel %vm14790_vm1, %v2484_v29, %v2503_v41  ;;  %v2535_v34 = vsel %vm14790_vm1, %v2408_v18, %v2427_v9  ;;  %v2390_v54 = vsel %vm14800_vm2, %v11433_v36, %v2384_v32 }
 0xa0f   :  { %9438 = vrot.lane.b32.xlu0 %v9437_v33, %s14780_s10  ;;  %v2686_v25 = vmul.f32 %v2639_v10, %v2546_v27  ;;  %v2687_v2 = vmul.f32 %v2640_v8, %v2547_v16  ;;  %v2391_v4 = vsel %vm14800_vm2, %v2384_v32, %v11438_v5  ;;  %v2675_v29 = vmul.f32 %v11377_v49, %v2535_v34 }
 0xa10   :  { %v2499_v21 = vpop.permute.xlu0 %2498  ;;  %v11507_v24 = vpop.permute.xlu1 %2622  ;;  %v2531_v5 = vsel %vm14790_vm1, %v11289_v7, %v2390_v54  ;;  %v2532_v31 = vsel %vm14790_vm1, %v11298_v39, %v2391_v4  ;;  %v2670_v48 = vmul.f32 %v11355_v62, %v2530_v11  ;;  %v2429_v33 = vsel %vm14797_vm7, %v2422_v23, %v11448_v20  ;;  %v11614_v4 = vld [vmem:[#allocation2 + $0x38] sm:$0xff] }
 0xa11   :  { %v9452_v26 = vpack.i.bf16 %v2687_v2, %v2686_v25  ;;  %v2630_v7 = vsel %vm14789_vm3, %v11355_v62, %v11362_v44  ;;  %v2631_v39 = vsel %vm14789_vm3, %v11362_v44, %v11364_v0  ;;  %v2409_v40 = vsel %vm14787_vm5, %v11413_v14, %v11419_v57  ;;  %15007 = vst [vmem:[#allocation16_spill] sm:$0xff] %v11614_v4 }
 0xa12   :  { %v2410_v28 = vsel %vm14787_vm5, %v11419_v57, %v11417_v38  ;;  %v2671_v23 = vmul.f32 %v2630_v7, %v2531_v5  ;;  %v2672_v20 = vmul.f32 %v2631_v39, %v2532_v31  ;;  %v9417_v27 = vpack.i.bf16 %v2675_v29, %v2670_v48  ;;  %v15009_v29 = vld [vmem:[#allocation4_spill] sm:$0xff]  ;;  %v8478_v7 = vld [vmem:[%s14910_s26 + $0x30] sm:$0xff] }
 0xa13   :  { %9443 = vrot.lane.b32.xlu0 %v9442_v45, %s14780_s10  ;;  %v2536_v16 = vsel %vm14790_vm1, %v2409_v40, %v2428_v43  ;;  %v2537_v62 = vsel %vm14790_vm1, %v2410_v28, %v2429_v33  ;;  %v2466_v44 = vsel %vm14786_vm4, %v11435_v53, %v11467_v13  ;;  %v2467_v0 = vsel %vm14786_vm4, %v11467_v13, %v11391_v61  ;;  %v8476_v33 = vld [vmem:[%s14911_s28 + $0x30] sm:$0xff]  ;;  %v8482_v40 = vld [vmem:[%s14913_s4 + $0xc] sm:$0xf] }
 0xa14   :  { %v2625_v3 = vpop.permute.xlu0 %2624  ;;  %v11521_v63 = vpop.permute.xlu1 %2626  ;;  %v2524_v14 = vsel %vm14782_vm9, %v11490_v42, %v11450_v1  ;;  %v2633_v38 = vsel %vm14789_vm3, %v11377_v49, %v11385_v12  ;;  %v2634_v57 = vsel %vm14789_vm3, %v11385_v12, %v11387_v51  ;;  %v2446_v53 = vsel %vm14789_vm3, %v11415_v17, %v11431_v37  ;;  %v8456_v51 = vld [vmem:[%s14679_s5 + $0x8] sm:$0xf] }
 0xa15   :  { %v2642_v47 = vsel %vm14789_vm3, %v11507_v24, %v2625_v3  ;;  %v2643_v32 = vsel %vm14789_vm3, %v2625_v3, %v11521_v63  ;;  %v2676_v61 = vmul.f32 %v2633_v38, %v2536_v16  ;;  %v2677_v13 = vmul.f32 %v2634_v57, %v2537_v62  ;;  %v8479_v57 = vld [vmem:[%s14910_s26 + $0x38] sm:$0xff] }
 0xa16   :  { %v2691_v36 = vmul.f32 %v2642_v47, %v2521_v55  ;;  %v2692_v30 = vmul.f32 %v2643_v32, %v2522_v6  ;;  %v9422_v8 = vpack.i.bf16 %v2672_v20, %v2671_v23  ;;  %v2543_v1 = vsel %vm14790_vm1, %v2446_v53, %v2466_v44  ;;  %v11623_v55 = vld [vmem:[#allocation2] sm:$0xff]  ;;  %v11653_v32 = vld [vmem:[#allocation2 + $0x48] sm:$0xff] }
 0xa17   :  { %9453 = vrot.lane.b32.xlu0 %v9452_v26, %s14780_s10  ;;  %v2544_v9 = vsel %vm14790_vm1, %v11431_v37, %v2467_v0  ;;  %v2504_v49 = vsel %vm14783_vm8, %v11445_v22, %v2499_v21  ;;  %v2505_v12 = vsel %vm14783_vm8, %v2499_v21, %v11395_v35  ;;  %v2638_v17 = vsel %vm14789_vm3, %v11401_v60, %v11403_v56  ;;  %v15004_v60 = vld [vmem:[#allocation13_spill] sm:$0xff]  ;;  %v8477_v0 = vld [vmem:[%s14911_s28 + $0x38] sm:$0xff] }
 0xa18   :  { %2764 = vrot.lane.b32.xlu1 %v2691_v36, %s14780_s10  ;;  %v2629_v41 = vpop.permute.xlu0 %2628  ;;  %v2485_v37 = vsel %vm14784_vm6, %v11421_v52, %v11427_v58  ;;  %v2486_v22 = vsel %vm14784_vm6, %v11427_v58, %v11393_v19  ;;  %v2683_v25 = vmul.f32 %v2638_v17, %v2543_v1  ;;  %v2684_v35 = vmul.f32 %v11403_v56, %v2544_v9  ;;  %v15005_v52 = vld [vmem:[#allocation27_spill] sm:$0xff] }
 0xa19   :  { %v2694_v10 = vmul.f32 %v2629_v41, %v2524_v14  ;;  %v9432_v21 = vpack.i.bf16 %v2677_v13, %v2676_v61  ;;  %v2548_v2 = vsel %vm14790_vm1, %v2485_v37, %v2504_v49  ;;  %v2549_v45 = vsel %vm14790_vm1, %v2486_v22, %v2505_v12  ;;  %v11651_v36 = vld [vmem:[#allocation2 + $0x40] sm:$0xff]  ;;  %15012 = vst [vmem:[#allocation17_spill] sm:$0xff] %v11653_v32  ;;  %v8483_v61 = vld [vmem:[%s14912_s23 + $0xc] sm:$0xf] }
 0xa1a   :  { %v2641_v18 = vsel %vm14789_vm3, %v11409_v15, %v15004_v60  ;;  %v9462_v34 = vpack.i.bf16 %v15006_v59, %v15005_v52  ;;  %v2689_v19 = vmul.f32 %v15004_v60, %v2549_v45  ;;  %v9447_v58 = vpack.i.bf16 %v2684_v35, %v2683_v25  ;;  %15011 = vst [vmem:[#allocation19_spill] sm:$0xff] %v11651_v36  ;;  %v4263_v12 = vld [vmem:[%s14683_s13 + $0x8] sm:$0xff] }
 0xa1b   :  { %2766 = vrot.lane.b32.xlu0 %v2692_v30, %s14780_s10  ;;  %v2688_v54 = vmul.f32 %v2641_v18, %v2548_v2  ;;  %v2644_v3 = vsel %vm14789_vm3, %v11521_v63, %v2629_v41  ;;  %v2523_v15 = vsel %vm14782_vm9, %v11425_v50, %v11490_v42  ;;  %v11627_v11 = vpack.i.bf16 %v11614_v4, %v11623_v55  ;;  %v8457_v50 = vld [vmem:[%s14680_s6 + $0x8] sm:$0xf]  ;;  %v11639_v42 = vld [vmem:[#allocation2 + $0x50] sm:$0xff] }
 0xa1c   :  { %9418 = vrot.lane.b32.xlu1 %v9417_v27, %s14780_s10  ;;  %v2693_v47 = vmul.f32 %v2644_v3, %v2523_v15  ;;  %v2690_v63 = vmul.f32 %v11507_v24, %v11423_v46  ;;  %15008 = vst [vmem:[#allocation14_spill] sm:$0xff] %v11639_v42  ;;  %v9512_v26 = vpack.i.bf16 %v11623_v55, %v11639_v42  ;;  %v15010_v46 = vld [vmem:[#allocation5_spill] sm:$0xff]  ;;  %vm14802_vm4 = vcmask 121856  }
 0xa1d   :  { %v9457_v56 = vpack.i.bf16 %v2689_v19, %v2688_v54  ;;  %v9467_v24 = vpack.i.bf16 %v15010_v46, %v15009_v29  ;;  %v9542_v5 = vpack.i.bf16 %v11653_v32, %v11651_v36  ;;  %v9562_v31 = vpack.i.bf16 %v15009_v29, %v15006_v59 }
 0xa1e   :  { %v9572_v6 = vpack.i.bf16 %v11651_v36, %v15005_v52  ;;  %v9582_v48 = vpack.i.bf16 %v11623_v55, %v15010_v46  ;;  %v9592_v43 = vpack.i.bf16 %v11639_v42, %v11653_v32 }
 0xa1f   :  { %2770 = vrot.lane.b32.xlu0 %v2694_v10, %s14780_s10 }
 0xa20   :  { %9423 = vrot.lane.b32.xlu1 %v9422_v8, %s14780_s10 }
 0xa23   :  { %2965 = vperm.xlu0 %9310, %v8456_v51   ;;  %v4193_v51 = vld [vmem:[#allocation2 + $0x10] sm:$0xf] }
 0xa24   :  { %9433 = vrot.lane.b32.xlu1 %v9432_v21, %s14780_s10  ;;  %v4224_v18 = vrot.slane %v4193_v51, 4 }
 0xa27   :  { %9463 = vrot.lane.b32.xlu0 %v9462_v34, %s14780_s10 }
 0xa28   :  { %9448 = vrot.lane.b32.xlu1 %v9447_v58, %s14780_s10 }
 0xa2b   :  { %9473 = vrot.lane.b32.xlu0 %v9462_v34, %s9933_s21 }
 0xa2c   :  { %9458 = vrot.lane.b32.xlu1 %v9457_v56, %s14780_s10 }
 0xa2f   :  { %9483 = vrot.lane.b32.xlu0 %v11627_v11, %s14780_s10 }
 0xa30   :  { %2768 = vrot.lane.b32.xlu1 %v2693_v47, %s14780_s10 }
 0xa33   :  { %9493 = vrot.lane.b32.xlu0 %v9462_v34, %s9934_s19 }
 0xa34   :  { %2762 = vrot.lane.b32.xlu1 %v2690_v63, %s14780_s10 }
 0xa37   :  { %9503 = vrot.lane.b32.xlu0 %v11627_v11, %s9934_s19 }
 0xa38   :  { %2976 = vperm.xlu1 %9311, %v8457_v50  }
 0xa3b   :  { %9513 = vrot.lane.b32.xlu0 %v9512_v26, %s14780_s10 }
 0xa3c   :  { %9468 = vrot.lane.b32.xlu1 %v9467_v24, %s14780_s10 }
 0xa3f   :  { %9523 = vrot.lane.b32.xlu0 %v9512_v26, %s9933_s21 }
 0xa40   :  { %9478 = vrot.lane.b32.xlu1 %v9467_v24, %s9933_s21 }
 0xa43   :  { %9533 = vrot.lane.b32.xlu0 %v9467_v24, %s14845_s22 }
 0xa44   :  { %9488 = vrot.lane.b32.xlu1 %v11627_v11, %s9933_s21 }
 0xa47   :  { %9543 = vrot.lane.b32.xlu0 %v9542_v5, %s9934_s19 }
 0xa48   :  { %9498 = vrot.lane.b32.xlu1 %v9467_v24, %s9934_s19 }
 0xa4b   :  { %9553 = vrot.lane.b32.xlu0 %v9542_v5, %s14845_s22 }
 0xa4c   :  { %9508 = vrot.lane.b32.xlu1 %v9542_v5, %s14780_s10 }
 0xa4f   :  { %9563 = vrot.lane.b32.xlu0 %v9562_v31, %s14943_s27 }
 0xa50   :  { %9518 = vrot.lane.b32.xlu1 %v9542_v5, %s9933_s21  ;;  %s15299_s21 = smov 118  }
 0xa53   :  { %9573 = vrot.lane.b32.xlu0 %v9572_v6, %s14943_s27 }
 0xa54   :  { %9528 = vrot.lane.b32.xlu1 %v9462_v34, %s14845_s22 }
 0xa57   :  { %9583 = vrot.lane.b32.xlu0 %v9582_v48, %s9936_s11 }
 0xa58   :  { %9538 = vrot.lane.b32.xlu1 %v11627_v11, %s14845_s22 }
 0xa5b   :  { %9593 = vrot.lane.b32.xlu0 %v9592_v43, %s14943_s27 }
 0xa5c   :  { %9548 = vrot.lane.b32.xlu1 %v9512_v26, %s9934_s19  ;;  %s14884_s19 = smov 5  }
 0xa5f   :  { %9603 = vrot.lane.b32.xlu0 %v9562_v31, %s14945_s1 }
 0xa60   :  { %9558 = vrot.lane.b32.xlu1 %v9512_v26, %s14845_s22  ;;  %s15325_s22 = smov 9  }
 0xa63   :  { %9613 = vrot.lane.b32.xlu0 %v9572_v6, %s14945_s1 }
 0xa64   :  { %9568 = vrot.lane.b32.xlu1 %v9582_v48, %s14943_s27 }
 0xa67   :  { %9623 = vrot.lane.b32.xlu0 %v11627_v11, %s9936_s11 }
 0xa68   :  { %9578 = vrot.lane.b32.xlu1 %v9562_v31, %s9936_s11 }
 0xa6b   :  { %9633 = vrot.lane.b32.xlu0 %v9582_v48, %s14949_s20 }
 0xa6c   :  { %9588 = vrot.lane.b32.xlu1 %v9572_v6, %s9936_s11  ;;  %v11697_v39 = vpop.permute.xlu0 %9413 }
 0xa6d   :  { %v9416_v3 = vunpack.i.h.bf16 %v11697_v39  ;;  %v9415_v26 = vunpack.i.l.bf16 %v11697_v39 }
 0xa6f   :  { %9643 = vrot.lane.b32.xlu0 %v9592_v43, %s14945_s1 }
 0xa70   :  { %9598 = vrot.lane.b32.xlu1 %v11627_v11, %s14943_s27 }
 0xa73   :  { %9653 = vrot.lane.b32.xlu0 %v9592_v43, %s14949_s20 }
 0xa74   :  { %9608 = vrot.lane.b32.xlu1 %v9582_v48, %s14945_s1 }
 0xa77   :  { %4071 = vperm.xlu0 %9310, %v8476_v33  }
 0xa78   :  { %9618 = vrot.lane.b32.xlu1 %v9592_v43, %s9936_s11  ;;  %s15298_s11 = smov 119  }
 0xa79   :  { %v9429_v30 = vpop.permute.xlu0 %9428 }
 0xa7a   :  { %v9431_v28 = vunpack.i.h.bf16 %v9429_v30  ;;  %v9430_v23 = vunpack.i.l.bf16 %v9429_v30 }
 0xa7b   :  { %4086 = vperm.xlu0 %9310, %v8478_v7  }
 0xa7c   :  { %9628 = vrot.lane.b32.xlu1 %v9562_v31, %s14949_s20  ;;  %v2775_v16 = vsel %vm14808_vm10, %v9430_v23, %v9431_v28 }
 0xa7f   :  { %4177 = vperm.xlu0 %9310, %v8482_v40  }
 0xa80   :  { %9638 = vrot.lane.b32.xlu1 %v9572_v6, %s14949_s20 }
 0xa81   :  { %v9439_v20 = vpop.permute.xlu0 %9438 }
 0xa82   :  { %v9441_v41 = vunpack.i.h.bf16 %v9439_v20  ;;  %v9440_v27 = vunpack.i.l.bf16 %v9439_v20 }
 0xa84   :  { %9648 = vrot.lane.b32.xlu1 %v11627_v11, %s14945_s1  ;;  %v2779_v62 = vsel %vm14808_vm10, %v9440_v27, %v9441_v41 }
 0xa85   :  { %v9015_v44 = vpack.c.bf16 %v2779_v62, %v2775_v16  ;;  %v9444_v38 = vpop.permute.xlu0 %9443 }
 0xa86   :  { %v9446_v17 = vunpack.i.h.bf16 %v9444_v38  ;;  %v9445_v25 = vunpack.i.l.bf16 %v9444_v38 }
 0xa87   :  { %9016 = vmatprep.subr.bf16.mxu1 %v9015_v44 }
 0xa88   :  { %9658 = vrot.lane.b32.xlu1 %v11627_v11, %s14949_s20  ;;  %v2781_v50 = vsel %vm14808_vm10, %v9445_v25, %v9446_v17  ;;  %v2780_v43 = vsel %vm14808_vm10, %v9415_v26, %v9445_v25  ;;  %v3193_v25 = vlaneseq }
 0xa89   :  { %v9454_v53 = vpop.permute.xlu0 %9453 }
 0xa8a   :  { %v11713_v14 = vpop.permute.xlu1 %2764  ;;  %v9456_v8 = vunpack.i.h.bf16 %v9454_v53  ;;  %v9455_v1 = vunpack.i.l.bf16 %v9454_v53 }
 0xa8c   :  { %4076 = vperm.xlu1 %9311, %v8477_v0   ;;  %v2785_v34 = vsel %vm14808_vm10, %v9455_v1, %v9456_v8  ;;  %v2784_v24 = vsel %vm14808_vm10, %v9416_v3, %v9455_v1 }
 0xa8d   :  { %v9011_v5 = vpack.c.bf16 %v2785_v34, %v2781_v50  ;;  %v2767_v31 = vpop.permute.xlu0 %2766  ;;  %v9013_v30 = vpack.c.bf16 %v2784_v24, %v2780_v43  ;;  %v15018_v43 = vmov 0 }
 0xa8e   :  { %v9419_v10 = vpop.permute.xlu1 %9418  ;;  %v2789_v39 = vsel %vm14808_vm10, %v11713_v14, %v2767_v31 }
 0xa8f   :  { %v9420_v37 = vunpack.i.l.bf16 %v9419_v10  ;;  %v9421_v35 = vunpack.i.h.bf16 %v9419_v10 }
 0xa90   :  { %4091 = vperm.xlu1 %9311, %v8479_v57   ;;  %v8449_v57 = vld [vmem:[%s14681_s8 + $0x8] sm:$0xf] }
 0xa91   :  { %v2771_v44 = vpop.permute.xlu0 %2770 }
 0xa92   :  { %v9424_v13 = vpop.permute.xlu1 %9423 }
 0xa93   :  { %v9426_v9 = vunpack.i.h.bf16 %v9424_v13  ;;  %v9425_v49 = vunpack.i.l.bf16 %v9424_v13 }
 0xa94   :  { %4185 = vperm.xlu1 %9311, %v8483_v61  }
 0xa95   :  { %v2774_v45 = vsel %vm14808_vm10, %v9426_v9, %v9430_v23  ;;  %v2772_v60 = vsel %vm14808_vm10, %v9420_v37, %v9425_v49  ;;  %v2773_v58 = vsel %vm14808_vm10, %v9425_v49, %v9426_v9 }
 0xa96   :  { %v9434_v22 = vpop.permute.xlu1 %9433 }
 0xa97   :  { %v9436_v21 = vunpack.i.h.bf16 %v9434_v22  ;;  %v9435_v2 = vunpack.i.l.bf16 %v9434_v22 }
 0xa98   :  { %4274 = vrot.lane.b32.xlu1 %v4263_v12, %s14849_s14  ;;  %s14867_s14 = smov 120  }
 0xa99   :  { %v2778_v54 = vsel %vm14808_vm10, %v9436_v21, %v9440_v27  ;;  %v2776_v19 = vsel %vm14808_vm10, %v9421_v35, %v9435_v2  ;;  %v2777_v56 = vsel %vm14808_vm10, %v9435_v2, %v9436_v21  ;;  %v8471_v21 = vld [vmem:[%s14684_s15 + $0x10] sm:$0xf]  ;;  %v3194_v2 = vshrl.u32 %v3193_v25, 7  ;;  %v8473_v25 = vld [vmem:[%s14684_s15 + $0x18] sm:$0xf] }
 0xa9a   :  { %v9449_v15 = vpop.permute.xlu1 %9448  ;;  %v9007_v11 = vpack.c.bf16 %v2777_v56, %v2773_v58  ;;  %v9017_v47 = vpack.c.bf16 %v2778_v54, %v2774_v45  ;;  %v9009_v63 = vpack.c.bf16 %v2776_v19, %v2772_v60  ;;  %vm3499_vm13 = vcmp.ne.f32.partialorder %v8471_v21, 0.0  ;;  %v8468_v56 = vld [vmem:[%s14684_s15 + $0x4] sm:$0xf] }
 0xa9b   :  { %v9451_v6 = vunpack.i.h.bf16 %v9449_v15  ;;  %v9450_v48 = vunpack.i.l.bf16 %v9449_v15  ;;  %v11798_v34 = vsub.s32 1, %v3194_v2  ;;  %v11800_v54 = vsub.s32 2, %v3194_v2 }
 0xa9c   :  { %4227 = vrot.lane.b32.xlu1 %v4224_v18, %s14847_s18  ;;  %9008 = vmatprep.subr.bf16.mxu0 %v9007_v11  ;;  %v15016_v19 = vmov 0   ;;  %v11806_v3 = vsub.s32 3, %v3194_v2  ;;  %v3190_v11 = vld [vmem:[%s14684_s15] sm:$0xf]  ;;  %vm3269_vm14 = vcmp.ne.f32.partialorder %v8468_v56, 0.0  ;;  %vm3625_vm12 = vcmp.ne.f32.partialorder %v8473_v25, 0.0 }
 0xa9d   :  { %9018 = vmatpush1.bf16.msra.mxu1 %v9017_v47  ;;  %9010 = vmatpush1.bf16.msra.mxu0 %v9009_v63  ;;  %v2782_v28 = vsel %vm14808_vm10, %v9446_v17, %v9450_v48  ;;  %v2783_v20 = vsel %vm14808_vm10, %v9450_v48, %v9451_v6  ;;  %15015 = vst [vmem:[#allocation11_spill] sm:$0xff] %v11800_v54  ;;  %v3500_v58 = vsel %vm3499_vm13, 1, %v15016_v19  ;;  %v8469_v47 = vld [vmem:[%s14684_s15 + $0x8] sm:$0xf]  ;;  %vm3191_vm15 = vcmp.ne.f32.partialorder %v3190_v11, 0.0  ;;  %s14870_s18 = smov 9  }
 0xa9e   :  { %v9459_v33 = vpop.permute.xlu1 %9458  ;;  %9012 = vmatprep.subr.bf16.mxu0 %v9011_v5  ;;  %v3512_v26 = vrot.slane %v3500_v58, %v11800_v54  ;;  %v3508_v24 = vrot.slane %v3500_v58, %v11798_v34  ;;  %v3516_v5 = vrot.slane %v3500_v58, %v11806_v3  ;;  %vm3345_vm13 = vcmp.ne.f32.partialorder %v8469_v47, 0.0  ;;  %v8470_v6 = vld [vmem:[%s14684_s15 + $0xc] sm:$0xf] }
 0xa9f   :  { %v9461_v7 = vunpack.i.h.bf16 %v9459_v33  ;;  %v9460_v40 = vunpack.i.l.bf16 %v9459_v33  ;;  %v11835_v33 = vsel %vm3191_vm15, 1, %v15016_v19  ;;  %vm3422_vm15 = vcmp.ne.f32.partialorder %v8470_v6, 0.0 }
 0xaa0   :  { %4235 = vrot.lane.b32.xlu1 %v4193_v51, %s14945_s1  ;;  %vm11837_vm8 = vcmp.eq.s32.totalorder %v3512_v26, 1  ;;  %vm11841_vm6 = vcmp.eq.s32.totalorder %v3508_v24, 1  ;;  %v15032_v11 = vmov 0  ;;  %v3208_v26 = vrot.slane %v11835_v33, %v11806_v3  ;;  %v8474_v24 = vld [vmem:[%s14684_s15 + $0x1c] sm:$0xf] }
 0xaa1   :  { %v2786_v23 = vsel %vm14808_vm10, %v9456_v8, %v9460_v40  ;;  %9014 = vmatpush1.bf16.msra.mxu0 %v9013_v30  ;;  %v2787_v41 = vsel %vm14808_vm10, %v9460_v40, %v9461_v7  ;;  %v15021_v7 = vmov 0  ;;  %v15024_v40 = vmov 0 }
 0xaa2   :  { %v2769_v27 = vpop.permute.xlu1 %2768  ;;  %8450 = vmatprep.subr.msk.mxu0 %vm14790_vm1, %v2789_v39  ;;  %v9019_v16 = vpack.c.bf16 %v2787_v41, %v2783_v20  ;;  %v9021_v62 = vpack.c.bf16 %v2786_v23, %v2782_v28  ;;  %v11761_v61 = vpop.permute.xlu0 %2965  ;;  %v15022_v7 = vsel %vm11837_vm8, 4294967295, %v15021_v7  ;;  %v15025_v40 = vsel %vm11841_vm6, 4294967295, %v15024_v40 }
 0xaa3   :  { %v2791_v0 = vsel %vm14808_vm10, %v2769_v27, %v2771_v44  ;;  %v2790_v53 = vsel %vm14808_vm10, %v2767_v31, %v2769_v27  ;;  %15013 = vst [vmem:[#allocation20_spill] sm:$0xff] %v11761_v61  ;;  %v11823_v31 = vsel %vm3269_vm14, 1, %v15016_v19  ;;  %15023 = vst [vmem:[#allocation7_spill] sm:$0xff] %v15022_v7  ;;  %v11846_v30 = vsel %vm3345_vm13, 1, %v15016_v19  ;;  %v8472_v27 = vld [vmem:[%s14684_s15 + $0x14] sm:$0xf] }
 0xaa4   :  { %4242 = vrot.lane.b32.xlu1 %v4224_v18, %s14949_s20  ;;  %9020 = vmatprep.subr.bf16.mxu1 %v9019_v16  ;;  %v11796_v18 = vsub.s32 0, %v3194_v2  ;;  %15026 = vst [vmem:[#allocation8_spill] sm:$0xff] %v15025_v40  ;;  %vm11848_vm14 = vcmp.eq.s32.totalorder %v3516_v5, 1  ;;  %v15027_v39 = vmov 0  ;;  %v3278_v28 = vrot.slane %v11823_v31, %v11798_v34 }
 0xaa5   :  { %9022 = vmatpush1.bf16.msra.mxu1 %v9021_v62  ;;  %v15028_v39 = vsel %vm11848_vm14, 4294967295, %v15027_v39  ;;  %v3200_v41 = vrot.slane %v11835_v33, %v11798_v34  ;;  %v3354_v44 = vrot.slane %v11846_v30, %v11798_v34  ;;  %v3282_v6 = vrot.slane %v11823_v31, %v11800_v54 }
 0xaa6   :  { %v2763_v38 = vpop.permute.xlu1 %2762  ;;  %8453 = vmatprep.subr.msk.mxu1 %vm14790_vm1, %v2791_v0  ;;  %v11765_v8 = vpop.permute.xlu0 %9463  ;;  %v3504_v63 = vrot.slane %v3500_v58, %v11796_v18  ;;  %15029 = vst [vmem:[#allocation9_spill] sm:$0xff] %v15028_v39  ;;  %vm11892_vm13 = vcmp.eq.s32.totalorder %v3278_v28, 1  ;;  %v3196_v58 = vrot.slane %v11835_v33, %v11796_v18  ;;  %v3350_v47 = vrot.slane %v11846_v30, %v11796_v18 }
 0xaa7   :  { %v2788_v10 = vsel %vm14808_vm10, %v2763_v38, %v11713_v14  ;;  %vm11914_vm5 = vcmp.eq.s32.totalorder %v3354_v44, 1  ;;  %v3286_v28 = vrot.slane %v11823_v31, %v11806_v3  ;;  %v3274_v44 = vrot.slane %v11823_v31, %v11796_v18 }
 0xaa8   :  { %8451 = vmatpush1.msk.msra.mxu0 %vm14790_vm1, %v2788_v10  ;;  %vm11830_vm9 = vcmp.eq.s32.totalorder %v3504_v63, 1  ;;  %v11882_v10 = vsel %vm3422_vm15, 1, %v15016_v19  ;;  %vm11901_vm15 = vcmp.eq.s32.totalorder %v3200_v41, 1  ;;  %v3204_v63 = vrot.slane %v11835_v33, %v11800_v54  ;;  %v8475_v33 = vld [vmem:[%s14684_s15 + $0x20] sm:$0xf]  ;;  %s15356_s15 = sld [smem:[#allocation48_spill]] }
 0xaa9   :  { %8452 = vmatmul.mubr.msk.f32.vlgmr.msra.gmra.mrb[18].mxu0 %vm14785_vm11, %v8449_v57  ;;  %8454 = vmatpush1.msk.msra.mxu1 %vm14790_vm1, %v2790_v53  ;;  %v15019_v43 = vsel %vm11830_vm9, 4294967295, %v15018_v43  ;;  %v15033_v11 = vsel %vm11901_vm15, 4294967295, %v15032_v11  ;;  %v3439_v41 = vrot.slane %v11882_v10, %v11806_v3  ;;  %v3362_v56 = vrot.slane %v11846_v30, %v11806_v3 }
 0xaaa   :  { %8455 = vmatmul.mubr.msk.f32.vlgmr.msra.gmra.mrb[18].mxu1 %vm14785_vm11, %v8449_v57  ;;  %3072 = vmatprep.mubr.f32.mxu0 %v11623_v55  ;;  %v11769_v1 = vpop.permute.xlu0 %9473  ;;  %15020 = vst [vmem:[#allocation6_spill] sm:$0xff] %v15019_v43  ;;  %vm3539_vm11 = vcmp.ne.f32.partialorder %v8472_v27, 0.0  ;;  %vm3702_vm3 = vcmp.ne.f32.partialorder %v8474_v24, 0.0  ;;  %v9465_v62 = vunpack.i.l.bf16 %v11765_v8  ;;  %vm11945_vm1 = vcmp.eq.s32.totalorder %v3196_v58, 1 }
 0xaab   :  { %3149 = vmatprep.mubr.f32.mxu1 %v11623_v55  ;;  %v11937_v16 = vsel %vm3539_vm11, 1, %v15016_v19  ;;  %v11952_v27 = vsel %vm3625_vm12, 1, %v15016_v19  ;;  %vm3778_vm11 = vcmp.ne.f32.partialorder %v8475_v33, 0.0  ;;  %v11967_v33 = vsel %vm3702_vm3, 1, %v15016_v19 }
 0xaac   :  { %15039 = vst [vmem:[#allocation5_spill] sm:$0xff] %v11967_v33  ;;  %v15040_v25 = vunpack.i.h.bf16 %v11769_v1  ;;  %v15041_v4 = vunpack.i.l.bf16 %v11769_v1  ;;  %vm11975_vm12 = vcmp.eq.s32.totalorder %v3350_v47, 1  ;;  %v11982_v31 = vsel %vm3778_vm11, 1, %v15016_v19 }
 0xaad   :  { %15044 = vst [vmem:[#allocation28_spill] sm:$0xff] %v11982_v31  ;;  %v15045_v29 = vunpack.i.h.bf16 %v11765_v8  ;;  %vm11989_vm3 = vcmp.eq.s32.totalorder %v3204_v63, 1  ;;  %vm11993_vm7 = vcmp.eq.s32.totalorder %v3208_v26, 1  ;;  %vm12006_vm11 = vcmp.eq.s32.totalorder %v3282_v6, 1 }
 0xaae   :  { %v11773_v49 = vpop.permute.xlu0 %9483  ;;  %v3312_v24 = vsel %vm14801_vm0, %v15041_v4, %v15040_v25  ;;  %vm12010_vm2 = vcmp.eq.s32.totalorder %v3286_v28, 1  ;;  %v15055_v6 = vmov 0  ;;  %vm12046_vm0 = vcmp.eq.s32.totalorder %v3274_v44, 1 }
 0xaaf   :  { %v9485_v23 = vunpack.i.l.bf16 %v11773_v49  ;;  %v3244_v7 = vsel %vm14808_vm10, %v9465_v62, %v15045_v29  ;;  %v15061_v61 = vmov 0  ;;  %vm15065_vm8 = vcmask 121856  }
 0xab0   :  { %v3260_v32 = vsel %vm11901_vm15, %v3244_v7, -3e+38  ;;  %vm15067_vm9 = vcmask 138240  }
 0xab1   :  { %vm15072_vm14 = vmmov %vm15067_vm9 }
 0xab2   :  { %v11777_v51 = vpop.permute.xlu0 %9493  ;;  %vm15073_vm15 = vmmov %vm15067_vm9 }
 0xab3   :  { %v9495_v38 = vunpack.i.l.bf16 %v11777_v51  ;;  %v15050_v36 = vunpack.i.h.bf16 %v11777_v51 }
 0xab5   :  { %v3389_v29 = vsel %vm14802_vm4, %v9495_v38, %v15050_v36  ;;  %v3328_v36 = vsel %vm11892_vm13, %v3312_v24, -3e+38  ;;  %vm12022_vm4 = vcmp.eq.s32.totalorder %v3362_v56, 1  ;;  %v12037_v24 = vsel %vm14808_vm10, %v9485_v23, %v9465_v62 }
 0xab6   :  { %v11781_v55 = vpop.permute.xlu0 %9503  ;;  %v15056_v6 = vsel %vm12022_vm4, 4294967295, %v15055_v6  ;;  %v3336_v7 = vmax.f32 %v3260_v32, %v3328_v36  ;;  %vm12052_vm10 = vcmp.eq.s32.totalorder %v3439_v41, 1  ;;  %v15071_v36 = vunpack.i.h.bf16 %v11765_v8 }
 0xab7   :  { %v11763_v13 = vpop.permute.xlu1 %2976  ;;  %15057 = vst [vmem:[#allocation29_spill] sm:$0xff] %v15056_v6  ;;  %v9505_v56 = vunpack.i.l.bf16 %v11781_v55  ;;  %v15062_v61 = vsel %vm12052_vm10, 4294967295, %v15061_v61  ;;  %v15110_v32 = vrot.slane %v11882_v10, %v11796_v18 }
 0xab8   :  { %15014 = vst [vmem:[#allocation18_spill] sm:$0xff] %v11763_v13  ;;  %15063 = vst [vmem:[#allocation31_spill] sm:$0xff] %v15062_v61 }
 0xab9   :  { %v12072_v23 = vsel %vm15065_vm8, %v9505_v56, %v9495_v38  ;;  %v15074_v38 = vunpack.i.h.bf16 %v11769_v1  ;;  %vm15075_vm8 = vcmask 130048  }
 0xaba   :  { %v11785_v22 = vpop.permute.xlu0 %9513 }
 0xabb   :  { %v11767_v14 = vpop.permute.xlu1 %9468  ;;  %v9516_v43 = vunpack.i.h.bf16 %v11785_v22  ;;  %v9515_v31 = vunpack.i.l.bf16 %v11785_v22 }
 0xabc   :  { %v9471_v52 = vunpack.i.h.bf16 %v11767_v14  ;;  %v9470_v25 = vunpack.i.l.bf16 %v11767_v14  ;;  %v15066_v14 = vunpack.i.h.bf16 %v11773_v49 }
 0xabe   :  { %v11792_v45 = vpop.permute.xlu0 %9523  ;;  %v3247_v40 = vsel %vm15067_vm9, %v9516_v43, %v15066_v14  ;;  %vm15077_vm9 = vmmov %vm15075_vm8 }
 0xabf   :  { %v11771_v9 = vpop.permute.xlu1 %9478 }
 0xac0   :  { %v9480_v13 = vunpack.i.l.bf16 %v11771_v9  ;;  %v9481_v62 = vunpack.i.h.bf16 %v11771_v9  ;;  %v3259_v9 = vsel %vm11945_vm1, %v12037_v24, -3e+38  ;;  %v3245_v24 = vsel %vm15072_vm14, %v15071_v36, %v9470_v25 }
 0xac1   :  { %vm15078_vm14 = vcmask 121856  }
 0xac2   :  { %v11808_v15 = vpop.permute.xlu0 %9533  ;;  %v3313_v56 = vsel %vm15075_vm8, %v15074_v38, %v9480_v13 }
 0xac3   :  { %v11775_v12 = vpop.permute.xlu1 %9488  ;;  %v9536_v14 = vunpack.i.h.bf16 %v11808_v15 }
 0xac4   :  { %v9490_v8 = vunpack.i.l.bf16 %v11775_v12 }
 0xac6   :  { %v11828_v48 = vpop.permute.xlu0 %9543 }
 0xac7   :  { %v11779_v17 = vpop.permute.xlu1 %9498  ;;  %15017 = vst [vmem:[#allocation10_spill] sm:$0xff] %v11828_v48  ;;  %v9545_v22 = vunpack.i.l.bf16 %v11828_v48 }
 0xac8   :  { %v9501_v59 = vunpack.i.h.bf16 %v11779_v17  ;;  %v9500_v44 = vunpack.i.l.bf16 %v11779_v17  ;;  %v15068_v17 = vrot.slane %v11846_v30, %v11800_v54  ;;  %v3314_v30 = vsel %vm15077_vm9, %v9480_v13, %v9481_v62 }
 0xac9   :  { %v3263_v13 = vsel %vm11945_vm1, %v3247_v40, -3e+38  ;;  %v3261_v62 = vsel %vm11989_vm3, %v3245_v24, -3e+38  ;;  %v15081_v40 = vunpack.i.l.bf16 %v11808_v15  ;;  %vm15082_vm1 = vcmask 7168  }
 0xaca   :  { %v11884_v53 = vpop.permute.xlu0 %9553  ;;  %vm12080_vm6 = vcmp.eq.s32.totalorder %v15068_v17, 1  ;;  %v3391_v38 = vsel %vm15078_vm14, %v9500_v44, %v9501_v59  ;;  %v3330_v17 = vsel %vm12010_vm2, %v3314_v30, -3e+38  ;;  %v15083_v24 = vunpack.i.l.bf16 %v11769_v1 }
 0xacb   :  { %v11783_v37 = vpop.permute.xlu1 %9508  ;;  %v3468_v0 = vsel %vm15082_vm1, %v15081_v40, %v9536_v14  ;;  %v15084_v30 = vrot.slane %v11882_v10, %v11800_v54  ;;  %v15088_v54 = vrot.slane %v11937_v16, %v11798_v34 }
 0xacc   :  { %v9511_v33 = vunpack.i.h.bf16 %v11783_v37  ;;  %v9510_v14 = vunpack.i.l.bf16 %v11783_v37  ;;  %v3860_v37 = vld [vmem:[%s14685_s17 + $0x40] sm:$0xff] }
 0xacd   :  { %vm12131_vm9 = vcmp.eq.s32.totalorder %v15084_v30, 1  ;;  %v15087_v30 = vunpack.i.h.bf16 %v11777_v51  ;;  %v3484_v51 = vsel %vm12052_vm10, %v3468_v0, -3e+38 }
 0xace   :  { %v11949_v57 = vpop.permute.xlu0 %9563 }
 0xacf   :  { %v11787_v35 = vpop.permute.xlu1 %9518  ;;  %v3390_v6 = vsel %vm15078_vm14, %v15087_v30, %v9500_v44  ;;  %v15116_v63 = vunpack.i.h.bf16 %v11949_v57 }
 0xad0   :  { %v9521_v1 = vunpack.i.h.bf16 %v11787_v35  ;;  %v3406_v19 = vsel %vm12080_vm6, %v3390_v6, -3e+38 }
 0xad2   :  { %v12026_v28 = vpop.permute.xlu0 %9573 }
 0xad3   :  { %v11794_v60 = vpop.permute.xlu1 %9528  ;;  %15058 = vst [vmem:[#allocation30_spill] sm:$0xff] %v12026_v28 }
 0xad6   :  { %v12092_v43 = vpop.permute.xlu0 %9583 }
 0xad7   :  { %v11817_v50 = vpop.permute.xlu1 %9538  ;;  %15076 = vst [vmem:[#allocation33_spill] sm:$0xff] %v12092_v43 }
 0xada   :  { %v12139_v40 = vpop.permute.xlu0 %9593 }
 0xadb   :  { %v11857_v20 = vpop.permute.xlu1 %9548 }
 0xadf   :  { %v11924_v21 = vpop.permute.xlu1 %9558 }
 0xae0   :  { %15036 = vst [vmem:[#allocation13_spill] sm:$0xff] %v11924_v21  ;;  %v3405_v21 = vsel %vm11914_vm5, %v3389_v29, -3e+38 }
 0xae1   :  { %v12069_v41 = vmax.f32 %v3336_v7, %v3405_v21  ;;  %v3246_v21 = vsel %vm15073_vm15, %v9470_v25, %v9471_v52  ;;  %v9491_v7 = vunpack.i.h.bf16 %v11775_v12  ;;  %v9526_v25 = vunpack.i.h.bf16 %v11792_v45  ;;  %vm15080_vm15 = vmmov %vm15075_vm8 }
 0xae2   :  { %v3262_v12 = vsel %vm11993_vm7, %v3246_v21, -3e+38  ;;  %v3329_v52 = vsel %vm12006_vm11, %v3313_v56, -3e+38  ;;  %v3311_v21 = vsel %vm15075_vm8, %v9490_v8, %v15083_v24  ;;  %v3407_v56 = vsel %vm12022_vm4, %v3391_v38, -3e+38  ;;  %vm15095_vm8 = vmmov %vm15078_vm14 }
 0xae3   :  { %v11979_v58 = vpop.permute.xlu1 %9568  ;;  %v3315_v59 = vsel %vm15080_vm15, %v9526_v25, %v9491_v7  ;;  %v9520_v8 = vunpack.i.l.bf16 %v11787_v35  ;;  %v9525_v24 = vunpack.i.l.bf16 %v11792_v45  ;;  %v3338_v38 = vmax.f32 %v3262_v12, %v3330_v17  ;;  %vm15097_vm14 = vmmov %vm15095_vm8 }
 0xae4   :  { %vm12150_vm15 = vcmp.eq.s32.totalorder %v15088_v54, 1  ;;  %v15091_v35 = vrot.slane %v11882_v10, %v11798_v34  ;;  %v3337_v17 = vmax.f32 %v3261_v62, %v3329_v52  ;;  %v3327_v44 = vsel %vm12046_vm0, %v3311_v21, -3e+38 }
 0xae5   :  { %v15094_v12 = vunpack.i.h.bf16 %v11781_v55  ;;  %v3335_v6 = vmax.f32 %v3259_v9, %v3327_v44 }
 0xae6   :  { %vm12157_vm1 = vcmp.eq.s32.totalorder %v15091_v35, 1  ;;  %v3415_v35 = vmax.f32 %v3338_v38, %v3407_v56  ;;  %v15102_v56 = vrot.slane %v11937_v16, %v11796_v18 }
 0xae7   :  { %v12056_v29 = vpop.permute.xlu1 %9578  ;;  %v12168_v54 = vsel %vm15095_vm8, %v15094_v12, %v9545_v22  ;;  %vm15101_vm8 = vcmask 130048  }
 0xae8   :  { %15064 = vst [vmem:[#allocation32_spill] sm:$0xff] %v12056_v29  ;;  %v3317_v12 = vsel %vm15101_vm8, %v9520_v8, %v9521_v1  ;;  %v12200_v29 = vpop.permute.xlu0 %9603 }
 0xae9   :  { %v3333_v5 = vsel %vm12006_vm11, %v3317_v12, -3e+38 }
 0xaeb   :  { %v12111_v36 = vpop.permute.xlu1 %9588 }
 0xaec   :  { %15079 = vst [vmem:[#allocation34_spill] sm:$0xff] %v12111_v36  ;;  %v3331_v36 = vsel %vm12046_vm0, %v3315_v59, -3e+38  ;;  %v15096_v59 = vunpack.i.h.bf16 %v11828_v48  ;;  %vm15100_vm0 = vcmask 138240  }
 0xaed   :  { %v12177_v0 = vmax.f32 %v3263_v13, %v3331_v36  ;;  %v3249_v21 = vsel %vm15100_vm0, %v9510_v14, %v9511_v33  ;;  %v9531_v36 = vunpack.i.h.bf16 %v11794_v60  ;;  %v9530_v13 = vunpack.i.l.bf16 %v11794_v60  ;;  %vm15105_vm0 = vmmov %vm15101_vm8 }
 0xaee   :  { %v3394_v30 = vsel %vm15097_vm14, %v9545_v22, %v15096_v59  ;;  %v9565_v22 = vunpack.i.l.bf16 %v11949_v57  ;;  %vm12188_vm14 = vcmp.eq.s32.totalorder %v15102_v56, 1  ;;  %v3409_v59 = vsel %vm11914_vm5, %v12168_v54, -3e+38  ;;  %vm15109_vm10 = vmmov %vm15105_vm0 }
 0xaef   :  { %v12175_v62 = vpop.permute.xlu1 %9598  ;;  %15099 = vst [vmem:[#allocation36_spill] sm:$0xff] %v12177_v0  ;;  %v3410_v61 = vsel %vm12080_vm6, %v3394_v30, -3e+38  ;;  %v3316_v52 = vsel %vm15105_vm0, %v9491_v7, %v9520_v8  ;;  %v3492_v56 = vmax.f32 %v3415_v35, %v3484_v51  ;;  %v15107_v0 = vunpack.i.l.bf16 %v11884_v53 }
 0xaf0   :  { %15098 = vst [vmem:[#allocation35_spill] sm:$0xff] %v12175_v62  ;;  %v15106_v62 = vunpack.i.h.bf16 %v11884_v53  ;;  %vm15108_vm8 = vcmask 7168   ;;  %v3318_v60 = vsel %vm15109_vm10, %v9521_v1, %v9525_v24  ;;  %vm14852_vm5 = vcmask 924672  }
 0xaf1   :  { %vm12213_vm6 = vcmp.eq.s32.totalorder %v15110_v32, 1  ;;  %v3414_v7 = vmax.f32 %v3337_v17, %v3406_v19  ;;  %vm15113_vm0 = vcmask 138240   ;;  %v15114_v51 = vunpack.i.h.bf16 %v11773_v49  ;;  %vm15118_vm11 = vmmov %vm15108_vm8  ;;  %v12261_v19 = vpop.permute.xlu0 %9613 }
 0xaf2   :  { %v3471_v48 = vsel %vm15108_vm8, %v15107_v0, %v15106_v62  ;;  %v3250_v8 = vsel %vm15113_vm0, %v9511_v33, %v9515_v31  ;;  %vm15115_vm4 = vmmov %vm15113_vm0  ;;  %v3265_v1 = vsel %vm11989_vm3, %v3249_v21, -3e+38  ;;  %vm15117_vm10 = vcmask 1039360  }
 0xaf3   :  { %v3248_v44 = vsel %vm15115_vm4, %v15114_v51, %v9510_v14  ;;  %v12226_v24 = vsel %vm15117_vm10, %v9565_v22, %v15116_v63  ;;  %v3332_v10 = vsel %vm11892_vm13, %v3316_v52, -3e+38  ;;  %v9575_v54 = vunpack.i.l.bf16 %v12026_v28  ;;  %v12232_v31 = vpop.permute.xlu1 %9608  ;;  %vm15130_vm3 = vmmov %vm15117_vm10 }
 0xaf4   :  { %v3466_v17 = vsel %vm15118_vm11, %v9530_v13, %v9531_v36  ;;  %15119 = vst [vmem:[#allocation37_spill] sm:$0xff] %v12232_v31  ;;  %v3487_v49 = vsel %vm12131_vm9, %v3471_v48, -3e+38  ;;  %v3334_v33 = vsel %vm12010_vm2, %v3318_v60, -3e+38  ;;  %v3341_v4 = vmax.f32 %v3265_v1, %v3333_v5  ;;  %vm15125_vm2 = vmmov %vm15108_vm8 }
 0xaf5   :  { %v15120_v14 = vsel %vm11975_vm12, %v12072_v23, -3e+38  ;;  %v3266_v2 = vsel %vm11993_vm7, %v3250_v8, -3e+38  ;;  %vm15121_vm4 = vnez %v15033_v11  ;;  %v9540_v52 = vunpack.i.l.bf16 %v11817_v50  ;;  %vm15135_vm0 = vmmov %vm15125_vm2 }
 0xaf6   :  { %v3412_v30 = vmax.f32 %v3335_v6, %v15120_v14  ;;  %v3264_v35 = vsel %vm15121_vm4, %v3248_v44, -3e+38  ;;  %vm15122_vm13 = vnez %v15028_v39  ;;  %v3608_v62 = vsel %vm12150_vm15, %v12226_v24, -3e+38  ;;  %v15143_v14 = vld [vmem:[#allocation32_spill] sm:$0xff]  ;;  %vm15149_vm4 = vmmov %vm15130_vm3 }
 0xaf7   :  { %v15123_v48 = vsel %vm15122_vm13, %v15010_v46, -3e+38  ;;  %v3340_v23 = vmax.f32 %v3264_v35, %v3332_v10  ;;  %v15124_v0 = vunpack.i.l.bf16 %v11808_v15  ;;  %v3482_v11 = vsel %vm12157_vm1, %v3466_v17, -3e+38  ;;  %v12292_v24 = vpop.permute.xlu1 %9618 }
 0xaf8   :  { %v12251_v26 = vmax.f32 %v3492_v56, %v15123_v48  ;;  %v15126_v21 = vrot.slane %v11937_v16, %v11806_v3  ;;  %v15127_v46 = vmov 0  ;;  %v12270_v12 = vmax.f32 %v3266_v2, %v3334_v33  ;;  %15136 = vst [vmem:[#allocation40_spill] sm:$0xff] %v12292_v24 }
 0xaf9   :  { %v3467_v47 = vsel %vm15125_vm2, %v9531_v36, %v15124_v0  ;;  %v14836_v6 = vunpack.i.h.bf16 %v12026_v28  ;;  %v12274_v15 = vsel %vm15130_vm3, %v9575_v54, %v9565_v22  ;;  %v14841_v36 = vunpack.i.h.bf16 %v11817_v50 }
 0xafa   :  { %vm12266_vm7 = vcmp.eq.s32.totalorder %v15126_v21, 1  ;;  %v15131_v56 = vrot.slane %v11952_v27, %v11798_v34  ;;  %v15132_v60 = vmov 0  ;;  %v3418_v5 = vmax.f32 %v3341_v4, %v3410_v61 }
 0xafb   :  { %v15128_v46 = vsel %vm12266_vm7, 4294967295, %v15127_v46  ;;  %v9586_v32 = vunpack.i.h.bf16 %v12092_v43  ;;  %v14837_v8 = vunpack.i.l.bf16 %v12092_v43  ;;  %v14842_v51 = vunpack.i.l.bf16 %v12139_v40  ;;  %v3870_v43 = vld [vmem:[%s14685_s17 + $0x90] sm:$0xff] }
 0xafc   :  { %15129 = vst [vmem:[#allocation38_spill] sm:$0xff] %v15128_v46  ;;  %vm12280_vm8 = vcmp.eq.s32.totalorder %v15131_v56, 1  ;;  %v3483_v22 = vsel %vm12131_vm9, %v3467_v47, -3e+38  ;;  %v3490_v44 = vmax.f32 %v12069_v41, %v3482_v11  ;;  %v3465_v1 = vsel %vm15135_vm0, %v9540_v52, %v9530_v13  ;;  %vm15142_vm9 = vmmov %vm15135_vm0  ;;  %v15144_v52 = vld [vmem:[#allocation5_spill] sm:$0xff]  ;;  %v12341_v11 = vpop.permute.xlu0 %9623 }
 0xafd   :  { %v15133_v60 = vsel %vm12280_vm8, 4294967295, %v15132_v60  ;;  %v9551_v63 = vunpack.i.h.bf16 %v11857_v20  ;;  %v15137_v61 = vrot.slane %v11952_v27, %v11806_v3  ;;  %v15138_v10 = vmov 0  ;;  %vm15157_vm0 = vmmov %vm15149_vm4 }
 0xafe   :  { %15134 = vst [vmem:[#allocation39_spill] sm:$0xff] %v15133_v60  ;;  %v12304_v54 = vmax.f32 %v3340_v23, %v3409_v59  ;;  %v9571_v41 = vunpack.i.h.bf16 %v11979_v58  ;;  %v14838_v13 = vunpack.i.l.bf16 %v11979_v58  ;;  %v15141_v17 = vunpack.i.l.bf16 %v11884_v53  ;;  %v3864_v60 = vld [vmem:[%s14685_s17 + $0x60] sm:$0xff] }
 0xaff   :  { %vm12297_vm10 = vcmp.eq.s32.totalorder %v15137_v61, 1  ;;  %v9550_v4 = vunpack.i.l.bf16 %v11857_v20  ;;  %v14839_v2 = vunpack.i.h.bf16 %v15143_v14  ;;  %v14840_v35 = vunpack.i.l.bf16 %v15143_v14 }
 0xb00   :  { %v15139_v10 = vsel %vm12297_vm10, 4294967295, %v15138_v10  ;;  %v12313_v33 = vsel %vm15142_vm9, %v14841_v36, %v15141_v17  ;;  %v15145_v59 = vrot.slane %v15144_v52, %v11806_v3  ;;  %v15146_v48 = vmov 0 }
 0xb01   :  { %15140 = vst [vmem:[#allocation41_spill] sm:$0xff] %v15139_v10  ;;  %v12325_v23 = vmax.f32 %v3414_v7, %v3483_v22  ;;  %v12330_v0 = vsel %vm14852_vm5, %v14837_v8, %v9586_v32  ;;  %v3481_v20 = vsel %vm12213_vm6, %v3465_v1, -3e+38  ;;  %v12339_v47 = vsel %vm15149_vm4, %v14836_v6, %v14842_v51  ;;  %v15152_v32 = vld [vmem:[#allocation8_spill] sm:$0xff]  ;;  %v15154_v22 = vld [vmem:[#allocation3_spill] sm:$0xff]  ;;  %v12385_v8 = vpop.permute.xlu1 %9628 }
 0xb02   :  { %vm12321_vm11 = vcmp.eq.s32.totalorder %v15145_v59, 1  ;;  %v15150_v21 = vunpack.i.h.bf16 %v11781_v55  ;;  %vm15151_vm2 = vcmask 121856   ;;  %vm15153_vm3 = vnez %v15152_v32  ;;  %15164 = vst [vmem:[#allocation8_spill] sm:$0xff] %v12385_v8 }
 0xb03   :  { %v15147_v48 = vsel %vm12321_vm11, 4294967295, %v15146_v48  ;;  %v15155_v1 = vsel %vm15153_vm3, %v15154_v22, -3e+38  ;;  %v12353_v17 = vmax.f32 %v3418_v5, %v3487_v49  ;;  %v3594_v6 = vsel %vm15157_vm0, %v14838_v13, %v9571_v41  ;;  %vm15163_vm4 = vmmov %vm15151_vm2  ;;  %v15169_v5 = vld [vmem:[#allocation20_spill] sm:$0xff] }
 0xb04   :  { %15148 = vst [vmem:[#allocation32_spill] sm:$0xff] %v15147_v48  ;;  %v12347_v56 = vsel %vm15151_vm2, %v9551_v63, %v15150_v21  ;;  %v3530_v61 = vmax.f32 %v3490_v44, %v15155_v1  ;;  %v9611_v55 = vunpack.i.h.bf16 %v12232_v31  ;;  %v15158_v21 = vrot.slane %v15144_v52, %v11798_v34  ;;  %v15161_v44 = vld [vmem:[#allocation10_spill] sm:$0xff]  ;;  %v12404_v63 = vpop.permute.xlu0 %9633 }
 0xb05   :  { %15156 = vst [vmem:[#allocation5_spill] sm:$0xff] %v12353_v17  ;;  %v12370_v49 = vmax.f32 %v3412_v30, %v3481_v20  ;;  %v15162_v1 = vunpack.i.h.bf16 %v15161_v44  ;;  %v15165_v30 = vld [vmem:[#allocation28_spill] sm:$0xff]  ;;  %v3610_v51 = vsel %vm12266_vm7, %v3594_v6, -3e+38  ;;  %vm15172_vm0 = vcmask 916480  }
 0xb06   :  { %vm12366_vm9 = vcmp.eq.s32.totalorder %v15158_v21, 1  ;;  %v3669_v21 = vsel %vm14852_vm5, %v14840_v35, %v14839_v2  ;;  %v15166_v20 = vrot.slane %v15165_v30, %v11798_v34  ;;  %v3616_v59 = vmax.f32 %v3530_v61, %v3608_v62  ;;  %v3868_v61 = vld [vmem:[%s14685_s17 + $0x80] sm:$0xff] }
 0xb07   :  { %v12378_v41 = vsel %vm15163_vm4, %v15162_v1, %v9550_v4  ;;  %v15170_v4 = vld [vmem:[#allocation18_spill] sm:$0xff]  ;;  %v15171_v1 = vunpack.i.l.bf16 %v12232_v31  ;;  %v15173_v6 = vrot.slane %v15165_v30, %v11806_v3  ;;  %v3869_v3 = vld [vmem:[%s14685_s17 + $0x88] sm:$0xff]  ;;  %v15178_v62 = vld [vmem:[#allocation11_spill] sm:$0xff]  ;;  %v9636_v30 = vunpack.i.h.bf16 %v12404_v63 }
 0xb08   :  { %vm12390_vm2 = vcmp.eq.s32.totalorder %v15166_v20, 1  ;;  %v15179_v31 = vrot.slane %v11937_v16, %v15178_v62  ;;  %v15198_v48 = vunpack.i.l.bf16 %v12139_v40  ;;  %vm15201_vm7 = vcmask 1043456  }
 0xb09   :  { %v3747_v46 = vsel %vm15172_vm0, %v15171_v1, %v9611_v55  ;;  %vm12416_vm4 = vcmp.eq.s32.totalorder %v15173_v6, 1  ;;  %v3852_v55 = vld [vmem:[%s14685_s17] sm:$0xff]  ;;  %v15177_v6 = vunpack.i.l.bf16 %v12200_v29 }
 0xb0a   :  { %v3900_v1 = vld [vmem:[%s14685_s17 + $0x180] sm:$0xff]  ;;  %vm12455_vm5 = vcmp.eq.s32.totalorder %v15179_v31, 1  ;;  %v3763_v17 = vsel %vm12321_vm11, %v3747_v46, -3e+38  ;;  %v15186_v46 = vld [vmem:[#allocation13_spill] sm:$0xff]  ;;  %vm15190_vm11 = vcmask 1043456  }
 0xb0b   :  { %v8458_v31 = vld [vmem:[%s14682_s9 + $0x20] sm:$0xff] }
 0xb7c   :  { %v2885_v25 = vpop.f32.mrb[18].mxu0 }
 0xb7d   :  { %v2968_v2 = vmul.f32 %v15169_v5, %v2885_v25  ;;  %v2887_v35 = vpop.f32.mrb[19].mxu0  ;;  %v2956_v36 = vpop.f32.mrb[18].mxu1  ;;  %v3685_v25 = vsel %vm12280_vm8, %v3669_v21, -3e+38  ;;  %v3853_v21 = vld [vmem:[%s14685_s17 + $0x8] sm:$0xff]  ;;  %vm15191_vm8 = vmmov %vm15190_vm11 }
 0xb7e   :  { %v2969_v34 = vmul.f32 %v15169_v5, %v2887_v35  ;;  %v2970_v20 = vmul.f32 %v15169_v5, %v2956_v36  ;;  %v2958_v7 = vpop.f32.mrb[19].mxu1  ;;  %v9025_v10 = vpack.c.bf16 %v3853_v21, %v3852_v55  ;;  %v8459_v21 = vld [vmem:[%s14682_s9 + $0x28] sm:$0xff] }
 0xb7f   :  { %v2979_v28 = vadd.f32 %v15170_v4, %v2968_v2  ;;  %v2971_v44 = vmul.f32 %v15169_v5, %v2958_v7 }
 0xb80   :  { %v2980_v35 = vadd.f32 %v15170_v4, %v2969_v34  ;;  %v2981_v7 = vadd.f32 %v15170_v4, %v2970_v20  ;;  %v3901_v34 = vld [vmem:[%s14685_s17 + $0x188] sm:$0xff]  ;;  %v15176_v20 = vunpack.i.h.bf16 %v12200_v29 }
 0xb81   :  { %v2982_v5 = vadd.f32 %v15170_v4, %v2971_v44  ;;  %v3618_v4 = vmax.f32 %v12251_v26, %v3610_v51  ;;  %v3687_v44 = vsel %vm12297_vm10, %v12330_v0, -3e+38  ;;  %v3884_v26 = vld [vmem:[%s14685_s17 + $0x100] sm:$0xff]  ;;  %v3885_v51 = vld [vmem:[%s14685_s17 + $0x108] sm:$0xff]  ;;  %v3693_v0 = vmax.f32 %v3616_v59, %v3685_v25 }
 0xb82   :  { %v3745_v2 = vsel %vm15172_vm0, %v15177_v6, %v15176_v20  ;;  %v2984_v24 = vmax.f32 %v2980_v35, 0.0  ;;  %v2983_v20 = vmax.f32 %v2979_v28, 0.0  ;;  %v9023_v6 = vpack.c.bf16 %v3869_v3, %v3868_v61  ;;  %v3871_v28 = vld [vmem:[%s14685_s17 + $0x98] sm:$0xff] }
 0xb83   :  { %v2986_v16 = vmax.f32 %v2982_v5, 0.0  ;;  %v2985_v35 = vmax.f32 %v2981_v7, 0.0  ;;  %vm15182_vm0 = vcmask 1043456   ;;  %v9055_v39 = vpack.c.bf16 %v3901_v34, %v3900_v1  ;;  %v3854_v1 = vld [vmem:[%s14685_s17 + $0x10] sm:$0xff]  ;;  %v3855_v34 = vld [vmem:[%s14685_s17 + $0x18] sm:$0xff] }
 0xb84   :  { %8460 = vmatprep.subr.msk.mxu0 %vm15182_vm0, %v2984_v24  ;;  %v15183_v59 = vunpack.i.h.bf16 %v12385_v8  ;;  %v15184_v25 = vunpack.i.l.bf16 %v12385_v8  ;;  %vm15185_vm10 = vcmask 908288   ;;  %v9561_v7 = vunpack.i.h.bf16 %v15186_v46 }
 0xb85   :  { %v9560_v24 = vunpack.i.l.bf16 %v15186_v46  ;;  %v15187_v3 = vrot.slane %v15144_v52, %v11796_v18  ;;  %8461 = vmatpush1.msk.msra.mxu0 %vm15190_vm11, %v2983_v20  ;;  %8464 = vmatprep.subr.msk.mxu1 %vm15191_vm8, %v2986_v16  ;;  %v9057_v5 = vpack.c.bf16 %v3885_v51, %v3884_v26  ;;  %v15192_v20 = vsel %vm12157_vm1, %v12313_v33, -3e+38  ;;  %v15193_v26 = vld [vmem:[#allocation6_spill] sm:$0xff]  ;;  %v15195_v51 = vld [vmem:[#allocation27_spill] sm:$0xff] }
 0xb86   :  { %v3821_v61 = vsel %vm15185_vm10, %v15184_v25, %v15183_v59  ;;  %v3695_v59 = vmax.f32 %v3618_v4, %v3687_v44  ;;  %v3494_v16 = vmax.f32 %v12304_v54, %v15192_v20  ;;  %vm15194_vm8 = vnez %v15193_v26  ;;  %8465 = vmatpush1.msk.msra.mxu1 %vm15201_vm7, %v2985_v35  ;;  %v3902_v54 = vld [vmem:[%s14685_s17 + $0x190] sm:$0xff]  ;;  %v3903_v33 = vld [vmem:[%s14685_s17 + $0x198] sm:$0xff] }
 0xb87   :  { %vm12489_vm0 = vcmp.eq.s32.totalorder %v15187_v3, 1  ;;  %v15196_v25 = vsel %vm15194_vm8, %v15195_v51, -3e+38  ;;  %v15197_v3 = vunpack.i.h.bf16 %v12139_v40  ;;  %vm15199_vm10 = vcmask 1039360   ;;  %9024 = vmatprep.subr.bf16.mxu0 %v9023_v6  ;;  %v3887_v35 = vld [vmem:[%s14685_s17 + $0x118] sm:$0xff]  ;;  %9056 = vmatprep.subr.bf16.mxu1 %v9055_v39  ;;  %v3862_v26 = vld [vmem:[%s14685_s17 + $0x50] sm:$0xff] }
 0xb88   :  { %v12514_v46 = vmax.f32 %v12370_v49, %v15196_v25  ;;  %vm15200_vm11 = vcmask 31744   ;;  %v3761_v45 = vsel %vm12366_vm9, %v3745_v2, -3e+38  ;;  %v15202_v49 = vrot.slane %v11952_v27, %v11796_v18 }
 0xb89   :  { %v12521_v8 = vsel %vm15199_vm10, %v15198_v48, %v15197_v3  ;;  %8462 = vmatmul.mubr.msk.f32.vlgmr.msra.gmra.mrb[20].mxu0 %vm15200_vm11, %v8458_v31  ;;  %v12536_v48 = vld [vmem:[%s14685_s17 + $0x110] sm:$0xff]  ;;  %vm15205_vm7 = vmmov %vm15200_vm11  ;;  %v9027_v2 = vpack.c.bf16 %v3871_v28, %v3870_v43  ;;  %v3837_v44 = vsel %vm12390_vm2, %v3821_v61, -3e+38  ;;  %v3771_v20 = vmax.f32 %v3695_v59, %v3763_v17  ;;  %v3872_v3 = vld [vmem:[%s14685_s17 + $0xa0] sm:$0xff] }
 0xb8a   :  { %vm12541_vm1 = vcmp.eq.s32.totalorder %v15202_v49, 1  ;;  %8466 = vmatmul.mubr.msk.f32.vlgmr.msra.gmra.mrb[20].mxu1 %vm15205_vm7, %v8458_v31  ;;  %v15206_v51 = vunpack.i.l.bf16 %v12404_v63  ;;  %vm15207_vm10 = vcmask 908288   ;;  %v3873_v43 = vld [vmem:[%s14685_s17 + $0xa8] sm:$0xff]  ;;  %v15208_v31 = vld [vmem:[#allocation29_spill] sm:$0xff]  ;;  %v15210_v17 = vsel %vm11975_vm12, %v12347_v56, -3e+38  ;;  %9026 = vmatpush3.bf16.msra.mxu0 %v9025_v10 }
 0xb8b   :  { %vm15209_vm11 = vnez %v15208_v31  ;;  %v15211_v28 = vld [vmem:[#allocation36_spill] sm:$0xff]  ;;  %v3769_v59 = vmax.f32 %v3693_v0, %v3761_v45  ;;  %v3904_v49 = vld [vmem:[%s14685_s17 + $0x1a0] sm:$0xff]  ;;  %vm15213_vm7 = vcmask 7168   ;;  %v15214_v56 = vunpack.i.h.bf16 %v11884_v53  ;;  %9058 = vmatpush3.bf16.msra.mxu1 %v9057_v5  ;;  %v3874_v45 = vld [vmem:[%s14685_s17 + $0xb0] sm:$0xff]  ;;  %9028 = vmatprep.subr.bf16.mxu0 %v9027_v2 }
 0xb8c   :  { %v3823_v25 = vsel %vm15207_vm10, %v15206_v51, %v9636_v30  ;;  %v3411_v6 = vsel %vm15209_vm11, %v12378_v41, -3e+38  ;;  %v3416_v61 = vmax.f32 %v15211_v28, %v15210_v17  ;;  %v9029_v30 = vpack.c.bf16 %v3855_v34, %v3854_v1  ;;  %v3905_v51 = vld [vmem:[%s14685_s17 + $0x1a8] sm:$0xff]  ;;  %vm15215_vm12 = vmmov %vm15213_vm7  ;;  %v12588_v1 = vld [vmem:[#allocation2] sm:$0xff] }
 0xb8d   :  { %v15212_v41 = vunpack.i.h.bf16 %v11817_v50  ;;  %v3472_v31 = vsel %vm15215_vm12, %v15214_v56, %v9560_v24  ;;  %v9615_v39 = vunpack.i.l.bf16 %v12261_v19  ;;  %v15216_v10 = vrot.slane %v11952_v27, %v15178_v62  ;;  %3078 = vmatprep.mubr.f32.mxu0 %v12588_v1  ;;  %v3856_v53 = vld [vmem:[%s14685_s17 + $0x20] sm:$0xff]  ;;  %3155 = vmatprep.mubr.f32.mxu1 %v12588_v1  ;;  %v15220_v17 = vld [vmem:[#allocation34_spill] sm:$0xff]  ;;  %v15289_v0 = vld [vmem:[#allocation41_spill] sm:$0xff] }
 0xb8e   :  { %v9059_v50 = vpack.c.bf16 %v3903_v33, %v3902_v54  ;;  %vm15219_vm11 = vcmask 31744   ;;  %v3845_v27 = vmax.f32 %v3769_v59, %v3837_v44  ;;  %v9061_v24 = vpack.c.bf16 %v3887_v35, %v12536_v48  ;;  %v3875_v54 = vld [vmem:[%s14685_s17 + $0xb8] sm:$0xff]  ;;  %v3888_v35 = vld [vmem:[%s14685_s17 + $0x120] sm:$0xff]  ;;  %9030 = vmatpush3.bf16.msra.mxu0 %v9029_v30 }
 0xb8f   :  { %v3469_v42 = vsel %vm15213_vm7, %v9561_v7, %v15212_v41  ;;  %vm12584_vm10 = vcmp.eq.s32.totalorder %v15216_v10, 1  ;;  %v3857_v7 = vld [vmem:[%s14685_s17 + $0x28] sm:$0xff]  ;;  %8463 = vmatmul.mubr.msk.f32.gmra.mrb[22].mxu0 %vm15219_vm11, %v8459_v21  ;;  %v3839_v5 = vsel %vm12416_vm4, %v3823_v25, -3e+38  ;;  %v9031_v34 = vpack.c.bf16 %v3873_v43, %v3872_v3  ;;  %vm15221_vm7 = vmmov %vm15219_vm11  ;;  %v15222_v43 = vld [vmem:[#allocation31_spill] sm:$0xff] }
 0xb90   :  { %v3419_v33 = vmax.f32 %v12270_v12, %v3411_v6  ;;  %v9590_v28 = vunpack.i.l.bf16 %v15220_v17  ;;  %8467 = vmatmul.mubr.msk.f32.gmra.mrb[22].mxu1 %vm15221_vm7, %v8459_v21  ;;  %v3847_v48 = vmax.f32 %v3771_v20, %v3839_v5  ;;  %v9063_v44 = vpack.c.bf16 %v3905_v51, %v3904_v49  ;;  %v3889_v25 = vld [vmem:[%s14685_s17 + $0x128] sm:$0xff]  ;;  %3980 = vmatprep.mubr.f32.mxu0 %v3845_v27  ;;  %v3906_v21 = vld [vmem:[%s14685_s17 + $0x1b0] sm:$0xff]  ;;  %v3907_v20 = vld [vmem:[%s14685_s17 + $0x1b8] sm:$0xff] }
 0xb91   :  { %v3485_v3 = vsel %vm12213_vm6, %v3469_v42, -3e+38  ;;  %vm15223_vm12 = vnez %v15222_v43  ;;  %v9033_v2 = vpack.c.bf16 %v3857_v7, %v3856_v53  ;;  %v15224_v6 = vld [vmem:[#allocation19_spill] sm:$0xff]  ;;  %v3613_v49 = vsel %vm12455_vm5, %v12521_v8, -3e+38  ;;  %9060 = vmatprep.subr.bf16.mxu1 %v9059_v50  ;;  %9032 = vmatprep.subr.bf16.mxu0 %v9031_v34  ;;  %v3890_v34 = vld [vmem:[%s14685_s17 + $0x130] sm:$0xff] }
 0xb92   :  { %v3488_v12 = vsel %vm15223_vm12, %v3472_v31, -3e+38  ;;  %v15225_v59 = vsel %vm15153_vm3, %v15224_v6, -3e+38  ;;  %v15226_v30 = vunpack.i.l.bf16 %v12200_v29  ;;  %vm15227_vm6 = vcmask 916480   ;;  %4055 = vmatprep.mubr.f32.mxu1 %v3847_v48  ;;  %v3859_v31 = vld [vmem:[%s14685_s17 + $0x38] sm:$0xff]  ;;  %9062 = vmatpush3.bf16.msra.mxu1 %v9061_v24 }
 0xb93   :  { %v3534_v9 = vmax.f32 %v3494_v16, %v15225_v59  ;;  %v15228_v41 = vunpack.i.l.bf16 %v11979_v58  ;;  %v15229_v42 = vunpack.i.h.bf16 %v11949_v57  ;;  %vm15230_vm11 = vcmask 1039360   ;;  %v3858_v16 = vld [vmem:[%s14685_s17 + $0x30] sm:$0xff]  ;;  %v15231_v10 = vld [vmem:[#allocation7_spill] sm:$0xff]  ;;  %v15233_v58 = vld [vmem:[#allocation4_spill] sm:$0xff]  ;;  %9064 = vmatprep.subr.bf16.mxu1 %v9063_v44  ;;  %9034 = vmatpush3.bf16.msra.mxu0 %v9033_v2 }
 0xb94   :  { %v12637_v51 = vsel %vm15227_vm6, %v9615_v39, %v15226_v30  ;;  %v9035_v32 = vpack.c.bf16 %v3875_v54, %v3874_v45  ;;  %v14866_v39 = vunpack.i.h.bf16 %v12261_v19  ;;  %vm15232_vm3 = vnez %v15231_v10  ;;  %v3876_v5 = vld [vmem:[%s14685_s17 + $0xc0] sm:$0xff]  ;;  %v3877_v45 = vld [vmem:[%s14685_s17 + $0xc8] sm:$0xff] }
 0xb95   :  { %v3593_v56 = vsel %vm15230_vm11, %v15229_v42, %v15228_v41  ;;  %v15234_v53 = vsel %vm15232_vm3, %v15233_v58, -3e+38  ;;  %v15235_v50 = vsel %vm12188_vm14, %v12274_v15, -3e+38  ;;  %v9065_v27 = vpack.c.bf16 %v3889_v25, %v3888_v35  ;;  %v12670_v15 = vpop.permute.xlu0 %9643  ;;  %v3891_v35 = vld [vmem:[%s14685_s17 + $0x138] sm:$0xff]  ;;  %v3908_v44 = vld [vmem:[%s14685_s17 + $0x1c0] sm:$0xff] }
 0xb96   :  { %v3531_v57 = vmax.f32 %v12325_v23, %v15234_v53  ;;  %v3615_v7 = vmax.f32 %v12514_v46, %v15235_v50  ;;  %v3493_v54 = vmax.f32 %v3416_v61, %v3485_v3  ;;  %v3496_v48 = vmax.f32 %v3419_v33, %v3488_v12  ;;  %v12672_v46 = vpop.permute.xlu1 %9638  ;;  %v3909_v25 = vld [vmem:[%s14685_s17 + $0x1c8] sm:$0xff]  ;;  %9036 = vmatprep.subr.bf16.mxu0 %v9035_v32  ;;  %v3878_v32 = vld [vmem:[%s14685_s17 + $0xd0] sm:$0xff]  ;;  %v15243_v58 = vld [vmem:[#allocation35_spill] sm:$0xff] }
 0xb97   :  { %v15236_v23 = vunpack.i.l.bf16 %v15143_v14  ;;  %vm15237_vm7 = vcmask 924672   ;;  %v9067_v24 = vpack.c.bf16 %v3907_v20, %v3906_v21  ;;  %v3760_v61 = vsel %vm12489_vm0, %v12637_v51, -3e+38  ;;  %v15239_v20 = vld [vmem:[#allocation33_spill] sm:$0xff]  ;;  %9066 = vmatpush3.bf16.msra.mxu1 %v9065_v27  ;;  %v3892_v27 = vld [vmem:[%s14685_s17 + $0x140] sm:$0xff]  ;;  %v3865_v8 = vld [vmem:[%s14685_s17 + $0x68] sm:$0xff] }
 0xb98   :  { %v3609_v33 = vsel %vm12455_vm5, %v3593_v56, -3e+38  ;;  %v15238_v3 = vsel %vm12150_vm15, %v12339_v47, -3e+38  ;;  %v9626_v21 = vunpack.i.h.bf16 %v12341_v11  ;;  %v15240_v6 = vunpack.i.l.bf16 %v15239_v20  ;;  %vm15242_vm12 = vmmov %vm15237_vm7  ;;  %v3861_v47 = vld [vmem:[%s14685_s17 + $0x48] sm:$0xff] }
 0xb99   :  { %v3668_v43 = vsel %vm15237_vm7, %v9590_v28, %v15236_v23  ;;  %v9037_v28 = vpack.c.bf16 %v3859_v31, %v3858_v16  ;;  %v12695_v12 = vmax.f32 %v3534_v9, %v15238_v3  ;;  %v15241_v2 = vunpack.i.h.bf16 %v15143_v14  ;;  %v3879_v16 = vld [vmem:[%s14685_s17 + $0xd8] sm:$0xff]  ;;  %9068 = vmatprep.subr.bf16.mxu1 %v9067_v24  ;;  %vm15249_vm15 = vmmov %vm15237_vm7 }
 0xb9a   :  { %v9591_v30 = vunpack.i.h.bf16 %v15220_v17  ;;  %v9039_v41 = vpack.c.bf16 %v3877_v45, %v3876_v5  ;;  %v9625_v9 = vunpack.i.l.bf16 %v12341_v11  ;;  %v3684_v42 = vsel %vm12541_vm1, %v3668_v43, -3e+38  ;;  %v3893_v45 = vld [vmem:[%s14685_s17 + $0x148] sm:$0xff]  ;;  %v3911_v24 = vld [vmem:[%s14685_s17 + $0x1d8] sm:$0xff] }
 0xb9b   :  { %v3670_v59 = vsel %vm15242_vm12, %v15241_v2, %v15240_v6  ;;  %v9645_v14 = vunpack.i.l.bf16 %v12670_v15  ;;  %v9069_v56 = vpack.c.bf16 %v3891_v35, %v3890_v34  ;;  %v3617_v31 = vmax.f32 %v3531_v57, %v3609_v33  ;;  %9038 = vmatpush3.bf16.msra.mxu0 %v9037_v28  ;;  %v3910_v57 = vld [vmem:[%s14685_s17 + $0x1d0] sm:$0xff]  ;;  %v15245_v35 = vld [vmem:[#allocation14_spill] sm:$0xff] }
 0xb9c   :  { %v9601_v53 = vunpack.i.h.bf16 %v15243_v58  ;;  %v9600_v50 = vunpack.i.l.bf16 %v15243_v58  ;;  %v9071_v5 = vpack.c.bf16 %v3909_v25, %v3908_v44  ;;  %v3686_v23 = vsel %vm12584_vm10, %v3670_v59, -3e+38  ;;  %v15247_v25 = vld [vmem:[#allocation16_spill] sm:$0xff]  ;;  %v12754_v59 = vpop.permute.xlu1 %9648  ;;  %9040 = vmatprep.subr.bf16.mxu0 %v9039_v41  ;;  %v15254_v58 = vld [vmem:[#allocation5_spill] sm:$0xff]  ;;  %v3899_v11 = vld [vmem:[%s14685_s17 + $0x178] sm:$0xff] }
 0xb9d   :  { %v9041_v43 = vpack.c.bf16 %v3861_v47, %v3860_v37  ;;  %v15246_v33 = vsel %vm15122_vm13, %v15245_v35, -3e+38  ;;  %v15248_v3 = vsel %vm15194_vm8, %v15247_v25, -3e+38  ;;  %v12751_v20 = vsel %vm15249_vm15, %v9626_v21, %v9591_v30  ;;  %9070 = vmatpush3.bf16.msra.mxu1 %v9069_v56  ;;  %v3881_v41 = vld [vmem:[%s14685_s17 + $0xe8] sm:$0xff]  ;;  %vm15251_vm13 = vmmov %vm15227_vm6 }
 0xb9e   :  { %v12740_v44 = vmax.f32 %v3496_v48, %v15246_v33  ;;  %v12746_v28 = vmax.f32 %v3493_v54, %v15248_v3  ;;  %v3692_v6 = vmax.f32 %v3615_v7, %v3684_v42  ;;  %v9646_v2 = vunpack.i.h.bf16 %v12670_v15  ;;  %v3863_v54 = vld [vmem:[%s14685_s17 + $0x58] sm:$0xff]  ;;  %v15250_v48 = vld [vmem:[#allocation40_spill] sm:$0xff]  ;;  %v3880_v7 = vld [vmem:[%s14685_s17 + $0xe0] sm:$0xff]  ;;  %9072 = vmatprep.subr.bf16.mxu1 %v9071_v5 }
 0xb9f   :  { %v9043_v37 = vpack.c.bf16 %v3879_v16, %v3878_v32  ;;  %v9620_v47 = vunpack.i.l.bf16 %v15250_v48  ;;  %v9073_v21 = vpack.c.bf16 %v3893_v45, %v3892_v27  ;;  %v12772_v42 = vsel %vm15251_vm13, %v14866_v39, %v9645_v14  ;;  %v15252_v32 = vld [vmem:[#allocation17_spill] sm:$0xff]  ;;  %v15255_v45 = vld [vmem:[#allocation30_spill] sm:$0xff]  ;;  %vm15257_vm8 = vmmov %vm15230_vm11  ;;  %9042 = vmatpush3.bf16.msra.mxu0 %v9041_v43 }
 0xba0   :  { %v15253_v16 = vsel %vm15232_vm3, %v15252_v32, -3e+38  ;;  %v12779_v27 = vmax.f32 %v3617_v31, %v3686_v23  ;;  %v15256_v34 = vunpack.i.h.bf16 %v15255_v45  ;;  %v15258_v33 = vunpack.i.h.bf16 %v12139_v40  ;;  %vm15259_vm6 = vmmov %vm15257_vm8  ;;  %v15260_v3 = vld [vmem:[#allocation28_spill] sm:$0xff]  ;;  %v3894_v31 = vld [vmem:[%s14685_s17 + $0x150] sm:$0xff]  ;;  %v12802_v40 = vpop.permute.xlu0 %9653 }
 0xba1   :  { %v3535_v56 = vmax.f32 %v15254_v58, %v15253_v16  ;;  %v15261_v39 = vrot.slane %v15260_v3, %v11796_v18  ;;  %v9075_v32 = vpack.c.bf16 %v3911_v24, %v3910_v57  ;;  %v9045_v23 = vpack.c.bf16 %v3863_v54, %v3862_v26  ;;  %v3913_v5 = vld [vmem:[%s14685_s17 + $0x1e8] sm:$0xff]  ;;  %9044 = vmatprep.subr.bf16.mxu0 %v9043_v37  ;;  %vm15267_vm5 = vmmov %vm15251_vm13  ;;  %v3896_v45 = vld [vmem:[%s14685_s17 + $0x160] sm:$0xff] }
 0xba2   :  { %v12784_v35 = vsel %vm15257_vm8, %v9601_v53, %v15256_v34  ;;  %v3598_v25 = vsel %vm15259_vm6, %v15258_v33, %v9600_v50  ;;  %v3895_v53 = vld [vmem:[%s14685_s17 + $0x158] sm:$0xff]  ;;  %v9621_v50 = vunpack.i.h.bf16 %v15250_v48  ;;  %v3688_v57 = vsel %vm12541_vm1, %v12751_v20, -3e+38  ;;  %9074 = vmatpush3.bf16.msra.mxu1 %v9073_v21  ;;  %v9659_v21 = vpop.permute.xlu1 %9658  ;;  %v3897_v34 = vld [vmem:[%s14685_s17 + $0x168] sm:$0xff]  ;;  %vm15273_vm15 = vmmov %vm15242_vm12 }
 0xba3   :  { %vm12792_vm11 = vcmp.eq.s32.totalorder %v15261_v39, 1  ;;  %v3912_v39 = vld [vmem:[%s14685_s17 + $0x1e0] sm:$0xff]  ;;  %v12818_v24 = vmax.f32 %v3535_v56, %v3613_v49  ;;  %v15264_v43 = vrot.slane %v15144_v52, %v15178_v62  ;;  %v12831_v54 = vmax.f32 %v3692_v6, %v3760_v61  ;;  %v15268_v61 = vld [vmem:[#allocation38_spill] sm:$0xff]  ;;  %9076 = vmatprep.subr.bf16.mxu1 %v9075_v32  ;;  %9046 = vmatpush3.bf16.msra.mxu0 %v9045_v23  ;;  %vm15279_vm8 = vmmov %vm15267_vm5 }
 0xba4   :  { %v9047_v48 = vpack.c.bf16 %v3881_v41, %v3880_v7  ;;  %v3765_v52 = vsel %vm12366_vm9, %v12772_v42, -3e+38  ;;  %v12845_v49 = vsel %vm15267_vm5, %v9645_v14, %v9646_v2  ;;  %v3611_v51 = vsel %vm12188_vm14, %v12784_v35, -3e+38  ;;  %v3882_v41 = vld [vmem:[%s14685_s17 + $0xf0] sm:$0xff]  ;;  %v3883_v14 = vld [vmem:[%s14685_s17 + $0xf8] sm:$0xff]  ;;  %vm15280_vm6 = vmmov %vm15242_vm12 }
 0xba5   :  { %vm12823_vm3 = vcmp.eq.s32.totalorder %v15264_v43, 1  ;;  %vm15269_vm7 = vnez %v15268_v61  ;;  %v3673_v37 = vsel %vm15242_vm12, %v9591_v30, %v9620_v47  ;;  %v9077_v7 = vpack.c.bf16 %v3895_v53, %v3894_v31  ;;  %v3915_v32 = vld [vmem:[%s14685_s17 + $0x1f8] sm:$0xff]  ;;  %v15274_v23 = vld [vmem:[#allocation39_spill] sm:$0xff]  ;;  %v15276_v43 = vld [vmem:[#allocation37_spill] sm:$0xff] }
 0xba6   :  { %v3614_v6 = vsel %vm15269_vm7, %v3598_v25, -3e+38  ;;  %v9656_v38 = vunpack.i.h.bf16 %v12802_v40  ;;  %v9655_v16 = vunpack.i.l.bf16 %v12802_v40  ;;  %v15270_v58 = vrot.slane %v15260_v3, %v15178_v62  ;;  %v3914_v3 = vld [vmem:[%s14685_s17 + $0x1f0] sm:$0xff]  ;;  %9048 = vmatprep.subr.bf16.mxu0 %v9047_v48  ;;  %vm15285_vm12 = vmmov %vm15279_vm8  ;;  %v12980_v40 = vld [vmem:[#allocation2] sm:$0xf] }
 0xba7   :  { %v9640_v30 = vunpack.i.l.bf16 %v12672_v46  ;;  %v9079_v56 = vpack.c.bf16 %v3913_v5, %v3912_v39  ;;  %v3674_v35 = vsel %vm15273_vm15, %v9620_v47, %v9621_v50  ;;  %v9641_v62 = vunpack.i.h.bf16 %v12672_v46  ;;  %v3866_v46 = vld [vmem:[%s14685_s17 + $0x70] sm:$0xff]  ;;  %v3867_v47 = vld [vmem:[%s14685_s17 + $0x78] sm:$0xff]  ;;  %9078 = vmatpush3.bf16.msra.mxu1 %v9077_v7 }
 0xba8   :  { %vm12866_vm14 = vcmp.eq.s32.totalorder %v15270_v58, 1  ;;  %v9650_v33 = vunpack.i.l.bf16 %v12754_v59  ;;  %v9049_v25 = vpack.c.bf16 %v3865_v8, %v3864_v60  ;;  %v9651_v31 = vunpack.i.h.bf16 %v12754_v59 }
 0xba9   :  { %v9051_v53 = vpack.c.bf16 %v3883_v14, %v3882_v41  ;;  %vm15275_vm13 = vnez %v15274_v23  ;;  %v3622_v5 = vmax.f32 %v12740_v44, %v3614_v6  ;;  %v15277_v60 = vunpack.i.l.bf16 %v15276_v43  ;;  %v15281_v14 = vld [vmem:[#allocation8_spill] sm:$0xff]  ;;  %9080 = vmatprep.subr.bf16.mxu1 %v9079_v56 }
 0xbaa   :  { %v3689_v39 = vsel %vm15275_vm13, %v3673_v37, -3e+38  ;;  %v15278_v8 = vunpack.i.h.bf16 %v12200_v29  ;;  %v3675_v48 = vsel %vm15280_vm6, %v9621_v50, %v9625_v9  ;;  %v9660_v61 = vunpack.i.l.bf16 %v9659_v21  ;;  %v3898_v29 = vld [vmem:[%s14685_s17 + $0x170] sm:$0xff]  ;;  %9050 = vmatpush3.bf16.msra.mxu0 %v9049_v25  ;;  %vm15292_vm13 = vmmov %vm15279_vm8  ;;  %s9943_s17 = smov 8  }
 0xbab   :  { %v9081_v41 = vpack.c.bf16 %v3897_v34, %v3896_v45  ;;  %v15282_v58 = vunpack.i.l.bf16 %v15281_v14  ;;  %vm15283_vm5 = vcmask 908288   ;;  %v9661_v37 = vunpack.i.h.bf16 %v9659_v21  ;;  %9052 = vmatprep.subr.bf16.mxu0 %v9051_v53 }
 0xbac   :  { %v3746_v59 = vsel %vm15279_vm8, %v15278_v8, %v15277_v60  ;;  %v9083_v44 = vpack.c.bf16 %v3915_v32, %v3914_v3  ;;  %v3690_v9 = vsel %vm12584_vm10, %v3674_v35, -3e+38  ;;  %v9053_v50 = vpack.c.bf16 %v3867_v47, %v3866_v46  ;;  %vm15284_vm7 = vmmov %vm15283_vm5 }
 0xbad   :  { %v3820_v23 = vsel %vm15283_vm5, %v9640_v30, %v15282_v58  ;;  %v3697_v6 = vmax.f32 %v12695_v12, %v3689_v39  ;;  %v3825_v7 = vsel %vm15284_vm7, %v9641_v62, %v9655_v16  ;;  %v3751_v30 = vsel %vm15285_vm12, %v9646_v2, %v9650_v33  ;;  %vm15288_vm15 = vmmov %vm15283_vm5  ;;  %9082 = vmatpush3.bf16.msra.mxu1 %v9081_v41 }
 0xbae   :  { %v15286_v21 = vunpack.i.l.bf16 %v12404_v63  ;;  %v15287_v56 = vunpack.i.h.bf16 %v15281_v14  ;;  %vm15290_vm10 = vnez %v15289_v0  ;;  %v3619_v12 = vmax.f32 %v12746_v28, %v3611_v51  ;;  %vm15293_vm8 = vmmov %vm15283_vm5  ;;  %9084 = vmatprep.subr.bf16.mxu1 %v9083_v44  ;;  %v15294_v51 = vld [vmem:[#allocation32_spill] sm:$0xff]  ;;  %9054 = vmatpush3.bf16.msra.mxu0 %v9053_v50 }
 0xbaf   :  { %v3691_v34 = vsel %vm15290_vm10, %v3675_v48, -3e+38  ;;  %v15291_v35 = vunpack.i.h.bf16 %v12261_v19  ;;  %v3762_v15 = vsel %vm12823_vm3, %v3746_v59, -3e+38  ;;  %v3836_v63 = vsel %vm12792_vm11, %v3820_v23, -3e+38  ;;  %vm15296_vm9 = vmmov %vm15283_vm5 }
 0xbb0   :  { %v3822_v45 = vsel %vm15288_vm15, %v15287_v56, %v15286_v21  ;;  %v9085_v2 = vpack.c.bf16 %v3899_v11, %v3898_v29  ;;  %v3827_v33 = vsel %vm15293_vm8, %v9656_v38, %v9660_v61  ;;  %v3841_v28 = vsel %vm12390_vm2, %v3825_v7, -3e+38  ;;  %v4072_v29 = vpop.permute.xlu0 %4071  ;;  %v4077_v7 = vpop.permute.xlu1 %4076 }
 0xbb1   :  { %v3748_v25 = vsel %vm15292_vm13, %v9651_v31, %v15291_v35  ;;  %vm15295_vm6 = vnez %v15294_v51  ;;  %v3824_v3 = vsel %vm15283_vm5, %v9661_v37, %v9641_v62  ;;  %v3698_v32 = vmax.f32 %v12818_v24, %v3690_v9  ;;  %vm15307_vm13 = vmmov %vm15283_vm5 }
 0xbb2   :  { %v3767_v19 = vsel %vm15295_vm6, %v3751_v30, -3e+38  ;;  %v3838_v31 = vsel %vm12866_vm14, %v3822_v45, -3e+38  ;;  %v3773_v53 = vmax.f32 %v3697_v6, %v3765_v52  ;;  %v3699_v46 = vmax.f32 %v3622_v5, %v3691_v34  ;;  %9086 = vmatpush3.bf16.msra.mxu1 %v9085_v2 }
 0xbb3   :  { %v3764_v13 = vsel %vm12489_vm0, %v3748_v25, -3e+38  ;;  %v3770_v47 = vmax.f32 %v12779_v27, %v3762_v15  ;;  %v3844_v39 = vmax.f32 %v12831_v54, %v3836_v63  ;;  %v3843_v24 = vsel %vm12416_vm4, %v3827_v33, -3e+38  ;;  %v8480_v33 = vld [vmem:[%s14678_s7 + $0xc] sm:$0xf] }
 0xbb4   :  { %v3696_v62 = vmax.f32 %v3619_v12, %v3688_v57  ;;  %v3849_v22 = vmax.f32 %v3773_v53, %v3841_v28  ;;  %v3775_v42 = vmax.f32 %v3699_v46, %v3767_v19  ;;  %v3840_v52 = vsel %vm12792_vm11, %v3824_v3, -3e+38  ;;  %v4087_v0 = vpop.permute.xlu0 %4086  ;;  %v4092_v35 = vpop.permute.xlu1 %4091  ;;  %v13016_v28 = vld [vmem:[%s14683_s13] sm:$0xff] }
 0xbb5   :  { %v3766_v55 = vsel %vm12823_vm3, %v12845_v49, -3e+38  ;;  %v3846_v27 = vmax.f32 %v3770_v47, %v3838_v31  ;;  %3981 = vmatmul.mubr.f32.vlgmr.msra.gmra.mrb[24].mxu0 %v3844_v39  ;;  %v3826_v4 = vsel %vm15296_vm9, %v9655_v16, %v9656_v38  ;;  %v9939_v49 = vmov 0.0|0.0   ;;  %v13029_v39 = vld [vmem:[%s14683_s13 + $0x10] sm:$0xff] }
 0xbb6   :  { %v3772_v54 = vmax.f32 %v3696_v62, %v3764_v13  ;;  %v3774_v36 = vmax.f32 %v3698_v32, %v3766_v55  ;;  %3985 = vmatprep.mubr.f32.mxu0 %v3849_v22  ;;  %v3851_v20 = vmax.f32 %v3775_v42, %v3843_v24  ;;  %v3842_v10 = vsel %vm12866_vm14, %v3826_v4, -3e+38  ;;  %9087 = vmatprep.subr.bf16.mxu0 %v9939_v49  ;;  %v13037_v24 = vld [vmem:[%s14683_s13 + $0x18] sm:$0xff]  ;;  %v4266_v62 = vld [vmem:[%s14683_s13 + $0x20] sm:$0xf] }
 0xbb7   :  { %4056 = vmatmul.mubr.f32.vlgmr.msra.gmra.mrb[24].mxu1 %v3846_v27  ;;  %9090 = vmatprep.subr.bf16.mxu1 %v9939_v49  ;;  %vm14875_vm2 = vmmov 0   ;;  %v4196_v38 = vrot.slane %v12980_v40, 4  ;;  %vm15297_vm4 = vcmask 130048   ;;  %v9917_v22 = vld [vmem:[#allocation2 + $0x10] sm:$0xf]  ;;  %vm15300_vm0 = vcmask 1039360  }
 0xbb8   :  { %v3848_v57 = vmax.f32 %v3772_v54, %v3840_v52  ;;  %4060 = vmatprep.mubr.f32.mxu1 %v3851_v20  ;;  %v3850_v26 = vmax.f32 %v3774_v36, %v3842_v10  ;;  %v4178_v51 = vpop.permute.xlu0 %4177  ;;  %v4186_v31 = vpop.permute.xlu1 %4185  ;;  %vm15301_vm1 = vcmask 1043456   ;;  %vm14878_vm3 = vcmask 982016  }
 0xbb9   :  { %4198 = vrot.lane.b32.xlu0 %v4196_v38, %s14943_s27  ;;  %vm15302_vm11 = vmmov %vm15301_vm1  ;;  %vm14874_vm14 = vcmask 965632   ;;  %vm15303_vm7 = vcmask 1031168   ;;  %vm15309_vm6 = vcmask 916480  }
 0xbba   :  { %3986 = vmatmul.mubr.f32.gmra.mrb[26].mxu0 %v3848_v57  ;;  %vm15304_vm12 = vmmov %vm15301_vm1 }
 0xbbb   :  { %4061 = vmatmul.mubr.f32.gmra.mrb[26].mxu1 %v3850_v26  ;;  %8784 = vmatprep.mubr.msk.f32.mxu0 %vm14875_vm2, %v12588_v1  ;;  %vm15305_vm15 = vmmov %vm15301_vm1 }
 0xbbc   :  { %8797 = vmatprep.mubr.msk.f32.mxu1 %vm14875_vm2, %v12588_v1  ;;  %v4275_v52 = vpop.permute.xlu1 %4274  ;;  %vm15306_vm10 = vmmov %vm15301_vm1 }
 0xbbd   :  { %4205 = vrot.lane.b32.xlu0 %v12980_v40, %s14940_s25  ;;  %vm15308_vm8 = vmmov %vm15301_vm1 }
 0xbbe   :  { %vm15310_vm5 = vmmov %vm15301_vm1 }
 0xbbf   :  { %vm15311_vm9 = vmmov %vm15301_vm1 }
 0xbc0   :  { %v4228_v27 = vpop.permute.xlu1 %4227 }
 0xbc1   :  { %4212 = vrot.lane.b32.xlu0 %v4196_v38, %s14867_s14 }
 0xbc4   :  { %v4236_v36 = vpop.permute.xlu1 %4235 }
 0xbc5   :  { %4272 = vrot.lane.b32.xlu0 %v13016_v28, %s15298_s11 }
 0xbc8   :  { %v4243_v20 = vpop.permute.xlu1 %4242 }
 0xc2b   :  { %v4199_v42 = vpop.permute.xlu0 %4198 }
 0xc2f   :  { %v4206_v55 = vpop.permute.xlu0 %4205 }
 0xc33   :  { %v4213_v54 = vpop.permute.xlu0 %4212 }
 0xc37   :  { %v4273_v4 = vpop.permute.xlu0 %4272 }
 0xc5c   :  { %v12986_v16 = vpop.f32.mrb[20].mxu0 }
 0xc5d   :  { %v12988_v17 = vpop.f32.mrb[21].mxu0  ;;  %v12990_v5 = vpop.f32.mrb[20].mxu1 }
 0xc5e   :  { %v12992_v43 = vpop.f32.mrb[21].mxu1 }
 0xc62   :  { %v12994_v60 = vpop.f32.mrb[22].mxu0 }
 0xc63   :  { %v12996_v8 = vpop.f32.mrb[23].mxu0  ;;  %v12998_v59 = vpop.f32.mrb[22].mxu1 }
 0xc64   :  { %v13000_v48 = vpop.f32.mrb[23].mxu1 }
 0xc88   :  { %v8652_v61 = vpop.f32.mrb[24].mxu0 }
 0xc89   :  { %v8653_v41 = vpop.f32.mrb[25].mxu0 }
 0xc8a   :  { %v8654_v14 = vadd.f32 %v8653_v41, %v8652_v61  ;;  %v8690_v58 = vpop.f32.mrb[24].mxu1 }
 0xc8b   :  { %v8691_v23 = vpop.f32.mrb[25].mxu1 }
 0xc8c   :  { %v8692_v37 = vadd.f32 %v8691_v23, %v8690_v58 }
 0xc8d   :  { %v8655_v44 = vpop.f32.mrb[26].mxu0 }
 0xc8e   :  { %v8656_v11 = vpop.f32.mrb[27].mxu0  ;;  %v13002_v9 = vadd.f32 %v8692_v37, %v8654_v14  ;;  %v8693_v6 = vpop.f32.mrb[26].mxu1 }
 0xc8f   :  { %v8657_v50 = vadd.f32 %v8656_v11, %v8655_v44  ;;  %v8694_v30 = vpop.f32.mrb[27].mxu1 }
 0xc90   :  { %v4079_v21 = vmul.f32 %v4072_v29, %v13002_v9  ;;  %v8695_v56 = vadd.f32 %v8694_v30, %v8693_v6 }
 0xc92   :  { %v13005_v45 = vadd.f32 %v8695_v56, %v8657_v50  ;;  %v4094_v34 = vadd.f32 %v4087_v0, %v4079_v21 }
 0xc94   :  { %v4080_v12 = vmul.f32 %v4077_v7, %v13005_v45  ;;  %v4096_v15 = vmax.f32 %v4094_v34, 0.0 }
 0xc96   :  { %v4095_v25 = vadd.f32 %v4092_v35, %v4080_v12 }
 0xc98   :  { %v4097_v63 = vmax.f32 %v4095_v25, 0.0 }
 0xc9a   :  { %v9088_v2 = vpack.c.bf16 %v4097_v63, %v4096_v15 }
 0xc9c   :  { %9089 = vmatpush3.bf16.msra.mxu0 %v9088_v2 }
 0xc9f   :  { %8785 = vmatmul.mubr.msk.f32.vlgmr.msra.gmra.mrb[28].mxu0 %vm15297_vm4, %v8480_v33  ;;  %vm15312_vm4 = vcmask 900096  }
 0xd72   :  { %v4169_v19 = vpop.f32.mrb[28].mxu0 }
 0xd73   :  { %v4180_v3 = vmul.f32 %v4178_v51, %v4169_v19  ;;  %v8786_v32 = vpop.f32.mrb[29].mxu0 }
 0xd75   :  { %v4188_v53 = vadd.f32 %v4186_v31, %v4180_v3 }
 0xd77   :  { %v4189_v46 = vmax.f32 %v4188_v53, 0.0 }
 0xd79   :  { %4190 = vst [vmem:[#allocation2 + $0x8] sm:$0xf] %v4189_v46 }
 0xd80   :  { %v4192_v13 = vld [vmem:[#allocation2 + $0x8] sm:$0xf] }
 0xd81   :  { %4233 = vrot.lane.b32.xlu0 %v4192_v13, %s14945_s1  ;;  %4207 = vrot.lane.b32.xlu1 %v4192_v13, %s14940_s25  ;;  %v4197_v47 = vrot.slane %v4192_v13, 4 }
 0xd85   :  { %4220 = vrot.lane.b32.xlu0 %v4192_v13, %s15298_s11  ;;  %4200 = vrot.lane.b32.xlu1 %v4197_v47, %s14943_s27 }
 0xd89   :  { %4225 = vrot.lane.b32.xlu0 %v4197_v47, %s15299_s21  ;;  %4214 = vrot.lane.b32.xlu1 %v4197_v47, %s14867_s14  ;;  %s9944_s14 = smov 7  }
 0xd8d   :  { %4240 = vrot.lane.b32.xlu0 %v4197_v47, %s14949_s20  ;;  %4276 = vrot.lane.b32.xlu1 %v13029_v39, %s15298_s11 }
 0xd91   :  { %4278 = vrot.lane.b32.xlu0 %v13037_v24, %s15298_s11  ;;  %4247 = vrot.lane.b32.xlu1 %v4192_v13, %s14942_s0 }
 0xd95   :  { %4249 = vrot.lane.b32.xlu0 %v9917_v22, %s14942_s0  ;;  %4280 = vrot.lane.b32.xlu1 %v4266_v62, %s15298_s11 }
 0xdf3   :  { %v4234_v57 = vpop.permute.xlu0 %4233  ;;  %v4208_v10 = vpop.permute.xlu1 %4207 }
 0xdf4   :  { %v4209_v29 = vsel %vm15303_vm7, %v4206_v55, %v4208_v10  ;;  %v4237_v2 = vsel %vm15309_vm6, %v4234_v57, %v4236_v36  ;;  %v8488_v55 = vld [vmem:[%s14680_s6 + $0xc] sm:$0xf]  ;;  %v8496_v36 = vld [vmem:[%s14910_s26 + $0x40] sm:$0xff]  ;;  %vm15314_vm7 = vcmask 31744   ;;  %vm15321_vm6 = vmmov %vm15301_vm1 }
 0xdf7   :  { %v4221_v26 = vpop.permute.xlu0 %4220  ;;  %v4201_v38 = vpop.permute.xlu1 %4200 }
 0xdf8   :  { %v4202_v61 = vsel %vm15300_vm0, %v4199_v42, %v4201_v38  ;;  %v4255_v41 = vsel %vm15301_vm1, %v4192_v13, %v4201_v38  ;;  %vm4329_vm0 = vcmask 72704  }
 0xdf9   :  { %v4254_v14 = vsel %vm15302_vm11, %v12980_v40, %v4202_v61  ;;  %v4288_v58 = vmul.f32 %v4273_v4, %v4255_v41  ;;  %vm15313_vm11 = vcmask 293888  }
 0xdfa   :  { %v4287_v23 = vmul.f32 %v4273_v4, %v4254_v14  ;;  %v8497_v4 = vld [vmem:[%s14910_s26 + $0x48] sm:$0xff] }
 0xdfb   :  { %v4226_v37 = vpop.permute.xlu0 %4225  ;;  %v4215_v44 = vpop.permute.xlu1 %4214 }
 0xdfc   :  { %v9662_v11 = vpack.i.bf16 %v4288_v58, %v4287_v23  ;;  %v4217_v50 = vsel %vm14878_vm3, %v4213_v54, %v4215_v44  ;;  %v4230_v6 = vsel %vm14874_vm14, %v4226_v37, %v4228_v27  ;;  %v4257_v30 = vsel %vm15305_vm15, %v4208_v10, %v4215_v44  ;;  %v8494_v27 = vld [vmem:[%s14911_s28 + $0x40] sm:$0xff]  ;;  %v8495_v54 = vld [vmem:[%s14911_s28 + $0x48] sm:$0xff]  ;;  %vm15316_vm15 = vmmov %vm15301_vm1 }
 0xdfd   :  { %v4256_v7 = vsel %vm15304_vm12, %v4209_v29, %v4217_v50  ;;  %v4290_v56 = vmul.f32 %v4275_v52, %v4257_v30  ;;  %v4258_v40 = vsel %vm15306_vm10, %v4221_v26, %v4226_v37  ;;  %v4259_v25 = vsel %vm15308_vm8, %v4221_v26, %v4230_v6  ;;  %v4713_v10 = vld [vmem:[%s14683_s13 + $0x8] sm:$0xff]  ;;  %v13096_v26 = vld [vmem:[#allocation2 + $0x10] sm:$0xf]  ;;  %vm15315_vm12 = vmmov %vm15301_vm1 }
 0xdfe   :  { %v4289_v21 = vmul.f32 %v4275_v52, %v4256_v7  ;;  %9663 = vrot.lane.b32.xlu0 %v9662_v11, %s14870_s18  ;;  %v8487_v52 = vld [vmem:[%s14679_s5 + $0xc] sm:$0xf]  ;;  %v4675_v38 = vrot.slane %v13096_v26, 4  ;;  %vm15317_vm10 = vmmov %vm15314_vm7  ;;  %vm15320_vm8 = vcmask 1039360  }
 0xdff   :  { %v4241_v0 = vpop.permute.xlu0 %4240  ;;  %v4277_v34 = vpop.permute.xlu1 %4276 }
 0xe00   :  { %v9667_v12 = vpack.i.bf16 %v4290_v56, %v4289_v21  ;;  %v4244_v35 = vsel %vm15307_vm13, %v4241_v0, %v4243_v20  ;;  %v4291_v15 = vmul.f32 %v4277_v34, %v4258_v40  ;;  %v4292_v63 = vmul.f32 %v4277_v34, %v4259_v25  ;;  %v8500_v20 = vld [vmem:[%s14913_s4 + $0x10] sm:$0xf]  ;;  %v8484_v25 = vld [vmem:[%s14681_s8 + $0xc] sm:$0xf] }
 0xe01   :  { %v4260_v33 = vsel %vm15310_vm5, %v4234_v57, %v4241_v0  ;;  %v4261_v19 = vsel %vm15311_vm9, %v4237_v2, %v4244_v35  ;;  %v8501_v57 = vld [vmem:[%s14912_s23 + $0x10] sm:$0xf]  ;;  %vm15319_vm13 = vcmask 130048   ;;  %vm15322_vm5 = vmmov %vm15301_vm1  ;;  %vm15323_vm9 = vcmask 1031168  }
 0xe02   :  { %9668 = vrot.lane.b32.xlu1 %v9667_v12, %s14870_s18  ;;  %v9672_v51 = vpack.i.bf16 %v4292_v63, %v4291_v15  ;;  %v8489_v63 = vld [vmem:[%s14682_s9 + $0x30] sm:$0xff] }
 0xe03   :  { %v4279_v3 = vpop.permute.xlu0 %4278  ;;  %v4248_v32 = vpop.permute.xlu1 %4247  ;;  %8802 = vmatprep.mubr.msk.f32.mxu0 %vm15314_vm7, %v8489_v63  ;;  %vm15327_vm7 = vcmask 908288  }
 0xe04   :  { %v4293_v31 = vmul.f32 %v4279_v3, %v4260_v33  ;;  %v4294_v53 = vmul.f32 %v4279_v3, %v4261_v19  ;;  %9673 = vrot.lane.b32.xlu0 %v9672_v51, %s14870_s18 }
 0xe06   :  { %v9677_v46 = vpack.i.bf16 %v4294_v53, %v4293_v31  ;;  %v8490_v53 = vld [vmem:[%s14682_s9 + $0x38] sm:$0xff] }
 0xe07   :  { %v4250_v13 = vpop.permute.xlu0 %4249  ;;  %v4281_v47 = vpop.permute.xlu1 %4280 }
 0xe08   :  { %v4251_v62 = vsel %vm15312_vm4, %v4248_v32, %v4250_v13  ;;  %v4295_v22 = vmul.f32 %v4281_v47, %v4248_v32  ;;  %9678 = vrot.lane.b32.xlu1 %v9677_v46, %s14870_s18  ;;  %v13132_v46 = vld [vmem:[#allocation2] sm:$0xf]  ;;  %vm15324_vm4 = vmmov %vm15301_vm1 }
 0xe09   :  { %v4296_v42 = vmul.f32 %v4281_v47, %v4251_v62  ;;  %v4648_v13 = vrot.slane %v13132_v46, 4 }
 0xe0a   :  { %4325 = vrot.lane.b32.xlu0 %v4295_v22, %s14870_s18 }
 0xe0c   :  { %4327 = vrot.lane.b32.xlu1 %v4296_v42, %s14870_s18  ;;  %s9945_s18 = smov 121  }
 0xe0e   :  { %4418 = vperm.xlu0 %9310, %v8487_v52  }
 0xe10   :  { %4426 = vperm.xlu1 %9311, %v8488_v55  }
 0xe12   :  { %4523 = vperm.xlu0 %9310, %v8494_v27  }
 0xe14   :  { %4528 = vperm.xlu1 %9311, %v8495_v54  }
 0xe16   :  { %4538 = vperm.xlu0 %9310, %v8496_v36  }
 0xe18   :  { %4543 = vperm.xlu1 %9311, %v8497_v4  }
 0xe1a   :  { %4629 = vperm.xlu0 %9310, %v8500_v20  }
 0xe1c   :  { %4637 = vperm.xlu1 %9311, %v8501_v57  }
 0xe1e   :  { %4650 = vrot.lane.b32.xlu0 %v4648_v13, %s14943_s27 }
 0xe20   :  { %4724 = vrot.lane.b32.xlu1 %v4713_v10, %s15298_s11 }
 0xe22   :  { %4657 = vrot.lane.b32.xlu0 %v13132_v46, %s14940_s25 }
 0xe24   :  { %4678 = vrot.lane.b32.xlu1 %v4675_v38, %s15299_s21 }
 0xe26   :  { %4664 = vrot.lane.b32.xlu0 %v4648_v13, %s15318_s30 }
 0xe28   :  { %4685 = vrot.lane.b32.xlu1 %v13096_v26, %s14945_s1 }
 0xe2a   :  { %4722 = vrot.lane.b32.xlu0 %v13016_v28, %s15298_s11 }
 0xe2c   :  { %4692 = vrot.lane.b32.xlu1 %v4675_v38, %s14949_s20 }
 0xe70   :  { %v9664_v61 = vpop.permute.xlu0 %9663 }
 0xe71   :  { %v9666_v41 = vunpack.i.h.bf16 %v9664_v61  ;;  %v9665_v14 = vunpack.i.l.bf16 %v9664_v61 }
 0xe73   :  { %v4330_v44 = vsel %vm4329_vm0, %v9665_v14, %v9666_v41 }
 0xe74   :  { %v9669_v58 = vpop.permute.xlu1 %9668 }
 0xe75   :  { %v9671_v23 = vunpack.i.h.bf16 %v9669_v58  ;;  %v9670_v37 = vunpack.i.l.bf16 %v9669_v58 }
 0xe76   :  { %v9674_v11 = vpop.permute.xlu0 %9673 }
 0xe77   :  { %v4331_v29 = vsel %vm4329_vm0, %v9670_v37, %v9671_v23  ;;  %v9676_v6 = vunpack.i.h.bf16 %v9674_v11  ;;  %v9675_v7 = vunpack.i.l.bf16 %v9674_v11 }
 0xe78   :  { %v9091_v50 = vpack.c.bf16 %v4331_v29, %v4330_v44  ;;  %v4716_v29 = vld [vmem:[%s14683_s13 + $0x20] sm:$0xf] }
 0xe79   :  { %v4332_v40 = vsel %vm4329_vm0, %v9675_v7, %v9676_v6 }
 0xe7a   :  { %v9679_v30 = vpop.permute.xlu1 %9678  ;;  %9092 = vmatpush3.bf16.msra.mxu1 %v9091_v50 }
 0xe7b   :  { %v9681_v21 = vunpack.i.h.bf16 %v9679_v30  ;;  %v9680_v56 = vunpack.i.l.bf16 %v9679_v30  ;;  %9093 = vmatprep.subr.bf16.mxu1 %v9939_v49 }
 0xe7c   :  { %v4326_v35 = vpop.permute.xlu0 %4325 }
 0xe7d   :  { %v4333_v0 = vsel %vm4329_vm0, %v9680_v56, %v9681_v21 }
 0xe7e   :  { %v9094_v34 = vpack.c.bf16 %v4333_v0, %v4332_v40  ;;  %v4328_v12 = vpop.permute.xlu1 %4327 }
 0xe7f   :  { %v4334_v15 = vsel %vm4329_vm0, %v4326_v35, %v4328_v12 }
 0xe80   :  { %9095 = vmatpush3.bf16.msra.mxu1 %v9094_v34 }
 0xe81   :  { %8795 = vmatprep.subr.mxu1 %v12588_v1 }
 0xe84   :  { %8796 = vmatpush3.msk.msra.mxu1 %vm15301_vm1, %v4334_v15 }
 0xe85   :  { %8798 = vmatmul.mubr.msk.f32.vlgmr.msra.gmra.mrb[28].mxu1 %vm15313_vm11, %v8484_v25  ;;  %9096 = vmatprep.subr.bf16.mxu1 %v9939_v49  ;;  %vm15326_vm11 = vmmov %vm15301_vm1 }
 0xe86   :  { %8809 = vmatprep.mubr.msk.f32.mxu1 %vm14875_vm2, %v12588_v1 }
 0xe8d   :  { %v4419_v2 = vpop.permute.xlu0 %4418 }
 0xe8f   :  { %v4427_v3 = vpop.permute.xlu1 %4426 }
 0xe91   :  { %v4524_v62 = vpop.permute.xlu0 %4523 }
 0xe93   :  { %v4529_v47 = vpop.permute.xlu1 %4528 }
 0xe95   :  { %v4539_v36 = vpop.permute.xlu0 %4538 }
 0xe97   :  { %v4544_v27 = vpop.permute.xlu1 %4543 }
 0xe9b   :  { %v4638_v14 = vpop.permute.xlu1 %4637 }
 0xe9f   :  { %v4725_v50 = vpop.permute.xlu1 %4724 }
 0xea3   :  { %v4679_v7 = vpop.permute.xlu1 %4678 }
 0xf58   :  { %v4410_v33 = vpop.f32.mrb[28].mxu1 }
 0xf59   :  { %v4421_v51 = vmul.f32 %v4419_v2, %v4410_v33  ;;  %v8799_v19 = vpop.f32.mrb[29].mxu1 }
 0xf5b   :  { %v4429_v32 = vadd.f32 %v4427_v3, %v4421_v51 }
 0xf5d   :  { %v4430_v31 = vmax.f32 %v4429_v32, 0.0 }
 0xf5f   :  { %8800 = vmatprep.subr.msk.mxu0 %vm15315_vm12, %v4430_v31  ;;  %vm15328_vm12 = vmmov %vm15301_vm1 }
 0xf60   :  { %8801 = vmatpush3.msk.msra.mxu0 %vm15316_vm15, %v4430_v31  ;;  %vm15329_vm15 = vcmask 916480  }
 0xf61   :  { %8803 = vmatmul.mubr.msk.f32.vlgmr.msra.gmra.mrb[30].mxu0 %vm15317_vm10, %v8490_v53  ;;  %9099 = vmatprep.subr.bf16.mxu0 %v9939_v49  ;;  %vm15330_vm10 = vmmov %vm15301_vm1 }
 0xf62   :  { %8822 = vmatprep.mubr.msk.f32.mxu0 %vm14875_vm2, %v12588_v1 }
0x1034   :  { %v8804_v22 = vpop.f32.mrb[30].mxu0 }
0x1035   :  { %v13142_v42 = vadd.f32 %v8804_v22, %v13005_v45  ;;  %v4509_v1 = vpop.f32.mrb[31].mxu0  ;;  %v8498_v45 = vld [vmem:[%s14678_s7 + $0x10] sm:$0xf] }
0x1036   :  { %v13145_v52 = vadd.f32 %v4509_v1, %v13002_v9  ;;  %v4630_v9 = vpop.permute.xlu0 %4629 }
0x1037   :  { %v4532_v55 = vmul.f32 %v4529_v47, %v13142_v42  ;;  %4968 = vst [vmem:[#allocation2 + $0x38] sm:$0xff] %v13142_v42 }
0x1038   :  { %v4531_v54 = vmul.f32 %v4524_v62, %v13145_v52 }
0x1039   :  { %v4547_v4 = vadd.f32 %v4544_v27, %v4532_v55 }
0x103a   :  { %v4546_v28 = vadd.f32 %v4539_v36, %v4531_v54  ;;  %v4651_v11 = vpop.permute.xlu0 %4650 }
0x103b   :  { %v4549_v20 = vmax.f32 %v4547_v4, 0.0 }
0x103c   :  { %v4548_v57 = vmax.f32 %v4546_v28, 0.0 }
0x103e   :  { %v9097_v10 = vpack.c.bf16 %v4549_v20, %v4548_v57  ;;  %v4658_v6 = vpop.permute.xlu0 %4657 }
0x1040   :  { %9098 = vmatpush3.bf16.msra.mxu1 %v9097_v10 }
0x1042   :  { %v4665_v30 = vpop.permute.xlu0 %4664 }
0x1043   :  { %8810 = vmatmul.mubr.msk.f32.vlgmr.msra.gmra.mrb[30].mxu1 %vm15319_vm13, %v8498_v45  ;;  %vm15331_vm13 = vmmov %vm15301_vm1 }
0x1046   :  { %v4723_v21 = vpop.permute.xlu0 %4722 }
0x1116   :  { %v4621_v38 = vpop.f32.mrb[30].mxu1 }
0x1117   :  { %v4632_v61 = vmul.f32 %v4630_v9, %v4621_v38  ;;  %v8811_v41 = vpop.f32.mrb[31].mxu1 }
0x1119   :  { %v4640_v58 = vadd.f32 %v4638_v14, %v4632_v61 }
0x111b   :  { %v4641_v23 = vmax.f32 %v4640_v58, 0.0 }
0x111d   :  { %4642 = vst [vmem:[#allocation2 + $0x8] sm:$0xf] %v4641_v23 }
0x1124   :  { %v4644_v37 = vld [vmem:[#allocation2 + $0x8] sm:$0xf] }
0x1125   :  { %4683 = vrot.lane.b32.xlu0 %v4644_v37, %s14945_s1  ;;  %4967 = vst [vmem:[#allocation2 + $0x8] sm:$0xff] %v13145_v52  ;;  %4659 = vrot.lane.b32.xlu1 %v4644_v37, %s14940_s25  ;;  %v4649_v44 = vrot.slane %v4644_v37, 4 }
0x1129   :  { %4671 = vrot.lane.b32.xlu0 %v4644_v37, %s15298_s11  ;;  %4652 = vrot.lane.b32.xlu1 %v4649_v44, %s14943_s27 }
0x112d   :  { %4676 = vrot.lane.b32.xlu0 %v4649_v44, %s15299_s21  ;;  %4666 = vrot.lane.b32.xlu1 %v4649_v44, %s15318_s30 }
0x1131   :  { %4690 = vrot.lane.b32.xlu0 %v4649_v44, %s14949_s20  ;;  %4726 = vrot.lane.b32.xlu1 %v13029_v39, %s15298_s11  ;;  %v4686_v39 = vpop.permute.xlu1 %4685  ;;  %v8506_v44 = vld [vmem:[%s14680_s6 + $0x10] sm:$0xf] }
0x1135   :  { %4728 = vrot.lane.b32.xlu0 %v13037_v24, %s15298_s11  ;;  %4697 = vrot.lane.b32.xlu1 %v4644_v37, %s14942_s0  ;;  %v4693_v56 = vpop.permute.xlu1 %4692 }
0x1139   :  { %4699 = vrot.lane.b32.xlu0 %v13096_v26, %s14942_s0  ;;  %4730 = vrot.lane.b32.xlu1 %v4716_v29, %s15298_s11  ;;  %v13201_v29 = vld [vmem:[#allocation2] sm:$0xff] }
0x1197   :  { %v4684_v24 = vpop.permute.xlu0 %4683  ;;  %v4660_v40 = vpop.permute.xlu1 %4659 }
0x1198   :  { %v4661_v33 = vsel %vm15323_vm9, %v4658_v6, %v4660_v40  ;;  %v4687_v36 = vsel %vm15329_vm15, %v4684_v24, %v4686_v39  ;;  %v4973_v6 = vld [vmem:[#allocation2 + $0x10] sm:$0xff]  ;;  %vm15336_vm9 = vcmask 31744   ;;  %vm5018_vm15 = vcmask 64512  }
0x119b   :  { %v4672_v0 = vpop.permute.xlu0 %4671  ;;  %v4653_v34 = vpop.permute.xlu1 %4652 }
0x119c   :  { %v4654_v12 = vsel %vm15320_vm8, %v4651_v11, %v4653_v34  ;;  %v4705_v35 = vsel %vm15321_vm6, %v4644_v37, %v4653_v34  ;;  %vm15332_vm8 = vcmask 900096   ;;  %v8505_v37 = vld [vmem:[%s14679_s5 + $0x10] sm:$0xf]  ;;  %v9702_v11 = vpack.i.bf16 %v13145_v52, %v13201_v29  ;;  %v8527_v34 = vld [vmem:[%s14912_s23 + $0x14] sm:$0xf]  ;;  %vm15334_vm6 = vmmov %vm15301_vm1 }
0x119d   :  { %v4704_v26 = vsel %vm15322_vm5, %v13132_v46, %v4654_v12  ;;  %v4738_v25 = vmul.f32 %v4723_v21, %v4705_v35  ;;  %vm15335_vm5 = vcmask 293888  }
0x119e   :  { %v4737_v15 = vmul.f32 %v4723_v21, %v4704_v26  ;;  %v8520_v21 = vld [vmem:[%s14911_s28 + $0x50] sm:$0xff] }
0x119f   :  { %v4677_v63 = vpop.permute.xlu0 %4676  ;;  %v4667_v2 = vpop.permute.xlu1 %4666 }
0x11a0   :  { %v9682_v51 = vpack.i.bf16 %v4738_v25, %v4737_v15  ;;  %v4668_v19 = vsel %vm14878_vm3, %v4665_v30, %v4667_v2  ;;  %v4680_v3 = vsel %vm14874_vm14, %v4677_v63, %v4679_v7  ;;  %v4707_v31 = vsel %vm15301_vm1, %v4660_v40, %v4667_v2  ;;  %v4974_v30 = vld [vmem:[#allocation2 + $0x40] sm:$0xff]  ;;  %v8523_v40 = vld [vmem:[%s14910_s26 + $0x58] sm:$0xff] }
0x11a1   :  { %v4706_v32 = vsel %vm15324_vm4, %v4661_v33, %v4668_v19  ;;  %v4740_v13 = vmul.f32 %v4725_v50, %v4707_v31  ;;  %v4708_v46 = vsel %vm15326_vm11, %v4672_v0, %v4677_v63  ;;  %v4709_v55 = vsel %vm15328_vm12, %v4672_v0, %v4680_v3  ;;  %v8526_v0 = vld [vmem:[%s14913_s4 + $0x14] sm:$0xf] }
0x11a2   :  { %v4739_v53 = vmul.f32 %v4725_v50, %v4706_v32  ;;  %9683 = vrot.lane.b32.xlu0 %v9682_v51, %s15325_s22  ;;  %v9712_v50 = vpack.i.bf16 %v13142_v42, %v13201_v29  ;;  %v9742_v7 = vpack.i.bf16 %v4973_v6, %v13145_v52  ;;  %v9747_v39 = vpack.i.bf16 %v4974_v30, %v13142_v42 }
0x11a3   :  { %v4691_v47 = vpop.permute.xlu0 %4690  ;;  %v4727_v62 = vpop.permute.xlu1 %4726 }
0x11a4   :  { %v9687_v22 = vpack.i.bf16 %v4740_v13, %v4739_v53  ;;  %v4694_v1 = vsel %vm15327_vm7, %v4691_v47, %v4693_v56  ;;  %v4741_v27 = vmul.f32 %v4727_v62, %v4708_v46  ;;  %v4742_v54 = vmul.f32 %v4727_v62, %v4709_v55  ;;  %v8521_v56 = vld [vmem:[%s14911_s28 + $0x58] sm:$0xff]  ;;  %v8502_v55 = vld [vmem:[%s14681_s8 + $0x10] sm:$0xf] }
0x11a5   :  { %v4710_v4 = vsel %vm15330_vm10, %v4684_v24, %v4691_v47  ;;  %v4711_v20 = vsel %vm15331_vm13, %v4687_v36, %v4694_v1  ;;  %v8522_v24 = vld [vmem:[%s14910_s26 + $0x50] sm:$0xff]  ;;  %vm5044_vm13 = vcmask 56320  }
0x11a6   :  { %9688 = vrot.lane.b32.xlu1 %v9687_v22, %s15325_s22  ;;  %v9692_v28 = vpack.i.bf16 %v4742_v54, %v4741_v27  ;;  %v8507_v54 = vld [vmem:[%s14682_s9 + $0x40] sm:$0xff] }
0x11a7   :  { %v4729_v57 = vpop.permute.xlu0 %4728  ;;  %v4698_v10 = vpop.permute.xlu1 %4697  ;;  %8827 = vmatprep.mubr.msk.f32.mxu1 %vm15336_vm9, %v8507_v54 }
0x11a8   :  { %v4743_v45 = vmul.f32 %v4729_v57, %v4710_v4  ;;  %v4744_v9 = vmul.f32 %v4729_v57, %v4711_v20  ;;  %9693 = vrot.lane.b32.xlu0 %v9692_v28, %s15325_s22  ;;  %v8512_v57 = vld [vmem:[%s14686_s16 + $0x1] sm:$0x1] }
0x11a9   :  { %vm5003_vm4 = vcmp.ne.f32.partialorder %v8512_v57, 0.0 }
0x11aa   :  { %v9697_v38 = vpack.i.bf16 %v4744_v9, %v4743_v45  ;;  %v4975_v9 = vld [vmem:[%s14686_s16] sm:$0x1] }
0x11ab   :  { %v4700_v61 = vpop.permute.xlu0 %4699  ;;  %v4731_v41 = vpop.permute.xlu1 %4730  ;;  %vm4976_vm1 = vcmp.ne.f32.partialorder %v4975_v9, 0.0 }
0x11ac   :  { %v4701_v14 = vsel %vm15332_vm8, %v4698_v10, %v4700_v61  ;;  %v4745_v58 = vmul.f32 %v4731_v41, %v4698_v10  ;;  %9698 = vrot.lane.b32.xlu1 %v9697_v38, %s15325_s22  ;;  %v8513_v38 = vld [vmem:[%s14686_s16 + $0x2] sm:$0x1]  ;;  %v8514_v61 = vld [vmem:[%s14686_s16 + $0x3] sm:$0x1] }
0x11ad   :  { %v4746_v23 = vmul.f32 %v4731_v41, %v4701_v14  ;;  %vm5029_vm11 = vcmp.ne.f32.partialorder %v8513_v38, 0.0  ;;  %v15337_v41 = vmov 0   ;;  %vm5055_vm7 = vcmp.ne.f32.partialorder %v8514_v61, 0.0 }
0x11ae   :  { %4775 = vrot.lane.b32.xlu0 %v4745_v58, %s15325_s22  ;;  %v5004_v14 = vsel %vm5003_vm4, 1, %v15337_v41 }
0x11b0   :  { %4777 = vrot.lane.b32.xlu1 %v4746_v23, %s15325_s22 }
0x11b2   :  { %4867 = vperm.xlu0 %9310, %v8505_v37   ;;  %v8515_v37 = vld [vmem:[%s14686_s16 + $0x4] sm:$0x1] }
0x11b3   :  { %vm5080_vm12 = vcmp.ne.f32.partialorder %v8515_v37, 0.0 }
0x11b4   :  { %4875 = vperm.xlu1 %9311, %v8506_v44   ;;  %v4977_v44 = vsel %vm4976_vm1, 1, %v15337_v41  ;;  %vm15346_vm1 = vcmask 7168  }
0x11b5   :  { %v4981_v30 = vrot.slane %v4977_v44, %v11796_v18 }
0x11b6   :  { %9703 = vrot.lane.b32.xlu0 %v9702_v11, %s15325_s22 }
0x11b8   :  { %9708 = vrot.lane.b32.xlu1 %v9702_v11, %s9943_s17 }
0x11ba   :  { %9713 = vrot.lane.b32.xlu0 %v9712_v50, %s15325_s22 }
0x11bc   :  { %9718 = vrot.lane.b32.xlu1 %v9712_v50, %s9943_s17  ;;  %s15418_s17 = sld [smem:[#allocation51_spill]] }
0x11be   :  { %9723 = vrot.lane.b32.xlu0 %v9702_v11, %s9944_s14 }
0x11c0   :  { %9728 = vrot.lane.b32.xlu1 %v9712_v50, %s9944_s14  ;;  %s15398_s14 = sld [smem:[#allocation50_spill]] }
0x11c2   :  { %9733 = vrot.lane.b32.xlu0 %v9702_v11, %s15333_s12  ;;  %v5030_v11 = vsel %vm5029_vm11, 1, %v15337_v41 }
0x11c4   :  { %9738 = vrot.lane.b32.xlu1 %v9712_v50, %s15333_s12  ;;  %v5008_v50 = vrot.slane %v5004_v14, %v11796_v18 }
0x11c6   :  { %9743 = vrot.lane.b32.xlu0 %v9742_v7, %s14943_s27  ;;  %vm13289_vm10 = vcmp.eq.s32.totalorder %v5008_v50, 1 }
0x11c8   :  { %9748 = vrot.lane.b32.xlu1 %v9747_v39, %s14943_s27 }
0x11ca   :  { %9753 = vrot.lane.b32.xlu0 %v9742_v7, %s9945_s18 }
0x11cc   :  { %9758 = vrot.lane.b32.xlu1 %v9747_v39, %s9945_s18  ;;  %s14880_s18 = smov 124  }
0x11ce   :  { %9763 = vrot.lane.b32.xlu0 %v9742_v7, %s15318_s30 }
0x11d0   :  { %9768 = vrot.lane.b32.xlu1 %v9747_v39, %s15318_s30 }
0x11d2   :  { %9773 = vrot.lane.b32.xlu0 %v9742_v7, %s15298_s11 }
0x11d4   :  { %9778 = vrot.lane.b32.xlu1 %v9747_v39, %s15298_s11  ;;  %v5034_v39 = vrot.slane %v5030_v11, %v11796_v18 }
0x11d6   :  { %5291 = vperm.xlu0 %9310, %v8520_v21   ;;  %v5056_v21 = vsel %vm5055_vm7, 1, %v15337_v41 }
0x11d8   :  { %5296 = vperm.xlu1 %9311, %v8521_v56  }
0x11da   :  { %5306 = vperm.xlu0 %9310, %v8522_v24  }
0x11dc   :  { %5311 = vperm.xlu1 %9311, %v8523_v40  }
0x11de   :  { %5397 = vperm.xlu0 %9310, %v8526_v0  }
0x11e0   :  { %5405 = vperm.xlu1 %9311, %v8527_v34   ;;  %v8516_v34 = vld [vmem:[%s14686_s16 + $0x5] sm:$0x1] }
0x11e1   :  { %vm5093_vm8 = vcmp.ne.f32.partialorder %v8516_v34, 0.0 }
0x1214   :  { %v9684_v12 = vpop.permute.xlu0 %9683 }
0x1215   :  { %v9686_v35 = vunpack.i.h.bf16 %v9684_v12  ;;  %v9685_v26 = vunpack.i.l.bf16 %v9684_v12  ;;  %v5206_v12 = vld [vmem:[%s15356_s15 + $0x58] sm:$0xff] }
0x1217   :  { %v4779_v2 = vsel %vm4329_vm0, %v9685_v26, %v9686_v35 }
0x1218   :  { %v9689_v25 = vpop.permute.xlu1 %9688 }
0x1219   :  { %v9691_v15 = vunpack.i.h.bf16 %v9689_v25  ;;  %v9690_v63 = vunpack.i.l.bf16 %v9689_v25  ;;  %v5060_v25 = vrot.slane %v5056_v21, %v11796_v18 }
0x121a   :  { %v9694_v51 = vpop.permute.xlu0 %9693 }
0x121b   :  { %v4780_v33 = vsel %vm4329_vm0, %v9690_v63, %v9691_v15  ;;  %v9696_v3 = vunpack.i.h.bf16 %v9694_v51  ;;  %v9695_v32 = vunpack.i.l.bf16 %v9694_v51  ;;  %vm13315_vm4 = vcmp.eq.s32.totalorder %v5060_v25, 1 }
0x121c   :  { %v9100_v19 = vpack.c.bf16 %v4780_v33, %v4779_v2  ;;  %v8517_v2 = vld [vmem:[%s14686_s16 + $0x6] sm:$0x1]  ;;  %v5081_v33 = vsel %vm5080_vm12, 1, %v15337_v41 }
0x121d   :  { %v4781_v46 = vsel %vm4329_vm0, %v9695_v32, %v9696_v3  ;;  %vm5120_vm9 = vcmp.ne.f32.partialorder %v8517_v2, 0.0 }
0x121e   :  { %v9699_v31 = vpop.permute.xlu1 %9698  ;;  %9101 = vmatpush3.bf16.msra.mxu0 %v9100_v19 }
0x121f   :  { %v9701_v53 = vunpack.i.h.bf16 %v9699_v31  ;;  %v9700_v13 = vunpack.i.l.bf16 %v9699_v31  ;;  %9102 = vmatprep.subr.bf16.mxu0 %v9939_v49 }
0x1220   :  { %v4776_v1 = vpop.permute.xlu0 %4775 }
0x1221   :  { %v4782_v47 = vsel %vm4329_vm0, %v9700_v13, %v9701_v53  ;;  %v8518_v53 = vld [vmem:[%s14686_s16 + $0x7] sm:$0x1] }
0x1222   :  { %v9103_v62 = vpack.c.bf16 %v4782_v47, %v4781_v46  ;;  %v4778_v22 = vpop.permute.xlu1 %4777  ;;  %v5094_v47 = vsel %vm5093_vm8, 1, %v15337_v41  ;;  %vm5146_vm11 = vcmp.ne.f32.partialorder %v8518_v53, 0.0  ;;  %v5195_v53 = vld [vmem:[%s15356_s15] sm:$0xff] }
0x1223   :  { %v4783_v27 = vsel %vm4329_vm0, %v4776_v1, %v4778_v22  ;;  %v5147_v37 = vsel %vm5146_vm11, 1, %v15337_v41 }
0x1224   :  { %9104 = vmatpush3.bf16.msra.mxu0 %v9103_v62  ;;  %v8519_v62 = vld [vmem:[%s14686_s16 + $0x8] sm:$0x1] }
0x1225   :  { %8820 = vmatprep.subr.mxu0 %v13201_v29  ;;  %vm5171_vm7 = vcmp.ne.f32.partialorder %v8519_v62, 0.0 }
0x1228   :  { %8821 = vmatpush3.msk.msra.mxu0 %vm15334_vm6, %v4783_v27  ;;  %vm13300_vm6 = vcmp.eq.s32.totalorder %v4981_v30, 1 }
0x1229   :  { %8823 = vmatmul.mubr.msk.f32.vlgmr.msra.gmra.mrb[32].mxu0 %vm15335_vm5, %v8502_v55  ;;  %9137 = vmatprep.subr.bf16.mxu0 %v9939_v49  ;;  %vm13305_vm5 = vcmp.eq.s32.totalorder %v5034_v39, 1  ;;  %v5085_v55 = vrot.slane %v5081_v33, %v11796_v18 }
0x122a   :  { %8869 = vmatprep.mubr.msk.f32.mxu0 %vm14875_vm2, %v13201_v29  ;;  %vm15359_vm2 = vcmask 1043456  }
0x122b   :  { %vm13337_vm12 = vcmp.eq.s32.totalorder %v5085_v55, 1 }
0x1231   :  { %v13256_v36 = vpop.permute.xlu0 %4867 }
0x1233   :  { %v13263_v10 = vpop.permute.xlu1 %4875 }
0x1235   :  { %v9704_v4 = vpop.permute.xlu0 %9703 }
0x1236   :  { %v9706_v56 = vunpack.i.h.bf16 %v9704_v4  ;;  %v9705_v24 = vunpack.i.l.bf16 %v9704_v4 }
0x1237   :  { %v9709_v58 = vpop.permute.xlu1 %9708 }
0x1238   :  { %v9711_v6 = vunpack.i.h.bf16 %v9709_v58  ;;  %v9710_v7 = vunpack.i.l.bf16 %v9709_v58  ;;  %v4995_v19 = vsel %vm4329_vm0, %v9705_v24, %v9706_v56  ;;  %v5151_v24 = vrot.slane %v5147_v37, %v11796_v18  ;;  %v5199_v37 = vld [vmem:[%s15356_s15 + $0x20] sm:$0xff] }
0x1239   :  { %v13258_v28 = vpop.permute.xlu0 %9713  ;;  %v4999_v22 = vsel %vm13300_vm6, %v4995_v19, -3e+38 }
0x123a   :  { %v5019_v26 = vsel %vm5018_vm15, %v9710_v7, %v9711_v6  ;;  %v5172_v6 = vsel %vm5171_vm7, 1, %v15337_v41  ;;  %vm14877_vm7 = vcmask 973824  }
0x123b   :  { %v5023_v31 = vsel %vm13289_vm10, %v5019_v26, -3e+38  ;;  %v13329_v4 = vpop.permute.xlu1 %9718 }
0x123c   :  { %v5025_v54 = vmax.f32 %v4999_v22, %v5023_v31 }
0x123d   :  { %v9724_v20 = vpop.permute.xlu0 %9723 }
0x123e   :  { %v9726_v40 = vunpack.i.h.bf16 %v9724_v20  ;;  %v9725_v0 = vunpack.i.l.bf16 %v9724_v20  ;;  %v5121_v20 = vsel %vm5120_vm9, 1, %v15337_v41  ;;  %vm5135_vm9 = vcmask 990208  }
0x123f   :  { %v5125_v58 = vrot.slane %v5121_v20, %v11796_v18  ;;  %v5087_v41 = vsel %vm13337_vm12, %v13145_v52, -3e+38 }
0x1240   :  { %v5045_v32 = vsel %vm5044_vm13, %v9725_v0, %v9726_v40  ;;  %v5176_v0 = vrot.slane %v5172_v6, %v11796_v18 }
0x1241   :  { %v9734_v45 = vpop.permute.xlu0 %9733  ;;  %v5049_v1 = vsel %vm13305_vm5, %v5045_v32, -3e+38  ;;  %vm13352_vm11 = vcmp.eq.s32.totalorder %v5125_v58, 1 }
0x1242   :  { %v9736_v15 = vunpack.i.h.bf16 %v9734_v45  ;;  %v9735_v63 = vunpack.i.l.bf16 %v9734_v45  ;;  %v5098_v45 = vrot.slane %v5094_v47, %v11796_v18  ;;  %v5051_v9 = vmax.f32 %v5025_v54, %v5049_v1  ;;  %v5198_v54 = vld [vmem:[%s15356_s15 + $0x18] sm:$0xff] }
0x1243   :  { %vm13377_vm14 = vcmp.eq.s32.totalorder %v5176_v0, 1 }
0x1244   :  { %v5070_v46 = vsel %vm15346_vm1, %v9735_v63, %v9736_v15  ;;  %vm13344_vm8 = vcmp.eq.s32.totalorder %v5098_v45, 1  ;;  %vm15351_vm1 = vcmask 1039360  }
0x1245   :  { %v13275_v23 = vpop.permute.xlu0 %9743  ;;  %v5074_v57 = vsel %vm13315_vm4, %v5070_v46, -3e+38  ;;  %v5196_v46 = vld [vmem:[%s15356_s15 + $0x8] sm:$0xff] }
0x1246   :  { %v9746_v38 = vunpack.i.h.bf16 %v13275_v23  ;;  %v9745_v61 = vunpack.i.l.bf16 %v13275_v23  ;;  %v5076_v44 = vmax.f32 %v5051_v9, %v5074_v57  ;;  %v13348_v23 = vpop.permute.xlu1 %9728  ;;  %v9105_v57 = vpack.c.bf16 %v5196_v46, %v5195_v53  ;;  %v5205_v53 = vld [vmem:[%s15356_s15 + $0x50] sm:$0xff] }
0x1247   :  { %v9125_v3 = vpack.c.bf16 %v5206_v12, %v5205_v53  ;;  %v13498_v53 = vld [vmem:[%s15368_s3] sm:$0xff] }
0x1248   :  { %v5110_v39 = vsel %vm15351_vm1, %v9745_v61, %v9746_v38  ;;  %v5089_v25 = vmax.f32 %v5076_v44, %v5087_v41  ;;  %vm13363_vm1 = vcmp.eq.s32.totalorder %v5151_v24, 1  ;;  %v5200_v44 = vld [vmem:[%s15356_s15 + $0x28] sm:$0xff]  ;;  %v9731_v24 = vunpack.i.h.bf16 %v13348_v23 }
0x1249   :  { %v9754_v35 = vpop.permute.xlu0 %9753  ;;  %v5114_v15 = vsel %vm13344_vm8, %v5110_v39, -3e+38  ;;  %v9113_v6 = vpack.c.bf16 %v5200_v44, %v5199_v37  ;;  %v5202_v39 = vld [vmem:[%s15356_s15 + $0x38] sm:$0xff]  ;;  %v9730_v41 = vunpack.i.l.bf16 %v13348_v23 }
0x124a   :  { %v9756_v11 = vunpack.i.h.bf16 %v9754_v35  ;;  %v9755_v50 = vunpack.i.l.bf16 %v9754_v35  ;;  %v9739_v31 = vpop.permute.xlu1 %9738  ;;  %v5116_v47 = vmax.f32 %v5089_v25, %v5114_v15  ;;  %v5203_v25 = vld [vmem:[%s15356_s15 + $0x40] sm:$0xff] }
0x124b   :  { %v5046_v23 = vsel %vm5044_vm13, %v9730_v41, %v9731_v24  ;;  %vm15367_vm13 = vmmov 0  }
0x124c   :  { %v5136_v34 = vsel %vm5135_vm9, %v9755_v50, %v9756_v11  ;;  %v9721_v11 = vunpack.i.h.bf16 %v13329_v4  ;;  %v9720_v50 = vunpack.i.l.bf16 %v13329_v4 }
0x124d   :  { %v9764_v27 = vpop.permute.xlu0 %9763  ;;  %v5140_v18 = vsel %vm13352_vm11, %v5136_v34, -3e+38  ;;  %v9741_v34 = vunpack.i.h.bf16 %v9739_v31 }
0x124e   :  { %v9766_v21 = vunpack.i.h.bf16 %v9764_v27  ;;  %v9765_v56 = vunpack.i.l.bf16 %v9764_v27  ;;  %v5142_v55 = vmax.f32 %v5116_v47, %v5140_v18  ;;  %v5197_v27 = vld [vmem:[%s15356_s15 + $0x10] sm:$0xff]  ;;  %v9749_v61 = vpop.permute.xlu1 %9748  ;;  %v5020_v4 = vsel %vm5018_vm15, %v9720_v50, %v9721_v11 }
0x124f   :  { %v9109_v38 = vpack.c.bf16 %v5198_v54, %v5197_v27  ;;  %v5050_v18 = vsel %vm13305_vm5, %v5046_v23, -3e+38  ;;  %v9751_v51 = vunpack.i.h.bf16 %v9749_v61  ;;  %vm15364_vm15 = vcmask 982016  }
0x1250   :  { %v5161_v33 = vsel %vm14878_vm3, %v9765_v56, %v9766_v21  ;;  %vm15361_vm3 = vcmask 31744   ;;  %v9716_v21 = vunpack.i.h.bf16 %v13258_v28  ;;  %v9715_v56 = vunpack.i.l.bf16 %v13258_v28  ;;  %v5204_v28 = vld [vmem:[%s15356_s15 + $0x48] sm:$0xff] }
0x1251   :  { %v9774_v30 = vpop.permute.xlu0 %9773  ;;  %v5165_v1 = vsel %vm13363_vm1, %v5161_v33, -3e+38 }
0x1252   :  { %v9776_v35 = vunpack.i.h.bf16 %v9774_v30  ;;  %v9775_v26 = vunpack.i.l.bf16 %v9774_v30  ;;  %v5167_v9 = vmax.f32 %v5142_v55, %v5165_v1  ;;  %v5201_v30 = vld [vmem:[%s15356_s15 + $0x30] sm:$0xff]  ;;  %v9759_v0 = vpop.permute.xlu1 %9758  ;;  %v4996_v15 = vsel %vm4329_vm0, %v9715_v56, %v9716_v21  ;;  %v5207_v1 = vld [vmem:[%s15356_s15 + $0x60] sm:$0xff]  ;;  %v5208_v55 = vld [vmem:[%s15356_s15 + $0x68] sm:$0xff] }
0x1253   :  { %v9761_v54 = vunpack.i.h.bf16 %v9759_v0 }
0x12fc   :  { %v4859_v63 = vpop.f32.mrb[32].mxu0 }
0x12fd   :  { %v4870_v19 = vmul.f32 %v13256_v36, %v4859_v63  ;;  %v8824_v32 = vpop.f32.mrb[33].mxu0  ;;  %v5187_v36 = vsel %vm14877_vm7, %v9775_v26, %v9776_v35  ;;  %vm15360_vm7 = vmmov %vm15359_vm2  ;;  %v9740_v35 = vunpack.i.l.bf16 %v9739_v31  ;;  %v9117_v26 = vpack.c.bf16 %v5202_v39, %v5201_v30  ;;  %v9769_v31 = vpop.permute.xlu1 %9768 }
0x12fe   :  { %v5191_v45 = vsel %vm13377_vm14, %v5187_v36, -3e+38  ;;  %v5024_v63 = vsel %vm13289_vm10, %v5020_v4, -3e+38  ;;  %v5000_v32 = vsel %vm13300_vm6, %v4996_v15, -3e+38 }
0x12ff   :  { %v4878_v22 = vadd.f32 %v13263_v10, %v4870_v19  ;;  %v8508_v10 = vld [vmem:[%s14682_s9 + $0x48] sm:$0xff]  ;;  %v5193_v58 = vmax.f32 %v5167_v9, %v5191_v45  ;;  %v9121_v19 = vpack.c.bf16 %v5204_v28, %v5203_v25  ;;  %v5026_v46 = vmax.f32 %v5000_v32, %v5024_v63  ;;  %v13468_v4 = vld [vmem:[#allocation2] sm:$0xf] }
0x1300   :  { %v9771_v45 = vunpack.i.h.bf16 %v9769_v31  ;;  %v9129_v9 = vpack.c.bf16 %v5208_v55, %v5207_v1  ;;  %vm15365_vm10 = vcmask 973824   ;;  %v5416_v40 = vrot.slane %v13468_v4, 4 }
0x1301   :  { %v4879_v20 = vmax.f32 %v4878_v22, 0.0  ;;  %v5052_v36 = vmax.f32 %v5026_v46, %v5050_v18  ;;  %v9750_v22 = vunpack.i.l.bf16 %v9749_v61  ;;  %v5209_v61 = vld [vmem:[%s15356_s15 + $0x70] sm:$0xff]  ;;  %vm5410_vm6 = vcmask 257024  }
0x1302   :  { %5418 = vrot.lane.b32.xlu0 %v5416_v40, %s14943_s27  ;;  %v8524_v18 = vld [vmem:[%s14678_s7 + $0x14] sm:$0xf] }
0x1303   :  { %8825 = vmatprep.subr.msk.mxu1 %vm15359_vm2, %v4879_v20  ;;  %vm15362_vm2 = vcmask 7168  }
0x1304   :  { %8826 = vmatpush3.msk.msra.mxu1 %vm15360_vm7, %v4879_v20  ;;  %v5071_v33 = vsel %vm15362_vm2, %v9740_v35, %v9741_v34  ;;  %v9760_v20 = vunpack.i.l.bf16 %v9759_v0  ;;  %v5292_v34 = vpop.permute.xlu0 %5291 }
0x1305   :  { %8828 = vmatmul.mubr.msk.f32.vlgmr.msra.gmra.mrb[32].mxu1 %vm15361_vm3, %v8508_v10  ;;  %9106 = vmatprep.subr.bf16.mxu1 %v9105_v57  ;;  %v5075_v47 = vsel %vm13315_vm4, %v5071_v33, -3e+38  ;;  %vm15363_vm3 = vcmask 1039360   ;;  %v9770_v10 = vunpack.i.l.bf16 %v9769_v31  ;;  %v13491_v31 = vld [vmem:[%s15368_s3 + $0x8] sm:$0xff]  ;;  %vm15370_vm4 = vmmov %vm15360_vm7 }
0x1306   :  { %9108 = vmatpush3.bf16.msra.mxu1 %v9105_v57  ;;  %8862 = vmatprep.mubr.f32.mxu1 %v5193_v58  ;;  %v5077_v27 = vmax.f32 %v5052_v36, %v5075_v47  ;;  %v9779_v57 = vpop.permute.xlu1 %9778  ;;  %v5111_v13 = vsel %vm15363_vm3, %v9750_v22, %v9751_v51  ;;  %v5210_v58 = vld [vmem:[%s15356_s15 + $0x78] sm:$0xff]  ;;  %v5137_v44 = vsel %vm5135_vm9, %v9760_v20, %v9761_v54  ;;  %s14879_s15 = smov 122   ;;  %v5465_v20 = vld [vmem:[%s15368_s3 + $0x20] sm:$0xf]  ;;  %vm15369_vm5 = vmmov %vm15363_vm3  ;;  %vm15372_vm9 = vcmask 1031168  }
0x1307   :  { %9110 = vmatprep.subr.bf16.mxu1 %v9109_v38  ;;  %v9781_v11 = vunpack.i.h.bf16 %v9779_v57  ;;  %v9780_v50 = vunpack.i.l.bf16 %v9779_v57  ;;  %v5162_v14 = vsel %vm15364_vm15, %v9770_v10, %v9771_v45  ;;  %v5141_v30 = vsel %vm13352_vm11, %v5137_v44, -3e+38  ;;  %5425 = vrot.lane.b32.xlu0 %v13468_v4, %s14940_s25  ;;  %v13521_v54 = vld [vmem:[%s15368_s3 + $0x18] sm:$0xff]  ;;  %vm15373_vm11 = vmmov %vm15370_vm4 }
0x1308   :  { %v5166_v56 = vsel %vm13363_vm1, %v5162_v14, -3e+38  ;;  %v5307_v15 = vpop.permute.xlu0 %5306  ;;  %5473 = vrot.lane.b32.xlu1 %v13491_v31, %s14882_s2  ;;  %vm15374_vm7 = vmmov %vm15370_vm4  ;;  %vm5516_vm3 = vcmask 39936  }
0x1309   :  { %v5188_v21 = vsel %vm15365_vm10, %v9780_v50, %v9781_v11  ;;  %vm15375_vm1 = vmmov %vm15370_vm4  ;;  %vm15379_vm10 = vcmask 293888  }
0x130a   :  { %9112 = vmatpush3.bf16.msra.mxu1 %v9109_v38  ;;  %v5088_v38 = vsel %vm13337_vm12, %v13142_v42, -3e+38  ;;  %v9133_v42 = vpack.c.bf16 %v5210_v58, %v5209_v61  ;;  %v5192_v7 = vsel %vm13377_vm14, %v5188_v21, -3e+38  ;;  %v5297_v2 = vpop.permute.xlu1 %5296  ;;  %vm15366_vm14 = vcmask 130048   ;;  %vm15371_vm12 = vmmov %vm15370_vm4 }
0x130b   :  { %9114 = vmatprep.subr.bf16.mxu1 %v9113_v6  ;;  %v5090_v37 = vmax.f32 %v5077_v27, %v5088_v38  ;;  %5432 = vrot.lane.b32.xlu0 %v5416_v40, %s14880_s18  ;;  %v13510_v27 = vld [vmem:[%s15368_s3 + $0x10] sm:$0xff]  ;;  %vm15376_vm2 = vmmov %vm15375_vm1 }
0x130c   :  { %v5398_v12 = vpop.permute.xlu0 %5397  ;;  %vm15378_vm15 = vmmov %vm15375_vm1 }
0x130e   :  { %9116 = vmatpush3.bf16.msra.mxu1 %v9113_v6  ;;  %v5115_v6 = vsel %vm13344_vm8, %v5111_v13, -3e+38  ;;  %v5312_v25 = vpop.permute.xlu1 %5311  ;;  %vm5436_vm8 = vcmask 1014784  }
0x130f   :  { %9118 = vmatprep.subr.bf16.mxu1 %v9117_v26  ;;  %v5117_v39 = vmax.f32 %v5090_v37, %v5115_v6  ;;  %5471 = vrot.lane.b32.xlu0 %v13498_v53, %s14882_s2 }
0x1311   :  { %v5143_v24 = vmax.f32 %v5117_v39, %v5141_v30 }
0x1312   :  { %9120 = vmatpush3.bf16.msra.mxu1 %v9117_v26  ;;  %v5406_v51 = vpop.permute.xlu1 %5405 }
0x1313   :  { %9122 = vmatprep.subr.bf16.mxu1 %v9121_v19  ;;  %v5168_v41 = vmax.f32 %v5143_v24, %v5166_v56 }
0x1315   :  { %v5194_v0 = vmax.f32 %v5168_v41, %v5192_v7 }
0x1316   :  { %9124 = vmatpush3.bf16.msra.mxu1 %v9121_v19 }
0x1317   :  { %9126 = vmatprep.subr.bf16.mxu1 %v9125_v3 }
0x131a   :  { %9128 = vmatpush3.bf16.msra.mxu1 %v9125_v3 }
0x131b   :  { %9130 = vmatprep.subr.bf16.mxu1 %v9129_v9 }
0x131e   :  { %9132 = vmatpush3.bf16.msra.mxu1 %v9129_v9 }
0x131f   :  { %9134 = vmatprep.subr.bf16.mxu1 %v9133_v42 }
0x1322   :  { %9136 = vmatpush3.bf16.msra.mxu1 %v9133_v42 }
0x1325   :  { %8863 = vmatmul.mubr.f32.vlgmr.msra.gmra.mrb[34].mxu1 %v5194_v0 }
0x1374   :  { %v5419_v57 = vpop.permute.xlu0 %5418 }
0x1379   :  { %v5426_v13 = vpop.permute.xlu0 %5425 }
0x137a   :  { %v5474_v10 = vpop.permute.xlu1 %5473 }
0x137d   :  { %v5433_v45 = vpop.permute.xlu0 %5432 }
0x1381   :  { %v5472_v9 = vpop.permute.xlu0 %5471 }
0x13f8   :  { %v13474_v35 = vpop.f32.mrb[34].mxu1 }
0x13f9   :  { %v5300_v62 = vmul.f32 %v13474_v35, %v5297_v2  ;;  %v13477_v26 = vpop.f32.mrb[35].mxu1 }
0x13fa   :  { %v5299_v28 = vmul.f32 %v5292_v34, %v13477_v26 }
0x13fb   :  { %v5315_v23 = vadd.f32 %v5312_v25, %v5300_v62 }
0x13fc   :  { %v5314_v63 = vadd.f32 %v5307_v15, %v5299_v28 }
0x13fd   :  { %v5317_v33 = vmax.f32 %v5315_v23, 0.0 }
0x13fe   :  { %v5316_v19 = vmax.f32 %v5314_v63, 0.0 }
0x1400   :  { %v9138_v32 = vpack.c.bf16 %v5317_v33, %v5316_v19 }
0x1402   :  { %9139 = vmatpush3.bf16.msra.mxu0 %v9138_v32  ;;  %v8531_v32 = vld [vmem:[%s14679_s5 + $0x14] sm:$0xf] }
0x1403   :  { %9140 = vmatprep.subr.bf16.mxu0 %v9939_v49 }
0x1405   :  { %8870 = vmatmul.mubr.msk.f32.vlgmr.msra.gmra.mrb[34].mxu0 %vm15366_vm14, %v8524_v18  ;;  %v8532_v18 = vld [vmem:[%s14680_s6 + $0x14] sm:$0xf]  ;;  %vm15380_vm14 = vcmask 31744  }
0x1406   :  { %8882 = vmatprep.mubr.msk.f32.mxu0 %vm15367_vm13, %v13201_v29 }
0x14d8   :  { %v5389_v46 = vpop.f32.mrb[34].mxu0 }
0x14d9   :  { %v5400_v47 = vmul.f32 %v5398_v12, %v5389_v46  ;;  %v8871_v36 = vpop.f32.mrb[35].mxu0  ;;  %v8538_v12 = vld [vmem:[%s14911_s28 + $0x60] sm:$0xff]  ;;  %v8539_v46 = vld [vmem:[%s14911_s28 + $0x68] sm:$0xff] }
0x14da   :  { %v8541_v36 = vld [vmem:[%s14910_s26 + $0x68] sm:$0xff] }
0x14db   :  { %v5408_v22 = vadd.f32 %v5406_v51, %v5400_v47  ;;  %v8540_v47 = vld [vmem:[%s14910_s26 + $0x60] sm:$0xff]  ;;  %v8544_v51 = vld [vmem:[%s14913_s4 + $0x18] sm:$0xf] }
0x14dd   :  { %v5409_v3 = vmax.f32 %v5408_v22, 0.0  ;;  %v8545_v22 = vld [vmem:[%s14912_s23 + $0x18] sm:$0xf] }
0x14df   :  { %5411 = vst.msk [vmem:[#allocation2 + $0x8] sm:$0xf] %vm5410_vm6, %v5409_v3 }
0x14e6   :  { %v5413_v1 = vld [vmem:[#allocation2 + $0x8] sm:$0xf] }
0x14e7   :  { %5440 = vrot.lane.b32.xlu0 %v5413_v1, %s14882_s2  ;;  %5427 = vrot.lane.b32.xlu1 %v5413_v1, %s14940_s25  ;;  %v5417_v55 = vrot.slane %v5413_v1, 4 }
0x14eb   :  { %5446 = vrot.lane.b32.xlu0 %v5413_v1, %s15318_s30  ;;  %5420 = vrot.lane.b32.xlu1 %v5417_v55, %s14943_s27 }
0x14ef   :  { %5475 = vrot.lane.b32.xlu0 %v13510_v27, %s14882_s2  ;;  %5434 = vrot.lane.b32.xlu1 %v5417_v55, %s14880_s18  ;;  %s15377_s18 = smov 123  }
0x14f3   :  { %5452 = vrot.lane.b32.xlu0 %v5413_v1, %s15299_s21  ;;  %5443 = vrot.lane.b32.xlu1 %v5417_v55, %s14879_s15 }
0x14f7   :  { %5449 = vrot.lane.b32.xlu1 %v5417_v55, %s15298_s11 }
0x14fb   :  { %5477 = vrot.lane.b32.xlu1 %v13521_v54, %s14882_s2 }
0x14ff   :  { %5479 = vrot.lane.b32.xlu1 %v5465_v20, %s14882_s2  ;;  %s15386_s2 = smov 122  }
0x1559   :  { %v5428_v38 = vpop.permute.xlu1 %5427  ;;  %v5441_v44 = vpop.permute.xlu0 %5440 }
0x155a   :  { %v5429_v42 = vsel %vm15372_vm9, %v5426_v13, %v5428_v38  ;;  %vm15385_vm9 = vcmask 130048  }
0x155d   :  { %v5421_v61 = vpop.permute.xlu1 %5420  ;;  %v5447_v41 = vpop.permute.xlu0 %5446 }
0x155e   :  { %v5422_v58 = vsel %vm15369_vm5, %v5419_v57, %v5421_v61  ;;  %v5456_v37 = vsel %vm15370_vm4, %v5413_v1, %v5421_v61  ;;  %vm15381_vm5 = vmmov %vm15375_vm1 }
0x155f   :  { %v5455_v11 = vsel %vm15371_vm12, %v13468_v4, %v5422_v58  ;;  %v5487_v50 = vmul.f32 %v5472_v9, %v5456_v37  ;;  %vm15382_vm4 = vmmov %vm15375_vm1 }
0x1560   :  { %v5486_v6 = vmul.f32 %v5472_v9, %v5455_v11  ;;  %v8533_v11 = vld [vmem:[%s14682_s9 + $0x50] sm:$0xff]  ;;  %vm15383_vm12 = vmmov %vm15380_vm14 }
0x1561   :  { %v5435_v14 = vpop.permute.xlu1 %5434  ;;  %v5476_v2 = vpop.permute.xlu0 %5475 }
0x1562   :  { %v9782_v30 = vpack.i.bf16 %v5487_v50, %v5486_v6  ;;  %v5437_v39 = vsel %vm5436_vm8, %v5433_v45, %v5435_v14  ;;  %v5458_v21 = vsel %vm15373_vm11, %v5428_v38, %v5435_v14  ;;  %vm15388_vm11 = vmmov %vm15375_vm1 }
0x1563   :  { %v5457_v56 = vsel %vm15374_vm7, %v5429_v42, %v5437_v39  ;;  %v5489_v24 = vmul.f32 %v5474_v10, %v5458_v21  ;;  %vm15389_vm7 = vmmov %vm15375_vm1 }
0x1564   :  { %v5488_v7 = vmul.f32 %v5474_v10, %v5457_v56  ;;  %9783 = vrot.lane.b32.xlu0 %v9782_v30, %s14884_s19  ;;  %v8534_v56 = vld [vmem:[%s14682_s9 + $0x58] sm:$0xff] }
0x1565   :  { %v5444_v0 = vpop.permute.xlu1 %5443  ;;  %v5453_v63 = vpop.permute.xlu0 %5452 }
0x1566   :  { %v9787_v4 = vpack.i.bf16 %v5489_v24, %v5488_v7  ;;  %v5459_v34 = vsel %vm15375_vm1, %v5441_v44, %v5444_v0  ;;  %v5827_v24 = vld [vmem:[#allocation2] sm:$0xf]  ;;  %vm15390_vm1 = vcmask 1031168  }
0x1567   :  { %v5490_v28 = vmul.f32 %v5476_v2, %v5459_v34  ;;  %v5831_v7 = vrot.slane %v5827_v24, 4 }
0x1568   :  { %9788 = vrot.lane.b32.xlu1 %v9787_v4, %s14884_s19 }
0x1569   :  { %v5450_v40 = vpop.permute.xlu1 %5449 }
0x156a   :  { %v5460_v62 = vsel %vm15376_vm2, %v5447_v41, %v5450_v40 }
0x156d   :  { %v5478_v25 = vpop.permute.xlu1 %5477 }
0x156e   :  { %v5491_v15 = vmul.f32 %v5478_v25, %v5460_v62 }
0x1570   :  { %v9792_v23 = vpack.i.bf16 %v5491_v15, %v5490_v28 }
0x1571   :  { %v5480_v33 = vpop.permute.xlu1 %5479 }
0x1572   :  { %v5492_v19 = vmul.f32 %v5480_v33, %v5453_v63  ;;  %9793 = vrot.lane.b32.xlu0 %v9792_v23, %s14884_s19 }
0x1574   :  { %5514 = vrot.lane.b32.xlu1 %v5492_v19, %s14884_s19  ;;  %s15422_s19 = sld [smem:[#allocation52_spill]] }
0x1576   :  { %5602 = vperm.xlu0 %9310, %v8531_v32  }
0x1578   :  { %5610 = vperm.xlu1 %9311, %v8532_v18  }
0x157a   :  { %5707 = vperm.xlu0 %9310, %v8538_v12  }
0x157c   :  { %5712 = vperm.xlu1 %9311, %v8539_v46  }
0x157e   :  { %5722 = vperm.xlu0 %9310, %v8540_v47  }
0x1580   :  { %5727 = vperm.xlu1 %9311, %v8541_v36  }
0x1582   :  { %5813 = vperm.xlu0 %9310, %v8544_v51  }
0x1584   :  { %5821 = vperm.xlu1 %9311, %v8545_v22  }
0x1586   :  { %5833 = vrot.lane.b32.xlu0 %v5831_v7, %s14943_s27 }
0x1588   :  { %5887 = vrot.lane.b32.xlu1 %v13491_v31, %s15377_s18  ;;  %v8528_v31 = vld [vmem:[%s14681_s8 + $0x14] sm:$0xf] }
0x158a   :  { %5840 = vrot.lane.b32.xlu0 %v5827_v24, %s14940_s25 }
0x158e   :  { %5847 = vrot.lane.b32.xlu0 %v5831_v7, %s15384_s24 }
0x1592   :  { %5885 = vrot.lane.b32.xlu0 %v13498_v53, %s15377_s18 }
0x15d6   :  { %v9784_v3 = vpop.permute.xlu0 %9783 }
0x15d7   :  { %v9786_v1 = vunpack.i.h.bf16 %v9784_v3  ;;  %v9785_v55 = vunpack.i.l.bf16 %v9784_v3 }
0x15d9   :  { %v5517_v45 = vsel %vm5516_vm3, %v9785_v55, %v9786_v1 }
0x15da   :  { %v9789_v20 = vpop.permute.xlu1 %9788 }
0x15db   :  { %v9791_v57 = vunpack.i.h.bf16 %v9789_v20  ;;  %v9790_v13 = vunpack.i.l.bf16 %v9789_v20 }
0x15dd   :  { %v5518_v10 = vsel %vm5516_vm3, %v9790_v13, %v9791_v57 }
0x15de   :  { %v9141_v9 = vpack.c.bf16 %v5518_v10, %v5517_v45 }
0x15e0   :  { %9142 = vmatpush3.bf16.msra.mxu0 %v9141_v9 }
0x15e1   :  { %9143 = vmatprep.subr.bf16.mxu0 %v9939_v49 }
0x15e4   :  { %v9794_v38 = vpop.permute.xlu0 %9793 }
0x15e5   :  { %v9796_v61 = vunpack.i.h.bf16 %v9794_v38  ;;  %v9795_v58 = vunpack.i.l.bf16 %v9794_v38 }
0x15e6   :  { %v5515_v44 = vpop.permute.xlu1 %5514 }
0x15e7   :  { %v9144_v37 = vpack.c.bf16 %v9796_v61, %v9795_v58 }
0x15e9   :  { %9145 = vmatpush3.bf16.msra.mxu0 %v9144_v37 }
0x15ea   :  { %8880 = vmatprep.subr.mxu0 %v13201_v29 }
0x15ed   :  { %8881 = vmatpush3.msk.msra.mxu0 %vm15378_vm15, %v5515_v44  ;;  %vm15391_vm15 = vmmov %vm15376_vm2 }
0x15ee   :  { %8883 = vmatmul.mubr.msk.f32.vlgmr.msra.gmra.mrb[36].mxu0 %vm15379_vm10, %v8528_v31  ;;  %vm15393_vm10 = vmmov %vm15376_vm2 }
0x15ef   :  { %8887 = vmatprep.mubr.msk.f32.mxu0 %vm15380_vm14, %v8533_v11  ;;  %vm15394_vm14 = vmmov %vm15376_vm2 }
0x15f5   :  { %v5603_v50 = vpop.permute.xlu0 %5602 }
0x15f7   :  { %v5611_v30 = vpop.permute.xlu1 %5610 }
0x15f9   :  { %v5708_v0 = vpop.permute.xlu0 %5707 }
0x15fb   :  { %v5713_v41 = vpop.permute.xlu1 %5712 }
0x15fd   :  { %v5723_v15 = vpop.permute.xlu0 %5722 }
0x15ff   :  { %v5728_v25 = vpop.permute.xlu1 %5727 }
0x1603   :  { %v5822_v46 = vpop.permute.xlu1 %5821 }
0x1607   :  { %v5888_v55 = vpop.permute.xlu1 %5887 }
0x16c1   :  { %v5594_v6 = vpop.f32.mrb[36].mxu0 }
0x16c2   :  { %v5605_v14 = vmul.f32 %v5603_v50, %v5594_v6  ;;  %v8884_v42 = vpop.f32.mrb[37].mxu0 }
0x16c4   :  { %v5613_v39 = vadd.f32 %v5611_v30, %v5605_v14 }
0x16c6   :  { %v5614_v21 = vmax.f32 %v5613_v39, 0.0 }
0x16c8   :  { %8885 = vmatprep.subr.msk.mxu0 %vm15381_vm5, %v5614_v21  ;;  %vm15397_vm5 = vmmov %vm15383_vm12 }
0x16c9   :  { %8886 = vmatpush3.msk.msra.mxu0 %vm15382_vm4, %v5614_v21  ;;  %vm15399_vm4 = vmmov %vm15376_vm2 }
0x16ca   :  { %8888 = vmatmul.mubr.msk.f32.vlgmr.msra.gmra.mrb[38].mxu0 %vm15383_vm12, %v8534_v56  ;;  %9146 = vmatprep.subr.bf16.mxu0 %v9939_v49  ;;  %vm15400_vm12 = vmmov %vm15376_vm2 }
0x16cb   :  { %8894 = vmatprep.mubr.msk.f32.mxu0 %vm15367_vm13, %v13201_v29 }
0x179d   :  { %v8889_v4 = vpop.f32.mrb[38].mxu0 }
0x179e   :  { %v13597_v40 = vadd.f32 %v8889_v4, %v13474_v35  ;;  %v5693_v2 = vpop.f32.mrb[39].mxu0  ;;  %v8542_v35 = vld [vmem:[%s14678_s7 + $0x18] sm:$0xf] }
0x179f   :  { %v13600_v34 = vadd.f32 %v5693_v2, %v13477_v26  ;;  %v5814_v26 = vpop.permute.xlu0 %5813 }
0x17a0   :  { %v5716_v62 = vmul.f32 %v5713_v41, %v13597_v40 }
0x17a1   :  { %v5715_v28 = vmul.f32 %v5708_v0, %v13600_v34 }
0x17a2   :  { %v5731_v23 = vadd.f32 %v5728_v25, %v5716_v62 }
0x17a3   :  { %v5730_v63 = vadd.f32 %v5723_v15, %v5715_v28  ;;  %v5834_v3 = vpop.permute.xlu0 %5833  ;;  %v8549_v15 = vld [vmem:[%s14679_s5 + $0x18] sm:$0xf] }
0x17a4   :  { %v5733_v33 = vmax.f32 %v5731_v23, 0.0  ;;  %v8550_v23 = vld [vmem:[%s14680_s6 + $0x18] sm:$0xf] }
0x17a5   :  { %v5732_v53 = vmax.f32 %v5730_v63, 0.0  ;;  %v8558_v63 = vld [vmem:[%s14911_s28 + $0x70] sm:$0xff] }
0x17a7   :  { %v9147_v19 = vpack.c.bf16 %v5733_v33, %v5732_v53  ;;  %v5841_v1 = vpop.permute.xlu0 %5840  ;;  %v8559_v33 = vld [vmem:[%s14911_s28 + $0x78] sm:$0xff]  ;;  %v8560_v53 = vld [vmem:[%s14910_s26 + $0x70] sm:$0xff] }
0x17a9   :  { %9148 = vmatpush3.bf16.msra.mxu0 %v9147_v19  ;;  %v8561_v19 = vld [vmem:[%s14910_s26 + $0x78] sm:$0xff] }
0x17aa   :  { %9149 = vmatprep.subr.bf16.mxu0 %v9939_v49 }
0x17ac   :  { %8895 = vmatmul.mubr.msk.f32.vlgmr.msra.gmra.mrb[40].mxu0 %vm15385_vm9, %v8542_v35  ;;  %v8564_v35 = vld [vmem:[%s14913_s4 + $0x1c] sm:$0xf]  ;;  %vm15401_vm9 = vmmov %vm15397_vm5 }
0x17ad   :  { %8907 = vmatprep.mubr.msk.f32.mxu0 %vm15367_vm13, %v13201_v29  ;;  %v5879_v29 = vld [vmem:[%s15368_s3 + $0x20] sm:$0xf]  ;;  %s15392_s3 = smov 5  }
0x187f   :  { %v5805_v32 = vpop.f32.mrb[40].mxu0 }
0x1880   :  { %v5816_v18 = vmul.f32 %v5814_v26, %v5805_v32  ;;  %v8896_v12 = vpop.f32.mrb[41].mxu0  ;;  %v8565_v26 = vld [vmem:[%s14912_s23 + $0x1c] sm:$0xf]  ;;  %v6398_v32 = vld [vmem:[%s14683_s13 + $0x8] sm:$0xff] }
0x1882   :  { %v5824_v47 = vadd.f32 %v5822_v46, %v5816_v18  ;;  %v13668_v18 = vld [vmem:[#allocation2 + $0x10] sm:$0xf] }
0x1883   :  { %v6360_v12 = vrot.slane %v13668_v18, 4 }
0x1884   :  { %v5825_v36 = vmax.f32 %v5824_v47, 0.0 }
0x1886   :  { %5826 = vst.msk [vmem:[#allocation2 + $0x8] sm:$0xf] %vm5410_vm6, %v5825_v36  ;;  %vm15387_vm6 = vcmask 1039360  }
0x188d   :  { %v5828_v51 = vld [vmem:[#allocation2 + $0x8] sm:$0xf] }
0x188e   :  { %5854 = vrot.lane.b32.xlu0 %v5828_v51, %s15377_s18  ;;  %5842 = vrot.lane.b32.xlu1 %v5828_v51, %s14940_s25  ;;  %v5832_v22 = vrot.slane %v5828_v51, 4 }
0x1892   :  { %5860 = vrot.lane.b32.xlu0 %v5828_v51, %s15318_s30  ;;  %5835 = vrot.lane.b32.xlu1 %v5832_v22, %s14943_s27 }
0x1896   :  { %5889 = vrot.lane.b32.xlu0 %v13510_v27, %s15377_s18  ;;  %5849 = vrot.lane.b32.xlu1 %v5832_v22, %s15384_s24  ;;  %v5848_v27 = vpop.permute.xlu0 %5847 }
0x189a   :  { %5866 = vrot.lane.b32.xlu0 %v5828_v51, %s15299_s21  ;;  %5857 = vrot.lane.b32.xlu1 %v5832_v22, %s15386_s2  ;;  %v5886_v20 = vpop.permute.xlu0 %5885 }
0x189e   :  { %5863 = vrot.lane.b32.xlu1 %v5832_v22, %s15298_s11 }
0x18a2   :  { %5891 = vrot.lane.b32.xlu1 %v13521_v54, %s15377_s18 }
0x18a6   :  { %5893 = vrot.lane.b32.xlu1 %v5879_v29, %s15377_s18 }
0x1900   :  { %v5843_v57 = vpop.permute.xlu1 %5842  ;;  %v5855_v9 = vpop.permute.xlu0 %5854 }
0x1901   :  { %v5844_v37 = vsel %vm15390_vm1, %v5841_v1, %v5843_v57  ;;  %vm15405_vm1 = vmmov %vm15376_vm2 }
0x1904   :  { %v5836_v13 = vpop.permute.xlu1 %5835  ;;  %v5861_v42 = vpop.permute.xlu0 %5860 }
0x1905   :  { %v5837_v45 = vsel %vm15387_vm6, %v5834_v3, %v5836_v13  ;;  %v5870_v10 = vsel %vm15388_vm11, %v5828_v51, %v5836_v13  ;;  %vm6119_vm6 = vcmask 261120   ;;  %vm15402_vm11 = vcmask 130048  }
0x1906   :  { %v5869_v54 = vsel %vm15389_vm7, %v5827_v24, %v5837_v45  ;;  %v5901_v38 = vmul.f32 %v5886_v20, %v5870_v10  ;;  %v13679_v45 = vld [vmem:[#allocation2] sm:$0xff]  ;;  %v8546_v10 = vld [vmem:[%s14681_s8 + $0x18] sm:$0xf]  ;;  %vm15404_vm7 = vmmov %vm15376_vm2 }
0x1907   :  { %v5900_v61 = vmul.f32 %v5886_v20, %v5869_v54  ;;  %v8551_v54 = vld [vmem:[%s14682_s9 + $0x60] sm:$0xff] }
0x1908   :  { %v5850_v58 = vpop.permute.xlu1 %5849  ;;  %v5890_v56 = vpop.permute.xlu0 %5889  ;;  %8912 = vmatprep.mubr.msk.f32.mxu1 %vm15397_vm5, %v8551_v54  ;;  %vm15412_vm5 = vcmask 908288  }
0x1909   :  { %v9797_v31 = vpack.i.bf16 %v5901_v38, %v5900_v61  ;;  %v5851_v44 = vsel %vm5436_vm8, %v5848_v27, %v5850_v58  ;;  %v5872_v11 = vsel %vm15376_vm2, %v5843_v57, %v5850_v58  ;;  %vm15395_vm8 = vmmov %vm15376_vm2  ;;  %vm15406_vm2 = vcmask 1031168  }
0x190a   :  { %v5871_v50 = vsel %vm15391_vm15, %v5844_v37, %v5851_v44  ;;  %v5903_v6 = vmul.f32 %v5888_v55, %v5872_v11  ;;  %v6115_v44 = vld [vmem:[%s15398_s14] sm:$0xff]  ;;  %v6116_v11 = vld [vmem:[%s15398_s14 + $0x8] sm:$0xff]  ;;  %vm15407_vm15 = vcmask 982016  }
0x190b   :  { %v5902_v14 = vmul.f32 %v5888_v55, %v5871_v50  ;;  %9798 = vrot.lane.b32.xlu0 %v9797_v31, %s15392_s3 }
0x190c   :  { %v5858_v30 = vpop.permute.xlu1 %5857  ;;  %v5867_v62 = vpop.permute.xlu0 %5866 }
0x190d   :  { %v9802_v39 = vpack.i.bf16 %v5903_v6, %v5902_v14  ;;  %v5873_v24 = vsel %vm15393_vm10, %v5855_v9, %v5858_v30  ;;  %v9155_v14 = vpack.c.bf16 %v6116_v11, %v6115_v44  ;;  %v6117_v30 = vld [vmem:[%s15398_s14 + $0x10] sm:$0xff]  ;;  %vm15408_vm10 = vcmask 965632  }
0x190e   :  { %v5904_v0 = vmul.f32 %v5890_v56, %v5873_v24 }
0x190f   :  { %9803 = vrot.lane.b32.xlu1 %v9802_v39, %s15392_s3  ;;  %v6118_v39 = vld [vmem:[%s15398_s14 + $0x18] sm:$0xff]  ;;  %s15444_s14 = smov 96  }
0x1910   :  { %v5864_v21 = vpop.permute.xlu1 %5863 }
0x1911   :  { %v5874_v7 = vsel %vm15394_vm14, %v5861_v42, %v5864_v21  ;;  %v8552_v42 = vld [vmem:[%s14682_s9 + $0x68] sm:$0xff]  ;;  %v9159_v21 = vpack.c.bf16 %v6118_v39, %v6117_v30  ;;  %vm15409_vm14 = vmmov %vm15405_vm1 }
0x1914   :  { %v5892_v41 = vpop.permute.xlu1 %5891 }
0x1915   :  { %v5905_v4 = vmul.f32 %v5892_v41, %v5874_v7 }
0x1917   :  { %v9807_v2 = vpack.i.bf16 %v5905_v4, %v5904_v0  ;;  %v13714_v0 = vld [vmem:[#allocation2] sm:$0xf] }
0x1918   :  { %v5894_v25 = vpop.permute.xlu1 %5893  ;;  %v6333_v4 = vrot.slane %v13714_v0, 4 }
0x1919   :  { %v5906_v28 = vmul.f32 %v5894_v25, %v5867_v62  ;;  %9808 = vrot.lane.b32.xlu0 %v9807_v2, %s15392_s3  ;;  %v9920_v25 = vld [vmem:[#allocation2 + $0x38] sm:$0xff] }
0x191b   :  { %5928 = vrot.lane.b32.xlu1 %v5906_v28, %s15392_s3  ;;  %v9276_v28 = vadd.f32 %v9920_v25, %v9920_v25 }
0x191d   :  { %6015 = vperm.xlu0 %9310, %v8549_v15  }
0x191f   :  { %6023 = vperm.xlu1 %9311, %v8550_v23  }
0x1921   :  { %6208 = vperm.xlu0 %9310, %v8558_v63  }
0x1923   :  { %6213 = vperm.xlu1 %9311, %v8559_v33  }
0x1925   :  { %6223 = vperm.xlu0 %9310, %v8560_v53  }
0x1927   :  { %6228 = vperm.xlu1 %9311, %v8561_v19  }
0x1929   :  { %6314 = vperm.xlu0 %9310, %v8564_v35  }
0x192b   :  { %6322 = vperm.xlu1 %9311, %v8565_v26  }
0x192d   :  { %6335 = vrot.lane.b32.xlu0 %v6333_v4, %s14943_s27 }
0x192f   :  { %6409 = vrot.lane.b32.xlu1 %v6398_v32, %s15298_s11 }
0x1931   :  { %6342 = vrot.lane.b32.xlu0 %v13714_v0, %s14940_s25 }
0x1933   :  { %6363 = vrot.lane.b32.xlu1 %v6360_v12, %s15299_s21 }
0x1935   :  { %6349 = vrot.lane.b32.xlu0 %v6333_v4, %s15318_s30 }
0x1937   :  { %6370 = vrot.lane.b32.xlu1 %v13668_v18, %s14945_s1 }
0x193b   :  { %6377 = vrot.lane.b32.xlu1 %v6360_v12, %s14949_s20 }
0x197d   :  { %v9799_v46 = vpop.permute.xlu0 %9798 }
0x197e   :  { %v9801_v47 = vunpack.i.h.bf16 %v9799_v46  ;;  %v9800_v36 = vunpack.i.l.bf16 %v9799_v46 }
0x1980   :  { %v5930_v3 = vsel %vm5516_vm3, %v9800_v36, %v9801_v47  ;;  %v6397_v36 = vld [vmem:[%s14683_s13] sm:$0xff] }
0x1981   :  { %v9804_v51 = vpop.permute.xlu1 %9803  ;;  %6407 = vrot.lane.b32.xlu0 %v6397_v36, %s15298_s11 }
0x1982   :  { %v9806_v22 = vunpack.i.h.bf16 %v9804_v51  ;;  %v9805_v29 = vunpack.i.l.bf16 %v9804_v51 }
0x1984   :  { %v5931_v1 = vsel %vm5516_vm3, %v9805_v29, %v9806_v22  ;;  %vm15396_vm3 = vcmask 293888  }
0x1985   :  { %v9150_v27 = vpack.c.bf16 %v5931_v1, %v5930_v3 }
0x1987   :  { %9151 = vmatpush3.bf16.msra.mxu0 %v9150_v27 }
0x1988   :  { %9152 = vmatprep.subr.bf16.mxu0 %v9939_v49 }
0x198b   :  { %v9809_v55 = vpop.permute.xlu0 %9808 }
0x198c   :  { %v9811_v20 = vunpack.i.h.bf16 %v9809_v55  ;;  %v9810_v57 = vunpack.i.l.bf16 %v9809_v55 }
0x198d   :  { %v5929_v9 = vpop.permute.xlu1 %5928 }
0x198e   :  { %v9153_v13 = vpack.c.bf16 %v9811_v20, %v9810_v57 }
0x1990   :  { %9154 = vmatpush3.bf16.msra.mxu0 %v9153_v13  ;;  %v6399_v13 = vld [vmem:[%s14683_s13 + $0x10] sm:$0xff] }
0x1991   :  { %8905 = vmatprep.subr.mxu0 %v13679_v45 }
0x1994   :  { %8906 = vmatpush3.msk.msra.mxu0 %vm15395_vm8, %v5929_v9  ;;  %v6401_v9 = vld [vmem:[%s14683_s13 + $0x20] sm:$0xf]  ;;  %vm15410_vm8 = vmmov %vm15405_vm1 }
0x1995   :  { %8908 = vmatmul.mubr.msk.f32.vlgmr.msra.gmra.mrb[42].mxu0 %vm15396_vm3, %v8546_v10  ;;  %9163 = vmatprep.subr.bf16.mxu0 %v9939_v49  ;;  %v6400_v10 = vld [vmem:[%s14683_s13 + $0x18] sm:$0xff]  ;;  %vm15411_vm3 = vmmov %vm15405_vm1 }
0x1996   :  { %8930 = vmatprep.mubr.msk.f32.mxu0 %vm15367_vm13, %v13679_v45 }
0x199c   :  { %v6016_v38 = vpop.permute.xlu0 %6015 }
0x199e   :  { %v6024_v31 = vpop.permute.xlu1 %6023 }
0x19a0   :  { %v6209_v62 = vpop.permute.xlu0 %6208 }
0x19a2   :  { %v6214_v2 = vpop.permute.xlu1 %6213 }
0x19a4   :  { %v6224_v35 = vpop.permute.xlu0 %6223 }
0x19a6   :  { %v6229_v53 = vpop.permute.xlu1 %6228 }
0x19a8   :  { %v6315_v51 = vpop.permute.xlu0 %6314 }
0x19aa   :  { %v6323_v1 = vpop.permute.xlu1 %6322 }
0x19ac   :  { %v6336_v54 = vpop.permute.xlu0 %6335 }
0x1a68   :  { %v6007_v61 = vpop.f32.mrb[42].mxu0 }
0x1a69   :  { %v6018_v58 = vmul.f32 %v6016_v38, %v6007_v61  ;;  %v8909_v37 = vpop.f32.mrb[43].mxu0  ;;  %v6410_v38 = vpop.permute.xlu1 %6409 }
0x1a6a   :  { %v6343_v61 = vpop.permute.xlu0 %6342 }
0x1a6b   :  { %v6026_v50 = vadd.f32 %v6024_v31, %v6018_v58 }
0x1a6d   :  { %v6027_v6 = vmax.f32 %v6026_v50, 0.0  ;;  %v6364_v58 = vpop.permute.xlu1 %6363 }
0x1a6e   :  { %v6350_v37 = vpop.permute.xlu0 %6349 }
0x1a6f   :  { %8910 = vmatprep.subr.msk.mxu1 %vm15399_vm4, %v6027_v6  ;;  %vm15413_vm4 = vmmov %vm15405_vm1 }
0x1a70   :  { %8911 = vmatpush3.msk.msra.mxu1 %vm15400_vm12, %v6027_v6  ;;  %vm15414_vm12 = vcmask 916480  }
0x1a71   :  { %8913 = vmatmul.mubr.msk.f32.vlgmr.msra.gmra.mrb[36].mxu1 %vm15401_vm9, %v8552_v42  ;;  %9156 = vmatprep.subr.bf16.mxu1 %v9155_v14  ;;  %v6371_v31 = vpop.permute.xlu1 %6370  ;;  %vm15415_vm9 = vmmov %vm15405_vm1 }
0x1a72   :  { %9158 = vmatpush3.bf16.msra.mxu1 %v9155_v14  ;;  %v6408_v44 = vpop.permute.xlu0 %6407 }
0x1a73   :  { %9160 = vmatprep.subr.bf16.mxu1 %v9159_v21 }
0x1a75   :  { %v6378_v11 = vpop.permute.xlu1 %6377 }
0x1a76   :  { %9162 = vmatpush3.bf16.msra.mxu1 %v9159_v21 }
0x1b44   :  { %v8914_v56 = vpop.f32.mrb[36].mxu1 }
0x1b45   :  { %v6106_v24 = vpop.f32.mrb[37].mxu1  ;;  %v6112_v41 = vadd.f32 %v8914_v56, %v13597_v40  ;;  %v9278_v40 = vadd.f32 %v13145_v52, %v13145_v52  ;;  %v8562_v52 = vld [vmem:[%s14678_s7 + $0x1c] sm:$0xf] }
0x1b46   :  { %v6107_v7 = vadd.f32 %v6106_v24, %v13600_v34 }
0x1b48   :  { %8923 = vmatprep.mubr.msk.f32.mxu1 %vm6119_vm6, %v6107_v7 }
0x1b49   :  { %8924 = vmatmul.mubr.msk.f32.vlgmr.msra.gmra.mrb[32].mxu1 %vm6119_vm6, %v6112_v41  ;;  %vm15416_vm6 = vmmov %vm15405_vm1 }
0x1c1c   :  { %v8925_v34 = vpop.f32.mrb[32].mxu1 }
0x1c1d   :  { %v13723_v15 = vadd.f32 %v9276_v28, %v8925_v34  ;;  %v6192_v23 = vpop.f32.mrb[33].mxu1 }
0x1c1e   :  { %v13725_v63 = vadd.f32 %v9278_v40, %v6192_v23 }
0x1c1f   :  { %v6217_v33 = vmul.f32 %v13723_v15, %v6214_v2 }
0x1c20   :  { %v6216_v19 = vmul.f32 %v13725_v63, %v6209_v62 }
0x1c21   :  { %v6232_v26 = vadd.f32 %v6229_v53, %v6217_v33 }
0x1c22   :  { %v6231_v32 = vadd.f32 %v6224_v35, %v6216_v19 }
0x1c23   :  { %v6234_v12 = vmax.f32 %v6232_v26, 0.0 }
0x1c24   :  { %v6233_v46 = vmax.f32 %v6231_v32, 0.0 }
0x1c26   :  { %v9164_v47 = vpack.c.bf16 %v6234_v12, %v6233_v46 }
0x1c28   :  { %9165 = vmatpush3.bf16.msra.mxu0 %v9164_v47 }
0x1c29   :  { %9166 = vmatprep.subr.bf16.mxu0 %v9939_v49 }
0x1c2b   :  { %8931 = vmatmul.mubr.msk.f32.vlgmr.msra.gmra.mrb[44].mxu0 %vm15402_vm11, %v8562_v52  ;;  %vm15417_vm11 = vcmask 900096  }
0x1c2c   :  { %8943 = vmatprep.mubr.msk.f32.mxu0 %vm15367_vm13, %v13679_v45  ;;  %vm15403_vm13 = vcmask 1039360  }
0x1cfe   :  { %v6306_v22 = vpop.f32.mrb[44].mxu0 }
0x1cff   :  { %v6317_v29 = vmul.f32 %v6315_v51, %v6306_v22  ;;  %v8932_v3 = vpop.f32.mrb[45].mxu0 }
0x1d01   :  { %v6325_v27 = vadd.f32 %v6323_v1, %v6317_v29 }
0x1d03   :  { %v6326_v55 = vmax.f32 %v6325_v27, 0.0 }
0x1d05   :  { %6327 = vst [vmem:[#allocation2 + $0x8] sm:$0xf] %v6326_v55 }
0x1d0c   :  { %v6329_v20 = vld [vmem:[#allocation2 + $0x8] sm:$0xf] }
0x1d0d   :  { %6368 = vrot.lane.b32.xlu0 %v6329_v20, %s14945_s1  ;;  %6344 = vrot.lane.b32.xlu1 %v6329_v20, %s14940_s25  ;;  %v6334_v57 = vrot.slane %v6329_v20, 4 }
0x1d11   :  { %6356 = vrot.lane.b32.xlu0 %v6329_v20, %s15298_s11  ;;  %6337 = vrot.lane.b32.xlu1 %v6334_v57, %s14943_s27 }
0x1d15   :  { %6361 = vrot.lane.b32.xlu0 %v6334_v57, %s15299_s21  ;;  %6351 = vrot.lane.b32.xlu1 %v6334_v57, %s15318_s30  ;;  %s15443_s30 = smov 95  }
0x1d19   :  { %6375 = vrot.lane.b32.xlu0 %v6334_v57, %s14949_s20  ;;  %6411 = vrot.lane.b32.xlu1 %v6399_v13, %s15298_s11  ;;  %v8569_v13 = vld [vmem:[%s14679_s5 + $0x1c] sm:$0xf] }
0x1d1d   :  { %6413 = vrot.lane.b32.xlu0 %v6400_v10, %s15298_s11  ;;  %6382 = vrot.lane.b32.xlu1 %v6329_v20, %s14942_s0  ;;  %v8570_v10 = vld [vmem:[%s14680_s6 + $0x1c] sm:$0xf] }
0x1d21   :  { %6384 = vrot.lane.b32.xlu0 %v13668_v18, %s14942_s0  ;;  %6415 = vrot.lane.b32.xlu1 %v6401_v9, %s15298_s11  ;;  %v6870_v9 = vld [vmem:[%s15418_s17] sm:$0xff]  ;;  %s15460_s11 = smov 94  }
0x1d7f   :  { %v6369_v50 = vpop.permute.xlu0 %6368  ;;  %v6345_v6 = vpop.permute.xlu1 %6344 }
0x1d80   :  { %v6346_v41 = vsel %vm15406_vm2, %v6343_v61, %v6345_v6  ;;  %v6372_v12 = vsel %vm15414_vm12, %v6369_v50, %v6371_v31  ;;  %v8577_v61 = vld [vmem:[%s15418_s17 + $0x18] sm:$0xff]  ;;  %v8584_v31 = vld [vmem:[%s15418_s17 + $0x30] sm:$0xff] }
0x1d83   :  { %v6357_v14 = vpop.permute.xlu0 %6356  ;;  %v6338_v42 = vpop.permute.xlu1 %6337 }
0x1d84   :  { %v6339_v30 = vsel %vm15403_vm13, %v6336_v54, %v6338_v42  ;;  %v6390_v39 = vsel %vm15404_vm7, %v6329_v20, %v6338_v42  ;;  %v6871_v54 = vld [vmem:[%s15418_s17 + $0x8] sm:$0xff]  ;;  %v8599_v42 = vld [vmem:[%s14913_s4 + $0x20] sm:$0xf]  ;;  %vm15419_vm13 = vmmov %vm15405_vm1  ;;  %vm15420_vm7 = vcmask 293888  }
0x1d85   :  { %v6389_v18 = vsel %vm15405_vm1, %v13714_v0, %v6339_v30  ;;  %v6423_v21 = vmul.f32 %v6408_v44, %v6390_v39  ;;  %v8600_v30 = vld [vmem:[%s14912_s23 + $0x20] sm:$0xf]  ;;  %vm15421_vm1 = vcmask 31744   ;;  %s15434_s23 = sld [smem:[#allocation53_spill]] }
0x1d86   :  { %v6422_v56 = vmul.f32 %v6408_v44, %v6389_v18  ;;  %v8585_v44 = vld [vmem:[%s15418_s17 + $0x38] sm:$0xff] }
0x1d87   :  { %v6362_v24 = vpop.permute.xlu0 %6361  ;;  %v6352_v7 = vpop.permute.xlu1 %6351 }
0x1d88   :  { %v9812_v4 = vpack.i.bf16 %v6423_v21, %v6422_v56  ;;  %v6353_v2 = vsel %vm15407_vm15, %v6350_v37, %v6352_v7  ;;  %v6365_v62 = vsel %vm15408_vm10, %v6362_v24, %v6364_v58  ;;  %v6392_v28 = vsel %vm15410_vm8, %v6345_v6, %v6352_v7  ;;  %v8582_v58 = vld [vmem:[%s15418_s17 + $0x20] sm:$0xff]  ;;  %v8583_v37 = vld [vmem:[%s15418_s17 + $0x28] sm:$0xff]  ;;  %vm15425_vm15 = vmmov %vm15421_vm1 }
0x1d89   :  { %v6391_v25 = vsel %vm15409_vm14, %v6346_v41, %v6353_v2  ;;  %v6425_v40 = vmul.f32 %v6410_v38, %v6392_v28  ;;  %v6393_v0 = vsel %vm15411_vm3, %v6357_v14, %v6362_v24  ;;  %v6394_v35 = vsel %vm15413_vm4, %v6357_v14, %v6365_v62  ;;  %v8594_v6 = vld [vmem:[%s14910_s26 + $0x80] sm:$0xff]  ;;  %v8595_v14 = vld [vmem:[%s14910_s26 + $0x88] sm:$0xff] }
0x1d8a   :  { %v6424_v34 = vmul.f32 %v6410_v38, %v6391_v25  ;;  %9813 = vrot.lane.b32.xlu0 %v9812_v4, %s15325_s22  ;;  %v8576_v38 = vld [vmem:[%s15418_s17 + $0x10] sm:$0xff]  ;;  %vm15435_vm10 = vcmask 130048  }
0x1d8b   :  { %v6376_v23 = vpop.permute.xlu0 %6375  ;;  %v6412_v33 = vpop.permute.xlu1 %6411  ;;  %vm15436_vm14 = vmmov %vm15435_vm10 }
0x1d8c   :  { %v9817_v53 = vpack.i.bf16 %v6425_v40, %v6424_v34  ;;  %v6379_v19 = vsel %vm15412_vm5, %v6376_v23, %v6378_v11  ;;  %v6426_v26 = vmul.f32 %v6412_v33, %v6393_v0  ;;  %v6427_v32 = vmul.f32 %v6412_v33, %v6394_v35  ;;  %v8592_v11 = vld [vmem:[%s14911_s28 + $0x80] sm:$0xff]  ;;  %vm15437_vm8 = vmmov %vm15435_vm10 }
0x1d8d   :  { %v6395_v46 = vsel %vm15415_vm9, %v6369_v50, %v6376_v23  ;;  %v6396_v52 = vsel %vm15416_vm6, %v6372_v12, %v6379_v19  ;;  %v8593_v50 = vld [vmem:[%s14911_s28 + $0x88] sm:$0xff]  ;;  %v6655_v12 = vld [vmem:[%s15422_s19 + $0x18] sm:$0xff] }
0x1d8e   :  { %9818 = vrot.lane.b32.xlu1 %v9817_v53, %s15325_s22  ;;  %v9822_v47 = vpack.i.bf16 %v6427_v32, %v6426_v26  ;;  %v8566_v26 = vld [vmem:[%s14681_s8 + $0x1c] sm:$0xf] }
0x1d8f   :  { %v6414_v36 = vpop.permute.xlu0 %6413  ;;  %v6383_v51 = vpop.permute.xlu1 %6382 }
0x1d90   :  { %v6428_v22 = vmul.f32 %v6414_v36, %v6395_v46  ;;  %v6429_v29 = vmul.f32 %v6414_v36, %v6396_v52  ;;  %9823 = vrot.lane.b32.xlu0 %v9822_v47, %s15325_s22  ;;  %v6659_v46 = vld [vmem:[%s15422_s19 + $0x38] sm:$0xff]  ;;  %v6654_v52 = vld [vmem:[%s15422_s19 + $0x10] sm:$0xff] }
0x1d91   :  { %v9204_v47 = vpack.c.bf16 %v6659_v46, %v6655_v12  ;;  %v6658_v36 = vld [vmem:[%s15422_s19 + $0x30] sm:$0xff]  ;;  %v6665_v12 = vld [vmem:[%s15422_s19 + $0x68] sm:$0xff] }
0x1d92   :  { %v9827_v3 = vpack.i.bf16 %v6429_v29, %v6428_v22  ;;  %v6663_v22 = vld [vmem:[%s15422_s19 + $0x58] sm:$0xff] }
0x1d93   :  { %v6385_v1 = vpop.permute.xlu0 %6384  ;;  %v6416_v27 = vpop.permute.xlu1 %6415  ;;  %v6667_v29 = vld [vmem:[%s15422_s19 + $0x78] sm:$0xff] }
0x1d94   :  { %v6386_v55 = vsel %vm15417_vm11, %v6383_v51, %v6385_v1  ;;  %v6430_v20 = vmul.f32 %v6416_v27, %v6383_v51  ;;  %9828 = vrot.lane.b32.xlu1 %v9827_v3, %s15325_s22  ;;  %v9206_v51 = vpack.c.bf16 %v6658_v36, %v6654_v52  ;;  %v9208_v3 = vpack.c.bf16 %v6667_v29, %v6663_v22  ;;  %v6662_v1 = vld [vmem:[%s15422_s19 + $0x50] sm:$0xff]  ;;  %v8572_v52 = vld [vmem:[%s14682_s9 + $0x78] sm:$0xff]  ;;  %v6660_v22 = vld [vmem:[%s15422_s19 + $0x40] sm:$0xff] }
0x1d95   :  { %v6431_v57 = vmul.f32 %v6416_v27, %v6386_v55  ;;  %v6666_v27 = vld [vmem:[%s15422_s19 + $0x70] sm:$0xff]  ;;  %v6664_v29 = vld [vmem:[%s15422_s19 + $0x60] sm:$0xff] }
0x1d96   :  { %6460 = vrot.lane.b32.xlu0 %v6430_v20, %s15325_s22  ;;  %v9210_v55 = vpack.c.bf16 %v6666_v27, %v6662_v1  ;;  %v6671_v20 = vld [vmem:[%s15422_s19 + $0x98] sm:$0xff]  ;;  %v6673_v1 = vld [vmem:[%s15422_s19 + $0xa8] sm:$0xff]  ;;  %v9178_v27 = vpack.c.bf16 %v6664_v29, %v6660_v22  ;;  %v15428_v22 = vld [vmem:[#allocation21_spill] sm:$0xff] }
0x1d97   :  { %v14064_v29 = vadd.f32 %v12988_v17, %v15428_v22 }
0x1d98   :  { %6462 = vrot.lane.b32.xlu1 %v6431_v57, %s15325_s22  ;;  %v6675_v57 = vld [vmem:[%s15422_s19 + $0xb8] sm:$0xff] }
0x1d9a   :  { %6552 = vperm.xlu0 %9310, %v8569_v13   ;;  %v9212_v13 = vpack.c.bf16 %v6675_v57, %v6671_v20  ;;  %v6668_v20 = vld [vmem:[%s15422_s19 + $0x80] sm:$0xff] }
0x1d9b   :  { %v6672_v57 = vld [vmem:[%s15422_s19 + $0xa0] sm:$0xff] }
0x1d9c   :  { %6560 = vperm.xlu1 %9311, %v8570_v10   ;;  %v6670_v10 = vld [vmem:[%s15422_s19 + $0x90] sm:$0xff] }
0x1d9e   :  { %6874 = vperm.xlu0 %9310, %v6870_v9   ;;  %v6674_v9 = vld [vmem:[%s15422_s19 + $0xb0] sm:$0xff] }
0x1da0   :  { %6879 = vperm.xlu1 %9311, %v6871_v54   ;;  %v9214_v54 = vpack.c.bf16 %v6674_v9, %v6670_v10  ;;  %v6681_v10 = vld [vmem:[%s15422_s19 + $0xe8] sm:$0xff]  ;;  %v9182_v9 = vpack.c.bf16 %v6672_v57, %v6668_v20 }
0x1da2   :  { %6895 = vperm.xlu0 %9310, %v8576_v38   ;;  %v6679_v38 = vld [vmem:[%s15422_s19 + $0xd8] sm:$0xff] }
0x1da4   :  { %6900 = vperm.xlu1 %9311, %v8577_v61   ;;  %v6683_v61 = vld [vmem:[%s15422_s19 + $0xf8] sm:$0xff] }
0x1da6   :  { %7086 = vperm.xlu0 %9310, %v8582_v58   ;;  %v9216_v58 = vpack.c.bf16 %v6683_v61, %v6679_v38  ;;  %v6676_v38 = vld [vmem:[%s15422_s19 + $0xc0] sm:$0xff] }
0x1da7   :  { %v6680_v61 = vld [vmem:[%s15422_s19 + $0xe0] sm:$0xff] }
0x1da8   :  { %7091 = vperm.xlu1 %9311, %v8583_v37   ;;  %v6678_v37 = vld [vmem:[%s15422_s19 + $0xd0] sm:$0xff] }
0x1daa   :  { %7107 = vperm.xlu0 %9310, %v8584_v31   ;;  %v6682_v31 = vld [vmem:[%s15422_s19 + $0xf0] sm:$0xff] }
0x1dac   :  { %7112 = vperm.xlu1 %9311, %v8585_v44   ;;  %v9218_v44 = vpack.c.bf16 %v6682_v31, %v6678_v37  ;;  %v6689_v37 = vld [vmem:[%s15422_s19 + $0x128] sm:$0xff]  ;;  %v9186_v31 = vpack.c.bf16 %v6680_v61, %v6676_v38 }
0x1dae   :  { %7363 = vperm.xlu0 %9310, %v8592_v11   ;;  %v6687_v11 = vld [vmem:[%s15422_s19 + $0x118] sm:$0xff] }
0x1db0   :  { %7368 = vperm.xlu1 %9311, %v8593_v50   ;;  %v6691_v50 = vld [vmem:[%s15422_s19 + $0x138] sm:$0xff] }
0x1db2   :  { %7384 = vperm.xlu0 %9310, %v8594_v6   ;;  %v9220_v6 = vpack.c.bf16 %v6691_v50, %v6687_v11  ;;  %v6684_v11 = vld [vmem:[%s15422_s19 + $0x100] sm:$0xff] }
0x1db3   :  { %v6688_v50 = vld [vmem:[%s15422_s19 + $0x120] sm:$0xff] }
0x1db4   :  { %7389 = vperm.xlu1 %9311, %v8595_v14   ;;  %v6686_v14 = vld [vmem:[%s15422_s19 + $0x110] sm:$0xff] }
0x1db6   :  { %7559 = vperm.xlu0 %9310, %v8599_v42   ;;  %v6690_v42 = vld [vmem:[%s15422_s19 + $0x130] sm:$0xff] }
0x1db8   :  { %7570 = vperm.xlu1 %9311, %v8600_v30   ;;  %v9222_v30 = vpack.c.bf16 %v6690_v42, %v6686_v14  ;;  %v6697_v14 = vld [vmem:[%s15422_s19 + $0x168] sm:$0xff]  ;;  %v9190_v42 = vpack.c.bf16 %v6688_v50, %v6684_v11 }
0x1dfc   :  { %v9814_v39 = vpop.permute.xlu0 %9813 }
0x1dfd   :  { %v9816_v18 = vunpack.i.h.bf16 %v9814_v39  ;;  %v9815_v21 = vunpack.i.l.bf16 %v9814_v39  ;;  %v6695_v39 = vld [vmem:[%s15422_s19 + $0x158] sm:$0xff] }
0x1dff   :  { %v6464_v41 = vsel %vm4329_vm0, %v9815_v21, %v9816_v18  ;;  %v6699_v18 = vld [vmem:[%s15422_s19 + $0x178] sm:$0xff] }
0x1e00   :  { %v9819_v56 = vpop.permute.xlu1 %9818  ;;  %v9224_v21 = vpack.c.bf16 %v6699_v18, %v6695_v39  ;;  %v6692_v39 = vld [vmem:[%s15422_s19 + $0x140] sm:$0xff] }
0x1e01   :  { %v9821_v24 = vunpack.i.h.bf16 %v9819_v56  ;;  %v9820_v7 = vunpack.i.l.bf16 %v9819_v56  ;;  %v6694_v56 = vld [vmem:[%s15422_s19 + $0x150] sm:$0xff]  ;;  %v6696_v18 = vld [vmem:[%s15422_s19 + $0x160] sm:$0xff] }
0x1e02   :  { %v9824_v2 = vpop.permute.xlu0 %9823 }
0x1e03   :  { %v6465_v4 = vsel %vm4329_vm0, %v9820_v7, %v9821_v24  ;;  %v9826_v25 = vunpack.i.h.bf16 %v9824_v2  ;;  %v9825_v28 = vunpack.i.l.bf16 %v9824_v2  ;;  %v6698_v24 = vld [vmem:[%s15422_s19 + $0x170] sm:$0xff] }
0x1e04   :  { %v9167_v62 = vpack.c.bf16 %v6465_v4, %v6464_v41  ;;  %v9226_v7 = vpack.c.bf16 %v6698_v24, %v6694_v56  ;;  %v6703_v41 = vld [vmem:[%s15422_s19 + $0x198] sm:$0xff]  ;;  %v6705_v56 = vld [vmem:[%s15422_s19 + $0x1a8] sm:$0xff]  ;;  %v9194_v24 = vpack.c.bf16 %v6696_v18, %v6692_v39 }
0x1e05   :  { %v6466_v23 = vsel %vm4329_vm0, %v9825_v28, %v9826_v25  ;;  %v6707_v4 = vld [vmem:[%s15422_s19 + $0x1b8] sm:$0xff]  ;;  %v6706_v25 = vld [vmem:[%s15422_s19 + $0x1b0] sm:$0xff] }
0x1e06   :  { %v9829_v34 = vpop.permute.xlu1 %9828  ;;  %9168 = vmatpush3.bf16.msra.mxu0 %v9167_v62  ;;  %v9228_v2 = vpack.c.bf16 %v6707_v4, %v6703_v41  ;;  %v6702_v62 = vld [vmem:[%s15422_s19 + $0x190] sm:$0xff]  ;;  %v6700_v41 = vld [vmem:[%s15422_s19 + $0x180] sm:$0xff] }
0x1e07   :  { %v9831_v40 = vunpack.i.h.bf16 %v9829_v34  ;;  %v9830_v0 = vunpack.i.l.bf16 %v9829_v34  ;;  %9169 = vmatprep.subr.bf16.mxu0 %v9939_v49  ;;  %v8571_v49 = vld [vmem:[%s14682_s9 + $0x70] sm:$0xff]  ;;  %v9230_v28 = vpack.c.bf16 %v6706_v25, %v6702_v62  ;;  %v6704_v4 = vld [vmem:[%s15422_s19 + $0x1a0] sm:$0xff]  ;;  %v6709_v62 = vld [vmem:[%s15422_s19 + $0x1c8] sm:$0xff] }
0x1e08   :  { %v6461_v35 = vpop.permute.xlu0 %6460  ;;  %8948 = vmatprep.mubr.msk.f32.mxu1 %vm15421_vm1, %v8571_v49  ;;  %v6661_v49 = vld [vmem:[%s15422_s19 + $0x48] sm:$0xff] }
0x1e09   :  { %v6467_v33 = vsel %vm4329_vm0, %v9830_v0, %v9831_v40  ;;  %v6713_v25 = vld [vmem:[%s15422_s19 + $0x1e8] sm:$0xff] }
0x1e0a   :  { %v9170_v53 = vpack.c.bf16 %v6467_v33, %v6466_v23  ;;  %v6463_v19 = vpop.permute.xlu1 %6462 }
0x1e0b   :  { %v6468_v32 = vsel %vm4329_vm0, %v6461_v35, %v6463_v19  ;;  %v6657_v19 = vld [vmem:[%s15422_s19 + $0x28] sm:$0xff]  ;;  %vm15423_vm0 = vmmov %vm15411_vm3 }
0x1e0c   :  { %9171 = vmatpush3.bf16.msra.mxu0 %v9170_v53  ;;  %v6653_v53 = vld [vmem:[%s15422_s19 + $0x8] sm:$0xff]  ;;  %vm15424_vm2 = vmmov %vm15423_vm0 }
0x1e0d   :  { %8941 = vmatprep.subr.mxu0 %v13679_v45  ;;  %vm15438_vm3 = vmmov %vm15437_vm8 }
0x1e0e   :  { %vm15439_vm5 = vmmov %vm15438_vm3 }
0x1e0f   :  { %vm15440_vm4 = vmmov %vm15438_vm3 }
0x1e10   :  { %8942 = vmatpush3.msk.msra.mxu0 %vm15419_vm13, %v6468_v32  ;;  %v6656_v32 = vld [vmem:[%s15422_s19 + $0x20] sm:$0xff]  ;;  %vm15441_vm12 = vmmov %vm15438_vm3  ;;  %vm15456_vm13 = vcmask 908288  }
0x1e11   :  { %8944 = vmatmul.mubr.msk.f32.vlgmr.msra.gmra.mrb[46].mxu0 %vm15420_vm7, %v8566_v26  ;;  %9205 = vmatprep.subr.bf16.mxu0 %v9204_v47  ;;  %v6652_v26 = vld [vmem:[%s15422_s19] sm:$0xff]  ;;  %v9172_v47 = vpack.c.bf16 %v6657_v19, %v6653_v53  ;;  %v6710_v19 = vld [vmem:[%s15422_s19 + $0x1d0] sm:$0xff]  ;;  %vm15442_vm9 = vmmov %vm15438_vm3 }
0x1e12   :  { %6857 = vmatprep.mubr.f32.mxu0 %v13679_v45  ;;  %9207 = vmatpush1.bf16.msra.mxu0 %v9206_v51  ;;  %v9174_v36 = vpack.c.bf16 %v6656_v32, %v6652_v26  ;;  %v9176_v51 = vpack.c.bf16 %v6665_v12, %v6661_v49  ;;  %vm15453_vm6 = vmmov %vm15438_vm3 }
0x1e13   :  { %9209 = vmatprep.subr.bf16.mxu0 %v9208_v3  ;;  %v6669_v3 = vld [vmem:[%s15422_s19 + $0x88] sm:$0xff]  ;;  %vm15454_vm11 = vmmov %vm15438_vm3 }
0x1e14   :  { %vm15457_vm7 = vmmov %vm15456_vm13 }
0x1e15   :  { %vm15459_vm1 = vmmov %vm15457_vm7 }
0x1e16   :  { %9211 = vmatpush1.bf16.msra.mxu0 %v9210_v55  ;;  %v9180_v55 = vpack.c.bf16 %v6673_v1, %v6669_v3 }
0x1e17   :  { %9213 = vmatprep.subr.bf16.mxu0 %v9212_v13  ;;  %v6677_v13 = vld [vmem:[%s15422_s19 + $0xc8] sm:$0xff] }
0x1e19   :  { %v6553_v34 = vpop.permute.xlu0 %6552 }
0x1e1a   :  { %9215 = vmatpush1.bf16.msra.mxu0 %v9214_v54  ;;  %v9184_v54 = vpack.c.bf16 %v6681_v10, %v6677_v13 }
0x1e1b   :  { %9217 = vmatprep.subr.bf16.mxu0 %v9216_v58  ;;  %v6561_v33 = vpop.permute.xlu1 %6560  ;;  %v6685_v58 = vld [vmem:[%s15422_s19 + $0x108] sm:$0xff] }
0x1e1e   :  { %9219 = vmatpush1.bf16.msra.mxu0 %v9218_v44  ;;  %v9188_v44 = vpack.c.bf16 %v6689_v37, %v6685_v58  ;;  %v15432_v58 = vld [vmem:[#allocation25_spill] sm:$0xff] }
0x1e1f   :  { %9221 = vmatprep.subr.bf16.mxu0 %v9220_v6  ;;  %v6693_v6 = vld [vmem:[%s15422_s19 + $0x148] sm:$0xff]  ;;  %v6880_v13 = vpop.permute.xlu1 %6879  ;;  %v14084_v37 = vadd.f32 %v12996_v8, %v15432_v58 }
0x1e22   :  { %9223 = vmatpush1.bf16.msra.mxu0 %v9222_v30  ;;  %v9192_v30 = vpack.c.bf16 %v6697_v14, %v6693_v6 }
0x1e23   :  { %9225 = vmatprep.subr.bf16.mxu0 %v9224_v21  ;;  %v6701_v21 = vld [vmem:[%s15422_s19 + $0x188] sm:$0xff] }
0x1e26   :  { %9227 = vmatpush1.bf16.msra.mxu0 %v9226_v7  ;;  %v9196_v7 = vpack.c.bf16 %v6705_v56, %v6701_v21 }
0x1e27   :  { %9229 = vmatprep.subr.bf16.mxu0 %v9228_v2  ;;  %v9198_v2 = vpack.c.bf16 %v6704_v4, %v6700_v41 }
0x1e2a   :  { %9231 = vmatpush1.bf16.msra.mxu0 %v9230_v28  ;;  %v6711_v28 = vld [vmem:[%s15422_s19 + $0x1d8] sm:$0xff] }
0x1ee4   :  { %v6544_v40 = vpop.f32.mrb[46].mxu0 }
0x1ee5   :  { %v6555_v0 = vmul.f32 %v6553_v34, %v6544_v40  ;;  %v8945_v23 = vpop.f32.mrb[47].mxu0  ;;  %v9200_v34 = vpack.c.bf16 %v6713_v25, %v6709_v62  ;;  %v6715_v40 = vld [vmem:[%s15422_s19 + $0x1f8] sm:$0xff] }
0x1ee6   :  { %v6712_v23 = vld [vmem:[%s15422_s19 + $0x1e0] sm:$0xff] }
0x1ee7   :  { %v6563_v35 = vadd.f32 %v6561_v33, %v6555_v0  ;;  %v6708_v0 = vld [vmem:[%s15422_s19 + $0x1c0] sm:$0xff]  ;;  %v9232_v33 = vpack.c.bf16 %v6715_v40, %v6711_v28 }
0x1ee8   :  { %v9202_v53 = vpack.c.bf16 %v6712_v23, %v6708_v0 }
0x1ee9   :  { %v6564_v46 = vmax.f32 %v6563_v35, 0.0  ;;  %v6714_v35 = vld [vmem:[%s15422_s19 + $0x1f0] sm:$0xff]  ;;  %9233 = vmatprep.subr.bf16.mxu0 %v9232_v33 }
0x1eea   :  { %v9234_v26 = vpack.c.bf16 %v6714_v35, %v6710_v19 }
0x1eeb   :  { %8946 = vmatprep.subr.msk.mxu1 %vm15423_vm0, %v6564_v46  ;;  %vm15461_vm0 = vcmask 1031168  }
0x1eec   :  { %8947 = vmatpush3.msk.msra.mxu1 %vm15424_vm2, %v6564_v46  ;;  %9235 = vmatpush1.bf16.msra.mxu0 %v9234_v26  ;;  %vm15462_vm2 = vmmov %vm15461_vm0 }
0x1eed   :  { %8949 = vmatmul.mubr.msk.f32.vlgmr.msra.gmra.mrb[38].mxu1 %vm15425_vm15, %v8572_v52  ;;  %9173 = vmatprep.subr.bf16.mxu1 %v9172_v47  ;;  %v15426_v47 = vld [vmem:[#allocation12_spill] sm:$0xff]  ;;  %vm15464_vm15 = vcmask 785408  }
0x1eee   :  { %9175 = vmatpush1.bf16.msra.mxu1 %v9174_v36  ;;  %6780 = vmatprep.mubr.f32.mxu1 %v13679_v45  ;;  %v14056_v52 = vadd.f32 %v12986_v16, %v15426_v47  ;;  %v15427_v36 = vld [vmem:[#allocation22_spill] sm:$0xff] }
0x1eef   :  { %9177 = vmatprep.subr.bf16.mxu1 %v9176_v51  ;;  %v6875_v51 = vpop.permute.xlu0 %6874 }
0x1ef2   :  { %9179 = vmatpush1.bf16.msra.mxu1 %v9178_v27 }
0x1ef3   :  { %9181 = vmatprep.subr.bf16.mxu1 %v9180_v55  ;;  %v6896_v39 = vpop.permute.xlu0 %6895 }
0x1ef6   :  { %9183 = vmatpush1.bf16.msra.mxu1 %v9182_v9  ;;  %v15430_v9 = vld [vmem:[#allocation24_spill] sm:$0xff] }
0x1ef7   :  { %9185 = vmatprep.subr.bf16.mxu1 %v9184_v54  ;;  %v14076_v17 = vadd.f32 %v12994_v60, %v15430_v9  ;;  %v15431_v54 = vld [vmem:[#allocation26_spill] sm:$0xff]  ;;  %v7087_v22 = vpop.permute.xlu0 %7086 }
0x1efa   :  { %9187 = vmatpush1.bf16.msra.mxu1 %v9186_v31  ;;  %v15433_v31 = vld [vmem:[#allocation15_spill] sm:$0xff] }
0x1efb   :  { %9189 = vmatprep.subr.bf16.mxu1 %v9188_v44  ;;  %v14088_v44 = vadd.f32 %v13000_v48, %v15433_v31 }
0x1efe   :  { %9191 = vmatpush1.bf16.msra.mxu1 %v9190_v42 }
0x1eff   :  { %9193 = vmatprep.subr.bf16.mxu1 %v9192_v30 }
0x1f02   :  { %9195 = vmatpush1.bf16.msra.mxu1 %v9194_v24 }
0x1f03   :  { %9197 = vmatprep.subr.bf16.mxu1 %v9196_v7  ;;  %v6901_v7 = vpop.permute.xlu1 %6900 }
0x1f06   :  { %9199 = vmatpush1.bf16.msra.mxu1 %v9198_v2 }
0x1f07   :  { %9201 = vmatprep.subr.bf16.mxu1 %v9200_v34 }
0x1f0a   :  { %9203 = vmatpush1.bf16.msra.mxu1 %v9202_v53 }
0x1fc0   :  { %v8950_v32 = vpop.f32.mrb[38].mxu1 }
0x1fc1   :  { %v6643_v49 = vpop.f32.mrb[39].mxu1  ;;  %v6649_v46 = vadd.f32 %v13723_v15, %v8950_v32  ;;  %v15429_v15 = vld [vmem:[#allocation23_spill] sm:$0xff] }
0x1fc2   :  { %v6644_v12 = vadd.f32 %v13725_v63, %v6643_v49  ;;  %v14060_v63 = vadd.f32 %v12990_v5, %v15427_v36  ;;  %v14068_v3 = vadd.f32 %v12992_v43, %v15429_v15  ;;  %v14080_v43 = vadd.f32 %v12998_v59, %v15431_v54  ;;  %v6919_v36 = vld [vmem:[%s15434_s23] sm:$0xff]  ;;  %v7092_v15 = vpop.permute.xlu1 %7091 }
0x1fc4   :  { %6781 = vmatmul.mubr.f32.vlgmr.msra.gmra.mrb[40].mxu1 %v6644_v12  ;;  %6858 = vmatmul.mubr.f32.vlgmr.msra.gmra.mrb[48].mxu0 %v6644_v12 }
0x1fc5   :  { %6786 = vmatprep.mubr.f32.mxu1 %v13679_v45  ;;  %6863 = vmatprep.mubr.f32.mxu0 %v13679_v45 }
0x1fc8   :  { %6787 = vmatmul.mubr.f32.gmra.mrb[42].mxu1 %v6649_v46  ;;  %6864 = vmatmul.mubr.f32.gmra.mrb[50].mxu0 %v6649_v46 }
0x1fc9   :  { %6991 = vmatprep.mubr.f32.mxu1 %v13679_v45  ;;  %7068 = vmatprep.mubr.f32.mxu0 %v13679_v45 }
0x2097   :  { %v6782_v1 = vpop.f32.mrb[40].mxu1  ;;  %v6859_v27 = vpop.f32.mrb[48].mxu0 }
0x2098   :  { %v6783_v55 = vadd.f32 %v6782_v1, %v14056_v52  ;;  %v6860_v16 = vadd.f32 %v6859_v27, %v14060_v63  ;;  %v6784_v20 = vpop.f32.mrb[41].mxu1  ;;  %v6861_v57 = vpop.f32.mrb[49].mxu0 }
0x2099   :  { %v6785_v5 = vadd.f32 %v6784_v20, %v14064_v29  ;;  %v6862_v10 = vadd.f32 %v6861_v57, %v14068_v3 }
0x209a   :  { %v6882_v38 = vmul.f32 %v6875_v51, %v6783_v55  ;;  %v6884_v61 = vmul.f32 %v6875_v51, %v6860_v16 }
0x209b   :  { %v6883_v11 = vmul.f32 %v6875_v51, %v6785_v5  ;;  %v6885_v50 = vmul.f32 %v6875_v51, %v6862_v10  ;;  %v6788_v6 = vpop.f32.mrb[42].mxu1  ;;  %v6865_v14 = vpop.f32.mrb[50].mxu0  ;;  %v6920_v51 = vld [vmem:[%s15434_s23 + $0x8] sm:$0xff] }
0x209c   :  { %v6789_v60 = vadd.f32 %v6788_v6, %v14076_v17  ;;  %v6866_v42 = vadd.f32 %v6865_v14, %v14080_v43  ;;  %v6790_v59 = vpop.f32.mrb[43].mxu1  ;;  %v6867_v30 = vpop.f32.mrb[51].mxu0  ;;  %v6903_v21 = vadd.f32 %v6896_v39, %v6882_v38  ;;  %v6905_v56 = vadd.f32 %v6896_v39, %v6884_v61 }
0x209d   :  { %v6791_v18 = vadd.f32 %v6790_v59, %v14084_v37  ;;  %v6868_v8 = vadd.f32 %v6867_v30, %v14088_v44  ;;  %v6904_v41 = vadd.f32 %v6896_v39, %v6883_v11  ;;  %v6906_v4 = vadd.f32 %v6896_v39, %v6885_v50  ;;  %v7108_v10 = vpop.permute.xlu0 %7107  ;;  %v7113_v6 = vpop.permute.xlu1 %7112 }
0x209e   :  { %v6886_v24 = vmul.f32 %v6880_v13, %v6789_v60  ;;  %v6888_v48 = vmul.f32 %v6880_v13, %v6866_v42  ;;  %v6911_v0 = vmax.f32 %v6903_v21, 0.0  ;;  %v6913_v23 = vmax.f32 %v6905_v56, 0.0 }
0x209f   :  { %v6887_v2 = vmul.f32 %v6880_v13, %v6791_v18  ;;  %v6889_v62 = vmul.f32 %v6880_v13, %v6868_v8  ;;  %v6912_v19 = vmax.f32 %v6904_v41, 0.0  ;;  %v6914_v35 = vmax.f32 %v6906_v4, 0.0 }
0x20a0   :  { %v6907_v25 = vadd.f32 %v6901_v7, %v6886_v24  ;;  %v6909_v28 = vadd.f32 %v6901_v7, %v6888_v48 }
0x20a1   :  { %v6908_v34 = vadd.f32 %v6901_v7, %v6887_v2  ;;  %v6910_v40 = vadd.f32 %v6901_v7, %v6889_v62 }
0x20a2   :  { %v6915_v33 = vmax.f32 %v6907_v25, 0.0  ;;  %v6917_v53 = vmax.f32 %v6909_v28, 0.0 }
0x20a3   :  { %v6916_v26 = vmax.f32 %v6908_v34, 0.0  ;;  %v6918_v32 = vmax.f32 %v6910_v40, 0.0  ;;  %v8586_v40 = vld [vmem:[%s15434_s23 + $0x10] sm:$0xff] }
0x20a4   :  { %v9238_v49 = vpack.c.bf16 %v6915_v33, %v6911_v0  ;;  %v9242_v12 = vpack.c.bf16 %v6917_v53, %v6913_v23  ;;  %v8587_v0 = vld [vmem:[%s15434_s23 + $0x18] sm:$0xff]  ;;  %v14122_v23 = vld [vmem:[#allocation2] sm:$0xf] }
0x20a5   :  { %v9236_v46 = vpack.c.bf16 %v6916_v26, %v6912_v19  ;;  %v9240_v47 = vpack.c.bf16 %v6918_v32, %v6914_v35  ;;  %v7596_v33 = vrot.slane %v14122_v23, 4  ;;  %7620 = vrot.lane.b32.xlu1 %v14122_v23, %s14940_s25  ;;  %v7772_v53 = vld [vmem:[%s14914_s29] sm:$0xff]  ;;  %v7774_v19 = vld [vmem:[%s14914_s29 + $0x10] sm:$0xff]  ;;  %v7775_v26 = vld [vmem:[%s14914_s29 + $0x18] sm:$0xff] }
0x20a6   :  { %v7776_v35 = vld [vmem:[%s14914_s29 + $0x20] sm:$0xff]  ;;  %v7778_v32 = vld [vmem:[%s14914_s29 + $0x30] sm:$0xff] }
0x20a7   :  { %9237 = vmatprep.subr.bf16.mxu1 %v9236_v46  ;;  %9241 = vmatprep.subr.bf16.mxu0 %v9240_v47  ;;  %v7779_v47 = vld [vmem:[%s14914_s29 + $0x38] sm:$0xff] }
0x20a8   :  { %9239 = vmatpush1.bf16.msra.mxu1 %v9238_v49  ;;  %9243 = vmatpush1.bf16.msra.mxu0 %v9242_v12  ;;  %v14151_v49 = vld [vmem:[#allocation2 + $0x28] sm:$0xf] }
0x20a9   :  { %7601 = vrot.lane.b32.xlu0 %v7596_v33, %s14943_s27  ;;  %7812 = vrot.lane.b32.xlu1 %v7772_v53, %s14949_s20  ;;  %v7777_v12 = vld [vmem:[%s14914_s29 + $0x28] sm:$0xff]  ;;  %v7675_v46 = vrot.slane %v14151_v49, 4 }
0x20ab   :  { %8578 = vmatmul.mubr.msk.f32.vlgmr.msra.gmra.mrb[44].mxu1 %vm15435_vm10, %v6919_v36  ;;  %8580 = vmatmul.mubr.msk.f32.vlgmr.msra.gmra.mrb[52].mxu0 %vm15436_vm14, %v6919_v36  ;;  %v7781_v36 = vld [vmem:[%s14914_s29 + $0x48] sm:$0xff]  ;;  %vm15465_vm10 = vcmask 1043456  }
0x20ac   :  { %6997 = vmatprep.mubr.f32.mxu1 %v13679_v45  ;;  %7074 = vmatprep.mubr.f32.mxu0 %v13679_v45  ;;  %vm15466_vm14 = vmmov %vm15465_vm10 }
0x20ad   :  { %7639 = vrot.lane.b32.xlu0 %v7596_v33, %s14945_s1  ;;  %7816 = vrot.lane.b32.xlu1 %v7774_v19, %s14949_s20 }
0x20af   :  { %8579 = vmatmul.mubr.msk.f32.gmra.mrb[46].mxu1 %vm15437_vm8, %v6920_v51  ;;  %8581 = vmatmul.mubr.msk.f32.gmra.mrb[54].mxu0 %vm15438_vm3, %v6920_v51  ;;  %v7780_v51 = vld [vmem:[%s14914_s29 + $0x40] sm:$0xff]  ;;  %vm15468_vm8 = vcmask 1039360  }
0x20b0   :  { %7204 = vmatprep.mubr.f32.mxu1 %v13679_v45  ;;  %7281 = vmatprep.mubr.f32.mxu0 %v13679_v45  ;;  %vm15469_vm3 = vmmov %vm15468_vm8 }
0x20b1   :  { %7820 = vrot.lane.b32.xlu1 %v7776_v35, %s14949_s20 }
0x20b5   :  { %7824 = vrot.lane.b32.xlu1 %v7778_v32, %s14949_s20  ;;  %v7364_v32 = vpop.permute.xlu0 %7363 }
0x20b9   :  { %7684 = vrot.lane.b32.xlu1 %v7675_v46, %s14942_s0 }
0x20bd   :  { %7722 = vrot.lane.b32.xlu1 %v7675_v46, %s15443_s30 }
0x20c1   :  { %7830 = vrot.lane.b32.xlu1 %v7781_v36, %s14949_s20 }
0x217e   :  { %v6993_v1 = vpop.f32.mrb[44].mxu1  ;;  %v7070_v27 = vpop.f32.mrb[52].mxu0 }
0x217f   :  { %v7094_v55 = vmul.f32 %v7087_v22, %v6993_v1  ;;  %v7096_v16 = vmul.f32 %v7087_v22, %v7070_v27  ;;  %v6995_v20 = vpop.f32.mrb[45].mxu1  ;;  %v7072_v57 = vpop.f32.mrb[53].mxu0 }
0x2180   :  { %v7095_v13 = vmul.f32 %v7087_v22, %v6995_v20  ;;  %v7097_v5 = vmul.f32 %v7087_v22, %v7072_v57 }
0x2181   :  { %v7115_v38 = vadd.f32 %v7108_v10, %v7094_v55  ;;  %v7117_v61 = vadd.f32 %v7108_v10, %v7096_v16 }
0x2182   :  { %v6999_v9 = vpop.f32.mrb[46].mxu1  ;;  %v7076_v54 = vpop.f32.mrb[54].mxu0  ;;  %v7116_v14 = vadd.f32 %v7108_v10, %v7095_v13  ;;  %v7118_v60 = vadd.f32 %v7108_v10, %v7097_v5 }
0x2183   :  { %v7098_v58 = vmul.f32 %v7092_v15, %v6999_v9  ;;  %v7100_v31 = vmul.f32 %v7092_v15, %v7076_v54  ;;  %v7001_v11 = vpop.f32.mrb[47].mxu1  ;;  %v7078_v50 = vpop.f32.mrb[55].mxu0  ;;  %v7123_v21 = vmax.f32 %v7115_v38, 0.0  ;;  %v7125_v56 = vmax.f32 %v7117_v61, 0.0 }
0x2184   :  { %v7099_v42 = vmul.f32 %v7092_v15, %v7001_v11  ;;  %v7101_v59 = vmul.f32 %v7092_v15, %v7078_v50  ;;  %v7124_v7 = vmax.f32 %v7116_v14, 0.0  ;;  %v7126_v41 = vmax.f32 %v7118_v60, 0.0 }
0x2185   :  { %v7119_v30 = vadd.f32 %v7113_v6, %v7098_v58  ;;  %v7121_v39 = vadd.f32 %v7113_v6, %v7100_v31 }
0x2186   :  { %v7120_v18 = vadd.f32 %v7113_v6, %v7099_v42  ;;  %v7122_v8 = vadd.f32 %v7113_v6, %v7101_v59 }
0x2187   :  { %v7127_v24 = vmax.f32 %v7119_v30, 0.0  ;;  %v7129_v48 = vmax.f32 %v7121_v39, 0.0 }
0x2188   :  { %v7128_v4 = vmax.f32 %v7120_v18, 0.0  ;;  %v7130_v2 = vmax.f32 %v7122_v8, 0.0 }
0x2189   :  { %v9246_v62 = vpack.c.bf16 %v7127_v24, %v7123_v21  ;;  %v9250_v25 = vpack.c.bf16 %v7129_v48, %v7125_v56 }
0x218a   :  { %v9244_v28 = vpack.c.bf16 %v7128_v4, %v7124_v7  ;;  %v9248_v34 = vpack.c.bf16 %v7130_v2, %v7126_v41 }
0x218c   :  { %9245 = vmatprep.subr.bf16.mxu1 %v9244_v28  ;;  %9249 = vmatprep.subr.bf16.mxu0 %v9248_v34 }
0x218d   :  { %9247 = vmatpush1.bf16.msra.mxu1 %v9246_v62  ;;  %9251 = vmatpush1.bf16.msra.mxu0 %v9250_v25 }
0x2190   :  { %8588 = vmatmul.mubr.msk.f32.vlgmr.msra.gmra.mrb[48].mxu1 %vm15439_vm5, %v8586_v40  ;;  %8590 = vmatmul.mubr.msk.f32.vlgmr.msra.gmra.mrb[56].mxu0 %vm15440_vm4, %v8586_v40  ;;  %vm15470_vm5 = vmmov %vm15459_vm1 }
0x2191   :  { %7210 = vmatprep.mubr.f32.mxu1 %v13679_v45  ;;  %7287 = vmatprep.mubr.f32.mxu0 %v13679_v45  ;;  %vm15471_vm4 = vmmov %vm15465_vm10 }
0x2194   :  { %8589 = vmatmul.mubr.msk.f32.gmra.mrb[50].mxu1 %vm15441_vm12, %v8587_v0  ;;  %8591 = vmatmul.mubr.msk.f32.gmra.mrb[58].mxu0 %vm15442_vm9, %v8587_v0  ;;  %vm15472_vm12 = vmmov %vm15471_vm4 }
0x2195   :  { %7477 = vmatprep.mubr.f32.mxu1 %v13679_v45  ;;  %7548 = vmatprep.mubr.f32.mxu0 %v13679_v45  ;;  %v7773_v45 = vld [vmem:[%s14914_s29 + $0x8] sm:$0xff]  ;;  %vm15473_vm9 = vmmov %vm15469_vm3 }
0x2196   :  { %7814 = vrot.lane.b32.xlu0 %v7773_v45, %s14949_s20 }
0x219a   :  { %7818 = vrot.lane.b32.xlu0 %v7775_v26, %s14949_s20 }
0x219e   :  { %7822 = vrot.lane.b32.xlu0 %v7777_v12, %s14949_s20  ;;  %v7369_v12 = vpop.permute.xlu1 %7368 }
0x21a2   :  { %7826 = vrot.lane.b32.xlu0 %v7779_v47, %s14949_s20 }
0x21a6   :  { %7703 = vrot.lane.b32.xlu0 %v14151_v49, %s15444_s14 }
0x21aa   :  { %7828 = vrot.lane.b32.xlu0 %v7780_v51, %s14949_s20 }
0x2263   :  { %v7206_v22 = vpop.f32.mrb[48].mxu1  ;;  %v7283_v15 = vpop.f32.mrb[56].mxu0 }
0x2264   :  { %v7294_v1 = vsub.f32 0.0, %v7206_v22  ;;  %v7296_v27 = vsub.f32 0.0, %v7283_v15  ;;  %v7208_v55 = vpop.f32.mrb[49].mxu1  ;;  %v7285_v16 = vpop.f32.mrb[57].mxu0 }
0x2265   :  { %v7295_v20 = vsub.f32 0.0, %v7208_v55  ;;  %v7297_v57 = vsub.f32 0.0, %v7285_v16 }
0x2266   :  { %v7302_v13 = vmul.f32 1.442695, %v7294_v1  ;;  %v7306_v5 = vmul.f32 1.442695, %v7296_v27 }
0x2267   :  { %v7304_v10 = vmul.f32 1.442695, %v7295_v20  ;;  %v7308_v9 = vmul.f32 1.442695, %v7297_v57  ;;  %v7212_v54 = vpop.f32.mrb[50].mxu1  ;;  %v7289_v38 = vpop.f32.mrb[58].mxu0 }
0x2268   :  { %9882 = vpow2.f32 %v7302_v13  ;;  %v7298_v61 = vsub.f32 0.0, %v7212_v54  ;;  %v7300_v58 = vsub.f32 0.0, %v7289_v38  ;;  %v7214_v31 = vpop.f32.mrb[51].mxu1  ;;  %v7291_v11 = vpop.f32.mrb[59].mxu0 }
0x2269   :  { %9884 = vpow2.f32 %v7306_v5  ;;  %v7299_v50 = vsub.f32 0.0, %v7214_v31  ;;  %v7301_v6 = vsub.f32 0.0, %v7291_v11  ;;  %v7390_v54 = vpop.permute.xlu1 %7389 }
0x226a   :  { %9886 = vpow2.f32 %v7304_v10  ;;  %v7310_v14 = vmul.f32 1.442695, %v7298_v61  ;;  %v7314_v60 = vmul.f32 1.442695, %v7300_v58 }
0x226b   :  { %9888 = vpow2.f32 %v7308_v9  ;;  %v7312_v42 = vmul.f32 1.442695, %v7299_v50  ;;  %v7316_v59 = vmul.f32 1.442695, %v7301_v6 }
0x226c   :  { %9890 = vpow2.f32 %v7310_v14 }
0x226d   :  { %9892 = vpow2.f32 %v7314_v60 }
0x226e   :  { %9894 = vpow2.f32 %v7312_v42 }
0x226f   :  { %9896 = vpow2.f32 %v7316_v59 }
0x2272   :  { %v9883_v30 = vpop.eup %9882 }
0x2273   :  { %v9885_v39 = vpop.eup %9884  ;;  %v7318_v18 = vadd.f32 1.0, %v9883_v30 }
0x2274   :  { %v9887_v8 = vpop.eup %9886  ;;  %v7320_v21 = vadd.f32 1.0, %v9885_v39 }
0x2275   :  { %v9889_v56 = vpop.eup %9888  ;;  %9898 = vrcp.f32 %v7318_v18  ;;  %v7319_v24 = vadd.f32 1.0, %v9887_v8 }
0x2276   :  { %v9891_v48 = vpop.eup %9890  ;;  %9900 = vrcp.f32 %v7320_v21  ;;  %v7321_v7 = vadd.f32 1.0, %v9889_v56 }
0x2277   :  { %v9893_v41 = vpop.eup %9892  ;;  %9902 = vrcp.f32 %v7319_v24  ;;  %v7322_v4 = vadd.f32 1.0, %v9891_v48 }
0x2278   :  { %v9895_v2 = vpop.eup %9894  ;;  %9904 = vrcp.f32 %v7321_v7  ;;  %v7324_v62 = vadd.f32 1.0, %v9893_v41 }
0x2279   :  { %v9897_v25 = vpop.eup %9896  ;;  %9906 = vrcp.f32 %v7322_v4  ;;  %v7323_v28 = vadd.f32 1.0, %v9895_v2  ;;  %v8596_v4 = vld [vmem:[%s14678_s7 + $0x20] sm:$0xf]  ;;  %s15564_s7 = sld [smem:[#allocation54_spill]] }
0x227a   :  { %9908 = vrcp.f32 %v7324_v62  ;;  %v7325_v34 = vadd.f32 1.0, %v9897_v25  ;;  %v14213_v2 = vld [vmem:[#allocation2] sm:$0xff]  ;;  %v7783_v62 = vld [vmem:[%s14914_s29 + $0x58] sm:$0xff]  ;;  %v7782_v25 = vld [vmem:[%s14914_s29 + $0x50] sm:$0xff] }
0x227b   :  { %9910 = vrcp.f32 %v7323_v28  ;;  %15455 = vst [vmem:[#allocation29_spill] sm:$0xff] %v14213_v2  ;;  %7834 = vrot.lane.b32.xlu1 %v7783_v62, %s14949_s20  ;;  %7832 = vrot.lane.b32.xlu0 %v7782_v25, %s14949_s20  ;;  %v7785_v28 = vld [vmem:[%s14914_s29 + $0x68] sm:$0xff]  ;;  %v7790_v62 = vld [vmem:[%s14914_s29 + $0x90] sm:$0xf] }
0x227c   :  { %9912 = vrcp.f32 %v7325_v34  ;;  %v7784_v34 = vld [vmem:[%s14914_s29 + $0x60] sm:$0xff]  ;;  %v7791_v25 = vld [vmem:[%s14914_s29 + $0x98] sm:$0xf] }
0x227f   :  { %v9899_v40 = vpop.eup %9898  ;;  %7838 = vrot.lane.b32.xlu1 %v7785_v28, %s14949_s20  ;;  %7836 = vrot.lane.b32.xlu0 %v7784_v34, %s14949_s20 }
0x2280   :  { %v9901_v0 = vpop.eup %9900  ;;  %v7342_v33 = vadd.f32 1.0, %v9899_v40  ;;  %v7787_v40 = vld [vmem:[%s14914_s29 + $0x78] sm:$0xff] }
0x2281   :  { %v9903_v53 = vpop.eup %9902  ;;  %v7344_v19 = vadd.f32 1.0, %v9901_v0  ;;  %v7786_v0 = vld [vmem:[%s14914_s29 + $0x70] sm:$0xff] }
0x2282   :  { %v9905_v45 = vpop.eup %9904  ;;  %v7343_v35 = vadd.f32 1.0, %v9903_v53  ;;  %v14177_v46 = vmul.f32 %v7342_v33, %v14056_v52  ;;  %v7571_v53 = vpop.permute.xlu1 %7570 }
0x2283   :  { %v9907_v26 = vpop.eup %9906  ;;  %v7345_v47 = vadd.f32 1.0, %v9905_v45  ;;  %v14180_v51 = vmul.f32 %v7344_v19, %v14060_v63  ;;  %7842 = vrot.lane.b32.xlu1 %v7787_v40, %s14949_s20  ;;  %7840 = vrot.lane.b32.xlu0 %v7786_v0, %s14949_s20 }
0x2284   :  { %15445 = vst [vmem:[#allocation3_spill] sm:$0xff] %v14177_v46  ;;  %v9909_v36 = vpop.eup %9908  ;;  %v14183_v22 = vmul.f32 %v7343_v35, %v14064_v29  ;;  %v7346_v15 = vadd.f32 1.0, %v9907_v26  ;;  %v7371_v13 = vmul.f32 %v7364_v32, %v14177_v46 }
0x2285   :  { %15446 = vst [vmem:[#allocation10_spill] sm:$0xff] %v14180_v51  ;;  %v9911_v1 = vpop.eup %9910  ;;  %v14186_v27 = vmul.f32 %v7345_v47, %v14068_v3  ;;  %v7348_v55 = vadd.f32 1.0, %v9909_v36  ;;  %v7373_v10 = vmul.f32 %v7364_v32, %v14180_v51 }
0x2286   :  { %15447 = vst [vmem:[#allocation20_spill] sm:$0xff] %v14183_v22  ;;  %v9913_v16 = vpop.eup %9912  ;;  %v14189_v20 = vmul.f32 %v7346_v15, %v14076_v17  ;;  %v7347_v52 = vadd.f32 1.0, %v9911_v1  ;;  %v7372_v57 = vmul.f32 %v7364_v32, %v14183_v22  ;;  %v7385_v17 = vpop.permute.xlu0 %7384 }
0x2287   :  { %15448 = vst [vmem:[#allocation18_spill] sm:$0xff] %v14186_v27  ;;  %v14194_v63 = vmul.f32 %v7348_v55, %v14080_v43  ;;  %v7349_v29 = vadd.f32 1.0, %v9913_v16  ;;  %v7374_v5 = vmul.f32 %v7364_v32, %v14186_v27  ;;  %v7392_v6 = vadd.f32 %v7385_v17, %v7371_v13  ;;  %v14243_v45 = vpop.permute.xlu1 %7620 }
0x2288   :  { %15449 = vst [vmem:[#allocation11_spill] sm:$0xff] %v14189_v20  ;;  %v7375_v3 = vmul.f32 %v7369_v12, %v14189_v20  ;;  %v14200_v9 = vmul.f32 %v7347_v52, %v14084_v37  ;;  %v7393_v58 = vadd.f32 %v7385_v17, %v7372_v57  ;;  %v7394_v42 = vadd.f32 %v7385_v17, %v7373_v10 }
0x2289   :  { %15450 = vst [vmem:[#allocation13_spill] sm:$0xff] %v14194_v63  ;;  %v7377_v38 = vmul.f32 %v7369_v12, %v14194_v63  ;;  %v14204_v61 = vmul.f32 %v7349_v29, %v14088_v44  ;;  %v7395_v50 = vadd.f32 %v7385_v17, %v7374_v5  ;;  %v7400_v44 = vmax.f32 %v7392_v6, 0.0 }
0x228a   :  { %15451 = vst [vmem:[#allocation6_spill] sm:$0xff] %v14200_v9  ;;  %v7376_v43 = vmul.f32 %v7369_v12, %v14200_v9  ;;  %v7396_v31 = vadd.f32 %v7390_v54, %v7375_v3  ;;  %v7401_v30 = vmax.f32 %v7393_v58, 0.0  ;;  %v7402_v24 = vmax.f32 %v7394_v42, 0.0  ;;  %v7560_v33 = vpop.permute.xlu0 %7559 }
0x228b   :  { %15452 = vst [vmem:[#allocation27_spill] sm:$0xff] %v14204_v61  ;;  %v7378_v11 = vmul.f32 %v7369_v12, %v14204_v61  ;;  %v7398_v14 = vadd.f32 %v7390_v54, %v7377_v38  ;;  %v7403_v8 = vmax.f32 %v7395_v50, 0.0  ;;  %v14247_v26 = vpop.permute.xlu1 %7812 }
0x228c   :  { %v7397_v60 = vadd.f32 %v7390_v54, %v7376_v43  ;;  %v7404_v59 = vmax.f32 %v7396_v31, 0.0 }
0x228d   :  { %v7399_v37 = vadd.f32 %v7390_v54, %v7378_v11  ;;  %v7406_v18 = vmax.f32 %v7398_v14, 0.0 }
0x228e   :  { %v7405_v39 = vmax.f32 %v7397_v60, 0.0  ;;  %v9254_v7 = vpack.c.bf16 %v7404_v59, %v7400_v44  ;;  %v14241_v19 = vpop.permute.xlu0 %7601 }
0x228f   :  { %v7407_v21 = vmax.f32 %v7399_v37, 0.0  ;;  %v9258_v41 = vpack.c.bf16 %v7406_v18, %v7402_v24  ;;  %v14251_v12 = vpop.permute.xlu1 %7816 }
0x2290   :  { %v9252_v56 = vpack.c.bf16 %v7405_v39, %v7401_v30 }
0x2291   :  { %v9256_v48 = vpack.c.bf16 %v7407_v21, %v7403_v8 }
0x2292   :  { %9253 = vmatprep.subr.bf16.mxu1 %v9252_v56  ;;  %v14245_v35 = vpop.permute.xlu0 %7639 }
0x2293   :  { %9257 = vmatprep.subr.bf16.mxu0 %v9256_v48  ;;  %9255 = vmatpush1.bf16.msra.mxu1 %v9254_v7  ;;  %v14260_v15 = vpop.permute.xlu1 %7820 }
0x2294   :  { %9259 = vmatpush1.bf16.msra.mxu0 %v9258_v41 }
0x2296   :  { %8597 = vmatmul.mubr.msk.f32.vlgmr.msra.gmra.mrb[52].mxu1 %vm15453_vm6, %v8596_v4  ;;  %v14249_v32 = vpop.permute.xlu0 %7814  ;;  %vm15474_vm6 = vmmov %vm15471_vm4 }
0x2297   :  { %8598 = vmatmul.mubr.msk.f32.vlgmr.msra.gmra.mrb[60].mxu0 %vm15454_vm11, %v8596_v4  ;;  %8105 = vmatprep.mubr.f32.mxu1 %v14213_v2  ;;  %v14256_v47 = vsel %vm15456_vm13, %v14249_v32, %v14251_v12  ;;  %v14264_v55 = vpop.permute.xlu1 %7824  ;;  %v7788_v4 = vld [vmem:[%s14914_s29 + $0x80] sm:$0xf]  ;;  %vm15475_vm11 = vmmov %vm15459_vm1 }
0x2298   :  { %8176 = vmatprep.mubr.f32.mxu0 %v14213_v2  ;;  %vm15476_vm13 = vmmov %vm15471_vm4 }
0x229a   :  { %v14258_v36 = vpop.permute.xlu0 %7818 }
0x229b   :  { %v14273_v57 = vpop.permute.xlu1 %7684 }
0x229c   :  { %15458 = vst [vmem:[#allocation36_spill] sm:$0xff] %v14273_v57 }
0x229e   :  { %v14262_v1 = vpop.permute.xlu0 %7822 }
0x229f   :  { %v14269_v16 = vsel %vm15457_vm7, %v14262_v1, %v14264_v55  ;;  %v14277_v29 = vpop.permute.xlu1 %7722  ;;  %vm15477_vm7 = vmmov %vm15459_vm1 }
0x22a2   :  { %v14271_v52 = vpop.permute.xlu0 %7826 }
0x22a3   :  { %v14281_v10 = vpop.permute.xlu1 %7830 }
0x22a6   :  { %v14275_v13 = vpop.permute.xlu0 %7703 }
0x22aa   :  { %v14279_v5 = vpop.permute.xlu0 %7828 }
0x22ed   :  { %v14283_v3 = vpop.permute.xlu0 %7832  ;;  %v14368_v28 = vpop.permute.xlu1 %7834 }
0x22ee   :  { %v14288_v17 = vsel %vm15459_vm1, %v14281_v10, %v14283_v3 }
0x22f1   :  { %v14370_v34 = vpop.permute.xlu0 %7836  ;;  %v14372_v40 = vpop.permute.xlu1 %7838 }
0x22f5   :  { %v14374_v0 = vpop.permute.xlu0 %7840 }
0x2369   :  { %v7479_v54 = vpop.f32.mrb[52].mxu1 }
0x236a   :  { %v7562_v38 = vmul.f32 %v7560_v33, %v7479_v54  ;;  %v7550_v43 = vpop.f32.mrb[60].mxu0  ;;  %v7481_v58 = vpop.f32.mrb[53].mxu1 }
0x236b   :  { %v7564_v31 = vmul.f32 %v7560_v33, %v7550_v43  ;;  %v7563_v11 = vmul.f32 %v7560_v33, %v7481_v58  ;;  %v7552_v50 = vpop.f32.mrb[61].mxu0 }
0x236c   :  { %v7573_v6 = vadd.f32 %v7571_v53, %v7562_v38  ;;  %v7565_v14 = vmul.f32 %v7560_v33, %v7552_v50  ;;  %v14376_v33 = vpop.permute.xlu1 %7842 }
0x236d   :  { %v7575_v60 = vadd.f32 %v7571_v53, %v7564_v31  ;;  %v7574_v42 = vadd.f32 %v7571_v53, %v7563_v11 }
0x236e   :  { %v7577_v37 = vmax.f32 %v7573_v6, 0.0  ;;  %v7576_v59 = vadd.f32 %v7571_v53, %v7565_v14 }
0x236f   :  { %v7579_v30 = vmax.f32 %v7575_v60, 0.0  ;;  %v7578_v39 = vmax.f32 %v7574_v42, 0.0 }
0x2370   :  { %7581 = vst [vmem:[#allocation2 + $0x8] sm:$0xf] %v7577_v37  ;;  %v7580_v18 = vmax.f32 %v7576_v59, 0.0 }
0x2371   :  { %7583 = vst [vmem:[#allocation2 + $0x18] sm:$0xf] %v7579_v30  ;;  %7582 = vst [vmem:[#allocation2 + $0x10] sm:$0xf] %v7578_v39 }
0x2372   :  { %7584 = vst [vmem:[#allocation2 + $0x20] sm:$0xf] %v7580_v18 }
0x2377   :  { %v14290_v8 = vld [vmem:[#allocation2 + $0x8] sm:$0xf] }
0x2378   :  { %7658 = vrot.lane.b32.xlu1 %v14290_v8, %s14949_s20  ;;  %7622 = vrot.lane.b32.xlu0 %v14290_v8, %s14940_s25  ;;  %v14296_v21 = vld [vmem:[#allocation2 + $0x18] sm:$0xf]  ;;  %v14302_v44 = vld [vmem:[#allocation2 + $0x10] sm:$0xf]  ;;  %v7597_v24 = vrot.slane %v14290_v8, 4 }
0x2379   :  { %v14308_v56 = vld [vmem:[#allocation2 + $0x20] sm:$0xf]  ;;  %v7599_v48 = vrot.slane %v14296_v21, 4  ;;  %v7598_v7 = vrot.slane %v14302_v44, 4 }
0x237a   :  { %v7600_v41 = vrot.slane %v14308_v56, 4 }
0x237c   :  { %7662 = vrot.lane.b32.xlu1 %v14296_v21, %s14949_s20  ;;  %7626 = vrot.lane.b32.xlu0 %v14296_v21, %s14940_s25 }
0x2380   :  { %7695 = vrot.lane.b32.xlu0 %v14290_v8, %s15444_s14  ;;  %7624 = vrot.lane.b32.xlu1 %v14302_v44, %s14940_s25 }
0x2384   :  { %7699 = vrot.lane.b32.xlu0 %v14296_v21, %s15444_s14  ;;  %7628 = vrot.lane.b32.xlu1 %v14308_v56, %s14940_s25 }
0x2388   :  { %7733 = vrot.lane.b32.xlu0 %v14290_v8, %s15460_s11  ;;  %7697 = vrot.lane.b32.xlu1 %v14302_v44, %s15444_s14 }
0x238c   :  { %7737 = vrot.lane.b32.xlu0 %v14296_v21, %s15460_s11  ;;  %7701 = vrot.lane.b32.xlu1 %v14308_v56, %s15444_s14 }
0x2390   :  { %7660 = vrot.lane.b32.xlu0 %v14302_v44, %s14949_s20  ;;  %7735 = vrot.lane.b32.xlu1 %v14302_v44, %s15460_s11 }
0x2394   :  { %7664 = vrot.lane.b32.xlu0 %v14308_v56, %s14949_s20  ;;  %7676 = vrot.lane.b32.xlu1 %v7597_v24, %s14942_s0 }
0x2398   :  { %7603 = vrot.lane.b32.xlu0 %v7597_v24, %s14943_s27  ;;  %7680 = vrot.lane.b32.xlu1 %v7599_v48, %s14942_s0 }
0x239c   :  { %7607 = vrot.lane.b32.xlu0 %v7599_v48, %s14943_s27  ;;  %7714 = vrot.lane.b32.xlu1 %v7597_v24, %s15443_s30 }
0x23a0   :  { %7641 = vrot.lane.b32.xlu0 %v7597_v24, %s14945_s1  ;;  %7718 = vrot.lane.b32.xlu1 %v7599_v48, %s15443_s30 }
0x23a4   :  { %7645 = vrot.lane.b32.xlu0 %v7599_v48, %s14945_s1  ;;  %7605 = vrot.lane.b32.xlu1 %v7598_v7, %s14943_s27 }
0x23a8   :  { %7741 = vrot.lane.b32.xlu0 %v14151_v49, %s15460_s11  ;;  %7609 = vrot.lane.b32.xlu1 %v7600_v41, %s14943_s27  ;;  %v7789_v49 = vld [vmem:[%s14914_s29 + $0x88] sm:$0xf]  ;;  %s15467_s29 = smov 17  }
0x23ac   :  { %7678 = vrot.lane.b32.xlu0 %v7598_v7, %s14942_s0  ;;  %7643 = vrot.lane.b32.xlu1 %v7598_v7, %s14945_s1 }
0x23b0   :  { %7682 = vrot.lane.b32.xlu0 %v7600_v41, %s14942_s0  ;;  %7647 = vrot.lane.b32.xlu1 %v7600_v41, %s14945_s1 }
0x23b4   :  { %7716 = vrot.lane.b32.xlu0 %v7598_v7, %s15443_s30  ;;  %7739 = vrot.lane.b32.xlu1 %v14308_v56, %s15460_s11 }
0x23b8   :  { %7720 = vrot.lane.b32.xlu0 %v7600_v41, %s15443_s30  ;;  %7844 = vrot.lane.b32.xlu1 %v7788_v4, %s14949_s20 }
0x23bc   :  { %7846 = vrot.lane.b32.xlu0 %v7789_v49, %s14949_s20  ;;  %7848 = vrot.lane.b32.xlu1 %v7790_v62, %s14949_s20 }
0x23c0   :  { %7850 = vrot.lane.b32.xlu0 %v7791_v25, %s14949_s20 }
0x23ea   :  { %v7659_v53 = vpop.permute.xlu1 %7658  ;;  %v14378_v54 = vpop.permute.xlu0 %7622 }
0x23ee   :  { %v14380_v38 = vpop.permute.xlu1 %7662  ;;  %v14382_v43 = vpop.permute.xlu0 %7626 }
0x23f2   :  { %v14384_v58 = vpop.permute.xlu0 %7695  ;;  %v7625_v31 = vpop.permute.xlu1 %7624 }
0x23f3   :  { %v7631_v11 = vsel %vm15461_vm0, %v14378_v54, %v7625_v31  ;;  %v7632_v50 = vsel %vm15462_vm2, %v7625_v31, %v14382_v43  ;;  %vm15478_vm0 = vmmov %vm15459_vm1 }
0x23f4   :  { %vm15479_vm2 = vmmov %vm15478_vm0 }
0x23f6   :  { %v14390_v6 = vpop.permute.xlu0 %7699  ;;  %v14392_v14 = vpop.permute.xlu1 %7628 }
0x23fa   :  { %v14394_v60 = vpop.permute.xlu0 %7733  ;;  %v14396_v42 = vpop.permute.xlu1 %7697 }
0x23fe   :  { %v14398_v37 = vpop.permute.xlu0 %7737  ;;  %v14400_v59 = vpop.permute.xlu1 %7701 }
0x23ff   :  { %15463 = vst [vmem:[#allocation34_spill] sm:$0xff] %v14398_v37  ;;  %v14405_v30 = vsel %vm15464_vm15, %v14390_v6, %v14400_v59  ;;  %vm15480_vm15 = vcmask 900096  }
0x2402   :  { %v7661_v39 = vpop.permute.xlu0 %7660  ;;  %v14407_v18 = vpop.permute.xlu1 %7735 }
0x2406   :  { %v14409_v24 = vpop.permute.xlu0 %7664  ;;  %v7677_v48 = vpop.permute.xlu1 %7676 }
0x2407   :  { %v7762_v4 = vsel %vm15465_vm10, %v7659_v53, %v7677_v48  ;;  %vm15481_vm10 = vmmov %vm15480_vm15 }
0x2408   :  { %v7902_v31 = vmul.f32 %v14279_v5, %v7762_v4  ;;  %v7852_v4 = vsel %vm15470_vm5, %v14247_v26, %v14249_v32 }
0x240a   :  { %v14411_v7 = vpop.permute.xlu0 %7603  ;;  %v7681_v41 = vpop.permute.xlu1 %7680 }
0x240e   :  { %v7608_v49 = vpop.permute.xlu0 %7607  ;;  %v14414_v62 = vpop.permute.xlu1 %7714 }
0x240f   :  { %v7767_v25 = vsel %vm15466_vm14, %v14384_v58, %v14414_v62  ;;  %vm15482_vm14 = vcmask 916480  }
0x2410   :  { %v7907_v61 = vmul.f32 %v14370_v34, %v7767_v25  ;;  %vm15485_vm5 = vmmov %vm15482_vm14 }
0x2412   :  { %v9832_v63 = vpack.i.bf16 %v7907_v61, %v7902_v31  ;;  %v14421_v9 = vpop.permute.xlu0 %7641  ;;  %v14423_v20 = vpop.permute.xlu1 %7718 }
0x2414   :  { %9833 = vrot.lane.b32.xlu0 %v9832_v63, %s15467_s29 }
0x2416   :  { %v7646_v27 = vpop.permute.xlu0 %7645  ;;  %v7606_v51 = vpop.permute.xlu1 %7605 }
0x2417   :  { %v7612_v22 = vsel %vm15468_vm8, %v14411_v7, %v7606_v51  ;;  %v7613_v46 = vsel %vm15469_vm3, %v7606_v51, %v7608_v49  ;;  %vm15483_vm8 = vmmov %vm15471_vm4 }
0x2418   :  { %v7753_v61 = vsel %vm15471_vm4, %v14290_v8, %v7612_v22  ;;  %v7754_v25 = vsel %vm15472_vm12, %v14302_v44, %v7613_v46  ;;  %v7854_v46 = vsel %vm15475_vm11, %v14251_v12, %v14258_v36  ;;  %v7855_v44 = vsel %vm15477_vm7, %v14260_v15, %v14262_v1  ;;  %vm15484_vm3 = vmmov %vm15471_vm4 }
0x2419   :  { %v14436_v31 = vmul.f32 %v7852_v4, %v7753_v61  ;;  %v14439_v63 = vmul.f32 %v14256_v47, %v7754_v25  ;;  %vm15486_vm4 = vmmov %vm15484_vm3 }
0x241a   :  { %v14441_v2 = vpop.permute.xlu0 %7741  ;;  %v7610_v57 = vpop.permute.xlu1 %7609  ;;  %vm15487_vm12 = vmmov %vm15484_vm3 }
0x241b   :  { %v9842_v51 = vpack.i.bf16 %v14439_v63, %v14436_v31  ;;  %v7614_v37 = vsel %vm15473_vm9, %v7608_v49, %v7610_v57  ;;  %v7756_v32 = vsel %vm15474_vm6, %v14308_v56, %v7610_v57  ;;  %v7858_v49 = vsel %vm15459_vm1, %v14279_v5, %v14281_v10  ;;  %vm15488_vm9 = vmmov %vm15478_vm0 }
0x241c   :  { %v7755_v22 = vsel %vm15476_vm13, %v14296_v21, %v7614_v37  ;;  %v7896_v47 = vmul.f32 %v14258_v36, %v7756_v32  ;;  %v7666_v57 = vsel %vm15478_vm0, %v7659_v53, %v7661_v39  ;;  %v7667_v56 = vsel %vm15479_vm2, %v7661_v39, %v14380_v38  ;;  %vm15490_vm11 = vmmov %vm15478_vm0 }
0x241d   :  { %v7895_v8 = vmul.f32 %v7854_v46, %v7755_v22  ;;  %vm15489_vm6 = vcmask 1031168   ;;  %vm15491_vm13 = vmmov %vm15481_vm10 }
0x241e   :  { %v7679_v12 = vpop.permute.xlu0 %7678  ;;  %v7644_v4 = vpop.permute.xlu1 %7643  ;;  %v7633_v22 = vsel %vm15489_vm6, %v14382_v43, %v14392_v14  ;;  %vm15492_vm7 = vmmov %vm15485_vm5 }
0x241f   :  { %v9847_v61 = vpack.i.bf16 %v7896_v47, %v7895_v8  ;;  %v7686_v21 = vsel %vm15480_vm15, %v7677_v48, %v7679_v12  ;;  %v7687_v36 = vsel %vm15481_vm10, %v7679_v12, %v7681_v41  ;;  %v7650_v37 = vsel %vm15482_vm14, %v14421_v9, %v7644_v4  ;;  %vm15493_vm1 = vmmov %vm15478_vm0 }
0x2420   :  { %v7763_v1 = vsel %vm15483_vm8, %v7666_v57, %v7686_v21  ;;  %v7764_v25 = vsel %vm15484_vm3, %v7667_v56, %v7687_v36  ;;  %v7651_v5 = vsel %vm15485_vm5, %v7644_v4, %v7646_v27  ;;  %v7758_v10 = vsel %vm15486_vm4, %v7631_v11, %v7650_v37  ;;  %vm15494_vm0 = vmmov %vm15484_vm3 }
0x2421   :  { %v7903_v53 = vmul.f32 %v7858_v49, %v7763_v1  ;;  %v7904_v39 = vmul.f32 %v14288_v17, %v7764_v25  ;;  %v7759_v32 = vsel %vm15487_vm12, %v7632_v50, %v7651_v5  ;;  %v14473_v46 = vmul.f32 %v7855_v44, %v7758_v10  ;;  %9848 = vrot.lane.b32.xlu0 %v9847_v61, %s15467_s29  ;;  %vm15495_vm2 = vmmov %vm15494_vm0 }
0x2422   :  { %v7857_v48 = vsel %vm15488_vm9, %v14264_v55, %v14271_v52  ;;  %v14483_v47 = vmul.f32 %v14269_v16, %v7759_v32  ;;  %v7683_v11 = vpop.permute.xlu0 %7682  ;;  %v7648_v8 = vpop.permute.xlu1 %7647  ;;  %v7668_v17 = vsel %vm15490_vm11, %v14380_v38, %v14409_v24  ;;  %v7860_v55 = vsel %vm15493_vm1, %v14283_v3, %v14368_v28  ;;  %vm15496_vm15 = vmmov %vm15494_vm0 }
0x2423   :  { %v9862_v50 = vpack.i.bf16 %v7904_v39, %v7903_v53  ;;  %v7688_v44 = vsel %vm15491_vm13, %v7681_v41, %v7683_v11  ;;  %v7652_v49 = vsel %vm15492_vm7, %v7646_v27, %v7648_v8  ;;  %v7761_v38 = vsel %vm15496_vm15, %v14392_v14, %v7648_v8  ;;  %vm15501_vm5 = vmmov %vm15493_vm1 }
0x2424   :  { %v9852_v43 = vpack.i.bf16 %v14483_v47, %v14473_v46  ;;  %v7765_v16 = vsel %vm15494_vm0, %v7668_v17, %v7688_v44  ;;  %v7760_v57 = vsel %vm15495_vm2, %v7633_v22, %v7652_v49  ;;  %v7901_v41 = vmul.f32 %v14271_v52, %v7761_v38  ;;  %vm15502_vm4 = vmmov %vm15494_vm0  ;;  %v15518_v17 = vld [vmem:[#allocation34_spill] sm:$0xff] }
0x2425   :  { %v14497_v56 = vmul.f32 %v7860_v55, %v7765_v16  ;;  %v7900_v12 = vmul.f32 %v7857_v48, %v7760_v57  ;;  %vm15497_vm10 = vcmask 777216   ;;  %vm15499_vm8 = vcmask 785408   ;;  %vm15503_vm12 = vmmov %vm15494_vm0  ;;  %v15520_v55 = vld [vmem:[#allocation36_spill] sm:$0xff] }
0x2426   :  { %v7717_v27 = vpop.permute.xlu0 %7716  ;;  %v7740_v4 = vpop.permute.xlu1 %7739  ;;  %vm15498_vm14 = vmmov %vm15497_vm10  ;;  %v7705_v21 = vsel %vm15499_vm8, %v14384_v58, %v14396_v42  ;;  %v7861_v52 = vsel %vm15501_vm5, %v14370_v34, %v14372_v40  ;;  %vm15506_vm11 = vcmask 1031168  }
0x2427   :  { %v7724_v3 = vsel %vm15497_vm10, %v14414_v62, %v7717_v27  ;;  %v7725_v61 = vsel %vm15498_vm14, %v7717_v27, %v14423_v20  ;;  %vm15500_vm3 = vmmov %vm15499_vm8  ;;  %v9857_v14 = vpack.i.bf16 %v7901_v41, %v7900_v12  ;;  %vm15515_vm8 = vcmask 769024  }
0x2428   :  { %v7706_v36 = vsel %vm15500_vm3, %v14396_v42, %v14390_v6  ;;  %v7768_v37 = vsel %vm15502_vm4, %v7705_v21, %v7724_v3  ;;  %vm15504_vm9 = vmmov %vm15493_vm1  ;;  %v7630_v6 = vsel %vm15506_vm11, %v14243_v45, %v14378_v54 }
0x2429   :  { %v7769_v62 = vsel %vm15503_vm12, %v7706_v36, %v7725_v61  ;;  %v7862_v1 = vsel %vm15504_vm9, %v14372_v40, %v14374_v0  ;;  %vm15505_vm6 = vmmov %vm15493_vm1  ;;  %9858 = vrot.lane.b32.xlu0 %v9857_v14, %s15467_s29  ;;  %vm15509_vm1 = vcmask 1039360   ;;  %v7908_v54 = vmul.f32 %v7861_v52, %v7768_v37 }
0x242a   :  { %v7863_v58 = vsel %vm15505_vm6, %v14374_v0, %v14376_v33  ;;  %vm15507_vm13 = vmmov %vm15492_vm7  ;;  %v7721_v42 = vpop.permute.xlu0 %7720  ;;  %v7845_v25 = vpop.permute.xlu1 %7844  ;;  %v7611_v0 = vsel %vm15509_vm1, %v14241_v19, %v14411_v7  ;;  %vm15521_vm9 = vcmask 900096   ;;  %vm15526_vm1 = vcmask 138240  }
0x242b   :  { %v7649_v34 = vsel %vm15507_vm13, %v14245_v35, %v14421_v9  ;;  %vm15508_vm7 = vmmov %vm15500_vm3  ;;  %v7909_v9 = vmul.f32 %v7862_v1, %v7769_v62 }
0x242c   :  { %v7708_v40 = vsel %vm15508_vm7, %v14400_v59, %v14275_v13  ;;  %vm15510_vm0 = vmmov %vm15497_vm10 }
0x242d   :  { %v7726_v5 = vsel %vm15510_vm0, %v14423_v20, %v7721_v42  ;;  %vm15511_vm2 = vmmov %vm15510_vm0  ;;  %9863 = vrot.lane.b32.xlu0 %v9862_v50, %s15467_s29  ;;  %v7743_v20 = vsel %vm15515_vm8, %v14394_v60, %v14407_v18  ;;  %v9872_v48 = vpack.i.bf16 %v7909_v9, %v7908_v54 }
0x242e   :  { %v7727_v45 = vsel %vm15511_vm2, %v7721_v42, %v14277_v29  ;;  %vm15512_vm15 = vmmov %vm15502_vm4  ;;  %v7847_v19 = vpop.permute.xlu0 %7846  ;;  %v7849_v7 = vpop.permute.xlu1 %7848 }
0x242f   :  { %v7770_v35 = vsel %vm15512_vm15, %v14405_v30, %v7726_v5  ;;  %vm15513_vm10 = vmmov %vm15502_vm4  ;;  %v7864_v30 = vsel %vm15501_vm5, %v7845_v25, %v7847_v19 }
0x2430   :  { %v7771_v10 = vsel %vm15513_vm10, %v7708_v40, %v7727_v45  ;;  %vm15514_vm14 = vmmov %vm15502_vm4  ;;  %v7910_v13 = vmul.f32 %v7863_v58, %v7770_v35  ;;  %v7913_v22 = vmul.f32 %v7864_v30, %v7743_v20 }
0x2431   :  { %v7757_v53 = vsel %vm15514_vm14, %v7630_v6, %v7649_v34  ;;  %v7911_v59 = vmul.f32 %v14376_v33, %v7771_v10  ;;  %vm15516_vm3 = vmmov %vm15502_vm4  ;;  %9873 = vrot.lane.b32.xlu0 %v9872_v48, %s15467_s29 }
0x2432   :  { %v7752_v29 = vsel %vm15516_vm3, %v14122_v23, %v7611_v0  ;;  %v7897_v32 = vmul.f32 %v14260_v15, %v7757_v53  ;;  %vm15517_vm4 = vmmov %vm15501_vm5  ;;  %7986 = vrot.lane.b32.xlu1 %v7913_v22, %s15467_s29  ;;  %v7851_v49 = vpop.permute.xlu0 %7850  ;;  %v7689_v15 = vsel %vm15521_vm9, %v7683_v11, %v15520_v55 }
0x2433   :  { %v9877_v39 = vpack.i.bf16 %v7911_v59, %v7910_v13  ;;  %v7865_v33 = vsel %vm15517_vm4, %v7847_v19, %v7849_v7  ;;  %v7892_v8 = vmul.f32 %v14247_v26, %v7752_v29  ;;  %vm15519_vm12 = vmmov %vm15515_vm8 }
0x2434   :  { %v7744_v50 = vsel %vm15519_vm12, %v14407_v18, %v15518_v17  ;;  %vm15522_vm6 = vmmov %vm15515_vm8  ;;  %v8608_v18 = vld [vmem:[%s14679_s5 + $0x20] sm:$0xf] }
0x2435   :  { %v9837_v23 = vpack.i.bf16 %v7897_v32, %v7892_v8  ;;  %v7914_v44 = vmul.f32 %v7865_v33, %v7744_v50  ;;  %v7746_v26 = vsel %vm15522_vm6, %v7740_v4, %v14441_v2  ;;  %vm15523_vm11 = vmmov %vm15516_vm3 }
0x2436   :  { %v7916_v16 = vmul.f32 %v7851_v49, %v7746_v26  ;;  %v7766_v57 = vsel %vm15523_vm11, %v14409_v24, %v7689_v15  ;;  %vm15524_vm13 = vmmov %vm15517_vm4 }
0x2437   :  { %7988 = vrot.lane.b32.xlu0 %v7914_v44, %s15467_s29  ;;  %9838 = vrot.lane.b32.xlu1 %v9837_v23, %s15467_s29  ;;  %v7906_v11 = vmul.f32 %v14368_v28, %v7766_v57  ;;  %v7866_v24 = vsel %vm15524_vm13, %v7849_v7, %v7851_v49  ;;  %vm15525_vm7 = vmmov %vm15522_vm6  ;;  %v7912_v28 = vmul.f32 %v7845_v25, %v14394_v60 }
0x2438   :  { %v7745_v31 = vsel %vm15525_vm7, %v15518_v17, %v7740_v4  ;;  %vm15527_vm0 = vmmov %vm15526_vm1 }
0x2439   :  { %v9867_v2 = vpack.i.bf16 %v7906_v11, %v14497_v56  ;;  %v7915_v63 = vmul.f32 %v7866_v24, %v7745_v31  ;;  %vm15528_vm2 = vmmov %vm15527_vm0 }
0x243a   :  { %vm15529_vm15 = vmmov %vm15527_vm0 }
0x243b   :  { %7992 = vrot.lane.b32.xlu0 %v7916_v16, %s15467_s29  ;;  %9843 = vrot.lane.b32.xlu1 %v9842_v51, %s15467_s29  ;;  %v8609_v51 = vld [vmem:[%s14680_s6 + $0x20] sm:$0xf]  ;;  %vm15530_vm10 = vmmov %vm15527_vm0 }
0x243c   :  { %vm15531_vm14 = vmmov %vm15527_vm0 }
0x243d   :  { %vm15532_vm8 = vmmov %vm15527_vm0 }
0x243e   :  { %vm15533_vm3 = vmmov %vm15527_vm0 }
0x243f   :  { %8187 = vperm.xlu0 %9310, %v8608_v18   ;;  %9853 = vrot.lane.b32.xlu1 %v9852_v43, %s15467_s29  ;;  %vm15534_vm5 = vmmov %vm15527_vm0 }
0x2440   :  { %vm15535_vm4 = vmmov %vm15527_vm0 }
0x2441   :  { %vm15536_vm12 = vmmov %vm15527_vm0 }
0x2442   :  { %vm15537_vm9 = vmmov %vm15527_vm0 }
0x2443   :  { %9868 = vrot.lane.b32.xlu1 %v9867_v2, %s15467_s29  ;;  %vm15538_vm6 = vmmov %vm15527_vm0 }
0x2444   :  { %vm15539_vm11 = vmmov %vm15527_vm0 }
0x2445   :  { %vm15540_vm13 = vmmov %vm15527_vm0 }
0x2446   :  { %vm15541_vm7 = vmmov %vm15527_vm0 }
0x2447   :  { %9878 = vrot.lane.b32.xlu1 %v9877_v39, %s15467_s29 }
0x244b   :  { %7990 = vrot.lane.b32.xlu1 %v7915_v63, %s15467_s29  ;;  %v8601_v63 = vld [vmem:[%s14681_s8 + $0x20] sm:$0xf] }
0x244f   :  { %7984 = vrot.lane.b32.xlu1 %v7912_v28, %s15467_s29 }
0x2453   :  { %8198 = vperm.xlu1 %9311, %v8609_v51  }
0x2486   :  { %v9834_v46 = vpop.permute.xlu0 %9833 }
0x2487   :  { %v9836_v13 = vunpack.i.h.bf16 %v9834_v46  ;;  %v9835_v39 = vunpack.i.l.bf16 %v9834_v46  ;;  %v15552_v46 = vld [vmem:[#allocation29_spill] sm:$0xff] }
0x2493   :  { %v9849_v47 = vpop.permute.xlu0 %9848 }
0x2494   :  { %v9851_v43 = vunpack.i.h.bf16 %v9849_v47  ;;  %v9850_v56 = vunpack.i.l.bf16 %v9849_v47 }
0x2496   :  { %v7997_v27 = vsel %vm15526_vm1, %v9850_v56, %v9851_v43  ;;  %vm15542_vm1 = vmmov %vm15527_vm0 }
0x249b   :  { %v9859_v38 = vpop.permute.xlu0 %9858 }
0x249c   :  { %v9861_v12 = vunpack.i.h.bf16 %v9859_v38  ;;  %v9860_v41 = vunpack.i.l.bf16 %v9859_v38 }
0x249e   :  { %v8001_v4 = vsel %vm15527_vm0, %v9860_v41, %v9861_v12  ;;  %vm15543_vm0 = vcmask 1043456  }
0x249f   :  { %v9268_v3 = vpack.c.bf16 %v8001_v4, %v7997_v27  ;;  %v9864_v61 = vpop.permute.xlu0 %9863 }
0x24a0   :  { %v9866_v58 = vunpack.i.h.bf16 %v9864_v61  ;;  %v9865_v42 = vunpack.i.l.bf16 %v9864_v61 }
0x24a1   :  { %9269 = vmatprep.subr.bf16.mxu0 %v9268_v3 }
0x24a2   :  { %v8003_v29 = vsel %vm15535_vm4, %v9865_v42, %v9866_v58  ;;  %v8002_v8 = vsel %vm15537_vm9, %v9835_v39, %v9865_v42  ;;  %vm15554_vm9 = vmmov %vm15543_vm0  ;;  %v15561_v42 = vld [vmem:[#allocation3_spill] sm:$0xff] }
0x24a3   :  { %v9874_v36 = vpop.permute.xlu0 %9873 }
0x24a4   :  { %v7987_v60 = vpop.permute.xlu1 %7986  ;;  %v9876_v52 = vunpack.i.h.bf16 %v9874_v36  ;;  %v9875_v37 = vunpack.i.l.bf16 %v9874_v36 }
0x24a6   :  { %v8007_v54 = vsel %vm15530_vm10, %v9875_v37, %v9876_v52  ;;  %v8006_v30 = vsel %vm15536_vm12, %v9836_v13, %v9875_v37  ;;  %vm15546_vm10 = vmmov %vm15542_vm1 }
0x24a7   :  { %v9264_v32 = vpack.c.bf16 %v8007_v54, %v8003_v29  ;;  %v9266_v50 = vpack.c.bf16 %v8006_v30, %v8002_v8  ;;  %vm15553_vm12 = vmmov %vm15543_vm0  ;;  %v15563_v54 = vld [vmem:[#allocation10_spill] sm:$0xff]  ;;  %v15568_v30 = vld [vmem:[#allocation13_spill] sm:$0xff] }
0x24a8   :  { %v15567_v29 = vld [vmem:[#allocation6_spill] sm:$0xff] }
0x24a9   :  { %v9839_v21 = vpop.permute.xlu1 %9838  ;;  %v7989_v48 = vpop.permute.xlu0 %7988 }
0x24aa   :  { %v9840_v6 = vunpack.i.l.bf16 %v9839_v21  ;;  %v9841_v25 = vunpack.i.h.bf16 %v9839_v21  ;;  %v8011_v49 = vsel %vm15538_vm6, %v7987_v60, %v7989_v48  ;;  %vm15555_vm6 = vmmov %vm15543_vm0 }
0x24ad   :  { %v9844_v14 = vpop.permute.xlu1 %9843  ;;  %v7993_v2 = vpop.permute.xlu0 %7992 }
0x24ae   :  { %v9846_v62 = vunpack.i.h.bf16 %v9844_v14  ;;  %v9845_v1 = vunpack.i.l.bf16 %v9844_v14 }
0x24b0   :  { %v7996_v5 = vsel %vm15528_vm2, %v9846_v62, %v9850_v56  ;;  %v7994_v45 = vsel %vm15529_vm15, %v9840_v6, %v9845_v1  ;;  %v7995_v10 = vsel %vm15533_vm3, %v9845_v1, %v9846_v62  ;;  %vm15544_vm2 = vmmov %vm15542_vm1  ;;  %vm15549_vm3 = vcmask 293888   ;;  %v8610_v1 = vld [vmem:[%s14682_s9 + $0x80] sm:$0xff]  ;;  %v8611_v6 = vld [vmem:[%s14682_s9 + $0x88] sm:$0xff] }
0x24b1   :  { %v9854_v34 = vpop.permute.xlu1 %9853  ;;  %vm15545_vm15 = vmmov %vm15543_vm0 }
0x24b2   :  { %v9856_v40 = vunpack.i.h.bf16 %v9854_v34  ;;  %v9855_v0 = vunpack.i.l.bf16 %v9854_v34  ;;  %vm15551_vm4 = vmmov %vm15549_vm3 }
0x24b4   :  { %v8000_v9 = vsel %vm15531_vm14, %v9856_v40, %v9860_v41  ;;  %v7998_v35 = vsel %vm15532_vm8, %v9841_v25, %v9855_v0  ;;  %v7999_v53 = vsel %vm15534_vm5, %v9855_v0, %v9856_v40  ;;  %vm15547_vm14 = vmmov %vm15542_vm1 }
0x24b5   :  { %v9262_v59 = vpack.c.bf16 %v7998_v35, %v7994_v45  ;;  %v9270_v19 = vpack.c.bf16 %v8000_v9, %v7996_v5  ;;  %v9869_v7 = vpop.permute.xlu1 %9868  ;;  %v9260_v20 = vpack.c.bf16 %v7999_v53, %v7995_v10  ;;  %vm15548_vm8 = vmmov %vm15543_vm0  ;;  %v15562_v5 = vld [vmem:[#allocation20_spill] sm:$0xff]  ;;  %v15565_v10 = vld [vmem:[#allocation18_spill] sm:$0xff] }
0x24b6   :  { %v9871_v22 = vunpack.i.h.bf16 %v9869_v7  ;;  %v9870_v33 = vunpack.i.l.bf16 %v9869_v7  ;;  %vm15550_vm5 = vmmov %vm15543_vm0 }
0x24b7   :  { %9261 = vmatprep.subr.bf16.mxu1 %v9260_v20  ;;  %9271 = vmatpush1.bf16.msra.mxu0 %v9270_v19 }
0x24b8   :  { %9263 = vmatpush1.bf16.msra.mxu1 %v9262_v59  ;;  %v8004_v55 = vsel %vm15539_vm11, %v9866_v58, %v9870_v33  ;;  %v8005_v26 = vsel %vm15541_vm7, %v9870_v33, %v9871_v22  ;;  %vm15556_vm11 = vcmask 31744   ;;  %v15566_v59 = vld [vmem:[#allocation11_spill] sm:$0xff] }
0x24b9   :  { %v9879_v17 = vpop.permute.xlu1 %9878  ;;  %9265 = vmatprep.subr.bf16.mxu1 %v9264_v32  ;;  %vm15558_vm7 = vmmov %vm15556_vm11  ;;  %v15569_v22 = vld [vmem:[#allocation27_spill] sm:$0xff] }
0x24ba   :  { %v9881_v23 = vunpack.i.h.bf16 %v9879_v17  ;;  %v9880_v44 = vunpack.i.l.bf16 %v9879_v17 }
0x24bc   :  { %v8008_v15 = vsel %vm15540_vm13, %v9876_v52, %v9880_v44  ;;  %9267 = vmatpush1.bf16.msra.mxu1 %v9266_v50  ;;  %v8009_v16 = vsel %vm15542_vm1, %v9880_v44, %v9881_v23  ;;  %vm15557_vm13 = vmmov %vm15543_vm0 }
0x24bd   :  { %v9274_v57 = vpack.c.bf16 %v8008_v15, %v8004_v55  ;;  %v7991_v18 = vpop.permute.xlu1 %7990  ;;  %8602 = vmatprep.subr.msk.mxu1 %vm15543_vm0, %v8011_v49  ;;  %v9272_v11 = vpack.c.bf16 %v8009_v16, %v8005_v26  ;;  %vm15559_vm1 = vmmov %vm15558_vm7 }
0x24be   :  { %v8013_v24 = vsel %vm15544_vm2, %v7991_v18, %v7993_v2  ;;  %v8012_v51 = vsel %vm15547_vm14, %v7989_v48, %v7991_v18  ;;  %v8188_v47 = vpop.permute.xlu0 %8187  ;;  %vm15560_vm0 = vmmov %vm15559_vm1 }
0x24bf   :  { %9273 = vmatprep.subr.bf16.mxu0 %v9272_v11 }
0x24c0   :  { %9275 = vmatpush1.bf16.msra.mxu0 %v9274_v57 }
0x24c1   :  { %v7985_v31 = vpop.permute.xlu1 %7984  ;;  %8605 = vmatprep.subr.msk.mxu0 %vm15545_vm15, %v8013_v24 }
0x24c2   :  { %v8010_v28 = vsel %vm15546_vm10, %v7985_v31, %v7987_v60 }
0x24c3   :  { %8603 = vmatpush1.msk.msra.mxu1 %vm15548_vm8, %v8010_v28 }
0x24c4   :  { %8604 = vmatmul.mubr.msk.f32.vlgmr.msra.gmra.mrb[54].mxu1 %vm15549_vm3, %v8601_v63  ;;  %8606 = vmatpush1.msk.msra.mxu0 %vm15550_vm5, %v8012_v51 }
0x24c5   :  { %8607 = vmatmul.mubr.msk.f32.vlgmr.msra.gmra.mrb[62].mxu0 %vm15551_vm4, %v8601_v63  ;;  %8294 = vmatprep.mubr.f32.mxu1 %v15552_v46 }
0x24c6   :  { %8371 = vmatprep.mubr.f32.mxu0 %v15552_v46 }
0x24d2   :  { %v8199_v41 = vpop.permute.xlu1 %8198 }
0x2597   :  { %v8107_v43 = vpop.f32.mrb[54].mxu1 }
0x2598   :  { %v8190_v56 = vmul.f32 %v8188_v47, %v8107_v43  ;;  %v8109_v38 = vpop.f32.mrb[55].mxu1  ;;  %v8178_v12 = vpop.f32.mrb[62].mxu0 }
0x2599   :  { %v8191_v27 = vmul.f32 %v8188_v47, %v8109_v38  ;;  %v8192_v4 = vmul.f32 %v8188_v47, %v8178_v12  ;;  %v8180_v3 = vpop.f32.mrb[63].mxu0 }
0x259a   :  { %v8201_v60 = vadd.f32 %v8199_v41, %v8190_v56  ;;  %v8193_v61 = vmul.f32 %v8188_v47, %v8180_v3 }
0x259b   :  { %v8202_v21 = vadd.f32 %v8199_v41, %v8191_v27  ;;  %v8203_v36 = vadd.f32 %v8199_v41, %v8192_v4 }
0x259c   :  { %v8204_v14 = vadd.f32 %v8199_v41, %v8193_v61  ;;  %v8205_v37 = vmax.f32 %v8201_v60, 0.0 }
0x259d   :  { %v8206_v52 = vmax.f32 %v8202_v21, 0.0  ;;  %v8207_v58 = vmax.f32 %v8203_v36, 0.0 }
0x259e   :  { %v8208_v62 = vmax.f32 %v8204_v14, 0.0 }
0x259f   :  { %8612 = vmatprep.subr.msk.mxu1 %vm15553_vm12, %v8206_v52 }
0x25a0   :  { %8613 = vmatpush1.msk.msra.mxu1 %vm15554_vm9, %v8205_v37  ;;  %8616 = vmatprep.subr.msk.mxu0 %vm15555_vm6, %v8208_v62 }
0x25a1   :  { %8614 = vmatmul.mubr.msk.f32.vlgmr.msra.gmra.mrb[56].mxu1 %vm15556_vm11, %v8610_v1  ;;  %8617 = vmatpush1.msk.msra.mxu0 %vm15557_vm13, %v8207_v58 }
0x25a2   :  { %8618 = vmatmul.mubr.msk.f32.vlgmr.msra.gmra.mrb[64].mxu0 %vm15558_vm7, %v8610_v1  ;;  %8300 = vmatprep.mubr.f32.mxu1 %v15552_v46 }
0x25a3   :  { %8377 = vmatprep.mubr.f32.mxu0 %v15552_v46 }
0x25a5   :  { %8615 = vmatmul.mubr.msk.f32.gmra.mrb[58].mxu1 %vm15559_vm1, %v8611_v6 }
0x25a6   :  { %8619 = vmatmul.mubr.msk.f32.gmra.mrb[66].mxu0 %vm15560_vm0, %v8611_v6 }
0x2674   :  { %v8296_v34 = vpop.f32.mrb[56].mxu1 }
0x2675   :  { %v8297_v25 = vadd.f32 %v8296_v34, %v15561_v42  ;;  %v8298_v40 = vpop.f32.mrb[57].mxu1  ;;  %v8373_v0 = vpop.f32.mrb[64].mxu0 }
0x2676   :  { %v8299_v45 = vadd.f32 %v8298_v40, %v15562_v5  ;;  %v8374_v9 = vadd.f32 %v8373_v0, %v15563_v54  ;;  %v8375_v35 = vpop.f32.mrb[65].mxu0 }
0x2677   :  { %8384 = vst [vmem:[%s15564_s7] sm:$0xff] %v8297_v25  ;;  %v8376_v53 = vadd.f32 %v8375_v35, %v15565_v10 }
0x2678   :  { %8385 = vst [vmem:[%s15564_s7 + $0x8] sm:$0xff] %v8299_v45  ;;  %8386 = vst [vmem:[%s15564_s7 + $0x10] sm:$0xff] %v8374_v9  ;;  %v8302_v13 = vpop.f32.mrb[58].mxu1 }
0x2679   :  { %8387 = vst [vmem:[%s15564_s7 + $0x18] sm:$0xff] %v8376_v53  ;;  %v8303_v19 = vadd.f32 %v8302_v13, %v15566_v59  ;;  %v8304_v7 = vpop.f32.mrb[59].mxu1  ;;  %v8379_v20 = vpop.f32.mrb[66].mxu0 }
0x267a   :  { %v8305_v39 = vadd.f32 %v8304_v7, %v15567_v29  ;;  %v8380_v32 = vadd.f32 %v8379_v20, %v15568_v30  ;;  %v8381_v48 = vpop.f32.mrb[67].mxu0 }
0x267b   :  { %8388 = vst [vmem:[%s15564_s7 + $0x20] sm:$0xff] %v8303_v19  ;;  %v8382_v33 = vadd.f32 %v8381_v48, %v15569_v22 }
0x267c   :  { %8389 = vst [vmem:[%s15564_s7 + $0x28] sm:$0xff] %v8305_v39  ;;  %8390 = vst [vmem:[%s15564_s7 + $0x30] sm:$0xff] %v8380_v32 }
0x267d   :  { %8391 = vst [vmem:[%s15564_s7 + $0x38] sm:$0xff] %v8382_v33 }

</bundles_post_ra>
